<compile_context>
chip_gen: v7x
topology: tpu7x:2x2x1
jax: 0.10.0
libtpu: 0.0.40
codegen_flags: <defaults>
</compile_context>

<pallas_src>
import functools

import jax
import jax.numpy as jnp
from jax import lax
from jax.experimental import pallas as pl
from jax.experimental.pallas import tpu as pltpu


# ----------------------------------------------------------------------------
# The fused kernel
# ----------------------------------------------------------------------------

def _tcre_unit_kernel(
    x_ref,                                  # (M, D)   batch-major rows (b*L + l)
    wg_ref, bg_ref,                         # (6, D, H), (6, 1, H)
    wpe_ref, bpe_ref,                       # (H, 3H), (1, 3H)   c_e -> [q1 | k1 | v2]
    wpr_ref, bpr_ref,                       # (H, 3H), (1, 3H)   c_r -> [q2 | k2 | v1]
    wo1_ref, bo1_ref, wo2_ref, bo2_ref,     # (H, H), (1, H)  out-proj of att1/att2
    w3a_ref, w3b_ref, b3_ref,               # it3 split by K:  (H, H), (H, H), (1, H)
    w4a_ref, w4b_ref, b4_ref,               # it4 split by K
    d1_ref, d2_ref,                         # (1, 2H)  weight[:, 0] - weight[:, 1]
    oe_ref, or_ref, fsum_ref,               # (M, 4H), (M, 4H), (1, 1)
    *, L, B, num_heads):
  H = w3a_ref.shape[0]
  hd = H // num_heads
  scale = 1.0 / float(hd) ** 0.5

  x = x_ref[...]                            # (M, D)

  # --- gate path: six aligned (M, H) matmuls from host-pre-sliced weights ----
  def gate(i, act):
    return act(jnp.dot(x, wg_ref[i], preferred_element_type=jnp.float32)
               + bg_ref[i])

  c_e = gate(0, jnp.tanh)
  g_e_adapt = gate(1, jax.nn.sigmoid)
  g_e_inter = gate(2, jax.nn.sigmoid)
  c_r = gate(3, jnp.tanh)
  g_r_adapt = gate(4, jax.nn.sigmoid)
  g_r_inter = gate(5, jax.nn.sigmoid)

  h_e_adapt = g_e_adapt * c_e
  h_r_adapt = g_r_adapt * c_r
  h_ie_gate = g_e_inter * h_r_adapt         # h_inter_e_by_gate
  h_ir_gate = g_r_inter * h_e_adapt         # h_inter_r_by_gate

  # --- packed q/k/v projections: one wide (M, 3H) matmul per source tensor ---
  proj_e = (jnp.dot(c_e, wpe_ref[...], preferred_element_type=jnp.float32)
            + bpe_ref[...])                 # [q1 | k1 | v2]
  proj_r = (jnp.dot(c_r, wpr_ref[...], preferred_element_type=jnp.float32)
            + bpr_ref[...])                 # [q2 | k2 | v1]

  # --- multi-head attention: every (batch, head) slice in this single step ---
  def mha(pqk, pv, wo_ref, bo_ref):
    outs = []
    for b in range(B):                      # static unroll, B*num_heads tiny
      r0 = b * L
      heads = []
      for h in range(num_heads):
        q = pqk[r0:r0 + L, h * hd:(h + 1) * hd] * scale
        k = pqk[r0:r0 + L, H + h * hd:H + (h + 1) * hd]
        v = pv[r0:r0 + L, 2 * H + h * hd:2 * H + (h + 1) * hd]
        # q @ k^T without an in-kernel transpose.
        s = lax.dot_general(q, k, (((1,), (1,)), ((), ())),
                            preferred_element_type=jnp.float32)   # (L, L)
        s = s - jnp.max(s, axis=-1, keepdims=True)
        p = jnp.exp(s)
        p = p * pl.reciprocal(jnp.sum(p, axis=-1, keepdims=True), approx=True)
        heads.append(jnp.dot(p, v, preferred_element_type=jnp.float32))
      outs.append(jnp.concatenate(heads, axis=-1))                # (L, H)
    att = jnp.concatenate(outs, axis=0)                           # (M, H)
    return (jnp.dot(att, wo_ref[...], preferred_element_type=jnp.float32)
            + bo_ref[...])

  att_e = mha(proj_e, proj_r, wo1_ref, bo1_ref)   # att1(c_e, c_e, c_r)
  att_r = mha(proj_r, proj_e, wo2_ref, bo2_ref)   # att2(c_r, c_r, c_e)

  # --- it3/it4 fused with their concats: cat(a, b) @ W^T == a @ Wa + b @ Wb ---
  h_inter_e = (jnp.dot(h_ie_gate, w3a_ref[...], preferred_element_type=jnp.float32)
               + jnp.dot(att_e, w3b_ref[...], preferred_element_type=jnp.float32)
               + b3_ref[...])
  h_inter_r = (jnp.dot(h_ir_gate, w4a_ref[...], preferred_element_type=jnp.float32)
               + jnp.dot(att_r, w4b_ref[...], preferred_element_type=jnp.float32)
               + b4_ref[...])

  i_e = jnp.concatenate([h_e_adapt, h_inter_e], axis=-1)          # (M, 2H)
  i_r = jnp.concatenate([h_r_adapt, h_inter_r], axis=-1)

  # --- 2-way softmax mixing: softmax([l0, l1])[..., 0] == sigmoid(l0 - l1) ---
  f1 = jax.nn.sigmoid(jnp.sum(i_e * d1_ref[...], axis=-1, keepdims=True))
  f3 = jax.nn.sigmoid(jnp.sum(i_r * d2_ref[...], axis=-1, keepdims=True))
  f2 = 1.0 - f1
  f4 = 1.0 - f3

  h_e = f1 * i_e + f2 * i_r
  h_r = f3 * i_e + f4 * i_r

  oe_ref[...] = jnp.concatenate([i_e, h_e], axis=-1)              # (M, 4H) lane-dense
  or_ref[...] = jnp.concatenate([i_r, h_r], axis=-1)
  # (1,1) VMEM scalar output (kept in VMEM for robust lowering of the
  # vector->scalar reduction; the single padded-tile store is negligible).
  fsum_ref[...] = jnp.sum(f1 * f4).reshape(1, 1)


# ----------------------------------------------------------------------------
# One-time host-side weight repacking (pre-transpose / pre-slice)
# ----------------------------------------------------------------------------

def pack_params(p):
  """PyTorch-layout params -> kernel-layout params (done once, outside jit)."""
  H = p["it3_w"].shape[0]
  w1, b1 = p["it1_w"], p["it1_b"]           # (3H, D), (3H,)
  w2, b2 = p["it2_w"], p["it2_b"]
  pk = {}
  # gates: pre-sliced + pre-transposed -> (6, D, H) / (6, 1, H)
  pk["w_gate"] = jnp.stack([w1[:H].T, w1[H:2 * H].T, w1[2 * H:].T,
                            w2[:H].T, w2[H:2 * H].T, w2[2 * H:].T], axis=0)
  pk["b_gate"] = jnp.stack([b1[:H], b1[H:2 * H], b1[2 * H:],
                            b2[:H], b2[H:2 * H], b2[2 * H:]], axis=0)[:, None, :]
  # attention in-proj (PyTorch packs rows [q; k; v] in in_proj_weight (3H, H)).
  a1w, a1b = p["att1_in_w"], p["att1_in_b"]
  a2w, a2b = p["att2_in_w"], p["att2_in_b"]
  # proj_e = c_e @ [Wq1^T | Wk1^T | Wv2^T]   (att1 uses c_e for q,k; att2 uses c_e for v)
  pk["w_proj_e"] = jnp.concatenate([a1w[:H].T, a1w[H:2 * H].T, a2w[2 * H:].T], axis=1)
  pk["b_proj_e"] = jnp.concatenate([a1b[:H], a1b[H:2 * H], a2b[2 * H:]])[None, :]
  # proj_r = c_r @ [Wq2^T | Wk2^T | Wv1^T]
  pk["w_proj_r"] = jnp.concatenate([a2w[:H].T, a2w[H:2 * H].T, a1w[2 * H:].T], axis=1)
  pk["b_proj_r"] = jnp.concatenate([a2b[:H], a2b[H:2 * H], a1b[2 * H:]])[None, :]
  # attention out-proj, pre-transposed
  pk["w_out1"] = p["att1_out_w"].T
  pk["b_out1"] = p["att1_out_b"][None, :]
  pk["w_out2"] = p["att2_out_w"].T
  pk["b_out2"] = p["att2_out_b"][None, :]
  # it3 / it4 split by K (so the concat with the attention output is fused away)
  pk["w3a"] = p["it3_w"][:, :H].T
  pk["w3b"] = p["it3_w"][:, H:].T
  pk["b3"] = p["it3_b"][None, :]
  pk["w4a"] = p["it4_w"][:, :H].T
  pk["w4b"] = p["it4_w"][:, H:].T
  pk["b4"] = p["it4_b"][None, :]
  # 2-way softmax -> sigmoid(l0 - l1): precompute the logit-difference vectors
  pk["d1"] = (p["weight1"][:, 0] - p["weight1"][:, 1])[None, :]
  pk["d2"] = (p["weight2"][:, 0] - p["weight2"][:, 1])[None, :]
  return pk


# ----------------------------------------------------------------------------
# Forward wrapper (single pallas_call)
# ----------------------------------------------------------------------------

@functools.partial(jax.jit, static_argnames=("num_heads",))
def tcre_unit_forward(packed, x, num_heads=2):
  """TCRE_unit.forward.  x: (L, B, input_size) seq-first, like the PyTorch model."""
  L, B, D = x.shape
  H = packed["w3a"].shape[0]
  M = L * B
  # batch-major rows inside the kernel -> contiguous per-batch sublane slices
  x2 = jnp.transpose(x, (1, 0, 2)).reshape(M, D)

  kernel = functools.partial(_tcre_unit_kernel, L=L, B=B, num_heads=num_heads)
  out_e, out_r, fsum = pl.pallas_call(
      kernel,
      out_shape=(jax.ShapeDtypeStruct((M, 4 * H), jnp.float32),
                 jax.ShapeDtypeStruct((M, 4 * H), jnp.float32),
                 jax.ShapeDtypeStruct((1, 1), jnp.float32)),
      compiler_params=pltpu.CompilerParams(vmem_limit_bytes=32 * 1024 * 1024),
  )(x2,
    packed["w_gate"], packed["b_gate"],
    packed["w_proj_e"], packed["b_proj_e"],
    packed["w_proj_r"], packed["b_proj_r"],
    packed["w_out1"], packed["b_out1"],
    packed["w_out2"], packed["b_out2"],
    packed["w3a"], packed["w3b"], packed["b3"],
    packed["w4a"], packed["w4b"], packed["b4"],
    packed["d1"], packed["d2"])

  h_e = jnp.transpose(out_e.reshape(B, L, 4 * H), (1, 0, 2))
  h_r = jnp.transpose(out_r.reshape(B, L, 4 * H), (1, 0, 2))
  loss_f = jnp.abs(jnp.log(fsum[0, 0]) / (L * B))
  return h_e, h_r, loss_f


# ----------------------------------------------------------------------------
# Deterministic parameter construction (PyTorch layout)
# ----------------------------------------------------------------------------

def init_params(key, input_size, hidden):
  H = hidden
  ks = jax.random.split(key, 8)

  def lin(k, out_d, in_d, scale=0.05):
    kw, kb = jax.random.split(k)
    return (jax.random.normal(kw, (out_d, in_d), jnp.float32) * scale,
            jax.random.normal(kb, (out_d,), jnp.float32) * scale)

  p = {}
  p["it1_w"], p["it1_b"] = lin(ks[0], 3 * H, input_size)
  p["it2_w"], p["it2_b"] = lin(ks[1], 3 * H, input_size)
  p["it3_w"], p["it3_b"] = lin(ks[2], H, 2 * H)
  p["it4_w"], p["it4_b"] = lin(ks[3], H, 2 * H)
  # nn.MultiheadAttention(H, 2): in_proj (3H, H) packed [q; k; v], out_proj (H, H)
  p["att1_in_w"], p["att1_in_b"] = lin(ks[4], 3 * H, H)
  p["att1_out_w"], p["att1_out_b"] = lin(ks[5], H, H)
  p["att2_in_w"], p["att2_in_b"] = lin(ks[6], 3 * H, H)
  p["att2_out_w"], p["att2_out_b"] = lin(ks[7], H, H)
  # module __init__ explicitly sets these to ones
  p["weight1"] = jnp.ones((2 * H, 2), jnp.float32)
  p["weight2"] = jnp.ones((2 * H, 2), jnp.float32)
  return p


if __name__ == "__main__":
  # hidden_size = 300 is forced by the module's hard-coded nn.MultiheadAttention(300, 2).
  L, B = 8, 2
  INPUT_SIZE = 32
  HIDDEN = 300
  HEADS = 2

  key = jax.random.PRNGKey(0)
  k_param, k_x = jax.random.split(key)
  params = init_params(k_param, INPUT_SIZE, HIDDEN)
  packed = pack_params(params)              # one-time host-side repack

  x = jax.random.normal(k_x, (L, B, INPUT_SIZE), jnp.float32)

  h_e, h_r, loss_f = tcre_unit_forward(packed, x, num_heads=HEADS)
  jax.block_until_ready((h_e, h_r, loss_f))

  assert h_e.shape == (L, B, 4 * HIDDEN)
  assert h_r.shape == (L, B, 4 * HIDDEN)
  assert loss_f.shape == ()
  assert bool(jnp.all(jnp.isfinite(h_e))) and bool(jnp.isfinite(loss_f))
  print("KERNEL_OK")
</pallas_src>

<mosaic_0001>
module attributes {stable_mosaic.version = 11 : i64} {
  func.func @_tcre_unit_kernel(%arg0: memref<16x32xf32, #tpu.memory_space<vmem>>, %arg1: memref<6x32x300xf32, #tpu.memory_space<vmem>>, %arg2: memref<6x1x300xf32, #tpu.memory_space<vmem>>, %arg3: memref<300x900xf32, #tpu.memory_space<vmem>>, %arg4: memref<1x900xf32, #tpu.memory_space<vmem>>, %arg5: memref<300x900xf32, #tpu.memory_space<vmem>>, %arg6: memref<1x900xf32, #tpu.memory_space<vmem>>, %arg7: memref<300x300xf32, #tpu.memory_space<vmem>>, %arg8: memref<1x300xf32, #tpu.memory_space<vmem>>, %arg9: memref<300x300xf32, #tpu.memory_space<vmem>>, %arg10: memref<1x300xf32, #tpu.memory_space<vmem>>, %arg11: memref<300x300xf32, #tpu.memory_space<vmem>>, %arg12: memref<300x300xf32, #tpu.memory_space<vmem>>, %arg13: memref<1x300xf32, #tpu.memory_space<vmem>>, %arg14: memref<300x300xf32, #tpu.memory_space<vmem>>, %arg15: memref<300x300xf32, #tpu.memory_space<vmem>>, %arg16: memref<1x300xf32, #tpu.memory_space<vmem>>, %arg17: memref<1x600xf32, #tpu.memory_space<vmem>>, %arg18: memref<1x600xf32, #tpu.memory_space<vmem>>, %arg19: memref<16x1200xf32, #tpu.memory_space<vmem>>, %arg20: memref<16x1200xf32, #tpu.memory_space<vmem>>, %arg21: memref<1x1xf32, #tpu.memory_space<vmem>>) attributes {dimension_semantics = [], scalar_prefetch = 0 : i64, scratch_operands = 0 : i64, tpu.core_type = #tpu.core_type<tc>} {
    %c0 = arith.constant 0 : index
    %c0_0 = arith.constant 0 : index
    %0 = vector.load %arg0[%c0, %c0_0] : memref<16x32xf32, #tpu.memory_space<vmem>>, vector<16x32xf32>
    %c0_1 = arith.constant 0 : index
    %c0_2 = arith.constant 0 : index
    %c0_3 = arith.constant 0 : index
    %1 = vector.load %arg1[%c0_1, %c0_2, %c0_3] : memref<6x32x300xf32, #tpu.memory_space<vmem>>, vector<1x32x300xf32>
    %2 = vector.shape_cast %1 : vector<1x32x300xf32> to vector<32x300xf32>
    %cst = arith.constant dense<0.000000e+00> : vector<16x300xf32>
    %3 = tpu.matmul %0, %2, %cst {dimension_numbers = #tpu.dot_dimension_numbers<[1], [0], [0], [1], [0, 0, 1, 1], [], []>} : vector<16x32xf32>, vector<32x300xf32>, vector<16x300xf32> -> vector<16x300xf32>
    %c0_4 = arith.constant 0 : index
    %c0_5 = arith.constant 0 : index
    %c0_6 = arith.constant 0 : index
    %4 = vector.load %arg2[%c0_4, %c0_5, %c0_6] : memref<6x1x300xf32, #tpu.memory_space<vmem>>, vector<1x1x300xf32>
    %5 = vector.shape_cast %4 : vector<1x1x300xf32> to vector<1x300xf32>
    %6 = vector.broadcast %5 : vector<1x300xf32> to vector<16x300xf32>
    %7 = arith.addf %3, %6 : vector<16x300xf32>
    %8 = math.tanh %7 : vector<16x300xf32>
    %c1 = arith.constant 1 : index
    %c0_7 = arith.constant 0 : index
    %c0_8 = arith.constant 0 : index
    %9 = vector.load %arg1[%c1, %c0_7, %c0_8] : memref<6x32x300xf32, #tpu.memory_space<vmem>>, vector<1x32x300xf32>
    %10 = vector.shape_cast %9 : vector<1x32x300xf32> to vector<32x300xf32>
    %cst_9 = arith.constant dense<0.000000e+00> : vector<16x300xf32>
    %11 = tpu.matmul %0, %10, %cst_9 {dimension_numbers = #tpu.dot_dimension_numbers<[1], [0], [0], [1], [0, 0, 1, 1], [], []>} : vector<16x32xf32>, vector<32x300xf32>, vector<16x300xf32> -> vector<16x300xf32>
    %c1_10 = arith.constant 1 : index
    %c0_11 = arith.constant 0 : index
    %c0_12 = arith.constant 0 : index
    %12 = vector.load %arg2[%c1_10, %c0_11, %c0_12] : memref<6x1x300xf32, #tpu.memory_space<vmem>>, vector<1x1x300xf32>
    %13 = vector.shape_cast %12 : vector<1x1x300xf32> to vector<1x300xf32>
    %14 = vector.broadcast %13 : vector<1x300xf32> to vector<16x300xf32>
    %15 = arith.addf %11, %14 : vector<16x300xf32>
    %16 = arith.negf %15 : vector<16x300xf32>
    %17 = math.exp %16 : vector<16x300xf32>
    %cst_13 = arith.constant 1.000000e+00 : f32
    %18 = vector.broadcast %cst_13 : f32 to vector<16x300xf32>
    %19 = arith.addf %18, %17 : vector<16x300xf32>
    %20 = arith.divf %18, %19 : vector<16x300xf32>
    %c2 = arith.constant 2 : index
    %c0_14 = arith.constant 0 : index
    %c0_15 = arith.constant 0 : index
    %21 = vector.load %arg1[%c2, %c0_14, %c0_15] : memref<6x32x300xf32, #tpu.memory_space<vmem>>, vector<1x32x300xf32>
    %22 = vector.shape_cast %21 : vector<1x32x300xf32> to vector<32x300xf32>
    %cst_16 = arith.constant dense<0.000000e+00> : vector<16x300xf32>
    %23 = tpu.matmul %0, %22, %cst_16 {dimension_numbers = #tpu.dot_dimension_numbers<[1], [0], [0], [1], [0, 0, 1, 1], [], []>} : vector<16x32xf32>, vector<32x300xf32>, vector<16x300xf32> -> vector<16x300xf32>
    %c2_17 = arith.constant 2 : index
    %c0_18 = arith.constant 0 : index
    %c0_19 = arith.constant 0 : index
    %24 = vector.load %arg2[%c2_17, %c0_18, %c0_19] : memref<6x1x300xf32, #tpu.memory_space<vmem>>, vector<1x1x300xf32>
    %25 = vector.shape_cast %24 : vector<1x1x300xf32> to vector<1x300xf32>
    %26 = vector.broadcast %25 : vector<1x300xf32> to vector<16x300xf32>
    %27 = arith.addf %23, %26 : vector<16x300xf32>
    %28 = arith.negf %27 : vector<16x300xf32>
    %29 = math.exp %28 : vector<16x300xf32>
    %cst_20 = arith.constant 1.000000e+00 : f32
    %30 = vector.broadcast %cst_20 : f32 to vector<16x300xf32>
    %31 = arith.addf %30, %29 : vector<16x300xf32>
    %32 = arith.divf %30, %31 : vector<16x300xf32>
    %c3 = arith.constant 3 : index
    %c0_21 = arith.constant 0 : index
    %c0_22 = arith.constant 0 : index
    %33 = vector.load %arg1[%c3, %c0_21, %c0_22] : memref<6x32x300xf32, #tpu.memory_space<vmem>>, vector<1x32x300xf32>
    %34 = vector.shape_cast %33 : vector<1x32x300xf32> to vector<32x300xf32>
    %cst_23 = arith.constant dense<0.000000e+00> : vector<16x300xf32>
    %35 = tpu.matmul %0, %34, %cst_23 {dimension_numbers = #tpu.dot_dimension_numbers<[1], [0], [0], [1], [0, 0, 1, 1], [], []>} : vector<16x32xf32>, vector<32x300xf32>, vector<16x300xf32> -> vector<16x300xf32>
    %c3_24 = arith.constant 3 : index
    %c0_25 = arith.constant 0 : index
    %c0_26 = arith.constant 0 : index
    %36 = vector.load %arg2[%c3_24, %c0_25, %c0_26] : memref<6x1x300xf32, #tpu.memory_space<vmem>>, vector<1x1x300xf32>
    %37 = vector.shape_cast %36 : vector<1x1x300xf32> to vector<1x300xf32>
    %38 = vector.broadcast %37 : vector<1x300xf32> to vector<16x300xf32>
    %39 = arith.addf %35, %38 : vector<16x300xf32>
    %40 = math.tanh %39 : vector<16x300xf32>
    %c4 = arith.constant 4 : index
    %c0_27 = arith.constant 0 : index
    %c0_28 = arith.constant 0 : index
    %41 = vector.load %arg1[%c4, %c0_27, %c0_28] : memref<6x32x300xf32, #tpu.memory_space<vmem>>, vector<1x32x300xf32>
    %42 = vector.shape_cast %41 : vector<1x32x300xf32> to vector<32x300xf32>
    %cst_29 = arith.constant dense<0.000000e+00> : vector<16x300xf32>
    %43 = tpu.matmul %0, %42, %cst_29 {dimension_numbers = #tpu.dot_dimension_numbers<[1], [0], [0], [1], [0, 0, 1, 1], [], []>} : vector<16x32xf32>, vector<32x300xf32>, vector<16x300xf32> -> vector<16x300xf32>
    %c4_30 = arith.constant 4 : index
    %c0_31 = arith.constant 0 : index
    %c0_32 = arith.constant 0 : index
    %44 = vector.load %arg2[%c4_30, %c0_31, %c0_32] : memref<6x1x300xf32, #tpu.memory_space<vmem>>, vector<1x1x300xf32>
    %45 = vector.shape_cast %44 : vector<1x1x300xf32> to vector<1x300xf32>
    %46 = vector.broadcast %45 : vector<1x300xf32> to vector<16x300xf32>
    %47 = arith.addf %43, %46 : vector<16x300xf32>
    %48 = arith.negf %47 : vector<16x300xf32>
    %49 = math.exp %48 : vector<16x300xf32>
    %cst_33 = arith.constant 1.000000e+00 : f32
    %50 = vector.broadcast %cst_33 : f32 to vector<16x300xf32>
    %51 = arith.addf %50, %49 : vector<16x300xf32>
    %52 = arith.divf %50, %51 : vector<16x300xf32>
    %c5 = arith.constant 5 : index
    %c0_34 = arith.constant 0 : index
    %c0_35 = arith.constant 0 : index
    %53 = vector.load %arg1[%c5, %c0_34, %c0_35] : memref<6x32x300xf32, #tpu.memory_space<vmem>>, vector<1x32x300xf32>
    %54 = vector.shape_cast %53 : vector<1x32x300xf32> to vector<32x300xf32>
    %cst_36 = arith.constant dense<0.000000e+00> : vector<16x300xf32>
    %55 = tpu.matmul %0, %54, %cst_36 {dimension_numbers = #tpu.dot_dimension_numbers<[1], [0], [0], [1], [0, 0, 1, 1], [], []>} : vector<16x32xf32>, vector<32x300xf32>, vector<16x300xf32> -> vector<16x300xf32>
    %c5_37 = arith.constant 5 : index
    %c0_38 = arith.constant 0 : index
    %c0_39 = arith.constant 0 : index
    %56 = vector.load %arg2[%c5_37, %c0_38, %c0_39] : memref<6x1x300xf32, #tpu.memory_space<vmem>>, vector<1x1x300xf32>
    %57 = vector.shape_cast %56 : vector<1x1x300xf32> to vector<1x300xf32>
    %58 = vector.broadcast %57 : vector<1x300xf32> to vector<16x300xf32>
    %59 = arith.addf %55, %58 : vector<16x300xf32>
    %60 = arith.negf %59 : vector<16x300xf32>
    %61 = math.exp %60 : vector<16x300xf32>
    %cst_40 = arith.constant 1.000000e+00 : f32
    %62 = vector.broadcast %cst_40 : f32 to vector<16x300xf32>
    %63 = arith.addf %62, %61 : vector<16x300xf32>
    %64 = arith.divf %62, %63 : vector<16x300xf32>
    %65 = arith.mulf %20, %8 : vector<16x300xf32>
    %66 = arith.mulf %52, %40 : vector<16x300xf32>
    %67 = arith.mulf %32, %66 : vector<16x300xf32>
    %68 = arith.mulf %64, %65 : vector<16x300xf32>
    %c0_41 = arith.constant 0 : index
    %c0_42 = arith.constant 0 : index
    %69 = vector.load %arg3[%c0_41, %c0_42] : memref<300x900xf32, #tpu.memory_space<vmem>>, vector<300x900xf32>
    %cst_43 = arith.constant dense<0.000000e+00> : vector<16x900xf32>
    %70 = tpu.matmul %8, %69, %cst_43 {dimension_numbers = #tpu.dot_dimension_numbers<[1], [0], [0], [1], [0, 0, 1, 1], [], []>} : vector<16x300xf32>, vector<300x900xf32>, vector<16x900xf32> -> vector<16x900xf32>
    %c0_44 = arith.constant 0 : index
    %c0_45 = arith.constant 0 : index
    %71 = vector.load %arg4[%c0_44, %c0_45] : memref<1x900xf32, #tpu.memory_space<vmem>>, vector<1x900xf32>
    %72 = vector.broadcast %71 : vector<1x900xf32> to vector<16x900xf32>
    %73 = arith.addf %70, %72 : vector<16x900xf32>
    %c0_46 = arith.constant 0 : index
    %c0_47 = arith.constant 0 : index
    %74 = vector.load %arg5[%c0_46, %c0_47] : memref<300x900xf32, #tpu.memory_space<vmem>>, vector<300x900xf32>
    %cst_48 = arith.constant dense<0.000000e+00> : vector<16x900xf32>
    %75 = tpu.matmul %40, %74, %cst_48 {dimension_numbers = #tpu.dot_dimension_numbers<[1], [0], [0], [1], [0, 0, 1, 1], [], []>} : vector<16x300xf32>, vector<300x900xf32>, vector<16x900xf32> -> vector<16x900xf32>
    %c0_49 = arith.constant 0 : index
    %c0_50 = arith.constant 0 : index
    %76 = vector.load %arg6[%c0_49, %c0_50] : memref<1x900xf32, #tpu.memory_space<vmem>>, vector<1x900xf32>
    %77 = vector.broadcast %76 : vector<1x900xf32> to vector<16x900xf32>
    %78 = arith.addf %75, %77 : vector<16x900xf32>
    %79 = vector.extract_strided_slice %73 {offsets = [0, 0], sizes = [8, 150], strides = [1, 1]} : vector<16x900xf32> to vector<8x150xf32>
    %cst_51 = arith.constant 0.0816496611 : f32
    %80 = vector.broadcast %cst_51 : f32 to vector<8x150xf32>
    %81 = arith.mulf %79, %80 : vector<8x150xf32>
    %82 = vector.extract_strided_slice %73 {offsets = [0, 300], sizes = [8, 150], strides = [1, 1]} : vector<16x900xf32> to vector<8x150xf32>
    %83 = vector.extract_strided_slice %78 {offsets = [0, 600], sizes = [8, 150], strides = [1, 1]} : vector<16x900xf32> to vector<8x150xf32>
    %cst_52 = arith.constant dense<0.000000e+00> : vector<8x8xf32>
    %84 = tpu.matmul %81, %82, %cst_52 {dimension_numbers = #tpu.dot_dimension_numbers<[1], [1], [0], [0], [0, 0, 1, 0], [], []>} : vector<8x150xf32>, vector<8x150xf32>, vector<8x8xf32> -> vector<8x8xf32>
    %cst_53 = arith.constant dense<0xFF800000> : vector<8xf32>
    %85 = vector.multi_reduction <maximumf>, %84, %cst_53 [1] : vector<8x8xf32> to vector<8xf32>
    %86 = vector.shape_cast %85 : vector<8xf32> to vector<8x1xf32>
    %87 = vector.broadcast %86 : vector<8x1xf32> to vector<8x8xf32>
    %88 = arith.subf %84, %87 : vector<8x8xf32>
    %89 = math.exp %88 : vector<8x8xf32>
    %cst_54 = arith.constant dense<0.000000e+00> : vector<8xf32>
    %90 = vector.multi_reduction <add>, %89, %cst_54 [1] : vector<8x8xf32> to vector<8xf32>
    %91 = vector.shape_cast %90 : vector<8xf32> to vector<8x1xf32>
    %92 = tpu.reciprocal %91 {approx = true} : vector<8x1xf32> -> vector<8x1xf32>
    %93 = vector.broadcast %92 : vector<8x1xf32> to vector<8x8xf32>
    %94 = arith.mulf %89, %93 : vector<8x8xf32>
    %cst_55 = arith.constant dense<0.000000e+00> : vector<8x150xf32>
    %95 = tpu.matmul %94, %83, %cst_55 {dimension_numbers = #tpu.dot_dimension_numbers<[1], [0], [0], [1], [0, 0, 1, 1], [], []>} : vector<8x8xf32>, vector<8x150xf32>, vector<8x150xf32> -> vector<8x150xf32>
    %96 = vector.extract_strided_slice %73 {offsets = [0, 150], sizes = [8, 150], strides = [1, 1]} : vector<16x900xf32> to vector<8x150xf32>
    %cst_56 = arith.constant 0.0816496611 : f32
    %97 = vector.broadcast %cst_56 : f32 to vector<8x150xf32>
    %98 = arith.mulf %96, %97 : vector<8x150xf32>
    %99 = vector.extract_strided_slice %73 {offsets = [0, 450], sizes = [8, 150], strides = [1, 1]} : vector<16x900xf32> to vector<8x150xf32>
    %100 = vector.extract_strided_slice %78 {offsets = [0, 750], sizes = [8, 150], strides = [1, 1]} : vector<16x900xf32> to vector<8x150xf32>
    %cst_57 = arith.constant dense<0.000000e+00> : vector<8x8xf32>
    %101 = tpu.matmul %98, %99, %cst_57 {dimension_numbers = #tpu.dot_dimension_numbers<[1], [1], [0], [0], [0, 0, 1, 0], [], []>} : vector<8x150xf32>, vector<8x150xf32>, vector<8x8xf32> -> vector<8x8xf32>
    %cst_58 = arith.constant dense<0xFF800000> : vector<8xf32>
    %102 = vector.multi_reduction <maximumf>, %101, %cst_58 [1] : vector<8x8xf32> to vector<8xf32>
    %103 = vector.shape_cast %102 : vector<8xf32> to vector<8x1xf32>
    %104 = vector.broadcast %103 : vector<8x1xf32> to vector<8x8xf32>
    %105 = arith.subf %101, %104 : vector<8x8xf32>
    %106 = math.exp %105 : vector<8x8xf32>
    %cst_59 = arith.constant dense<0.000000e+00> : vector<8xf32>
    %107 = vector.multi_reduction <add>, %106, %cst_59 [1] : vector<8x8xf32> to vector<8xf32>
    %108 = vector.shape_cast %107 : vector<8xf32> to vector<8x1xf32>
    %109 = tpu.reciprocal %108 {approx = true} : vector<8x1xf32> -> vector<8x1xf32>
    %110 = vector.broadcast %109 : vector<8x1xf32> to vector<8x8xf32>
    %111 = arith.mulf %106, %110 : vector<8x8xf32>
    %cst_60 = arith.constant dense<0.000000e+00> : vector<8x150xf32>
    %112 = tpu.matmul %111, %100, %cst_60 {dimension_numbers = #tpu.dot_dimension_numbers<[1], [0], [0], [1], [0, 0, 1, 1], [], []>} : vector<8x8xf32>, vector<8x150xf32>, vector<8x150xf32> -> vector<8x150xf32>
    %113 = tpu.concatenate %95, %112 in 1 : vector<8x150xf32>, vector<8x150xf32> -> vector<8x300xf32>
    %114 = vector.extract_strided_slice %73 {offsets = [8, 0], sizes = [8, 150], strides = [1, 1]} : vector<16x900xf32> to vector<8x150xf32>
    %cst_61 = arith.constant 0.0816496611 : f32
    %115 = vector.broadcast %cst_61 : f32 to vector<8x150xf32>
    %116 = arith.mulf %114, %115 : vector<8x150xf32>
    %117 = vector.extract_strided_slice %73 {offsets = [8, 300], sizes = [8, 150], strides = [1, 1]} : vector<16x900xf32> to vector<8x150xf32>
    %118 = vector.extract_strided_slice %78 {offsets = [8, 600], sizes = [8, 150], strides = [1, 1]} : vector<16x900xf32> to vector<8x150xf32>
    %cst_62 = arith.constant dense<0.000000e+00> : vector<8x8xf32>
    %119 = tpu.matmul %116, %117, %cst_62 {dimension_numbers = #tpu.dot_dimension_numbers<[1], [1], [0], [0], [0, 0, 1, 0], [], []>} : vector<8x150xf32>, vector<8x150xf32>, vector<8x8xf32> -> vector<8x8xf32>
    %cst_63 = arith.constant dense<0xFF800000> : vector<8xf32>
    %120 = vector.multi_reduction <maximumf>, %119, %cst_63 [1] : vector<8x8xf32> to vector<8xf32>
    %121 = vector.shape_cast %120 : vector<8xf32> to vector<8x1xf32>
    %122 = vector.broadcast %121 : vector<8x1xf32> to vector<8x8xf32>
    %123 = arith.subf %119, %122 : vector<8x8xf32>
    %124 = math.exp %123 : vector<8x8xf32>
    %cst_64 = arith.constant dense<0.000000e+00> : vector<8xf32>
    %125 = vector.multi_reduction <add>, %124, %cst_64 [1] : vector<8x8xf32> to vector<8xf32>
    %126 = vector.shape_cast %125 : vector<8xf32> to vector<8x1xf32>
    %127 = tpu.reciprocal %126 {approx = true} : vector<8x1xf32> -> vector<8x1xf32>
    %128 = vector.broadcast %127 : vector<8x1xf32> to vector<8x8xf32>
    %129 = arith.mulf %124, %128 : vector<8x8xf32>
    %cst_65 = arith.constant dense<0.000000e+00> : vector<8x150xf32>
    %130 = tpu.matmul %129, %118, %cst_65 {dimension_numbers = #tpu.dot_dimension_numbers<[1], [0], [0], [1], [0, 0, 1, 1], [], []>} : vector<8x8xf32>, vector<8x150xf32>, vector<8x150xf32> -> vector<8x150xf32>
    %131 = vector.extract_strided_slice %73 {offsets = [8, 150], sizes = [8, 150], strides = [1, 1]} : vector<16x900xf32> to vector<8x150xf32>
    %cst_66 = arith.constant 0.0816496611 : f32
    %132 = vector.broadcast %cst_66 : f32 to vector<8x150xf32>
    %133 = arith.mulf %131, %132 : vector<8x150xf32>
    %134 = vector.extract_strided_slice %73 {offsets = [8, 450], sizes = [8, 150], strides = [1, 1]} : vector<16x900xf32> to vector<8x150xf32>
    %135 = vector.extract_strided_slice %78 {offsets = [8, 750], sizes = [8, 150], strides = [1, 1]} : vector<16x900xf32> to vector<8x150xf32>
    %cst_67 = arith.constant dense<0.000000e+00> : vector<8x8xf32>
    %136 = tpu.matmul %133, %134, %cst_67 {dimension_numbers = #tpu.dot_dimension_numbers<[1], [1], [0], [0], [0, 0, 1, 0], [], []>} : vector<8x150xf32>, vector<8x150xf32>, vector<8x8xf32> -> vector<8x8xf32>
    %cst_68 = arith.constant dense<0xFF800000> : vector<8xf32>
    %137 = vector.multi_reduction <maximumf>, %136, %cst_68 [1] : vector<8x8xf32> to vector<8xf32>
    %138 = vector.shape_cast %137 : vector<8xf32> to vector<8x1xf32>
    %139 = vector.broadcast %138 : vector<8x1xf32> to vector<8x8xf32>
    %140 = arith.subf %136, %139 : vector<8x8xf32>
    %141 = math.exp %140 : vector<8x8xf32>
    %cst_69 = arith.constant dense<0.000000e+00> : vector<8xf32>
    %142 = vector.multi_reduction <add>, %141, %cst_69 [1] : vector<8x8xf32> to vector<8xf32>
    %143 = vector.shape_cast %142 : vector<8xf32> to vector<8x1xf32>
    %144 = tpu.reciprocal %143 {approx = true} : vector<8x1xf32> -> vector<8x1xf32>
    %145 = vector.broadcast %144 : vector<8x1xf32> to vector<8x8xf32>
    %146 = arith.mulf %141, %145 : vector<8x8xf32>
    %cst_70 = arith.constant dense<0.000000e+00> : vector<8x150xf32>
    %147 = tpu.matmul %146, %135, %cst_70 {dimension_numbers = #tpu.dot_dimension_numbers<[1], [0], [0], [1], [0, 0, 1, 1], [], []>} : vector<8x8xf32>, vector<8x150xf32>, vector<8x150xf32> -> vector<8x150xf32>
    %148 = tpu.concatenate %130, %147 in 1 : vector<8x150xf32>, vector<8x150xf32> -> vector<8x300xf32>
    %149 = tpu.concatenate %113, %148 in 0 : vector<8x300xf32>, vector<8x300xf32> -> vector<16x300xf32>
    %c0_71 = arith.constant 0 : index
    %c0_72 = arith.constant 0 : index
    %150 = vector.load %arg7[%c0_71, %c0_72] : memref<300x300xf32, #tpu.memory_space<vmem>>, vector<300x300xf32>
    %cst_73 = arith.constant dense<0.000000e+00> : vector<16x300xf32>
    %151 = tpu.matmul %149, %150, %cst_73 {dimension_numbers = #tpu.dot_dimension_numbers<[1], [0], [0], [1], [0, 0, 1, 1], [], []>} : vector<16x300xf32>, vector<300x300xf32>, vector<16x300xf32> -> vector<16x300xf32>
    %c0_74 = arith.constant 0 : index
    %c0_75 = arith.constant 0 : index
    %152 = vector.load %arg8[%c0_74, %c0_75] : memref<1x300xf32, #tpu.memory_space<vmem>>, vector<1x300xf32>
    %153 = vector.broadcast %152 : vector<1x300xf32> to vector<16x300xf32>
    %154 = arith.addf %151, %153 : vector<16x300xf32>
    %155 = vector.extract_strided_slice %78 {offsets = [0, 0], sizes = [8, 150], strides = [1, 1]} : vector<16x900xf32> to vector<8x150xf32>
    %cst_76 = arith.constant 0.0816496611 : f32
    %156 = vector.broadcast %cst_76 : f32 to vector<8x150xf32>
    %157 = arith.mulf %155, %156 : vector<8x150xf32>
    %158 = vector.extract_strided_slice %78 {offsets = [0, 300], sizes = [8, 150], strides = [1, 1]} : vector<16x900xf32> to vector<8x150xf32>
    %159 = vector.extract_strided_slice %73 {offsets = [0, 600], sizes = [8, 150], strides = [1, 1]} : vector<16x900xf32> to vector<8x150xf32>
    %cst_77 = arith.constant dense<0.000000e+00> : vector<8x8xf32>
    %160 = tpu.matmul %157, %158, %cst_77 {dimension_numbers = #tpu.dot_dimension_numbers<[1], [1], [0], [0], [0, 0, 1, 0], [], []>} : vector<8x150xf32>, vector<8x150xf32>, vector<8x8xf32> -> vector<8x8xf32>
    %cst_78 = arith.constant dense<0xFF800000> : vector<8xf32>
    %161 = vector.multi_reduction <maximumf>, %160, %cst_78 [1] : vector<8x8xf32> to vector<8xf32>
    %162 = vector.shape_cast %161 : vector<8xf32> to vector<8x1xf32>
    %163 = vector.broadcast %162 : vector<8x1xf32> to vector<8x8xf32>
    %164 = arith.subf %160, %163 : vector<8x8xf32>
    %165 = math.exp %164 : vector<8x8xf32>
    %cst_79 = arith.constant dense<0.000000e+00> : vector<8xf32>
    %166 = vector.multi_reduction <add>, %165, %cst_79 [1] : vector<8x8xf32> to vector<8xf32>
    %167 = vector.shape_cast %166 : vector<8xf32> to vector<8x1xf32>
    %168 = tpu.reciprocal %167 {approx = true} : vector<8x1xf32> -> vector<8x1xf32>
    %169 = vector.broadcast %168 : vector<8x1xf32> to vector<8x8xf32>
    %170 = arith.mulf %165, %169 : vector<8x8xf32>
    %cst_80 = arith.constant dense<0.000000e+00> : vector<8x150xf32>
    %171 = tpu.matmul %170, %159, %cst_80 {dimension_numbers = #tpu.dot_dimension_numbers<[1], [0], [0], [1], [0, 0, 1, 1], [], []>} : vector<8x8xf32>, vector<8x150xf32>, vector<8x150xf32> -> vector<8x150xf32>
    %172 = vector.extract_strided_slice %78 {offsets = [0, 150], sizes = [8, 150], strides = [1, 1]} : vector<16x900xf32> to vector<8x150xf32>
    %cst_81 = arith.constant 0.0816496611 : f32
    %173 = vector.broadcast %cst_81 : f32 to vector<8x150xf32>
    %174 = arith.mulf %172, %173 : vector<8x150xf32>
    %175 = vector.extract_strided_slice %78 {offsets = [0, 450], sizes = [8, 150], strides = [1, 1]} : vector<16x900xf32> to vector<8x150xf32>
    %176 = vector.extract_strided_slice %73 {offsets = [0, 750], sizes = [8, 150], strides = [1, 1]} : vector<16x900xf32> to vector<8x150xf32>
    %cst_82 = arith.constant dense<0.000000e+00> : vector<8x8xf32>
    %177 = tpu.matmul %174, %175, %cst_82 {dimension_numbers = #tpu.dot_dimension_numbers<[1], [1], [0], [0], [0, 0, 1, 0], [], []>} : vector<8x150xf32>, vector<8x150xf32>, vector<8x8xf32> -> vector<8x8xf32>
    %cst_83 = arith.constant dense<0xFF800000> : vector<8xf32>
    %178 = vector.multi_reduction <maximumf>, %177, %cst_83 [1] : vector<8x8xf32> to vector<8xf32>
    %179 = vector.shape_cast %178 : vector<8xf32> to vector<8x1xf32>
    %180 = vector.broadcast %179 : vector<8x1xf32> to vector<8x8xf32>
    %181 = arith.subf %177, %180 : vector<8x8xf32>
    %182 = math.exp %181 : vector<8x8xf32>
    %cst_84 = arith.constant dense<0.000000e+00> : vector<8xf32>
    %183 = vector.multi_reduction <add>, %182, %cst_84 [1] : vector<8x8xf32> to vector<8xf32>
    %184 = vector.shape_cast %183 : vector<8xf32> to vector<8x1xf32>
    %185 = tpu.reciprocal %184 {approx = true} : vector<8x1xf32> -> vector<8x1xf32>
    %186 = vector.broadcast %185 : vector<8x1xf32> to vector<8x8xf32>
    %187 = arith.mulf %182, %186 : vector<8x8xf32>
    %cst_85 = arith.constant dense<0.000000e+00> : vector<8x150xf32>
    %188 = tpu.matmul %187, %176, %cst_85 {dimension_numbers = #tpu.dot_dimension_numbers<[1], [0], [0], [1], [0, 0, 1, 1], [], []>} : vector<8x8xf32>, vector<8x150xf32>, vector<8x150xf32> -> vector<8x150xf32>
    %189 = tpu.concatenate %171, %188 in 1 : vector<8x150xf32>, vector<8x150xf32> -> vector<8x300xf32>
    %190 = vector.extract_strided_slice %78 {offsets = [8, 0], sizes = [8, 150], strides = [1, 1]} : vector<16x900xf32> to vector<8x150xf32>
    %cst_86 = arith.constant 0.0816496611 : f32
    %191 = vector.broadcast %cst_86 : f32 to vector<8x150xf32>
    %192 = arith.mulf %190, %191 : vector<8x150xf32>
    %193 = vector.extract_strided_slice %78 {offsets = [8, 300], sizes = [8, 150], strides = [1, 1]} : vector<16x900xf32> to vector<8x150xf32>
    %194 = vector.extract_strided_slice %73 {offsets = [8, 600], sizes = [8, 150], strides = [1, 1]} : vector<16x900xf32> to vector<8x150xf32>
    %cst_87 = arith.constant dense<0.000000e+00> : vector<8x8xf32>
    %195 = tpu.matmul %192, %193, %cst_87 {dimension_numbers = #tpu.dot_dimension_numbers<[1], [1], [0], [0], [0, 0, 1, 0], [], []>} : vector<8x150xf32>, vector<8x150xf32>, vector<8x8xf32> -> vector<8x8xf32>
    %cst_88 = arith.constant dense<0xFF800000> : vector<8xf32>
    %196 = vector.multi_reduction <maximumf>, %195, %cst_88 [1] : vector<8x8xf32> to vector<8xf32>
    %197 = vector.shape_cast %196 : vector<8xf32> to vector<8x1xf32>
    %198 = vector.broadcast %197 : vector<8x1xf32> to vector<8x8xf32>
    %199 = arith.subf %195, %198 : vector<8x8xf32>
    %200 = math.exp %199 : vector<8x8xf32>
    %cst_89 = arith.constant dense<0.000000e+00> : vector<8xf32>
    %201 = vector.multi_reduction <add>, %200, %cst_89 [1] : vector<8x8xf32> to vector<8xf32>
    %202 = vector.shape_cast %201 : vector<8xf32> to vector<8x1xf32>
    %203 = tpu.reciprocal %202 {approx = true} : vector<8x1xf32> -> vector<8x1xf32>
    %204 = vector.broadcast %203 : vector<8x1xf32> to vector<8x8xf32>
    %205 = arith.mulf %200, %204 : vector<8x8xf32>
    %cst_90 = arith.constant dense<0.000000e+00> : vector<8x150xf32>
    %206 = tpu.matmul %205, %194, %cst_90 {dimension_numbers = #tpu.dot_dimension_numbers<[1], [0], [0], [1], [0, 0, 1, 1], [], []>} : vector<8x8xf32>, vector<8x150xf32>, vector<8x150xf32> -> vector<8x150xf32>
    %207 = vector.extract_strided_slice %78 {offsets = [8, 150], sizes = [8, 150], strides = [1, 1]} : vector<16x900xf32> to vector<8x150xf32>
    %cst_91 = arith.constant 0.0816496611 : f32
    %208 = vector.broadcast %cst_91 : f32 to vector<8x150xf32>
    %209 = arith.mulf %207, %208 : vector<8x150xf32>
    %210 = vector.extract_strided_slice %78 {offsets = [8, 450], sizes = [8, 150], strides = [1, 1]} : vector<16x900xf32> to vector<8x150xf32>
    %211 = vector.extract_strided_slice %73 {offsets = [8, 750], sizes = [8, 150], strides = [1, 1]} : vector<16x900xf32> to vector<8x150xf32>
    %cst_92 = arith.constant dense<0.000000e+00> : vector<8x8xf32>
    %212 = tpu.matmul %209, %210, %cst_92 {dimension_numbers = #tpu.dot_dimension_numbers<[1], [1], [0], [0], [0, 0, 1, 0], [], []>} : vector<8x150xf32>, vector<8x150xf32>, vector<8x8xf32> -> vector<8x8xf32>
    %cst_93 = arith.constant dense<0xFF800000> : vector<8xf32>
    %213 = vector.multi_reduction <maximumf>, %212, %cst_93 [1] : vector<8x8xf32> to vector<8xf32>
    %214 = vector.shape_cast %213 : vector<8xf32> to vector<8x1xf32>
    %215 = vector.broadcast %214 : vector<8x1xf32> to vector<8x8xf32>
    %216 = arith.subf %212, %215 : vector<8x8xf32>
    %217 = math.exp %216 : vector<8x8xf32>
    %cst_94 = arith.constant dense<0.000000e+00> : vector<8xf32>
    %218 = vector.multi_reduction <add>, %217, %cst_94 [1] : vector<8x8xf32> to vector<8xf32>
    %219 = vector.shape_cast %218 : vector<8xf32> to vector<8x1xf32>
    %220 = tpu.reciprocal %219 {approx = true} : vector<8x1xf32> -> vector<8x1xf32>
    %221 = vector.broadcast %220 : vector<8x1xf32> to vector<8x8xf32>
    %222 = arith.mulf %217, %221 : vector<8x8xf32>
    %cst_95 = arith.constant dense<0.000000e+00> : vector<8x150xf32>
    %223 = tpu.matmul %222, %211, %cst_95 {dimension_numbers = #tpu.dot_dimension_numbers<[1], [0], [0], [1], [0, 0, 1, 1], [], []>} : vector<8x8xf32>, vector<8x150xf32>, vector<8x150xf32> -> vector<8x150xf32>
    %224 = tpu.concatenate %206, %223 in 1 : vector<8x150xf32>, vector<8x150xf32> -> vector<8x300xf32>
    %225 = tpu.concatenate %189, %224 in 0 : vector<8x300xf32>, vector<8x300xf32> -> vector<16x300xf32>
    %c0_96 = arith.constant 0 : index
    %c0_97 = arith.constant 0 : index
    %226 = vector.load %arg9[%c0_96, %c0_97] : memref<300x300xf32, #tpu.memory_space<vmem>>, vector<300x300xf32>
    %cst_98 = arith.constant dense<0.000000e+00> : vector<16x300xf32>
    %227 = tpu.matmul %225, %226, %cst_98 {dimension_numbers = #tpu.dot_dimension_numbers<[1], [0], [0], [1], [0, 0, 1, 1], [], []>} : vector<16x300xf32>, vector<300x300xf32>, vector<16x300xf32> -> vector<16x300xf32>
    %c0_99 = arith.constant 0 : index
    %c0_100 = arith.constant 0 : index
    %228 = vector.load %arg10[%c0_99, %c0_100] : memref<1x300xf32, #tpu.memory_space<vmem>>, vector<1x300xf32>
    %229 = vector.broadcast %228 : vector<1x300xf32> to vector<16x300xf32>
    %230 = arith.addf %227, %229 : vector<16x300xf32>
    %c0_101 = arith.constant 0 : index
    %c0_102 = arith.constant 0 : index
    %231 = vector.load %arg11[%c0_101, %c0_102] : memref<300x300xf32, #tpu.memory_space<vmem>>, vector<300x300xf32>
    %cst_103 = arith.constant dense<0.000000e+00> : vector<16x300xf32>
    %232 = tpu.matmul %67, %231, %cst_103 {dimension_numbers = #tpu.dot_dimension_numbers<[1], [0], [0], [1], [0, 0, 1, 1], [], []>} : vector<16x300xf32>, vector<300x300xf32>, vector<16x300xf32> -> vector<16x300xf32>
    %c0_104 = arith.constant 0 : index
    %c0_105 = arith.constant 0 : index
    %233 = vector.load %arg12[%c0_104, %c0_105] : memref<300x300xf32, #tpu.memory_space<vmem>>, vector<300x300xf32>
    %cst_106 = arith.constant dense<0.000000e+00> : vector<16x300xf32>
    %234 = tpu.matmul %154, %233, %cst_106 {dimension_numbers = #tpu.dot_dimension_numbers<[1], [0], [0], [1], [0, 0, 1, 1], [], []>} : vector<16x300xf32>, vector<300x300xf32>, vector<16x300xf32> -> vector<16x300xf32>
    %235 = arith.addf %232, %234 : vector<16x300xf32>
    %c0_107 = arith.constant 0 : index
    %c0_108 = arith.constant 0 : index
    %236 = vector.load %arg13[%c0_107, %c0_108] : memref<1x300xf32, #tpu.memory_space<vmem>>, vector<1x300xf32>
    %237 = vector.broadcast %236 : vector<1x300xf32> to vector<16x300xf32>
    %238 = arith.addf %235, %237 : vector<16x300xf32>
    %c0_109 = arith.constant 0 : index
    %c0_110 = arith.constant 0 : index
    %239 = vector.load %arg14[%c0_109, %c0_110] : memref<300x300xf32, #tpu.memory_space<vmem>>, vector<300x300xf32>
    %cst_111 = arith.constant dense<0.000000e+00> : vector<16x300xf32>
    %240 = tpu.matmul %68, %239, %cst_111 {dimension_numbers = #tpu.dot_dimension_numbers<[1], [0], [0], [1], [0, 0, 1, 1], [], []>} : vector<16x300xf32>, vector<300x300xf32>, vector<16x300xf32> -> vector<16x300xf32>
    %c0_112 = arith.constant 0 : index
    %c0_113 = arith.constant 0 : index
    %241 = vector.load %arg15[%c0_112, %c0_113] : memref<300x300xf32, #tpu.memory_space<vmem>>, vector<300x300xf32>
    %cst_114 = arith.constant dense<0.000000e+00> : vector<16x300xf32>
    %242 = tpu.matmul %230, %241, %cst_114 {dimension_numbers = #tpu.dot_dimension_numbers<[1], [0], [0], [1], [0, 0, 1, 1], [], []>} : vector<16x300xf32>, vector<300x300xf32>, vector<16x300xf32> -> vector<16x300xf32>
    %243 = arith.addf %240, %242 : vector<16x300xf32>
    %c0_115 = arith.constant 0 : index
    %c0_116 = arith.constant 0 : index
    %244 = vector.load %arg16[%c0_115, %c0_116] : memref<1x300xf32, #tpu.memory_space<vmem>>, vector<1x300xf32>
    %245 = vector.broadcast %244 : vector<1x300xf32> to vector<16x300xf32>
    %246 = arith.addf %243, %245 : vector<16x300xf32>
    %247 = tpu.concatenate %65, %238 in 1 : vector<16x300xf32>, vector<16x300xf32> -> vector<16x600xf32>
    %248 = tpu.concatenate %66, %246 in 1 : vector<16x300xf32>, vector<16x300xf32> -> vector<16x600xf32>
    %c0_117 = arith.constant 0 : index
    %c0_118 = arith.constant 0 : index
    %249 = vector.load %arg17[%c0_117, %c0_118] : memref<1x600xf32, #tpu.memory_space<vmem>>, vector<1x600xf32>
    %250 = vector.broadcast %249 : vector<1x600xf32> to vector<16x600xf32>
    %251 = arith.mulf %247, %250 : vector<16x600xf32>
    %cst_119 = arith.constant dense<0.000000e+00> : vector<16xf32>
    %252 = vector.multi_reduction <add>, %251, %cst_119 [1] : vector<16x600xf32> to vector<16xf32>
    %253 = vector.shape_cast %252 : vector<16xf32> to vector<16x1xf32>
    %254 = arith.negf %253 : vector<16x1xf32>
    %255 = math.exp %254 : vector<16x1xf32>
    %cst_120 = arith.constant 1.000000e+00 : f32
    %256 = vector.broadcast %cst_120 : f32 to vector<16x1xf32>
    %257 = arith.addf %256, %255 : vector<16x1xf32>
    %258 = arith.divf %256, %257 : vector<16x1xf32>
    %c0_121 = arith.constant 0 : index
    %c0_122 = arith.constant 0 : index
    %259 = vector.load %arg18[%c0_121, %c0_122] : memref<1x600xf32, #tpu.memory_space<vmem>>, vector<1x600xf32>
    %260 = vector.broadcast %259 : vector<1x600xf32> to vector<16x600xf32>
    %261 = arith.mulf %248, %260 : vector<16x600xf32>
    %cst_123 = arith.constant dense<0.000000e+00> : vector<16xf32>
    %262 = vector.multi_reduction <add>, %261, %cst_123 [1] : vector<16x600xf32> to vector<16xf32>
    %263 = vector.shape_cast %262 : vector<16xf32> to vector<16x1xf32>
    %264 = arith.negf %263 : vector<16x1xf32>
    %265 = math.exp %264 : vector<16x1xf32>
    %cst_124 = arith.constant 1.000000e+00 : f32
    %266 = vector.broadcast %cst_124 : f32 to vector<16x1xf32>
    %267 = arith.addf %266, %265 : vector<16x1xf32>
    %268 = arith.divf %266, %267 : vector<16x1xf32>
    %cst_125 = arith.constant 1.000000e+00 : f32
    %269 = vector.broadcast %cst_125 : f32 to vector<16x1xf32>
    %270 = arith.subf %269, %258 : vector<16x1xf32>
    %cst_126 = arith.constant 1.000000e+00 : f32
    %271 = vector.broadcast %cst_126 : f32 to vector<16x1xf32>
    %272 = arith.subf %271, %268 : vector<16x1xf32>
    %273 = vector.broadcast %258 : vector<16x1xf32> to vector<16x600xf32>
    %274 = arith.mulf %273, %247 : vector<16x600xf32>
    %275 = vector.broadcast %270 : vector<16x1xf32> to vector<16x600xf32>
    %276 = arith.mulf %275, %248 : vector<16x600xf32>
    %277 = arith.addf %274, %276 : vector<16x600xf32>
    %278 = vector.broadcast %268 : vector<16x1xf32> to vector<16x600xf32>
    %279 = arith.mulf %278, %247 : vector<16x600xf32>
    %280 = vector.broadcast %272 : vector<16x1xf32> to vector<16x600xf32>
    %281 = arith.mulf %280, %248 : vector<16x600xf32>
    %282 = arith.addf %279, %281 : vector<16x600xf32>
    %283 = tpu.concatenate %247, %277 in 1 : vector<16x600xf32>, vector<16x600xf32> -> vector<16x1200xf32>
    %c0_127 = arith.constant 0 : index
    %c0_128 = arith.constant 0 : index
    %284 = vector.load %arg19[%c0_127, %c0_128] : memref<16x1200xf32, #tpu.memory_space<vmem>>, vector<16x1200xf32>
    tpu.vector_store %arg19[%c0_127, %c0_128], %283 {strides = array<i32>} : memref<16x1200xf32, #tpu.memory_space<vmem>>, vector<16x1200xf32>,
    %285 = tpu.concatenate %248, %282 in 1 : vector<16x600xf32>, vector<16x600xf32> -> vector<16x1200xf32>
    %c0_129 = arith.constant 0 : index
    %c0_130 = arith.constant 0 : index
    %286 = vector.load %arg20[%c0_129, %c0_130] : memref<16x1200xf32, #tpu.memory_space<vmem>>, vector<16x1200xf32>
    tpu.vector_store %arg20[%c0_129, %c0_130], %285 {strides = array<i32>} : memref<16x1200xf32, #tpu.memory_space<vmem>>, vector<16x1200xf32>,
    %287 = arith.mulf %258, %272 : vector<16x1xf32>
    %288 = vector.shape_cast %287 : vector<16x1xf32> to vector<1x16x1xf32>
    %cst_131 = arith.constant dense<0.000000e+00> : vector<1xf32>
    %289 = vector.multi_reduction <add>, %288, %cst_131 [1, 2] : vector<1x16x1xf32> to vector<1xf32>
    %290 = vector.shape_cast %289 : vector<1xf32> to vector<1x1x1xf32>
    %291 = vector.extract %290[0, 0, 0] : f32 from vector<1x1x1xf32>
    %292 = vector.broadcast %291 : f32 to vector<1x1xf32>
    %c0_132 = arith.constant 0 : index
    %c0_133 = arith.constant 0 : index
    %293 = vector.load %arg21[%c0_132, %c0_133] : memref<1x1xf32, #tpu.memory_space<vmem>>, vector<1x1xf32>
    tpu.vector_store %arg21[%c0_132, %c0_133], %292 {strides = array<i32>} : memref<1x1xf32, #tpu.memory_space<vmem>>, vector<1x1xf32>,
    return
  }
}

</mosaic_0001>

<bundles_post_ra>
// kernel: tcre_unit_forward.1
= control target key start
LH: loop header
LB: loop body
LE: loop exit
PB: predicated region body
PF: predicated region fallthrough
CT: control target
= control target key end

     0   :  { %s12753_s0 = inlined_call_operand.vmem [shape: f32[16,32], index: 0, kind: input, shape index: {}]   ;;  %s12754_s1 = inlined_call_operand.hbm [shape: f32[6,32,300], index: 1, kind: input, shape index: {}]   ;;  %s12755_s2 = inlined_call_operand.hbm [shape: f32[6,1,300], index: 2, kind: input, shape index: {}]   ;;  %s12756_s3 = inlined_call_operand.hbm [shape: f32[300,900], index: 3, kind: input, shape index: {}]   ;;  %s12757_s4 = inlined_call_operand.hbm [shape: f32[1,900], index: 4, kind: input, shape index: {}]   ;;  %s12758_s5 = inlined_call_operand.hbm [shape: f32[300,900], index: 5, kind: input, shape index: {}]   ;;  %s12759_s6 = inlined_call_operand.hbm [shape: f32[1,900], index: 6, kind: input, shape index: {}]   ;;  %s12760_s7 = inlined_call_operand.hbm [shape: f32[300,300], index: 7, kind: input, shape index: {}]   ;;  %s12761_s8 = inlined_call_operand.hbm [shape: f32[1,300], index: 8, kind: input, shape index: {}]   ;;  %s12762_s9 = inlined_call_operand.hbm [shape: f32[300,300], index: 9, kind: input, shape index: {}]   ;;  %s12763_s10 = inlined_call_operand.hbm [shape: f32[1,300], index: 10, kind: input, shape index: {}]   ;;  %s12764_s11 = inlined_call_operand.hbm [shape: f32[300,300], index: 11, kind: input, shape index: {}]   ;;  %s12765_s12 = inlined_call_operand.hbm [shape: f32[300,300], index: 12, kind: input, shape index: {}]   ;;  %s12766_s13 = inlined_call_operand.hbm [shape: f32[1,300], index: 13, kind: input, shape index: {}]   ;;  %s12767_s14 = inlined_call_operand.hbm [shape: f32[300,300], index: 14, kind: input, shape index: {}]   ;;  %s12768_s15 = inlined_call_operand.hbm [shape: f32[300,300], index: 15, kind: input, shape index: {}]   ;;  %s12769_s16 = inlined_call_operand.hbm [shape: f32[1,300], index: 16, kind: input, shape index: {}]   ;;  %s12770_s17 = inlined_call_operand.hbm [shape: f32[1,600], index: 17, kind: input, shape index: {}]   ;;  %s12771_s18 = inlined_call_operand.hbm [shape: f32[1,600], index: 18, kind: input, shape index: {}]   ;;  %s12772_s19 = inlined_call_operand.vmem [shape: f32[16,1200], index: 19, kind: output, shape index: {0}]   ;;  %s12773_s20 = inlined_call_operand.vmem [shape: f32[16,1200], index: 20, kind: output, shape index: {1}]   ;;  %s12774_s21 = inlined_call_operand.hbm [shape: f32[1,1], index: 21, kind: output, shape index: {2}]  }
   0x1   :  { %12794 = sst [smem:[#allocation57_spill]] %s12753_s0 }
   0x2   :  { %12795 = sst [smem:[#allocation58_spill]] %s12754_s1 }
   0x3   :  { %12796 = sst [smem:[#allocation59_spill]] %s12755_s2 }
   0x4   :  { %12797 = sst [smem:[#allocation60_spill]] %s12756_s3 }
   0x5   :  { %12798 = sst [smem:[#allocation61_spill]] %s12757_s4 }
   0x6   :  { %12799 = sst [smem:[#allocation62_spill]] %s12758_s5 }
   0x7   :  { %12800 = sst [smem:[#allocation63_spill]] %s12772_s19 }
   0x8   :  { %12801 = sst [smem:[#allocation64_spill]] %s12773_s20 }
   0x9   :  { %12802 = sst [smem:[#allocation65_spill]] %s12774_s21 }
   0xa   :  { %27 = vsyncpa [#allocation3], 0 }
   0xb   :  { %28 = vsyncpa [#allocation6], 0 }
   0xc   :  { %29 = vsyncpa [#allocation9], 0 }
   0xd   :  { %30 = vsyncpa [#allocation12], 0 }
   0xe   :  { %31 = vsyncpa [#allocation15], 0 }
   0xf   :  { %32 = vsyncpa [#allocation18], 0 }
  0x10   :  { %33 = vsyncpa [#allocation21], 0 }
  0x11   :  { %34 = vsyncpa [#allocation24], 0 }
  0x12   :  { %35 = vsyncpa [#allocation27], 0 }
  0x13   :  { %36 = vsyncpa [#allocation30], 0 }
  0x14   :  { %37 = vsyncpa [#allocation4], 0  ;;  %s11040_s2 = smov [#allocation5]   ;;  %s12803_s3 = sld [smem:[#allocation59_spill]] }
  0x15   :  { %s57_s25 = sshll.u32 %s11040_s2, 4  ;;  %s58_s25 = int_to_ptr.vmem [resolvable:$true] %s57_s25 }
  0x1a   :  { %s10600_s28 = scalar_lea.hbm %s12803_s3, 288 }
  0x1b   :  { %p10601_p0 = scmp.ne.s32.totalorder %s12803_s3, %s10600_s28  ;;  %p10604_p1 = scmp.lt.u32.totalorder %s10600_s28, %s12803_s3 }
  0x1d   :  { %p10606_p2 = pnand %p10604_p1, %p10601_p0 }
  0x1f   :  { %10609 = shalt.err (!%p10606_p2)
}
  0x20   :  { %s10610_s5 = scalar_lea.vmem %s58_s25, 288  ;;  %p10615_p4 = scmp.lt.s32.totalorder %s58_s25, %s58_s25 }
  0x21   :  { %p10611_p3 = scmp.ne.s32.totalorder %s58_s25, %s10610_s5  ;;  %p10616_p5 = scmp.lt.s32.totalorder %s10610_s5, %s10610_s5 }
  0x23   :  { %p10617_p6 = por %p10616_p5, %p10615_p4 }
  0x25   :  { %p10618_p7 = pnand %p10617_p6, %p10611_p3 }
  0x27   :  { %10621 = shalt.err (!%p10618_p7)
}
  0x28   :  { %s11041_s22 = smov 48   ;;  %s11042_s23 = smov 3  }
  0x29   :  { %63 = dma.hbm_to_vmem [thread:$0]  %s12803_s3, 288, %s58_s25, [#allocation6], %s11041_s22, %s11041_s22, %s11042_s23  }
  0x2a   :  { %s11043_s2 = smov [#allocation8]   ;;  %s11044_s27 = smov [#allocation11]  }
  0x2b   :  { %s82_s26 = sshll.u32 %s11043_s2, 4  ;;  %s104_s28 = sshll.u32 %s11044_s27, 4  ;;  %s83_s26 = int_to_ptr.vmem [resolvable:$true] %s82_s26  ;;  %s105_s28 = int_to_ptr.vmem [resolvable:$true] %s104_s28 }
  0x2c   :  { %s12804_s4 = sld [smem:[#allocation61_spill]] }
  0x32   :  { %s10622_s30 = scalar_lea.hbm %s12804_s4, 128 }
  0x33   :  { %p10623_p8 = scmp.ne.s32.totalorder %s12804_s4, %s10622_s30  ;;  %p10626_p9 = scmp.lt.u32.totalorder %s10622_s30, %s12804_s4 }
  0x35   :  { %p10628_p10 = pnand %p10626_p9, %p10623_p8 }
  0x37   :  { %10631 = shalt.err (!%p10628_p10)
}
  0x38   :  { %s10632_s25 = scalar_lea.vmem %s83_s26, 128  ;;  %p10637_p12 = scmp.lt.s32.totalorder %s83_s26, %s83_s26 }
  0x39   :  { %p10633_p11 = scmp.ne.s32.totalorder %s83_s26, %s10632_s25  ;;  %p10638_p13 = scmp.lt.s32.totalorder %s10632_s25, %s10632_s25 }
  0x3b   :  { %p10639_p0 = por %p10638_p13, %p10637_p12 }
  0x3d   :  { %p10640_p1 = pnand %p10639_p0, %p10633_p11 }
  0x3f   :  { %10643 = shalt.err (!%p10640_p1)
}
  0x40   :  { %85 = dma.hbm_to_vmem [thread:$0]  %s12804_s4, 128, %s83_s26, [#allocation9]  }
  0x41   :  { %s10644_s1 = scalar_lea.hbm %s12759_s6, 128 }
  0x42   :  { %p10645_p2 = scmp.ne.s32.totalorder %s12759_s6, %s10644_s1  ;;  %p10648_p3 = scmp.lt.u32.totalorder %s10644_s1, %s12759_s6 }
  0x44   :  { %p10650_p4 = pnand %p10648_p3, %p10645_p2 }
  0x46   :  { %10653 = shalt.err (!%p10650_p4)
}
  0x47   :  { %s10654_s27 = scalar_lea.vmem %s105_s28, 128  ;;  %p10659_p6 = scmp.lt.s32.totalorder %s105_s28, %s105_s28 }
  0x48   :  { %p10655_p5 = scmp.ne.s32.totalorder %s105_s28, %s10654_s27  ;;  %p10660_p7 = scmp.lt.s32.totalorder %s10654_s27, %s10654_s27 }
  0x4a   :  { %p10661_p8 = por %p10660_p7, %p10659_p6 }
  0x4c   :  { %p10662_p9 = pnand %p10661_p8, %p10655_p5 }
  0x4e   :  { %10665 = shalt.err (!%p10662_p9)
}
  0x4f   :  { %107 = dma.hbm_to_vmem [thread:$0]  %s12759_s6, 128, %s105_s28, [#allocation12]  }
  0x50   :  { %s11045_s0 = smov [#allocation14]   ;;  %s11046_s30 = smov [#allocation17]  }
  0x51   :  { %s126_s4 = sshll.u32 %s11045_s0, 4  ;;  %s148_s5 = sshll.u32 %s11046_s30, 4  ;;  %s127_s4 = int_to_ptr.vmem [resolvable:$true] %s126_s4  ;;  %s149_s5 = int_to_ptr.vmem [resolvable:$true] %s148_s5 }
  0x52   :  { %s10666_s22 = scalar_lea.hbm %s12761_s8, 48 }
  0x53   :  { %p10667_p10 = scmp.ne.s32.totalorder %s12761_s8, %s10666_s22  ;;  %p10670_p11 = scmp.lt.u32.totalorder %s10666_s22, %s12761_s8 }
  0x55   :  { %p10672_p12 = pnand %p10670_p11, %p10667_p10 }
  0x57   :  { %10675 = shalt.err (!%p10672_p12)
}
  0x58   :  { %s10676_s6 = scalar_lea.vmem %s127_s4, 48  ;;  %s10680_s28 = scalar_lea.vmem %s127_s4, 64 }
  0x59   :  { %p10677_p13 = scmp.ne.s32.totalorder %s127_s4, %s10676_s6  ;;  %p10681_p0 = scmp.lt.s32.totalorder %s127_s4, %s127_s4 }
  0x5a   :  { %p10682_p1 = scmp.lt.s32.totalorder %s10680_s28, %s10676_s6 }
  0x5c   :  { %p10683_p2 = por %p10682_p1, %p10681_p0 }
  0x5e   :  { %p10684_p3 = pnand %p10683_p2, %p10677_p13 }
  0x60   :  { %10687 = shalt.err (!%p10684_p3)
}
  0x61   :  { %129 = dma.hbm_to_vmem [thread:$0]  %s12761_s8, 48, %s127_s4, [#allocation15]  }
  0x62   :  { %s10688_s26 = scalar_lea.hbm %s12763_s10, 48 }
  0x63   :  { %p10689_p4 = scmp.ne.s32.totalorder %s12763_s10, %s10688_s26  ;;  %p10692_p5 = scmp.lt.u32.totalorder %s10688_s26, %s12763_s10 }
  0x65   :  { %p10694_p6 = pnand %p10692_p5, %p10689_p4 }
  0x67   :  { %10697 = shalt.err (!%p10694_p6)
}
  0x68   :  { %s10698_s3 = scalar_lea.vmem %s149_s5, 48  ;;  %s10702_s22 = scalar_lea.vmem %s149_s5, 64 }
  0x69   :  { %p10699_p7 = scmp.ne.s32.totalorder %s149_s5, %s10698_s3  ;;  %p10703_p8 = scmp.lt.s32.totalorder %s149_s5, %s149_s5 }
  0x6a   :  { %p10704_p9 = scmp.lt.s32.totalorder %s10702_s22, %s10698_s3 }
  0x6c   :  { %p10705_p10 = por %p10704_p9, %p10703_p8 }
  0x6e   :  { %p10706_p11 = pnand %p10705_p10, %p10699_p7 }
  0x70   :  { %10709 = shalt.err (!%p10706_p11)
}
  0x71   :  { %151 = dma.hbm_to_vmem [thread:$0]  %s12763_s10, 48, %s149_s5, [#allocation18]  }
  0x72   :  { %s11047_s21 = smov [#allocation20]   ;;  %s11048_s1 = smov [#allocation23]  }
  0x73   :  { %s169_s23 = sshll.u32 %s11047_s21, 4  ;;  %s191_s19 = sshll.u32 %s11048_s1, 4  ;;  %s170_s23 = int_to_ptr.vmem [resolvable:$true] %s169_s23  ;;  %s192_s19 = int_to_ptr.vmem [resolvable:$true] %s191_s19 }
  0x74   :  { %s10710_s20 = scalar_lea.hbm %s12765_s12, 14592 }
  0x75   :  { %p10711_p12 = scmp.ne.s32.totalorder %s12765_s12, %s10710_s20  ;;  %p10714_p13 = scmp.lt.u32.totalorder %s10710_s20, %s12765_s12 }
  0x77   :  { %p10716_p0 = pnand %p10714_p13, %p10711_p12 }
  0x79   :  { %10719 = shalt.err (!%p10716_p0)
}
  0x7a   :  { %s10720_s10 = scalar_lea.vmem %s170_s23, 14592  ;;  %p10725_p2 = scmp.lt.s32.totalorder %s170_s23, %s170_s23 }
  0x7b   :  { %p10721_p1 = scmp.ne.s32.totalorder %s170_s23, %s10720_s10  ;;  %p10726_p3 = scmp.lt.s32.totalorder %s10720_s10, %s10720_s10 }
  0x7d   :  { %p10727_p4 = por %p10726_p3, %p10725_p2 }
  0x7f   :  { %p10728_p5 = pnand %p10727_p4, %p10721_p1 }
  0x81   :  { %10731 = shalt.err (!%p10728_p5)
}
  0x82   :  { %s11049_s5 = smov 384   ;;  %s11050_s29 = smov 24  }
  0x83   :  { %175 = dma.hbm_to_vmem [thread:$0]  %s12765_s12, 14592, %s170_s23, [#allocation21], %s11049_s5, %s11049_s5, %s11050_s29  }
  0x84   :  { %s10732_s22 = scalar_lea.hbm %s12767_s14, 14592 }
  0x85   :  { %p10733_p6 = scmp.ne.s32.totalorder %s12767_s14, %s10732_s22  ;;  %p10736_p7 = scmp.lt.u32.totalorder %s10732_s22, %s12767_s14 }
  0x87   :  { %p10738_p8 = pnand %p10736_p7, %p10733_p6 }
  0x89   :  { %10741 = shalt.err (!%p10738_p8)
}
  0x8a   :  { %s10742_s6 = scalar_lea.vmem %s192_s19, 14592  ;;  %p10747_p10 = scmp.lt.s32.totalorder %s192_s19, %s192_s19 }
  0x8b   :  { %p10743_p9 = scmp.ne.s32.totalorder %s192_s19, %s10742_s6  ;;  %p10748_p11 = scmp.lt.s32.totalorder %s10742_s6, %s10742_s6 }
  0x8d   :  { %p10749_p12 = por %p10748_p11, %p10747_p10 }
  0x8f   :  { %p10750_p13 = pnand %p10749_p12, %p10743_p9 }
  0x91   :  { %10753 = shalt.err (!%p10750_p13)
}
  0x92   :  { %197 = dma.hbm_to_vmem [thread:$0]  %s12767_s14, 14592, %s192_s19, [#allocation24], %s11049_s5, %s11049_s5, %s11050_s29  }
  0x93   :  { %s11051_s28 = smov [#allocation26]   ;;  %s11052_s24 = smov [#allocation2]  }
  0x94   :  { %s216_s20 = sshll.u32 %s11051_s28, 4  ;;  %s45_s2 = sshll.u32 %s11052_s24, 4  ;;  %s217_s20 = int_to_ptr.vmem [resolvable:$true] %s216_s20  ;;  %s46_s2 = int_to_ptr.vmem [resolvable:$true] %s45_s2 }
  0x95   :  { %s10754_s10 = scalar_lea.hbm %s12769_s16, 48 }
  0x96   :  { %p10755_p0 = scmp.ne.s32.totalorder %s12769_s16, %s10754_s10  ;;  %p10758_p1 = scmp.lt.u32.totalorder %s10754_s10, %s12769_s16 }
  0x98   :  { %p10760_p2 = pnand %p10758_p1, %p10755_p0 }
  0x9a   :  { %10763 = shalt.err (!%p10760_p2)
}
  0x9b   :  { %s10764_s14 = scalar_lea.vmem %s217_s20, 48  ;;  %s10768_s19 = scalar_lea.vmem %s217_s20, 64 }
  0x9c   :  { %p10765_p3 = scmp.ne.s32.totalorder %s217_s20, %s10764_s14  ;;  %p10769_p4 = scmp.lt.s32.totalorder %s217_s20, %s217_s20 }
  0x9d   :  { %p10770_p5 = scmp.lt.s32.totalorder %s10768_s19, %s10764_s14 }
  0x9f   :  { %p10771_p6 = por %p10770_p5, %p10769_p4 }
  0xa1   :  { %p10772_p7 = pnand %p10771_p6, %p10765_p3 }
  0xa3   :  { %10775 = shalt.err (!%p10772_p7)
}
  0xa4   :  { %219 = dma.hbm_to_vmem [thread:$0]  %s12769_s16, 48, %s217_s20, [#allocation27]  }
  0xa5   :  { %s12805_s1 = sld [smem:[#allocation58_spill]] }
  0xab   :  { %s10776_s6 = scalar_lea.hbm %s12805_s1, 9216 }
  0xac   :  { %p10777_p8 = scmp.ne.s32.totalorder %s12805_s1, %s10776_s6  ;;  %p10780_p9 = scmp.lt.u32.totalorder %s10776_s6, %s12805_s1 }
  0xae   :  { %p10782_p10 = pnand %p10780_p9, %p10777_p8 }
  0xb0   :  { %10785 = shalt.err (!%p10782_p10)
}
  0xb1   :  { %s10786_s27 = scalar_lea.vmem %s46_s2, 9216  ;;  %p10791_p12 = scmp.lt.s32.totalorder %s46_s2, %s46_s2 }
  0xb2   :  { %p10787_p11 = scmp.ne.s32.totalorder %s46_s2, %s10786_s27  ;;  %p10792_p13 = scmp.lt.s32.totalorder %s10786_s27, %s10786_s27 }
  0xb4   :  { %p10793_p0 = por %p10792_p13, %p10791_p12 }
  0xb6   :  { %p10794_p1 = pnand %p10793_p0, %p10787_p11 }
  0xb8   :  { %10797 = shalt.err (!%p10794_p1)
}
  0xb9   :  { %51 = dma.hbm_to_vmem [thread:$0]  %s12805_s1, 9216, %s46_s2, [#allocation3], %s11049_s5, %s11049_s5, %s11050_s29  }
  0xba   :  { %s11053_s26 = smov [#allocation7]   ;;  %s12806_s25 = sld [smem:[#allocation60_spill]] }
  0xbb   :  { %s69_s10 = sshll.u32 %s11053_s26, 4  ;;  %s70_s10 = int_to_ptr.vmem [resolvable:$true] %s69_s10 }
  0xc0   :  { %s10798_s3 = scalar_lea.hbm %s12806_s25, 38912 }
  0xc1   :  { %p10799_p2 = scmp.ne.s32.totalorder %s12806_s25, %s10798_s3  ;;  %p10802_p3 = scmp.lt.u32.totalorder %s10798_s3, %s12806_s25 }
  0xc3   :  { %p10804_p4 = pnand %p10802_p3, %p10799_p2 }
  0xc5   :  { %10807 = shalt.err (!%p10804_p4)
}
  0xc6   :  { %s10808_s4 = scalar_lea.vmem %s70_s10, 38912  ;;  %p10813_p6 = scmp.lt.s32.totalorder %s70_s10, %s70_s10 }
  0xc7   :  { %p10809_p5 = scmp.ne.s32.totalorder %s70_s10, %s10808_s4  ;;  %p10814_p7 = scmp.lt.s32.totalorder %s10808_s4, %s10808_s4 }
  0xc9   :  { %p10815_p8 = por %p10814_p7, %p10813_p6 }
  0xcb   :  { %p10816_p9 = pnand %p10815_p8, %p10809_p5 }
  0xcd   :  { %10819 = shalt.err (!%p10816_p9)
}
  0xce   :  { %s11054_s2 = smov 1024   ;;  %s11055_s21 = smov 64  }
  0xcf   :  { %75 = dma.hbm_to_vmem [thread:$0]  %s12806_s25, 38912, %s70_s10, [#allocation6], %s11054_s2, %s11054_s2, %s11055_s21  }
  0xd0   :  { %s11056_s12 = smov [#allocation10]   ;;  %s11057_s28 = smov [#allocation13]  }
  0xd1   :  { %s91_s23 = sshll.u32 %s11056_s12, 4  ;;  %s113_s24 = sshll.u32 %s11057_s28, 4  ;;  %s92_s23 = int_to_ptr.vmem [resolvable:$true] %s91_s23  ;;  %s11314_s24 = int_to_ptr.vmem [resolvable:$true] %s113_s24 }
  0xd2   :  { %s12807_s20 = sld [smem:[#allocation62_spill]] }
  0xd8   :  { %s10820_s26 = scalar_lea.hbm %s12807_s20, 38912 }
  0xd9   :  { %p10821_p10 = scmp.ne.s32.totalorder %s12807_s20, %s10820_s26  ;;  %p10824_p11 = scmp.lt.u32.totalorder %s10820_s26, %s12807_s20 }
  0xdb   :  { %p10826_p12 = pnand %p10824_p11, %p10821_p10 }
  0xdd   :  { %10829 = shalt.err (!%p10826_p12)
}
  0xde   :  { %s10830_s10 = scalar_lea.vmem %s92_s23, 38912  ;;  %p10835_p0 = scmp.lt.s32.totalorder %s92_s23, %s92_s23 }
  0xdf   :  { %p10831_p13 = scmp.ne.s32.totalorder %s92_s23, %s10830_s10  ;;  %p10836_p1 = scmp.lt.s32.totalorder %s10830_s10, %s10830_s10 }
  0xe1   :  { %p10837_p2 = por %p10836_p1, %p10835_p0 }
  0xe3   :  { %p10838_p3 = pnand %p10837_p2, %p10831_p13 }
  0xe5   :  { %10841 = shalt.err (!%p10838_p3)
}
  0xe6   :  { %97 = dma.hbm_to_vmem [thread:$0]  %s12807_s20, 38912, %s92_s23, [#allocation9], %s11054_s2, %s11054_s2, %s11055_s21  }
  0xe7   :  { %s10842_s4 = scalar_lea.hbm %s12760_s7, 14592 }
  0xe8   :  { %p10843_p4 = scmp.ne.s32.totalorder %s12760_s7, %s10842_s4  ;;  %p10846_p5 = scmp.lt.u32.totalorder %s10842_s4, %s12760_s7 }
  0xea   :  { %p10848_p6 = pnand %p10846_p5, %p10843_p4 }
  0xec   :  { %10851 = shalt.err (!%p10848_p6)
}
  0xed   :  { %s10852_s27 = scalar_lea.vmem %s11314_s24, 14592  ;;  %p10857_p8 = scmp.lt.s32.totalorder %s11314_s24, %s11314_s24 }
  0xee   :  { %p10853_p7 = scmp.ne.s32.totalorder %s11314_s24, %s10852_s27  ;;  %p10858_p9 = scmp.lt.s32.totalorder %s10852_s27, %s10852_s27 }
  0xf0   :  { %p10859_p10 = por %p10858_p9, %p10857_p8 }
  0xf2   :  { %p10860_p11 = pnand %p10859_p10, %p10853_p7 }
  0xf4   :  { %10863 = shalt.err (!%p10860_p11)
}
  0xf5   :  { %119 = dma.hbm_to_vmem [thread:$0]  %s12760_s7, 14592, %s11314_s24, [#allocation12], %s11049_s5, %s11049_s5, %s11050_s29  }
  0xf6   :  { %s11058_s23 = smov [#allocation16]   ;;  %s11059_s20 = smov [#allocation19]  }
  0xf7   :  { %s135_s16 = sshll.u32 %s11058_s23, 4  ;;  %s157_s26 = sshll.u32 %s11059_s20, 4  ;;  %s136_s16 = int_to_ptr.vmem [resolvable:$true] %s135_s16  ;;  %s11348_s26 = int_to_ptr.vmem [resolvable:$true] %s157_s26 }
  0xf8   :  { %s10864_s3 = scalar_lea.hbm %s12762_s9, 14592 }
  0xf9   :  { %p10865_p12 = scmp.ne.s32.totalorder %s12762_s9, %s10864_s3  ;;  %p10868_p13 = scmp.lt.u32.totalorder %s10864_s3, %s12762_s9 }
  0xfb   :  { %p10870_p0 = pnand %p10868_p13, %p10865_p12 }
  0xfd   :  { %10873 = shalt.err (!%p10870_p0)
}
  0xfe   :  { %s10874_s7 = scalar_lea.vmem %s136_s16, 14592  ;;  %p10879_p2 = scmp.lt.s32.totalorder %s136_s16, %s136_s16 }
  0xff   :  { %p10875_p1 = scmp.ne.s32.totalorder %s136_s16, %s10874_s7  ;;  %p10880_p3 = scmp.lt.s32.totalorder %s10874_s7, %s10874_s7 }
 0x101   :  { %p10881_p4 = por %p10880_p3, %p10879_p2 }
 0x103   :  { %p10882_p5 = pnand %p10881_p4, %p10875_p1 }
 0x105   :  { %10885 = shalt.err (!%p10882_p5)
}
 0x106   :  { %141 = dma.hbm_to_vmem [thread:$0]  %s12762_s9, 14592, %s136_s16, [#allocation15], %s11049_s5, %s11049_s5, %s11050_s29  }
 0x107   :  { %s10886_s1 = scalar_lea.hbm %s12764_s11, 14592 }
 0x108   :  { %p10887_p6 = scmp.ne.s32.totalorder %s12764_s11, %s10886_s1  ;;  %p10890_p7 = scmp.lt.u32.totalorder %s10886_s1, %s12764_s11 }
 0x10a   :  { %p10892_p8 = pnand %p10890_p7, %p10887_p6 }
 0x10c   :  { %10895 = shalt.err (!%p10892_p8)
}
 0x10d   :  { %s10896_s2 = scalar_lea.vmem %s11348_s26, 14592  ;;  %p10901_p10 = scmp.lt.s32.totalorder %s11348_s26, %s11348_s26 }
 0x10e   :  { %p10897_p9 = scmp.ne.s32.totalorder %s11348_s26, %s10896_s2  ;;  %p10902_p11 = scmp.lt.s32.totalorder %s10896_s2, %s10896_s2 }
 0x110   :  { %p10903_p12 = por %p10902_p11, %p10901_p10 }
 0x112   :  { %p10904_p13 = pnand %p10903_p12, %p10897_p9 }
 0x114   :  { %10907 = shalt.err (!%p10904_p13)
}
 0x115   :  { %163 = dma.hbm_to_vmem [thread:$0]  %s12764_s11, 14592, %s11348_s26, [#allocation18], %s11049_s5, %s11049_s5, %s11050_s29  }
 0x116   :  { %s11060_s23 = smov [#allocation22]   ;;  %s11061_s20 = smov [#allocation25]  }
 0x117   :  { %s182_s16 = sshll.u32 %s11060_s23, 4  ;;  %s203_s0 = sshll.u32 %s11061_s20, 4  ;;  %s183_s16 = int_to_ptr.vmem [resolvable:$true] %s182_s16  ;;  %s11385_s0 = int_to_ptr.vmem [resolvable:$true] %s203_s0 }
 0x118   :  { %s10908_s14 = scalar_lea.hbm %s12766_s13, 48 }
 0x119   :  { %p10909_p0 = scmp.ne.s32.totalorder %s12766_s13, %s10908_s14  ;;  %p10912_p1 = scmp.lt.u32.totalorder %s10908_s14, %s12766_s13 }
 0x11b   :  { %p10914_p2 = pnand %p10912_p1, %p10909_p0 }
 0x11d   :  { %10917 = shalt.err (!%p10914_p2)
}
 0x11e   :  { %s10918_s11 = scalar_lea.vmem %s183_s16, 48  ;;  %s10922_s26 = scalar_lea.vmem %s183_s16, 64 }
 0x11f   :  { %p10919_p3 = scmp.ne.s32.totalorder %s183_s16, %s10918_s11  ;;  %p10923_p4 = scmp.lt.s32.totalorder %s183_s16, %s183_s16 }
 0x120   :  { %p10924_p5 = scmp.lt.s32.totalorder %s10922_s26, %s10918_s11 }
 0x122   :  { %p10925_p6 = por %p10924_p5, %p10923_p4 }
 0x124   :  { %p10926_p7 = pnand %p10925_p6, %p10919_p3 }
 0x126   :  { %10929 = shalt.err (!%p10926_p7)
}
 0x127   :  { %185 = dma.hbm_to_vmem [thread:$0]  %s12766_s13, 48, %s183_s16, [#allocation21]  }
 0x128   :  { %s10930_s1 = scalar_lea.hbm %s12768_s15, 14592 }
 0x129   :  { %p10931_p8 = scmp.ne.s32.totalorder %s12768_s15, %s10930_s1  ;;  %p10934_p9 = scmp.lt.u32.totalorder %s10930_s1, %s12768_s15 }
 0x12b   :  { %p10936_p10 = pnand %p10934_p9, %p10931_p8 }
 0x12d   :  { %10939 = shalt.err (!%p10936_p10)
}
 0x12e   :  { %s10940_s2 = scalar_lea.vmem %s11385_s0, 14592  ;;  %p10945_p12 = scmp.lt.s32.totalorder %s11385_s0, %s11385_s0 }
 0x12f   :  { %p10941_p11 = scmp.ne.s32.totalorder %s11385_s0, %s10940_s2  ;;  %p10946_p13 = scmp.lt.s32.totalorder %s10940_s2, %s10940_s2 }
 0x131   :  { %p10947_p0 = por %p10946_p13, %p10945_p12 }
 0x133   :  { %p10948_p1 = pnand %p10947_p0, %p10941_p11 }
 0x135   :  { %10951 = shalt.err (!%p10948_p1)
}
 0x136   :  { %209 = dma.hbm_to_vmem [thread:$0]  %s12768_s15, 14592, %s11385_s0, [#allocation24], %s11049_s5, %s11049_s5, %s11050_s29  }
 0x137   :  { %s11062_s21 = smov [#allocation28]   ;;  %s11063_s16 = smov [#allocation29]  }
 0x138   :  { %s226_s23 = sshll.u32 %s11062_s21, 4  ;;  %s236_s20 = sshll.u32 %s11063_s16, 4  ;;  %s227_s23 = int_to_ptr.vmem [resolvable:$true] %s226_s23  ;;  %s237_s20 = int_to_ptr.vmem [resolvable:$true] %s236_s20 }
 0x139   :  { %s10952_s14 = scalar_lea.hbm %s12770_s17, 80 }
 0x13a   :  { %p10953_p2 = scmp.ne.s32.totalorder %s12770_s17, %s10952_s14  ;;  %p10956_p3 = scmp.lt.u32.totalorder %s10952_s14, %s12770_s17 }
 0x13c   :  { %p10958_p4 = pnand %p10956_p3, %p10953_p2 }
 0x13e   :  { %10961 = shalt.err (!%p10958_p4)
}
 0x13f   :  { %s10962_s15 = scalar_lea.vmem %s227_s23, 80  ;;  %s10966_s5 = scalar_lea.vmem %s227_s23, 96 }
 0x140   :  { %p10963_p5 = scmp.ne.s32.totalorder %s227_s23, %s10962_s15  ;;  %p10967_p6 = scmp.lt.s32.totalorder %s227_s23, %s227_s23 }
 0x141   :  { %p10968_p7 = scmp.lt.s32.totalorder %s10966_s5, %s10962_s15 }
 0x143   :  { %p10969_p8 = por %p10968_p7, %p10967_p6 }
 0x145   :  { %p10970_p9 = pnand %p10969_p8, %p10963_p5 }
 0x147   :  { %10973 = shalt.err (!%p10970_p9)
}
 0x148   :  { %229 = dma.hbm_to_vmem [thread:$0]  %s12770_s17, 80, %s227_s23, [#allocation27]  }
 0x149   :  { %s10974_s24 = scalar_lea.hbm %s12771_s18, 80 }
 0x14a   :  { %p10975_p10 = scmp.ne.s32.totalorder %s12771_s18, %s10974_s24  ;;  %p10978_p11 = scmp.lt.u32.totalorder %s10974_s24, %s12771_s18 }
 0x14c   :  { %p10980_p12 = pnand %p10978_p11, %p10975_p10 }
 0x14e   :  { %10983 = shalt.err (!%p10980_p12)
}
 0x14f   :  { %s10984_s6 = scalar_lea.vmem %s237_s20, 80  ;;  %s10988_s12 = scalar_lea.vmem %s237_s20, 96 }
 0x150   :  { %p10985_p13 = scmp.ne.s32.totalorder %s237_s20, %s10984_s6  ;;  %p10989_p0 = scmp.lt.s32.totalorder %s237_s20, %s237_s20 }
 0x151   :  { %p10990_p1 = scmp.lt.s32.totalorder %s10988_s12, %s10984_s6 }
 0x153   :  { %p10991_p2 = por %p10990_p1, %p10989_p0 }
 0x155   :  { %p10992_p3 = pnand %p10991_p2, %p10985_p13 }
 0x157   :  { %10995 = shalt.err (!%p10992_p3)
}
 0x158   :  { %239 = dma.hbm_to_vmem [thread:$0]  %s12771_s18, 80, %s237_s20, [#allocation30]  }
 0x159   :  { %11018 = dma.done.wait [#allocation3], 9216  }
 0x15a   :  { %11019 = vsyncadd [#allocation3], 4294958080 }
 0x15b   :  { %11020 = dma.done.wait [#allocation6], 39200  }
 0x15c   :  { %11021 = vsyncadd [#allocation6], 4294928096 }
 0x15d   :  { %11022 = dma.done.wait [#allocation9], 39040  }
 0x15e   :  { %11023 = vsyncadd [#allocation9], 4294928256 }
 0x15f   :  { %11024 = dma.done.wait [#allocation12], 14720  }
 0x160   :  { %11025 = vsyncadd [#allocation12], 4294952576 }
 0x161   :  { %11026 = dma.done.wait [#allocation15], 14640  }
 0x162   :  { %11027 = vsyncadd [#allocation15], 4294952656 }
 0x163   :  { %11028 = dma.done.wait [#allocation18], 14640  }
 0x164   :  { %11029 = vsyncadd [#allocation18], 4294952656 }
 0x165   :  { %11030 = dma.done.wait [#allocation21], 14640  }
 0x166   :  { %11031 = vsyncadd [#allocation21], 4294952656 }
 0x167   :  { %11032 = dma.done.wait [#allocation24], 29184  }
 0x168   :  { %11033 = vsyncadd [#allocation24], 4294938112 }
 0x169   :  { %11034 = dma.done.wait [#allocation27], 128  }
 0x16a   :  { %11035 = vsyncadd [#allocation27], 4294967168 }
 0x16b   :  { %11036 = dma.done.wait [#allocation30], 80  }
 0x16c   :  { %11037 = vsyncadd [#allocation30], 4294967216  ;;  %v12784_v0 = vmov 0.0   ;;  %v297_v1 = vld [vmem:[#allocation2 + $0x8] sm:$0xff]  ;;  %v300_v2 = vld [vmem:[#allocation2 + $0x20] sm:$0xff]  ;;  %s12808_s2 = sld [smem:[#allocation57_spill]] }
 0x16d   :  { %396 = vmatprep.mubr.f32.mxu1 %v12784_v0  ;;  %585 = vmatprep.mubr.f32.mxu0 %v12784_v0  ;;  %v492_v3 = vld [vmem:[#allocation2 + $0x68] sm:$0xff]  ;;  %v8802_v4 = vpack.c.bf16 %v300_v2, %v297_v1  ;;  %v495_v5 = vld [vmem:[#allocation2 + $0x80] sm:$0xff]  ;;  %v299_v7 = vld [vmem:[#allocation2 + $0x18] sm:$0xff]  ;;  %vm325_vm0 = vcmask 261120   ;;  %vm1932_vm1 = vcmask 1043456   ;;  %vm11065_vm2 = vmmov 1  }
 0x16e   :  { %v296_v6 = vld [vmem:[#allocation2] sm:$0xff]  ;;  %v8818_v8 = vpack.c.bf16 %v495_v5, %v492_v3  ;;  %v494_v11 = vld [vmem:[#allocation2 + $0x78] sm:$0xff]  ;;  %v306_v14 = vld [vmem:[#allocation2 + $0x50] sm:$0xff]  ;;  %vm1925_vm4 = vcmask 359424   ;;  %s12815_s16 = sld [smem:[#allocation63_spill]]  ;;  %s12822_s15 = sld [smem:[#allocation64_spill]] }
 0x16f   :  { %v8804_v9 = vpack.c.bf16 %v299_v7, %v296_v6  ;;  %v491_v10 = vld [vmem:[#allocation2 + $0x60] sm:$0xff]  ;;  %v303_v12 = vld [vmem:[#allocation2 + $0x38] sm:$0xff]  ;;  %8803 = vmatprep.subr.bf16.mxu1 %v8802_v4  ;;  %v501_v16 = vld [vmem:[#allocation2 + $0xb0] sm:$0xff]  ;;  %vm3576_vm5 = vcmask 179200   ;;  %s11066_s22 = smov 62   ;;  %s11067_s8 = smov 84  }
 0x170   :  { %v8820_v13 = vpack.c.bf16 %v494_v11, %v491_v10  ;;  %v498_v15 = vld [vmem:[#allocation2 + $0x98] sm:$0xff]  ;;  %8819 = vmatprep.subr.bf16.mxu0 %v8818_v8  ;;  %v8806_v17 = vpack.c.bf16 %v306_v14, %v303_v12  ;;  %v302_v19 = vld [vmem:[#allocation2 + $0x30] sm:$0xff]  ;;  %v305_v20 = vld [vmem:[#allocation2 + $0x48] sm:$0xff]  ;;  %s11068_s4 = smov 106   ;;  %vm3573_vm6 = vcmask 687104   ;;  %vm3762_vm7 = vcmask 506880  }
 0x171   :  { %8805 = vmatpush1.bf16.msra.mxu1 %v8804_v9  ;;  %v8822_v18 = vpack.c.bf16 %v501_v16, %v498_v15  ;;  %v497_v21 = vld [vmem:[#allocation2 + $0x90] sm:$0xff]  ;;  %v8808_v22 = vpack.c.bf16 %v305_v20, %v302_v19  ;;  %v500_v23 = vld [vmem:[#allocation2 + $0xa8] sm:$0xff]  ;;  %v714_v28 = vld [vmem:[#allocation2 + $0xe0] sm:$0xff]  ;;  %vm3754_vm8 = vcmask 867328   ;;  %s11069_s1 = smov 40   ;;  %s11070_s6 = smov 18  }
 0x172   :  { %8821 = vmatpush1.bf16.msra.mxu0 %v8820_v13  ;;  %v298_v24 = vld [vmem:[#allocation2 + $0x10] sm:$0xff]  ;;  %8807 = vmatprep.subr.bf16.mxu1 %v8806_v17  ;;  %v8824_v25 = vpack.c.bf16 %v500_v23, %v497_v21  ;;  %v301_v26 = vld [vmem:[#allocation2 + $0x28] sm:$0xff]  ;;  %v11448_v29 = vld [vmem:[%s12808_s2] sm:$0xff]  ;;  %vm3670_vm9 = vcmask 326656   ;;  %vm3652_vm10 = vcmask 64512   ;;  %vm3858_vm11 = vcmask 146432  }
 0x173   :  { %8823 = vmatprep.subr.bf16.mxu0 %v8822_v18  ;;  %v711_v27 = vld [vmem:[#allocation2 + $0xc8] sm:$0xff]  ;;  %v8810_v30 = vpack.c.bf16 %v301_v26, %v298_v24  ;;  %v710_v32 = vld [vmem:[#allocation2 + $0xc0] sm:$0xff]  ;;  %v713_v33 = vld [vmem:[#allocation2 + $0xd8] sm:$0xff]  ;;  %s11071_s12 = smov 22   ;;  %s11072_s7 = smov 44   ;;  %vm7838_vm12 = vcmask 719872  }
 0x174   :  { %v8834_v31 = vpack.c.bf16 %v714_v28, %v711_v27  ;;  %v304_v34 = vld [vmem:[#allocation2 + $0x40] sm:$0xff]  ;;  %v307_v35 = vld [vmem:[#allocation2 + $0x58] sm:$0xff]  ;;  %v8836_v37 = vpack.c.bf16 %v713_v33, %v710_v32  ;;  %v720_v38 = vld [vmem:[#allocation2 + $0x110] sm:$0xff]  ;;  %vm8136_vm13 = vcmask 7168   ;;  %s11073_s14 = smov 88   ;;  %vm8050_vm14 = vcmask 392192  }
 0x175   :  { %8809 = vmatpush1.bf16.msra.mxu1 %v8808_v22  ;;  %v717_v36 = vld [vmem:[#allocation2 + $0xf8] sm:$0xff]  ;;  %v8814_v39 = vpack.c.bf16 %v307_v35, %v304_v34  ;;  %v716_v40 = vld [vmem:[#allocation2 + $0xf0] sm:$0xff]  ;;  %v719_v41 = vld [vmem:[#allocation2 + $0x108] sm:$0xff]  ;;  %s11074_s18 = smov [#allocation31]   ;;  %vm8150_vm15 = vcmask 0  }
 0x176   :  { %8825 = vmatpush1.bf16.msra.mxu0 %v8824_v25  ;;  %8811 = vmatprep.subr.bf16.mxu1 %v8810_v30  ;;  %v8838_v42 = vpack.c.bf16 %v720_v38, %v717_v36  ;;  %v493_v43 = vld [vmem:[#allocation2 + $0x70] sm:$0xff]  ;;  %v496_v44 = vld [vmem:[#allocation2 + $0x88] sm:$0xff]  ;;  %v933_v47 = vld [vmem:[#allocation2 + $0x140] sm:$0xff]  ;;  %v8840_v48 = vpack.c.bf16 %v719_v41, %v716_v40  ;;  %s8162_s27 = sshll.u32 %s11074_s18, 4  ;;  %s8163_s27 = int_to_ptr.vmem [resolvable:$true] %s8162_s27 }
 0x177   :  { %8835 = vmatprep.subr.bf16.mxu0 %v8834_v31  ;;  %v11457_v45 = vld [vmem:[%s12808_s2 + $0x8] sm:$0xff]  ;;  %v8826_v49 = vpack.c.bf16 %v496_v44, %v493_v43  ;;  %v929_v50 = vld [vmem:[#allocation2 + $0x120] sm:$0xff]  ;;  %v932_v51 = vld [vmem:[#allocation2 + $0x138] sm:$0xff]  ;;  %s10996_s13 = scalar_lea.vmem %s8163_s27, 16  ;;  %s11000_s9 = scalar_lea.vmem %s8163_s27, 32 }
 0x178   :  { %8184 = vmatmul.mubr.msk.f32.vlgmr.msra.gmra.mrb[0].mxu1 %vm325_vm0, %v11448_v29  ;;  %v930_v46 = vld [vmem:[#allocation2 + $0x128] sm:$0xff]  ;;  %v499_v52 = vld [vmem:[#allocation2 + $0xa0] sm:$0xff]  ;;  %v502_v54 = vld [vmem:[#allocation2 + $0xb8] sm:$0xff]  ;;  %v8852_v57 = vpack.c.bf16 %v932_v51, %v929_v50  ;;  %p10997_p4 = scmp.ne.s32.totalorder %s8163_s27, %s10996_s13  ;;  %p11001_p5 = scmp.lt.s32.totalorder %s8163_s27, %s8163_s27 }
 0x179   :  { %8188 = vmatmul.mubr.msk.f32.vlgmr.msra.gmra.mrb[0].mxu0 %vm325_vm0, %v11448_v29  ;;  %8813 = vmatpush3.bf16.msra.mxu1 %v8810_v30  ;;  %v8850_v53 = vpack.c.bf16 %v933_v47, %v930_v46  ;;  %v936_v55 = vld [vmem:[#allocation2 + $0x158] sm:$0xff]  ;;  %v939_v56 = vld [vmem:[#allocation2 + $0x170] sm:$0xff]  ;;  %v8830_v58 = vpack.c.bf16 %v502_v54, %v499_v52  ;;  %v938_v61 = vld [vmem:[#allocation2 + $0x168] sm:$0xff]  ;;  %p11002_p6 = scmp.lt.s32.totalorder %s11000_s9, %s10996_s13 }
 0x17a   :  { %8837 = vmatpush1.bf16.msra.mxu0 %v8836_v37  ;;  %402 = vmatprep.mubr.f32.mxu1 %v12784_v0  ;;  %v8854_v59 = vpack.c.bf16 %v939_v56, %v936_v55  ;;  %v935_v60 = vld [vmem:[#allocation2 + $0x150] sm:$0xff]  ;;  %v715_v63 = vld [vmem:[#allocation2 + $0xe8] sm:$0xff]  ;;  %v1122_v2 = vld [vmem:[#allocation2 + $0x1a0] sm:$0xff] }
 0x17b   :  { %591 = vmatprep.mubr.f32.mxu0 %v12784_v0  ;;  %8815 = vmatprep.subr.bf16.mxu1 %v8814_v39  ;;  %v712_v62 = vld [vmem:[#allocation2 + $0xd0] sm:$0xff]  ;;  %v1119_v1 = vld [vmem:[#allocation2 + $0x188] sm:$0xff]  ;;  %v8856_v3 = vpack.c.bf16 %v938_v61, %v935_v60  ;;  %v1118_v6 = vld [vmem:[#allocation2 + $0x180] sm:$0xff]  ;;  %p11003_p7 = por %p11002_p6, %p11001_p5 }
 0x17c   :  { %8185 = vmatmul.mubr.msk.f32.gmra.mrb[2].mxu1 %vm325_vm0, %v11457_v45  ;;  %8839 = vmatprep.subr.bf16.mxu0 %v8838_v42  ;;  %v8842_v4 = vpack.c.bf16 %v715_v63, %v712_v62  ;;  %v8866_v5 = vpack.c.bf16 %v1122_v2, %v1119_v1  ;;  %v1121_v7 = vld [vmem:[#allocation2 + $0x198] sm:$0xff]  ;;  %v718_v8 = vld [vmem:[#allocation2 + $0x100] sm:$0xff]  ;;  %v1128_v11 = vld [vmem:[#allocation2 + $0x1d0] sm:$0xff] }
 0x17d   :  { %8189 = vmatmul.mubr.msk.f32.gmra.mrb[2].mxu0 %vm325_vm0, %v11457_v45  ;;  %8817 = vmatpush3.bf16.msra.mxu1 %v8814_v39  ;;  %v721_v9 = vld [vmem:[#allocation2 + $0x118] sm:$0xff]  ;;  %v8868_v12 = vpack.c.bf16 %v1121_v7, %v1118_v6  ;;  %v1124_v15 = vld [vmem:[#allocation2 + $0x1b0] sm:$0xff]  ;;  %v1127_v16 = vld [vmem:[#allocation2 + $0x1c8] sm:$0xff]  ;;  %p11004_p8 = pnand %p11003_p7, %p10997_p4 }
 0x17e   :  { %8841 = vmatpush1.bf16.msra.mxu0 %v8840_v48  ;;  %8654 = vmatprep.mubr.msk.f32.mxu1 %vm325_vm0, %v11448_v29  ;;  %v1125_v10 = vld [vmem:[#allocation2 + $0x1b8] sm:$0xff]  ;;  %v8846_v13 = vpack.c.bf16 %v721_v9, %v718_v8  ;;  %v931_v17 = vld [vmem:[#allocation2 + $0x130] sm:$0xff]  ;;  %v934_v18 = vld [vmem:[#allocation2 + $0x148] sm:$0xff]  ;;  %v8872_v21 = vpack.c.bf16 %v1127_v16, %v1124_v15 }
 0x17f   :  { %804 = vmatprep.mubr.f32.mxu0 %v12784_v0  ;;  %8827 = vmatprep.subr.bf16.mxu1 %v8826_v49  ;;  %v8870_v14 = vpack.c.bf16 %v1128_v11, %v1125_v10  ;;  %v1338_v19 = vld [vmem:[#allocation2 + $0x1e8] sm:$0xff]  ;;  %v1341_v20 = vld [vmem:[#allocation2 + $0x200] sm:$0xff]  ;;  %v8858_v22 = vpack.c.bf16 %v934_v18, %v931_v17  ;;  %v1340_v25 = vld [vmem:[#allocation2 + $0x1f8] sm:$0xff] }
 0x180   :  { %8655 = vmatmul.mubr.msk.f32.vlgmr.msra.gmra.mrb[4].mxu1 %vm325_vm0, %v11457_v45  ;;  %8851 = vmatprep.subr.bf16.mxu0 %v8850_v53  ;;  %v8882_v23 = vpack.c.bf16 %v1341_v20, %v1338_v19  ;;  %v1337_v24 = vld [vmem:[#allocation2 + $0x1e0] sm:$0xff]  ;;  %v940_v27 = vld [vmem:[#allocation2 + $0x178] sm:$0xff]  ;;  %v1347_v30 = vld [vmem:[#allocation2 + $0x230] sm:$0xff] }
 0x181   :  { %8198 = vmatmul.mubr.msk.f32.vlgmr.msra.gmra.mrb[4].mxu0 %vm325_vm0, %v11448_v29  ;;  %8829 = vmatpush3.bf16.msra.mxu1 %v8826_v49  ;;  %v937_v26 = vld [vmem:[#allocation2 + $0x160] sm:$0xff]  ;;  %v1344_v28 = vld [vmem:[#allocation2 + $0x218] sm:$0xff]  ;;  %v8884_v31 = vpack.c.bf16 %v1340_v25, %v1337_v24  ;;  %v1343_v34 = vld [vmem:[#allocation2 + $0x210] sm:$0xff] }
 0x182   :  { %8853 = vmatpush1.bf16.msra.mxu0 %v8852_v57  ;;  %810 = vmatprep.mubr.f32.mxu0 %v12784_v0  ;;  %v8862_v32 = vpack.c.bf16 %v940_v27, %v937_v26  ;;  %v8886_v33 = vpack.c.bf16 %v1347_v30, %v1344_v28  ;;  %v1346_v35 = vld [vmem:[#allocation2 + $0x228] sm:$0xff]  ;;  %v1120_v36 = vld [vmem:[#allocation2 + $0x190] sm:$0xff]  ;;  %v1580_v38 = vld [vmem:[#allocation7 + $0x8] sm:$0xff] }
 0x183   :  { %8831 = vmatprep.subr.bf16.mxu1 %v8830_v58  ;;  %8855 = vmatprep.subr.bf16.mxu0 %v8854_v59  ;;  %v1123_v37 = vld [vmem:[#allocation2 + $0x1a8] sm:$0xff]  ;;  %v1588_v39 = vld [vmem:[#allocation7 + $0x48] sm:$0xff]  ;;  %v8888_v40 = vpack.c.bf16 %v1346_v35, %v1343_v34  ;;  %v1579_v46 = vld [vmem:[#allocation7] sm:$0xff] }
 0x184   :  { %8665 = vmatprep.mubr.msk.f32.mxu1 %vm325_vm0, %v11448_v29  ;;  %v8874_v41 = vpack.c.bf16 %v1123_v37, %v1120_v36  ;;  %v1126_v42 = vld [vmem:[#allocation2 + $0x1c0] sm:$0xff]  ;;  %v1129_v43 = vld [vmem:[#allocation2 + $0x1d8] sm:$0xff]  ;;  %v8898_v44 = vpack.c.bf16 %v1588_v39, %v1580_v38  ;;  %v1339_v51 = vld [vmem:[#allocation2 + $0x1f0] sm:$0xff] }
 0x185   :  { %8199 = vmatmul.mubr.msk.f32.gmra.mrb[6].mxu0 %vm325_vm0, %v11457_v45  ;;  %8833 = vmatpush3.bf16.msra.mxu1 %v8830_v58  ;;  %v1587_v47 = vld [vmem:[#allocation7 + $0x40] sm:$0xff]  ;;  %v1596_v48 = vld [vmem:[#allocation7 + $0x88] sm:$0xff]  ;;  %v8878_v50 = vpack.c.bf16 %v1129_v43, %v1126_v42  ;;  %v1342_v52 = vld [vmem:[#allocation2 + $0x208] sm:$0xff] }
 0x186   :  { %8857 = vmatpush1.bf16.msra.mxu0 %v8856_v3  ;;  %1023 = vmatprep.mubr.f32.mxu0 %v12784_v0  ;;  %v1604_v49 = vld [vmem:[#allocation7 + $0xc8] sm:$0xff]  ;;  %v8900_v53 = vpack.c.bf16 %v1587_v47, %v1579_v46  ;;  %v1595_v55 = vld [vmem:[#allocation7 + $0x80] sm:$0xff]  ;;  %v8890_v59 = vpack.c.bf16 %v1342_v52, %v1339_v51  ;;  %vm11514_vm3 = vmpackc.low %vm1932_vm1, %vm11065_vm2 }
 0x187   :  { %8843 = vmatprep.subr.bf16.mxu1 %v8842_v4  ;;  %8867 = vmatprep.subr.bf16.mxu0 %v8866_v5  ;;  %v8902_v54 = vpack.c.bf16 %v1604_v49, %v1596_v48  ;;  %v1603_v56 = vld [vmem:[#allocation7 + $0xc0] sm:$0xff]  ;;  %v1612_v57 = vld [vmem:[#allocation7 + $0x108] sm:$0xff] }
 0x188   :  { %8666 = vmatmul.mubr.msk.f32.vlgmr.msra.gmra.mrb[6].mxu1 %vm325_vm0, %v11457_v45  ;;  %v1620_v58 = vld [vmem:[#allocation7 + $0x148] sm:$0xff]  ;;  %v8904_v62 = vpack.c.bf16 %v1603_v56, %v1595_v55  ;;  %v1611_v1 = vld [vmem:[#allocation7 + $0x100] sm:$0xff] }
 0x189   :  { %8208 = vmatmul.mubr.msk.f32.vlgmr.msra.gmra.mrb[8].mxu0 %vm325_vm0, %v11448_v29  ;;  %8845 = vmatpush3.bf16.msra.mxu1 %v8842_v4  ;;  %v1345_v60 = vld [vmem:[#allocation2 + $0x220] sm:$0xff]  ;;  %v1348_v61 = vld [vmem:[#allocation2 + $0x238] sm:$0xff]  ;;  %v8906_v63 = vpack.c.bf16 %v1620_v58, %v1612_v57 }
 0x18a   :  { %8869 = vmatpush1.bf16.msra.mxu0 %v8868_v12  ;;  %1029 = vmatprep.mubr.f32.mxu0 %v12784_v0  ;;  %v1619_v2 = vld [vmem:[#allocation7 + $0x140] sm:$0xff]  ;;  %v1628_v3 = vld [vmem:[#allocation7 + $0x188] sm:$0xff]  ;;  %v8894_v5 = vpack.c.bf16 %v1348_v61, %v1345_v60 }
 0x18b   :  { %8847 = vmatprep.subr.bf16.mxu1 %v8846_v13  ;;  %8871 = vmatprep.subr.bf16.mxu0 %v8870_v14  ;;  %v1636_v4 = vld [vmem:[#allocation7 + $0x1c8] sm:$0xff]  ;;  %v8908_v6 = vpack.c.bf16 %v1619_v2, %v1611_v1  ;;  %v1627_v8 = vld [vmem:[#allocation7 + $0x180] sm:$0xff] }
 0x18c   :  { %8676 = vmatprep.mubr.msk.f32.mxu1 %vm325_vm0, %v11448_v29  ;;  %v8910_v7 = vpack.c.bf16 %v1636_v4, %v1628_v3  ;;  %v1635_v9 = vld [vmem:[#allocation7 + $0x1c0] sm:$0xff]  ;;  %v1644_v10 = vld [vmem:[#allocation7 + $0x208] sm:$0xff] }
 0x18d   :  { %8209 = vmatmul.mubr.msk.f32.gmra.mrb[10].mxu0 %vm325_vm0, %v11457_v45  ;;  %8849 = vmatpush3.bf16.msra.mxu1 %v8846_v13  ;;  %v1652_v11 = vld [vmem:[#allocation7 + $0x248] sm:$0xff]  ;;  %v8912_v12 = vpack.c.bf16 %v1635_v9, %v1627_v8  ;;  %v1643_v14 = vld [vmem:[#allocation7 + $0x200] sm:$0xff] }
 0x18e   :  { %8873 = vmatpush1.bf16.msra.mxu0 %v8872_v21  ;;  %1212 = vmatprep.mubr.f32.mxu0 %v12784_v0  ;;  %v8914_v13 = vpack.c.bf16 %v1652_v11, %v1644_v10  ;;  %v1651_v15 = vld [vmem:[#allocation7 + $0x240] sm:$0xff]  ;;  %v1660_v16 = vld [vmem:[#allocation7 + $0x288] sm:$0xff] }
 0x18f   :  { %8859 = vmatprep.subr.bf16.mxu1 %v8858_v22  ;;  %8883 = vmatprep.subr.bf16.mxu0 %v8882_v23  ;;  %v1668_v17 = vld [vmem:[#allocation7 + $0x2c8] sm:$0xff]  ;;  %v8916_v18 = vpack.c.bf16 %v1651_v15, %v1643_v14  ;;  %v1667_v20 = vld [vmem:[#allocation7 + $0x2c0] sm:$0xff] }
 0x190   :  { %8677 = vmatmul.mubr.msk.f32.vlgmr.msra.gmra.mrb[8].mxu1 %vm325_vm0, %v11457_v45  ;;  %v8918_v19 = vpack.c.bf16 %v1668_v17, %v1660_v16  ;;  %v1676_v21 = vld [vmem:[#allocation7 + $0x308] sm:$0xff]  ;;  %v1675_v25 = vld [vmem:[#allocation7 + $0x300] sm:$0xff] }
 0x191   :  { %8212 = vmatmul.mubr.msk.f32.vlgmr.msra.gmra.mrb[12].mxu0 %vm325_vm0, %v11448_v29  ;;  %8861 = vmatpush3.bf16.msra.mxu1 %v8858_v22  ;;  %v1684_v22 = vld [vmem:[#allocation7 + $0x348] sm:$0xff]  ;;  %v1683_v26 = vld [vmem:[#allocation7 + $0x340] sm:$0xff] }
 0x192   :  { %8885 = vmatpush1.bf16.msra.mxu0 %v8884_v31  ;;  %1218 = vmatprep.mubr.f32.mxu0 %v12784_v0  ;;  %v8922_v24 = vpack.c.bf16 %v1684_v22, %v1676_v21  ;;  %v1692_v27 = vld [vmem:[#allocation7 + $0x388] sm:$0xff]  ;;  %v8924_v30 = vpack.c.bf16 %v1683_v26, %v1675_v25  ;;  %v1691_v31 = vld [vmem:[#allocation7 + $0x380] sm:$0xff] }
 0x193   :  { %8863 = vmatprep.subr.bf16.mxu1 %v8862_v32  ;;  %8887 = vmatprep.subr.bf16.mxu0 %v8886_v33  ;;  %v1700_v28 = vld [vmem:[#allocation7 + $0x3c8] sm:$0xff]  ;;  %v1707_v37 = vld [vmem:[#allocation7 + $0x400] sm:$0xff] }
 0x194   :  { %8687 = vmatprep.mubr.msk.f32.mxu1 %vm325_vm0, %v11448_v29  ;;  %v1708_v33 = vld [vmem:[#allocation7 + $0x408] sm:$0xff]  ;;  %v1715_v38 = vld [vmem:[#allocation7 + $0x440] sm:$0xff] }
 0x195   :  { %8213 = vmatmul.mubr.msk.f32.gmra.mrb[14].mxu0 %vm325_vm0, %v11457_v45  ;;  %8865 = vmatpush3.bf16.msra.mxu1 %v8862_v32  ;;  %v1699_v32 = vld [vmem:[#allocation7 + $0x3c0] sm:$0xff]  ;;  %v1716_v34 = vld [vmem:[#allocation7 + $0x448] sm:$0xff] }
 0x196   :  { %8889 = vmatpush1.bf16.msra.mxu0 %v8888_v40  ;;  %1431 = vmatprep.mubr.f32.mxu0 %v12784_v0  ;;  %v8928_v35 = vpack.c.bf16 %v1699_v32, %v1691_v31  ;;  %v8930_v36 = vpack.c.bf16 %v1716_v34, %v1708_v33  ;;  %v1724_v39 = vld [vmem:[#allocation7 + $0x488] sm:$0xff]  ;;  %v1723_v43 = vld [vmem:[#allocation7 + $0x480] sm:$0xff] }
 0x197   :  { %8875 = vmatprep.subr.bf16.mxu1 %v8874_v41  ;;  %8899 = vmatprep.subr.bf16.mxu0 %v8898_v44  ;;  %v1732_v40 = vld [vmem:[#allocation7 + $0x4c8] sm:$0xff]  ;;  %v1731_v44 = vld [vmem:[#allocation7 + $0x4c0] sm:$0xff] }
 0x198   :  { %8688 = vmatmul.mubr.msk.f32.vlgmr.msra.gmra.mrb[10].mxu1 %vm325_vm0, %v11457_v45  ;;  %v8934_v42 = vpack.c.bf16 %v1732_v40, %v1724_v39  ;;  %v1740_v46 = vld [vmem:[#allocation7 + $0x508] sm:$0xff]  ;;  %v8936_v48 = vpack.c.bf16 %v1731_v44, %v1723_v43  ;;  %v1747_v51 = vld [vmem:[#allocation7 + $0x540] sm:$0xff]  ;;  %v310_v44 = vlaneseq }
 0x199   :  { %8222 = vmatmul.mubr.msk.f32.vlgmr.msra.gmra.mrb[16].mxu0 %vm325_vm0, %v11448_v29  ;;  %8877 = vmatpush3.bf16.msra.mxu1 %v8874_v41  ;;  %v8932_v41 = vpack.c.bf16 %v1715_v38, %v1707_v37  ;;  %v1748_v47 = vld [vmem:[#allocation7 + $0x548] sm:$0xff]  ;;  %v1755_v56 = vld [vmem:[#allocation7 + $0x580] sm:$0xff] }
 0x19a   :  { %1437 = vmatprep.mubr.f32.mxu0 %v12784_v0  ;;  %8879 = vmatprep.subr.bf16.mxu1 %v8878_v50  ;;  %v8938_v49 = vpack.c.bf16 %v1748_v47, %v1740_v46  ;;  %v1756_v52 = vld [vmem:[#allocation7 + $0x588] sm:$0xff]  ;;  %v1763_v57 = vld [vmem:[#allocation7 + $0x5c0] sm:$0xff]  ;;  %v11522_v46 = vshrl.u32 %v310_v44, 7 }
 0x19b   :  { %8698 = vmatprep.mubr.msk.f32.mxu1 %vm325_vm0, %v11448_v29  ;;  %8901 = vmatpush1.bf16.msra.mxu0 %v8900_v53  ;;  %v1764_v53 = vld [vmem:[#allocation7 + $0x5c8] sm:$0xff]  ;;  %v8944_v60 = vpack.c.bf16 %v1763_v57, %v1755_v56  ;;  %v1803_v11 = vld [vmem:[#allocation7 + $0x700] sm:$0xff] }
 0x19c   :  { %8903 = vmatprep.subr.bf16.mxu0 %v8902_v54  ;;  %v8942_v55 = vpack.c.bf16 %v1764_v53, %v1756_v52  ;;  %v1772_v58 = vld [vmem:[#allocation7 + $0x608] sm:$0xff]  ;;  %v1819_v21 = vld [vmem:[#allocation7 + $0x780] sm:$0xff]  ;;  %v11525_v47 = vsub.s32 0, %v11522_v46 }
 0x19d   :  { %8223 = vmatmul.mubr.msk.f32.gmra.mrb[18].mxu0 %vm325_vm0, %v11457_v45  ;;  %8881 = vmatpush3.bf16.msra.mxu1 %v8878_v50  ;;  %v1739_v50 = vld [vmem:[#allocation7 + $0x500] sm:$0xff]  ;;  %v1788_v2 = vld [vmem:[#allocation7 + $0x688] sm:$0xff] }
 0x19e   :  { %8891 = vmatprep.subr.bf16.mxu1 %v8890_v59  ;;  %v8940_v54 = vpack.c.bf16 %v1747_v51, %v1739_v50  ;;  %v1796_v3 = vld [vmem:[#allocation7 + $0x6c8] sm:$0xff]  ;;  %v1827_v22 = vld [vmem:[#allocation7 + $0x7c0] sm:$0xff]  ;;  %v504_v50 = vld [vmem:[#allocation5 + $0x3] sm:$0x7] }
 0x19f   :  { %8905 = vmatpush1.bf16.msra.mxu0 %v8904_v62  ;;  %v1771_v62 = vld [vmem:[#allocation7 + $0x600] sm:$0xff]  ;;  %v8950_v4 = vpack.c.bf16 %v1796_v3, %v1788_v2  ;;  %v1804_v8 = vld [vmem:[#allocation7 + $0x708] sm:$0xff]  ;;  %v509_v52 = vrot.slane %v504_v50, %v11525_v47 }
 0x1a0   :  { %8699 = vmatmul.mubr.msk.f32.vlgmr.msra.gmra.mrb[12].mxu1 %vm325_vm0, %v11457_v45  ;;  %8907 = vmatprep.subr.bf16.mxu0 %v8906_v63  ;;  %v1779_v63 = vld [vmem:[#allocation7 + $0x640] sm:$0xff]  ;;  %v1812_v9 = vld [vmem:[#allocation7 + $0x748] sm:$0xff] }
 0x1a1   :  { %8893 = vmatpush3.bf16.msra.mxu1 %v8890_v59  ;;  %8709 = vmatprep.mubr.msk.f32.mxu1 %vm325_vm0, %v11448_v29  ;;  %v1659_v29 = vld [vmem:[#allocation7 + $0x280] sm:$0xff]  ;;  %v1780_v59 = vld [vmem:[#allocation7 + $0x648] sm:$0xff]  ;;  %v8948_v1 = vpack.c.bf16 %v1779_v63, %v1771_v62  ;;  %v8954_v10 = vpack.c.bf16 %v1812_v9, %v1804_v8  ;;  %v11535_v62 = vsub.s32 2, %v11522_v46 }
 0x1a2   :  { %8895 = vmatprep.subr.bf16.mxu1 %v8894_v5  ;;  %v8920_v23 = vpack.c.bf16 %v1667_v20, %v1659_v29  ;;  %v8946_v61 = vpack.c.bf16 %v1780_v59, %v1772_v58  ;;  %v1836_v14 = vld [vmem:[#allocation7 + $0x808] sm:$0xff]  ;;  %v1843_v20 = vld [vmem:[#allocation7 + $0x840] sm:$0xff] }
 0x1a3   :  { %8909 = vmatpush1.bf16.msra.mxu0 %v8908_v6  ;;  %v1795_v6 = vld [vmem:[#allocation7 + $0x6c0] sm:$0xff]  ;;  %v1844_v15 = vld [vmem:[#allocation7 + $0x848] sm:$0xff] }
 0x1a4   :  { %8911 = vmatprep.subr.bf16.mxu0 %v8910_v7  ;;  %v8962_v16 = vpack.c.bf16 %v1844_v15, %v1836_v14  ;;  %v1820_v17 = vld [vmem:[#allocation7 + $0x788] sm:$0xff]  ;;  %v1867_v37 = vld [vmem:[#allocation7 + $0x900] sm:$0xff] }
 0x1a5   :  { %8897 = vmatpush3.bf16.msra.mxu1 %v8894_v5  ;;  %v1787_v5 = vld [vmem:[#allocation7 + $0x680] sm:$0xff]  ;;  %v1852_v25 = vld [vmem:[#allocation7 + $0x888] sm:$0xff] }
 0x1a6   :  { %v8952_v7 = vpack.c.bf16 %v1795_v6, %v1787_v5  ;;  %8963 = vmatprep.subr.bf16.mxu1 %v8962_v16  ;;  %v1860_v26 = vld [vmem:[#allocation7 + $0x8c8] sm:$0xff]  ;;  %v1875_v38 = vld [vmem:[#allocation7 + $0x940] sm:$0xf] }
 0x1a7   :  { %8913 = vmatpush1.bf16.msra.mxu0 %v8912_v12  ;;  %v1811_v12 = vld [vmem:[#allocation7 + $0x740] sm:$0xff]  ;;  %v1592_v32 = vld [vmem:[#allocation7 + $0x68] sm:$0xff]  ;;  %v8973_v40 = vpack.c.bf16 %v1875_v38, %v1867_v37 }
 0x1a8   :  { %8710 = vmatmul.mubr.msk.f32.vlgmr.msra.gmra.mrb[14].mxu1 %vm325_vm0, %v11457_v45  ;;  %8915 = vmatprep.subr.bf16.mxu0 %v8914_v13  ;;  %v8926_v45 = vpack.c.bf16 %v1700_v28, %v1692_v27  ;;  %v8956_v13 = vpack.c.bf16 %v1811_v12, %v1803_v11  ;;  %v8966_v27 = vpack.c.bf16 %v1860_v26, %v1852_v25  ;;  %v1851_v28 = vld [vmem:[#allocation7 + $0x880] sm:$0xff]  ;;  %v1868_v34 = vld [vmem:[#allocation7 + $0x908] sm:$0xff] }
 0x1a9   :  { %2098 = vmatprep.mubr.f32.mxu1 %v12784_v0 }
 0x1ab   :  { %8917 = vmatpush1.bf16.msra.mxu0 %v8916_v18  ;;  %v1828_v18 = vld [vmem:[#allocation7 + $0x7c8] sm:$0xff] }
 0x1ac   :  { %8919 = vmatprep.subr.bf16.mxu0 %v8918_v19  ;;  %v1835_v19 = vld [vmem:[#allocation7 + $0x800] sm:$0xff]  ;;  %v8958_v29 = vpack.c.bf16 %v1828_v18, %v1820_v17 }
 0x1ad   :  { %v1583_v18 = vld [vmem:[#allocation7 + $0x20] sm:$0xff] }
 0x1af   :  { %8921 = vmatpush1.bf16.msra.mxu0 %v8920_v23  ;;  %v8964_v23 = vpack.c.bf16 %v1843_v20, %v1835_v19  ;;  %v1591_v19 = vld [vmem:[#allocation7 + $0x60] sm:$0xff]  ;;  %v1600_v20 = vld [vmem:[#allocation7 + $0xa8] sm:$0xff] }
 0x1b0   :  { %8923 = vmatprep.subr.bf16.mxu0 %v8922_v24  ;;  %v8960_v24 = vpack.c.bf16 %v1827_v22, %v1819_v21  ;;  %v1608_v21 = vld [vmem:[#allocation7 + $0xe8] sm:$0xff] }
 0x1b1   :  { %8965 = vmatpush1.bf16.msra.mxu1 %v8964_v23  ;;  %v517_v23 = vrot.slane %v504_v50, %v11535_v62 }
 0x1b2   :  { %8967 = vmatprep.subr.bf16.mxu1 %v8966_v27  ;;  %v9058_v27 = vpack.c.bf16 %v1608_v21, %v1600_v20  ;;  %v1648_v20 = vld [vmem:[#allocation7 + $0x228] sm:$0xff] }
 0x1b3   :  { %8925 = vmatpush1.bf16.msra.mxu0 %v8924_v30  ;;  %v1859_v30 = vld [vmem:[#allocation7 + $0x8c0] sm:$0xff]  ;;  %v1656_v21 = vld [vmem:[#allocation7 + $0x268] sm:$0xff] }
 0x1b4   :  { %8927 = vmatprep.subr.bf16.mxu0 %v8926_v45  ;;  %v1584_v45 = vld [vmem:[#allocation7 + $0x28] sm:$0xff]  ;;  %v8968_v31 = vpack.c.bf16 %v1859_v30, %v1851_v28 }
 0x1b5   :  { %v9054_v33 = vpack.c.bf16 %v1592_v32, %v1584_v45  ;;  %v1599_v45 = vld [vmem:[#allocation7 + $0xa0] sm:$0xff] }
 0x1b6   :  { %8969 = vmatpush1.bf16.msra.mxu1 %v8968_v31  ;;  %v1607_v31 = vld [vmem:[#allocation7 + $0xe0] sm:$0xff] }
 0x1b7   :  { %8929 = vmatpush1.bf16.msra.mxu0 %v8928_v35  ;;  %v1876_v35 = vld [vmem:[#allocation7 + $0x948] sm:$0xf] }
 0x1b8   :  { %8931 = vmatprep.subr.bf16.mxu0 %v8930_v36  ;;  %v8970_v36 = vpack.c.bf16 %v1876_v35, %v1868_v34  ;;  %v1616_v34 = vld [vmem:[#allocation7 + $0x128] sm:$0xff] }
 0x1b9   :  { %v1624_v35 = vld [vmem:[#allocation7 + $0x168] sm:$0xff] }
 0x1ba   :  { %8972 = vmatprep.subr.msk.bf16.mxu1 %vm11514_vm3, %v8970_v36 }
 0x1bb   :  { %8933 = vmatpush1.bf16.msra.mxu0 %v8932_v41  ;;  %8975 = vmatpush1.bf16.msk.msra.mxu1 %vm11514_vm3, %v8973_v40  ;;  %v1582_v41 = vld [vmem:[#allocation7 + $0x18] sm:$0xff] }
 0x1bc   :  { %8935 = vmatprep.subr.bf16.mxu0 %v8934_v42  ;;  %v1590_v42 = vld [vmem:[#allocation7 + $0x58] sm:$0xff] }
 0x1bd   :  { %v8976_v43 = vpack.c.bf16 %v1590_v42, %v1582_v41  ;;  %v1581_v41 = vld [vmem:[#allocation7 + $0x10] sm:$0xff] }
 0x1bf   :  { %8937 = vmatpush1.bf16.msra.mxu0 %v8936_v48  ;;  %8977 = vmatprep.subr.bf16.mxu1 %v8976_v43  ;;  %v308_v48 = vld [vmem:[#allocation5] sm:$0x7] }
 0x1c0   :  { %8939 = vmatprep.subr.bf16.mxu0 %v8938_v49  ;;  %v11528_v49 = vsub.s32 1, %v11522_v46  ;;  %v313_v51 = vrot.slane %v308_v48, %v11525_v47 }
 0x1c2   :  { %v317_v53 = vrot.slane %v308_v48, %v11528_v49 }
 0x1c3   :  { %8941 = vmatpush1.bf16.msra.mxu0 %v8940_v54  ;;  %v513_v54 = vrot.slane %v504_v50, %v11528_v49  ;;  %v9060_v50 = vpack.c.bf16 %v1607_v31, %v1599_v45  ;;  %v1621_v45 = vld [vmem:[#allocation7 + $0x150] sm:$0xff]  ;;  %v1647_v31 = vld [vmem:[#allocation7 + $0x220] sm:$0xff] }
 0x1c4   :  { %8943 = vmatprep.subr.bf16.mxu0 %v8942_v55 }
 0x1c7   :  { %8945 = vmatpush1.bf16.msra.mxu0 %v8944_v60 }
 0x1c8   :  { %8947 = vmatprep.subr.bf16.mxu0 %v8946_v61 }
 0x1cb   :  { %8949 = vmatpush1.bf16.msra.mxu0 %v8948_v1 }
 0x1cc   :  { %8951 = vmatprep.subr.bf16.mxu0 %v8950_v4 }
 0x1cf   :  { %8953 = vmatpush1.bf16.msra.mxu0 %v8952_v7 }
 0x1d0   :  { %8955 = vmatprep.subr.bf16.mxu0 %v8954_v10  ;;  %v321_v10 = vrot.slane %v308_v48, %v11535_v62 }
 0x1d3   :  { %8957 = vmatpush1.bf16.msra.mxu0 %v8956_v13 }
 0x1d4   :  { %8959 = vmatprep.subr.bf16.mxu0 %v8958_v29 }
 0x1d7   :  { %8961 = vmatpush1.bf16.msra.mxu0 %v8960_v24  ;;  %v9056_v24 = vpack.c.bf16 %v1591_v19, %v1583_v18  ;;  %v1622_v18 = vld [vmem:[#allocation7 + $0x158] sm:$0xff] }
 0x1d8   :  { %9055 = vmatprep.subr.bf16.mxu0 %v9054_v33 }
 0x24b   :  { %v398_v55 = vpop.f32.mrb[0].mxu1 }
 0x24c   :  { %v399_v56 = vadd.f32 %v398_v55, %v313_v51  ;;  %v587_v57 = vpop.f32.mrb[0].mxu0  ;;  %v400_v58 = vpop.f32.mrb[1].mxu1 }
 0x24d   :  { %v588_v59 = vadd.f32 %v587_v57, %v509_v52  ;;  %v401_v60 = vadd.f32 %v400_v58, %v317_v53  ;;  %v589_v61 = vpop.f32.mrb[1].mxu0  ;;  %v1598_v57 = vld [vmem:[#allocation7 + $0x98] sm:$0xff] }
 0x24e   :  { %v590_v63 = vadd.f32 %v589_v61, %v513_v54  ;;  %v1606_v58 = vld [vmem:[#allocation7 + $0xd8] sm:$0xff]  ;;  %v1632_v61 = vld [vmem:[#allocation7 + $0x1a8] sm:$0xff] }
 0x24f   :  { %v8192_v1 = vmul.f32 -1.442695, %v588_v59  ;;  %10419 = vtanh.f32 %v401_v60  ;;  %v404_v2 = vpop.f32.mrb[2].mxu1  ;;  %v11565_v59 = vld [vmem:[#allocation5 + $0xc] sm:$0x7] }
 0x250   :  { %10421 = vtanh.f32 %v399_v56  ;;  %v8193_v3 = vmul.f32 -1.442695, %v590_v63  ;;  %v405_v4 = vadd.f32 %v404_v2, %v313_v51  ;;  %v593_v5 = vpop.f32.mrb[2].mxu0  ;;  %v406_v6 = vpop.f32.mrb[3].mxu1  ;;  %v1589_v51 = vld [vmem:[#allocation7 + $0x50] sm:$0xff]  ;;  %v9062_v56 = vpack.c.bf16 %v1624_v35, %v1616_v34  ;;  %v1640_v63 = vld [vmem:[#allocation7 + $0x1e8] sm:$0xff] }
 0x251   :  { %10423 = vpow2.f32 %v8192_v1  ;;  %v594_v7 = vadd.f32 %v593_v5, %v509_v52  ;;  %v407_v8 = vadd.f32 %v406_v6, %v317_v53  ;;  %v595_v9 = vpop.f32.mrb[3].mxu0  ;;  %v1615_v52 = vld [vmem:[#allocation7 + $0x120] sm:$0xff]  ;;  %v1140_v19 = vrot.slane %v11565_v59, %v11528_v49 }
 0x252   :  { %10425 = vpow2.f32 %v8193_v3  ;;  %v596_v11 = vadd.f32 %v595_v9, %v513_v54  ;;  %v1623_v53 = vld [vmem:[#allocation7 + $0x160] sm:$0xff]  ;;  %v8978_v3 = vpack.c.bf16 %v1589_v51, %v1581_v41  ;;  %v1597_v9 = vld [vmem:[#allocation7 + $0x90] sm:$0xff]  ;;  %v1638_v41 = vld [vmem:[#allocation7 + $0x1d8] sm:$0xff] }
 0x253   :  { %10427 = vtanh.f32 %v405_v4  ;;  %v8195_v12 = vmul.f32 -1.442695, %v594_v7  ;;  %v8656_v13 = vpop.f32.mrb[4].mxu1  ;;  %v9064_v6 = vpack.c.bf16 %v1623_v53, %v1615_v52  ;;  %v8980_v7 = vpack.c.bf16 %v1606_v58, %v1598_v57  ;;  %v11591_v52 = vld [vmem:[#allocation7 + $0x190] sm:$0xff]  ;;  %v1664_v53 = vld [vmem:[#allocation7 + $0x2a8] sm:$0xff] }
 0x254   :  { %10429 = vtanh.f32 %v407_v8  ;;  %v8196_v14 = vmul.f32 -1.442695, %v596_v11  ;;  %v475_v15 = vpop.f32.mrb[5].mxu1  ;;  %v11538_v16 = vpop.f32.mrb[4].mxu0  ;;  %v481_v22 = vadd.f32 %v8656_v13, %v321_v10  ;;  %v1136_v11 = vrot.slane %v11565_v59, %v11525_v47  ;;  %v11593_v58 = vld [vmem:[#allocation5 + $0x9] sm:$0x7] }
 0x255   :  { %10431 = vpow2.f32 %v8195_v12  ;;  %v476_v17 = vadd.f32 %v475_v15, %v321_v10  ;;  %v11540_v29 = vpop.f32.mrb[5].mxu0  ;;  %v1605_v10 = vld [vmem:[#allocation7 + $0xd0] sm:$0xff]  ;;  %v1631_v12 = vld [vmem:[#allocation7 + $0x1a0] sm:$0xff] }
 0x256   :  { %10433 = vpow2.f32 %v8196_v14  ;;  %v9066_v14 = vpack.c.bf16 %v1640_v63, %v1632_v61  ;;  %v1639_v15 = vld [vmem:[#allocation7 + $0x1e0] sm:$0xff] }
 0x257   :  { %10435 = vtanh.f32 %v476_v17  ;;  %v1614_v17 = vld [vmem:[#allocation7 + $0x118] sm:$0xff]  ;;  %v9068_v34 = vpack.c.bf16 %v1639_v15, %v1631_v12  ;;  %v1671_v12 = vld [vmem:[#allocation7 + $0x2e0] sm:$0xff] }
 0x258   :  { %v11543_v25 = vpop.f32.mrb[6].mxu0  ;;  %10437 = vtanh.f32 %v481_v22 }
 0x259   :  { %v11545_v26 = vpop.eup %10419  ;;  %v11547_v28 = vpop.f32.mrb[7].mxu0 }
 0x25a   :  { %v11549_v30 = vpop.eup %10421  ;;  %2021 = vmatprep.mubr.f32.mxu0 %v11545_v26 }
 0x25b   :  { %v10424_v32 = vpop.eup %10423  ;;  %v8667_v33 = vpop.f32.mrb[6].mxu1  ;;  %2022 = vmatmul.mubr.f32.vlgmr.msra.gmra.mrb[20].mxu0 %v11549_v30 }
 0x25c   :  { %v10426_v36 = vpop.eup %10425  ;;  %v691_v37 = vadd.f32 1.0, %v10424_v32  ;;  %v11553_v38 = vadd.f32 %v8667_v33, %v517_v23  ;;  %9057 = vmatpush1.bf16.msra.mxu0 %v9056_v24  ;;  %v664_v40 = vpop.f32.mrb[7].mxu1 }
 0x25d   :  { %v11555_v42 = vpop.f32.mrb[8].mxu0  ;;  %v11557_v43 = vpop.eup %10427  ;;  %v692_v44 = vadd.f32 1.0, %v10426_v36  ;;  %v11559_v48 = vadd.f32 %v664_v40, %v517_v23  ;;  %9059 = vmatprep.subr.bf16.mxu0 %v9058_v27  ;;  %v8982_v23 = vpack.c.bf16 %v1605_v10, %v1597_v9  ;;  %v1613_v27 = vld [vmem:[#allocation7 + $0x110] sm:$0xff]  ;;  %v8984_v36 = vpack.c.bf16 %v1622_v18, %v1614_v17  ;;  %v1630_v40 = vld [vmem:[#allocation7 + $0x198] sm:$0xff]  ;;  %v1663_v10 = vld [vmem:[#allocation7 + $0x2a0] sm:$0xff] }
 0x25e   :  { %12811 = vst [vmem:[#allocation43_spill] sm:$0xff] %v11553_v38  ;;  %v11561_v54 = vpop.f32.mrb[9].mxu0  ;;  %v11563_v55 = vpop.eup %10429  ;;  %10439 = vrcp.f32 %v691_v37  ;;  %v1655_v37 = vld [vmem:[#allocation7 + $0x260] sm:$0xff]  ;;  %v8986_v63 = vpack.c.bf16 %v1621_v45, %v1613_v27  ;;  %v1688_v27 = vld [vmem:[#allocation7 + $0x368] sm:$0xff] }
 0x25f   :  { %12812 = vst [vmem:[#allocation44_spill] sm:$0xff] %v11559_v48  ;;  %v10432_v60 = vpop.eup %10431  ;;  %10441 = vrcp.f32 %v692_v44  ;;  %2027 = vmatprep.mubr.f32.mxu0 %v11563_v55 }
 0x260   :  { %v10434_v1 = vpop.eup %10433  ;;  %v694_v2 = vadd.f32 1.0, %v10432_v60  ;;  %2028 = vmatmul.mubr.f32.gmra.mrb[22].mxu0 %v11557_v43  ;;  %v11569_v4 = vpop.f32.mrb[10].mxu0 }
 0x261   :  { %v695_v5 = vadd.f32 1.0, %v10434_v1  ;;  %9061 = vmatpush1.bf16.msra.mxu0 %v9060_v50  ;;  %2329 = vmatprep.mubr.f32.mxu0 %v11545_v26  ;;  %v11572_v8 = vpop.f32.mrb[11].mxu0  ;;  %v11576_v13 = vpop.eup %10435  ;;  %v9070_v50 = vpack.c.bf16 %v1656_v21, %v1648_v20  ;;  %v9072_v1 = vpack.c.bf16 %v1655_v37, %v1647_v31  ;;  %v1646_v20 = vld [vmem:[#allocation7 + $0x218] sm:$0xff] }
 0x262   :  { %12813 = vst [vmem:[#allocation45_spill] sm:$0xff] %v11576_v13  ;;  %10443 = vrcp.f32 %v694_v2  ;;  %9063 = vmatprep.subr.bf16.mxu0 %v9062_v56  ;;  %8234 = vmatmul.mubr.msk.f32.vlgmr.msra.gmra.mrb[16].mxu1 %vm1925_vm4, %v11576_v13  ;;  %v11587_v44 = vpop.eup %10437  ;;  %v1672_v56 = vld [vmem:[#allocation7 + $0x2e8] sm:$0xff]  ;;  %v8988_v2 = vpack.c.bf16 %v1638_v41, %v1630_v40  ;;  %v1654_v21 = vld [vmem:[#allocation7 + $0x258] sm:$0xff] }
 0x263   :  { %10445 = vrcp.f32 %v695_v5  ;;  %v11582_v22 = vpop.f32.mrb[8].mxu1  ;;  %8979 = vmatpush1.bf16.msra.mxu1 %v8978_v3  ;;  %2104 = vmatprep.mubr.f32.mxu1 %v12784_v0  ;;  %12814 = vst [vmem:[#allocation46_spill] sm:$0xff] %v11587_v44  ;;  %v1637_v3 = vld [vmem:[#allocation7 + $0x1d0] sm:$0xff]  ;;  %v9074_v18 = vpack.c.bf16 %v1672_v56, %v1664_v53  ;;  %v1679_v53 = vld [vmem:[#allocation7 + $0x320] sm:$0xff] }
 0x264   :  { %v1214_v24 = vpop.f32.mrb[12].mxu0  ;;  %v11585_v32 = vpop.f32.mrb[9].mxu1  ;;  %8981 = vmatprep.subr.bf16.mxu1 %v8980_v7 }
 0x265   :  { %9065 = vmatpush1.bf16.msra.mxu0 %v9064_v6  ;;  %v1215_v33 = vadd.f32 %v1214_v24, %v1136_v11  ;;  %v1216_v35 = vpop.f32.mrb[13].mxu0  ;;  %v1680_v24 = vld [vmem:[#allocation7 + $0x328] sm:$0xff] }
 0x266   :  { %9067 = vmatprep.subr.bf16.mxu0 %v9066_v14  ;;  %8235 = vmatmul.mubr.msk.f32.gmra.mrb[18].mxu1 %vm1925_vm4, %v11587_v44  ;;  %v1217_v51 = vadd.f32 %v1216_v35, %v1140_v19  ;;  %v955_v14 = vrot.slane %v11593_v58, %v11535_v62 }
 0x267   :  { %8983 = vmatpush1.bf16.msra.mxu1 %v8982_v23  ;;  %v8216_v60 = vmul.f32 -1.442695, %v1215_v33  ;;  %2175 = vmatprep.mubr.f32.mxu1 %v11545_v26 }
 0x268   :  { %v10440_v57 = vpop.eup %10439  ;;  %v1220_v61 = vpop.f32.mrb[14].mxu0  ;;  %8985 = vmatprep.subr.bf16.mxu1 %v8984_v36  ;;  %v8217_v23 = vmul.f32 -1.442695, %v1217_v51  ;;  %v1645_v51 = vld [vmem:[#allocation7 + $0x210] sm:$0xff] }
 0x269   :  { %v10442_v5 = vpop.eup %10441  ;;  %v1555_v6 = vmul.f32 %v10440_v57, %v11549_v30  ;;  %9069 = vmatpush1.bf16.msra.mxu0 %v9068_v34  ;;  %v1221_v7 = vadd.f32 %v1220_v61, %v1136_v11  ;;  %v1222_v9 = vpop.f32.mrb[15].mxu0  ;;  %v8990_v11 = vpack.c.bf16 %v1637_v3, %v11591_v52  ;;  %10447 = vpow2.f32 %v8216_v60  ;;  %v1653_v52 = vld [vmem:[#allocation7 + $0x250] sm:$0xff]  ;;  %v1662_v3 = vld [vmem:[#allocation7 + $0x298] sm:$0xff] }
 0x26a   :  { %v1556_v15 = vmul.f32 %v10442_v5, %v11545_v26  ;;  %v1223_v17 = vadd.f32 %v1222_v9, %v1140_v19  ;;  %9071 = vmatprep.subr.bf16.mxu0 %v9070_v50  ;;  %v9076_v34 = vpack.c.bf16 %v1671_v12, %v1663_v10  ;;  %v8992_v50 = vpack.c.bf16 %v1654_v21, %v1646_v20  ;;  %v1670_v5 = vld [vmem:[#allocation7 + $0x2d8] sm:$0xff]  ;;  %v1695_v20 = vld [vmem:[#allocation7 + $0x3a0] sm:$0xff] }
 0x26b   :  { %8041 = vst [vmem:[%s12815_s16] sm:$0xff] %v1555_v6  ;;  %v8689_v45 = vpop.f32.mrb[10].mxu1  ;;  %v8219_v19 = vmul.f32 -1.442695, %v1221_v7  ;;  %8987 = vmatpush1.bf16.msra.mxu1 %v8986_v63  ;;  %v9078_v61 = vpack.c.bf16 %v1688_v27, %v1680_v24  ;;  %v1687_v63 = vld [vmem:[#allocation7 + $0x360] sm:$0xff]  ;;  %10449 = vpow2.f32 %v8217_v23  ;;  %v947_v6 = vrot.slane %v11593_v58, %v11525_v47  ;;  %v1678_v24 = vld [vmem:[#allocation7 + $0x318] sm:$0xff] }
 0x26c   :  { %v10444_v31 = vpop.eup %10443  ;;  %8042 = vst [vmem:[%s12815_s16 + $0x8] sm:$0xff] %v1556_v15  ;;  %v11607_v33 = vpop.f32.mrb[16].mxu0  ;;  %v11609_v35 = vadd.f32 %v8689_v45, %v955_v14  ;;  %8989 = vmatprep.subr.bf16.mxu1 %v8988_v2  ;;  %v8220_v60 = vmul.f32 -1.442695, %v1223_v17  ;;  %v1704_v2 = vld [vmem:[#allocation7 + $0x3e8] sm:$0xff]  ;;  %v8994_v9 = vpack.c.bf16 %v1653_v52, %v1645_v51  ;;  %v1144_v10 = vrot.slane %v11565_v59, %v11535_v62  ;;  %v1661_v17 = vld [vmem:[#allocation7 + $0x290] sm:$0xff] }
 0x26d   :  { %12816 = vst [vmem:[#allocation47_spill] sm:$0xff] %v11607_v33  ;;  %v1102_v36 = vpop.f32.mrb[11].mxu1  ;;  %v10446_v37 = vpop.eup %10445  ;;  %v1558_v40 = vmul.f32 %v10444_v31, %v11557_v43  ;;  %9073 = vmatpush1.bf16.msra.mxu0 %v9072_v1  ;;  %v1696_v1 = vld [vmem:[#allocation7 + $0x3a8] sm:$0xff]  ;;  %10451 = vpow2.f32 %v8219_v19  ;;  %v8996_v15 = vpack.c.bf16 %v1670_v5, %v1662_v3  ;;  %v951_v21 = vrot.slane %v11593_v58, %v11528_v49  ;;  %v1686_v27 = vld [vmem:[#allocation7 + $0x358] sm:$0xff]  ;;  %v1677_v51 = vld [vmem:[#allocation7 + $0x310] sm:$0xff] }
 0x26e   :  { %v11612_v41 = vpop.f32.mrb[17].mxu0  ;;  %v11614_v56 = vadd.f32 %v1102_v36, %v955_v14  ;;  %v1559_v57 = vmul.f32 %v10446_v37, %v11563_v55  ;;  %9075 = vmatprep.subr.bf16.mxu0 %v9074_v18  ;;  %v9080_v14 = vpack.c.bf16 %v1687_v63, %v1679_v53  ;;  %v1669_v18 = vld [vmem:[#allocation7 + $0x2d0] sm:$0xff]  ;;  %10453 = vpow2.f32 %v8220_v60  ;;  %v1712_v59 = vld [vmem:[#allocation7 + $0x428] sm:$0xff]  ;;  %v1711_v53 = vld [vmem:[#allocation7 + $0x420] sm:$0xff] }
 0x26f   :  { %12817 = vst [vmem:[#allocation48_spill] sm:$0xff] %v11612_v41  ;;  %8052 = vst [vmem:[%s12815_s16 + $0x50] sm:$0xff] %v1558_v40  ;;  %8991 = vmatpush1.bf16.msra.mxu1 %v8990_v11  ;;  %v9082_v23 = vpack.c.bf16 %v1704_v2, %v1696_v1  ;;  %v1703_v11 = vld [vmem:[#allocation7 + $0x3e0] sm:$0xff]  ;;  %v1720_v31 = vld [vmem:[#allocation7 + $0x468] sm:$0xff]  ;;  %v1026_v19 = vadd.f32 %v11555_v42, %v947_v6  ;;  %v9000_v58 = vpack.c.bf16 %v1686_v27, %v1678_v24 }
 0x270   :  { %8053 = vst [vmem:[%s12815_s16 + $0x58] sm:$0xff] %v1559_v57  ;;  %v11625_v7 = vpop.f32.mrb[18].mxu0  ;;  %8993 = vmatprep.subr.bf16.mxu1 %v8992_v50  ;;  %v9084_v40 = vpack.c.bf16 %v1703_v11, %v1695_v20  ;;  %v1685_v52 = vld [vmem:[#allocation7 + $0x350] sm:$0xff]  ;;  %v1028_v60 = vadd.f32 %v11561_v54, %v951_v21  ;;  %v1719_v42 = vld [vmem:[#allocation7 + $0x460] sm:$0xff]  ;;  %v1694_v63 = vld [vmem:[#allocation7 + $0x398] sm:$0xff]  ;;  %v1032_v5 = vadd.f32 %v11569_v4, %v947_v6 }
 0x271   :  { %12818 = vst [vmem:[#allocation49_spill] sm:$0xff] %v11625_v7  ;;  %9077 = vmatpush1.bf16.msra.mxu0 %v9076_v34  ;;  %v11629_v12 = vpop.f32.mrb[19].mxu0  ;;  %v8998_v34 = vpack.c.bf16 %v1669_v18, %v1661_v17  ;;  %v1702_v3 = vld [vmem:[#allocation7 + $0x3d8] sm:$0xff]  ;;  %v1728_v2 = vld [vmem:[#allocation7 + $0x4a8] sm:$0xff]  ;;  %10455 = vtanh.f32 %v1026_v19  ;;  %v1693_v54 = vld [vmem:[#allocation7 + $0x390] sm:$0xff]  ;;  %v1034_v11 = vadd.f32 %v11572_v8, %v951_v21 }
 0x272   :  { %12819 = vst [vmem:[#allocation50_spill] sm:$0xff] %v11629_v12  ;;  %9079 = vmatprep.subr.bf16.mxu0 %v9078_v61  ;;  %v9086_v61 = vpack.c.bf16 %v1720_v31, %v1712_v59  ;;  %v9004_v17 = vpack.c.bf16 %v1702_v3, %v1694_v63  ;;  %v1701_v18 = vld [vmem:[#allocation7 + $0x3d0] sm:$0xff]  ;;  %v1727_v20 = vld [vmem:[#allocation7 + $0x4a0] sm:$0xff]  ;;  %v1710_v27 = vld [vmem:[#allocation7 + $0x418] sm:$0xff] }
 0x273   :  { %v8700_v45 = vpop.f32.mrb[12].mxu1  ;;  %8995 = vmatpush1.bf16.msra.mxu1 %v8994_v9  ;;  %v10448_v57 = vpop.eup %10447  ;;  %v1736_v9 = vld [vmem:[#allocation7 + $0x4e8] sm:$0xff]  ;;  %v1735_v24 = vld [vmem:[#allocation7 + $0x4e0] sm:$0xff]  ;;  %v1734_v63 = vld [vmem:[#allocation7 + $0x4d8] sm:$0xff] }
 0x274   :  { %v11634_v36 = vadd.f32 %v8700_v45, %v1144_v10  ;;  %v1291_v37 = vpop.f32.mrb[13].mxu1  ;;  %8997 = vmatprep.subr.bf16.mxu1 %v8996_v15  ;;  %v1318_v1 = vadd.f32 1.0, %v10448_v57  ;;  %v9088_v15 = vpack.c.bf16 %v1719_v42, %v1711_v53  ;;  %v9090_v6 = vpack.c.bf16 %v1736_v9, %v1728_v2  ;;  %v1718_v45 = vld [vmem:[#allocation7 + $0x458] sm:$0xff]  ;;  %v1744_v19 = vld [vmem:[#allocation7 + $0x528] sm:$0xff]  ;;  %v1717_v53 = vld [vmem:[#allocation7 + $0x450] sm:$0xff] }
 0x275   :  { %9081 = vmatpush1.bf16.msra.mxu0 %v9080_v14  ;;  %v11636_v50 = vadd.f32 %v1291_v37, %v1144_v10  ;;  %v9002_v10 = vpack.c.bf16 %v1685_v52, %v1677_v51  ;;  %v10450_v14 = vpop.eup %10449  ;;  %v9092_v21 = vpack.c.bf16 %v1735_v24, %v1727_v20  ;;  %v9008_v51 = vpack.c.bf16 %v1718_v45, %v1710_v27  ;;  %v1709_v52 = vld [vmem:[#allocation7 + $0x410] sm:$0xff]  ;;  %v1743_v57 = vld [vmem:[#allocation7 + $0x520] sm:$0xff]  ;;  %v1726_v42 = vld [vmem:[#allocation7 + $0x498] sm:$0xff] }
 0x276   :  { %9083 = vmatprep.subr.bf16.mxu0 %v9082_v23  ;;  %10457 = vrcp.f32 %v1318_v1  ;;  %v1319_v4 = vadd.f32 1.0, %v10450_v14  ;;  %v1760_v3 = vld [vmem:[#allocation7 + $0x5a8] sm:$0xff]  ;;  %v9010_v1 = vpack.c.bf16 %v1717_v53, %v1709_v52  ;;  %v9012_v9 = vpack.c.bf16 %v1734_v63, %v1726_v42  ;;  %v1733_v14 = vld [vmem:[#allocation7 + $0x4d0] sm:$0xff]  ;;  %v1742_v20 = vld [vmem:[#allocation7 + $0x518] sm:$0xff] }
 0x277   :  { %8999 = vmatpush1.bf16.msra.mxu1 %v8998_v34  ;;  %v10452_v23 = vpop.eup %10451  ;;  %10459 = vtanh.f32 %v1028_v60  ;;  %v1752_v34 = vld [vmem:[#allocation7 + $0x568] sm:$0xff]  ;;  %v1783_v52 = vld [vmem:[#allocation7 + $0x660] sm:$0xff]  ;;  %v1758_v53 = vld [vmem:[#allocation7 + $0x598] sm:$0xff] }
 0x278   :  { %9001 = vmatprep.subr.bf16.mxu1 %v9000_v58  ;;  %10461 = vtanh.f32 %v1032_v5  ;;  %v1321_v59 = vadd.f32 1.0, %v10452_v23  ;;  %v10454_v37 = vpop.eup %10453  ;;  %v9006_v58 = vpack.c.bf16 %v1701_v18, %v1693_v54  ;;  %v9094_v60 = vpack.c.bf16 %v1752_v34, %v1744_v19  ;;  %v1768_v5 = vld [vmem:[#allocation7 + $0x5e8] sm:$0xff]  ;;  %v1767_v18 = vld [vmem:[#allocation7 + $0x5e0] sm:$0xff]  ;;  %v1750_v23 = vld [vmem:[#allocation7 + $0x558] sm:$0xff] }
 0x279   :  { %9085 = vmatpush1.bf16.msra.mxu0 %v9084_v40  ;;  %10463 = vrcp.f32 %v1319_v4  ;;  %v1322_v8 = vadd.f32 1.0, %v10454_v37  ;;  %v9098_v54 = vpack.c.bf16 %v1768_v5, %v1760_v3  ;;  %v1776_v4 = vld [vmem:[#allocation7 + $0x628] sm:$0xff]  ;;  %v9016_v34 = vpack.c.bf16 %v1750_v23, %v1742_v20  ;;  %v1741_v37 = vld [vmem:[#allocation7 + $0x510] sm:$0xff]  ;;  %v1799_v23 = vld [vmem:[#allocation7 + $0x6e0] sm:$0xff] }
 0x27a   :  { %9087 = vmatprep.subr.bf16.mxu0 %v9086_v61  ;;  %10465 = vrcp.f32 %v1321_v59  ;;  %v1751_v61 = vld [vmem:[#allocation7 + $0x560] sm:$0xff]  ;;  %v1792_v42 = vld [vmem:[#allocation7 + $0x6a8] sm:$0xff]  ;;  %v4365_v7 = vld [vmem:[#allocation13 + $0x168] sm:$0xff] }
 0x27b   :  { %v11641_v31 = vpop.f32.mrb[14].mxu1  ;;  %9003 = vmatpush1.bf16.msra.mxu1 %v9002_v10  ;;  %10467 = vtanh.f32 %v1034_v11  ;;  %v9096_v2 = vpack.c.bf16 %v1751_v61, %v1743_v57  ;;  %v1725_v10 = vld [vmem:[#allocation7 + $0x490] sm:$0xff]  ;;  %v1766_v57 = vld [vmem:[#allocation7 + $0x5d8] sm:$0xff]  ;;  %v1800_v63 = vld [vmem:[#allocation7 + $0x6e8] sm:$0xff] }
 0x27c   :  { %12820 = vst [vmem:[#allocation51_spill] sm:$0xff] %v11641_v31  ;;  %v11643_v40 = vpop.f32.mrb[15].mxu1  ;;  %9005 = vmatprep.subr.bf16.mxu1 %v9004_v17  ;;  %10469 = vrcp.f32 %v1322_v8  ;;  %v11645_v17 = vpop.eup %10455  ;;  %v9014_v45 = vpack.c.bf16 %v1733_v14, %v1725_v10  ;;  %v1775_v8 = vld [vmem:[#allocation7 + $0x620] sm:$0xff]  ;;  %v9020_v10 = vpack.c.bf16 %v1766_v57, %v1758_v53  ;;  %v1757_v14 = vld [vmem:[#allocation7 + $0x590] sm:$0xff]  ;;  %v9106_v20 = vpack.c.bf16 %v1800_v63, %v1792_v42  ;;  %v1798_v53 = vld [vmem:[#allocation7 + $0x6d8] sm:$0xff] }
 0x27d   :  { %12821 = vst [vmem:[#allocation52_spill] sm:$0xff] %v11643_v40  ;;  %9089 = vmatpush1.bf16.msra.mxu0 %v9088_v15  ;;  %v1759_v15 = vld [vmem:[#allocation7 + $0x5a0] sm:$0xff]  ;;  %v1824_v57 = vld [vmem:[#allocation7 + $0x7a8] sm:$0xff]  ;;  %10471 = vtanh.f32 %v11614_v56  ;;  %v1866_v56 = vld [vmem:[#allocation7 + $0x8f8] sm:$0xff] }
 0x27e   :  { %9091 = vmatprep.subr.bf16.mxu0 %v9090_v6  ;;  %v1784_v6 = vld [vmem:[#allocation7 + $0x668] sm:$0xff]  ;;  %v9100_v19 = vpack.c.bf16 %v1767_v18, %v1759_v15  ;;  %v1765_v15 = vld [vmem:[#allocation7 + $0x5d0] sm:$0xff]  ;;  %10473 = vtanh.f32 %v11609_v35  ;;  %v4322_v40 = vld [vmem:[#allocation13 + $0x10] sm:$0xff] }
 0x27f   :  { %9007 = vmatpush1.bf16.msra.mxu1 %v9006_v58  ;;  %v1749_v58 = vld [vmem:[#allocation7 + $0x550] sm:$0xff]  ;;  %v2585_v35 = vld [vmem:[#allocation10 + $0x60] sm:$0xff]  ;;  %v4325_v12 = vld [vmem:[#allocation13 + $0x28] sm:$0xff] }
 0x280   :  { %9009 = vmatprep.subr.bf16.mxu1 %v9008_v51  ;;  %v10458_v11 = vpop.eup %10457  ;;  %v9102_v51 = vpack.c.bf16 %v1784_v6, %v1776_v4  ;;  %v1782_v4 = vld [vmem:[#allocation7 + $0x658] sm:$0xff]  ;;  %v1808_v6 = vld [vmem:[#allocation7 + $0x728] sm:$0xff] }
 0x281   :  { %9093 = vmatpush1.bf16.msra.mxu0 %v9092_v21  ;;  %v11647_v24 = vpop.eup %10459  ;;  %v1561_v27 = vmul.f32 %v10458_v11, %v11645_v17  ;;  %v1774_v11 = vld [vmem:[#allocation7 + $0x618] sm:$0xff]  ;;  %v4331_v33 = vld [vmem:[#allocation13 + $0x58] sm:$0xff] }
 0x282   :  { %9095 = vmatprep.subr.bf16.mxu0 %v9094_v60  ;;  %v11650_v59 = vpop.eup %10461 }
 0x283   :  { %9011 = vmatpush1.bf16.msra.mxu1 %v9010_v1  ;;  %v10464_v21 = vpop.eup %10463  ;;  %8114 = vst [vmem:[%s12822_s15] sm:$0xff] %v1561_v27  ;;  %v9018_v1 = vpack.c.bf16 %v1749_v58, %v1741_v37  ;;  %v1816_v27 = vld [vmem:[#allocation7 + $0x768] sm:$0xff]  ;;  %v1773_v37 = vld [vmem:[#allocation7 + $0x610] sm:$0xff] }
 0x284   :  { %9013 = vmatprep.subr.bf16.mxu1 %v9012_v9  ;;  %v10466_v60 = vpop.eup %10465  ;;  %v1562_v61 = vmul.f32 %v10464_v21, %v11647_v24  ;;  %v9104_v9 = vpack.c.bf16 %v1783_v52, %v1775_v8  ;;  %v1781_v58 = vld [vmem:[#allocation7 + $0x650] sm:$0xff]  ;;  %v1807_v8 = vld [vmem:[#allocation7 + $0x720] sm:$0xff]  ;;  %v9110_v21 = vpack.c.bf16 %v1816_v27, %v1808_v6  ;;  %v1790_v52 = vld [vmem:[#allocation7 + $0x698] sm:$0xff] }
 0x285   :  { %9097 = vmatpush1.bf16.msra.mxu0 %v9096_v2  ;;  %v11656_v3 = vpop.eup %10467  ;;  %v1564_v5 = vmul.f32 %v10466_v60, %v11650_v59  ;;  %v1832_v60 = vld [vmem:[#allocation7 + $0x7e8] sm:$0xff]  ;;  %v9028_v63 = vpack.c.bf16 %v1798_v53, %v1790_v52  ;;  %v1813_v6 = vld [vmem:[#allocation7 + $0x750] sm:$0xff] }
 0x286   :  { %9099 = vmatprep.subr.bf16.mxu0 %v9098_v54  ;;  %v10470_v2 = vpop.eup %10469  ;;  %8115 = vst [vmem:[%s12822_s15 + $0x8] sm:$0xff] %v1562_v61  ;;  %v1791_v54 = vld [vmem:[#allocation7 + $0x6a0] sm:$0xff]  ;;  %v9026_v61 = vpack.c.bf16 %v1781_v58, %v1773_v37  ;;  %v1830_v37 = vld [vmem:[#allocation7 + $0x7d8] sm:$0xff]  ;;  %v1856_v58 = vld [vmem:[#allocation7 + $0x8a8] sm:$0xff] }
 0x287   :  { %9015 = vmatpush1.bf16.msra.mxu1 %v9014_v45  ;;  %8124 = vst [vmem:[%s12822_s15 + $0x50] sm:$0xff] %v1564_v5  ;;  %v1565_v18 = vmul.f32 %v10470_v2, %v11656_v3  ;;  %v9022_v45 = vpack.c.bf16 %v1765_v15, %v1757_v14  ;;  %v1789_v5 = vld [vmem:[#allocation7 + $0x690] sm:$0xff]  ;;  %v1823_v2 = vld [vmem:[#allocation7 + $0x7a0] sm:$0xff]  ;;  %v1806_v14 = vld [vmem:[#allocation7 + $0x718] sm:$0xff] }
 0x288   :  { %9017 = vmatprep.subr.bf16.mxu1 %v9016_v34  ;;  %v9024_v34 = vpack.c.bf16 %v1782_v4, %v1774_v11  ;;  %v1814_v15 = vld [vmem:[#allocation7 + $0x758] sm:$0xff]  ;;  %v1805_v4 = vld [vmem:[#allocation7 + $0x710] sm:$0xff] }
 0x289   :  { %9101 = vmatpush1.bf16.msra.mxu0 %v9100_v19  ;;  %8125 = vst [vmem:[%s12822_s15 + $0x58] sm:$0xff] %v1565_v18  ;;  %v9108_v19 = vpack.c.bf16 %v1799_v23, %v1791_v54  ;;  %v1840_v54 = vld [vmem:[#allocation7 + $0x828] sm:$0xff]  ;;  %v9032_v11 = vpack.c.bf16 %v1814_v15, %v1806_v14  ;;  %v1821_v52 = vld [vmem:[#allocation7 + $0x790] sm:$0xff] }
 0x28a   :  { %9103 = vmatprep.subr.bf16.mxu0 %v9102_v51  ;;  %v1815_v51 = vld [vmem:[#allocation7 + $0x760] sm:$0xff]  ;;  %v1848_v18 = vld [vmem:[#allocation7 + $0x868] sm:$0xff]  ;;  %v1829_v53 = vld [vmem:[#allocation7 + $0x7d0] sm:$0xff] }
 0x28b   :  { %9019 = vmatpush1.bf16.msra.mxu1 %v9018_v1  ;;  %v9112_v42 = vpack.c.bf16 %v1815_v51, %v1807_v8  ;;  %v1797_v1 = vld [vmem:[#allocation7 + $0x6d0] sm:$0xff]  ;;  %v9118_v27 = vpack.c.bf16 %v1848_v18, %v1840_v54  ;;  %v1864_v8 = vld [vmem:[#allocation7 + $0x8e8] sm:$0xff]  ;;  %v1871_v18 = vld [vmem:[#allocation7 + $0x920] sm:$0xff] }
 0x28c   :  { %9021 = vmatprep.subr.bf16.mxu1 %v9020_v10  ;;  %v1831_v10 = vld [vmem:[#allocation7 + $0x7e0] sm:$0xff]  ;;  %v1837_v15 = vld [vmem:[#allocation7 + $0x810] sm:$0xff] }
 0x28d   :  { %9105 = vmatpush1.bf16.msra.mxu0 %v9104_v9  ;;  %v9114_v9 = vpack.c.bf16 %v1832_v60, %v1824_v57  ;;  %v9116_v23 = vpack.c.bf16 %v1831_v10, %v1823_v2  ;;  %v1855_v57 = vld [vmem:[#allocation7 + $0x8a0] sm:$0xff]  ;;  %v1880_v2 = vld [vmem:[#allocation7 + $0x968] sm:$0xf]  ;;  %v1845_v54 = vld [vmem:[#allocation7 + $0x850] sm:$0xff] }
 0x28e   :  { %9107 = vmatprep.subr.bf16.mxu0 %v9106_v20  ;;  %v9030_v20 = vpack.c.bf16 %v1797_v1, %v1789_v5  ;;  %v1846_v5 = vld [vmem:[#allocation7 + $0x858] sm:$0xff]  ;;  %v1872_v1 = vld [vmem:[#allocation7 + $0x928] sm:$0xff] }
 0x28f   :  { %9023 = vmatpush1.bf16.msra.mxu1 %v9022_v45  ;;  %v1839_v45 = vld [vmem:[#allocation7 + $0x820] sm:$0xff] }
 0x290   :  { %9025 = vmatprep.subr.bf16.mxu1 %v9024_v34  ;;  %v1822_v34 = vld [vmem:[#allocation7 + $0x798] sm:$0xff] }
 0x291   :  { %9109 = vmatpush1.bf16.msra.mxu0 %v9108_v19  ;;  %v1847_v19 = vld [vmem:[#allocation7 + $0x860] sm:$0xff]  ;;  %v9036_v60 = vpack.c.bf16 %v1830_v37, %v1822_v34  ;;  %v1853_v37 = vld [vmem:[#allocation7 + $0x890] sm:$0xff] }
 0x292   :  { %9111 = vmatprep.subr.bf16.mxu0 %v9110_v21  ;;  %v9034_v21 = vpack.c.bf16 %v1813_v6, %v1805_v4  ;;  %v9120_v51 = vpack.c.bf16 %v1847_v19, %v1839_v45  ;;  %v1862_v4 = vld [vmem:[#allocation7 + $0x8d8] sm:$0xff]  ;;  %v2574_v6 = vld [vmem:[#allocation10 + $0x8] sm:$0xff]  ;;  %v9042_v45 = vpack.c.bf16 %v1845_v54, %v1837_v15 }
 0x293   :  { %9027 = vmatpush1.bf16.msra.mxu1 %v9026_v61  ;;  %v9122_v61 = vpack.c.bf16 %v1864_v8, %v1856_v58  ;;  %v1861_v58 = vld [vmem:[#allocation7 + $0x8d0] sm:$0xff]  ;;  %v2573_v8 = vld [vmem:[#allocation10] sm:$0xff]  ;;  %v1594_v15 = vld [vmem:[#allocation7 + $0x78] sm:$0xff] }
 0x294   :  { %9029 = vmatprep.subr.bf16.mxu1 %v9028_v63  ;;  %v1838_v63 = vld [vmem:[#allocation7 + $0x818] sm:$0xff]  ;;  %v2606_v54 = vld [vmem:[#allocation10 + $0x108] sm:$0xff] }
 0x295   :  { %9113 = vmatpush1.bf16.msra.mxu0 %v9112_v42  ;;  %v1863_v42 = vld [vmem:[#allocation7 + $0x8e0] sm:$0xff]  ;;  %v9040_v14 = vpack.c.bf16 %v1846_v5, %v1838_v63  ;;  %v1869_v5 = vld [vmem:[#allocation7 + $0x910] sm:$0xff] }
 0x296   :  { %9115 = vmatprep.subr.bf16.mxu0 %v9114_v9  ;;  %v9038_v9 = vpack.c.bf16 %v1829_v53, %v1821_v52  ;;  %v9124_v10 = vpack.c.bf16 %v1863_v42, %v1855_v57  ;;  %v1870_v52 = vld [vmem:[#allocation7 + $0x918] sm:$0xff]  ;;  %v2590_v57 = vld [vmem:[#allocation10 + $0x88] sm:$0xff] }
 0x297   :  { %9031 = vmatpush1.bf16.msra.mxu1 %v9030_v20  ;;  %v9126_v20 = vpack.c.bf16 %v1880_v2, %v1872_v1  ;;  %v1878_v53 = vld [vmem:[#allocation7 + $0x958] sm:$0xf]  ;;  %v1877_v1 = vld [vmem:[#allocation7 + $0x950] sm:$0xf]  ;;  %v2589_v2 = vld [vmem:[#allocation10 + $0x80] sm:$0xff] }
 0x298   :  { %9033 = vmatprep.subr.bf16.mxu1 %v9032_v11  ;;  %v1854_v11 = vld [vmem:[#allocation7 + $0x898] sm:$0xff]  ;;  %v9048_v63 = vpack.c.bf16 %v1878_v53, %v1870_v52  ;;  %v1601_v53 = vld [vmem:[#allocation7 + $0xb0] sm:$0xff] }
 0x299   :  { %9117 = vmatpush1.bf16.msra.mxu0 %v9116_v23  ;;  %v1879_v23 = vld [vmem:[#allocation7 + $0x960] sm:$0xf]  ;;  %v9044_v34 = vpack.c.bf16 %v1862_v4, %v1854_v11  ;;  %v1585_v4 = vld [vmem:[#allocation7 + $0x30] sm:$0xff] }
 0x29a   :  { %9119 = vmatprep.subr.bf16.mxu0 %v9118_v27  ;;  %v2582_v27 = vld [vmem:[#allocation10 + $0x48] sm:$0xff]  ;;  %v9129_v19 = vpack.c.bf16 %v1879_v23, %v1871_v18 }
 0x29b   :  { %9035 = vmatpush1.bf16.msra.mxu1 %v9034_v21  ;;  %v9210_v21 = vpack.c.bf16 %v2582_v27, %v2574_v6  ;;  %v2614_v18 = vld [vmem:[#allocation10 + $0x148] sm:$0xff]  ;;  %v2605_v27 = vld [vmem:[#allocation10 + $0x100] sm:$0xff] }
 0x29c   :  { %2330 = vmatmul.mubr.f32.vlgmr.msra.gmra.mrb[24].mxu0 %v11549_v30  ;;  %9037 = vmatprep.subr.bf16.mxu1 %v9036_v60  ;;  %v2598_v60 = vld [vmem:[#allocation10 + $0xc8] sm:$0xff] }
 0x29d   :  { %2335 = vmatprep.mubr.f32.mxu0 %v11563_v55  ;;  %9121 = vmatpush1.bf16.msra.mxu0 %v9120_v51  ;;  %v2581_v51 = vld [vmem:[#allocation10 + $0x40] sm:$0xff]  ;;  %v1593_v6 = vld [vmem:[#allocation7 + $0x70] sm:$0xff] }
 0x29e   :  { %9123 = vmatprep.subr.bf16.mxu0 %v9122_v61  ;;  %v9046_v61 = vpack.c.bf16 %v1861_v58, %v1853_v37  ;;  %v9212_v42 = vpack.c.bf16 %v2581_v51, %v2573_v8  ;;  %v1610_v37 = vld [vmem:[#allocation7 + $0xf8] sm:$0xff]  ;;  %v2622_v58 = vld [vmem:[#allocation10 + $0x188] sm:$0xff] }
 0x29f   :  { %9039 = vmatpush1.bf16.msra.mxu1 %v9038_v9  ;;  %v9214_v9 = vpack.c.bf16 %v2598_v60, %v2590_v57  ;;  %v2630_v8 = vld [vmem:[#allocation10 + $0x1c8] sm:$0xff]  ;;  %v2621_v60 = vld [vmem:[#allocation10 + $0x180] sm:$0xff] }
 0x2a0   :  { %2336 = vmatmul.mubr.f32.gmra.mrb[26].mxu0 %v11557_v43  ;;  %9041 = vmatprep.subr.bf16.mxu1 %v9040_v14  ;;  %v1586_v14 = vld [vmem:[#allocation7 + $0x38] sm:$0xff]  ;;  %v1609_v57 = vld [vmem:[#allocation7 + $0xf0] sm:$0xff] }
 0x2a1   :  { %9125 = vmatpush1.bf16.msra.mxu0 %v9124_v10  ;;  %2406 = vmatprep.mubr.f32.mxu0 %v12784_v0  ;;  %v2597_v10 = vld [vmem:[#allocation10 + $0xc0] sm:$0xff]  ;;  %v9132_v11 = vpack.c.bf16 %v1594_v15, %v1586_v14  ;;  %v1617_v15 = vld [vmem:[#allocation7 + $0x130] sm:$0xff] }
 0x2a2   :  { %9128 = vmatprep.subr.msk.bf16.mxu0 %vm11514_vm3, %v9126_v20  ;;  %2176 = vmatmul.mubr.f32.vlgmr.msra.gmra.mrb[20].mxu1 %v11549_v30  ;;  %v9051_v20 = vpack.c.bf16 %v1877_v1, %v1869_v5  ;;  %v9216_v23 = vpack.c.bf16 %v2597_v10, %v2589_v2  ;;  %v1626_v5 = vld [vmem:[#allocation7 + $0x178] sm:$0xff]  ;;  %v2638_v1 = vld [vmem:[#allocation10 + $0x208] sm:$0xff] }
 0x2a3   :  { %2181 = vmatprep.mubr.f32.mxu1 %v11563_v55  ;;  %9043 = vmatpush1.bf16.msra.mxu1 %v9042_v45  ;;  %v9218_v45 = vpack.c.bf16 %v2614_v18, %v2606_v54  ;;  %v2646_v2 = vld [vmem:[#allocation10 + $0x248] sm:$0xff]  ;;  %v2637_v18 = vld [vmem:[#allocation10 + $0x200] sm:$0xff] }
 0x2a4   :  { %9045 = vmatprep.subr.bf16.mxu1 %v9044_v34  ;;  %v1602_v34 = vld [vmem:[#allocation7 + $0xb8] sm:$0xff]  ;;  %v1625_v54 = vld [vmem:[#allocation7 + $0x170] sm:$0xff] }
 0x2a5   :  { %9131 = vmatpush1.bf16.msk.msra.mxu0 %vm11514_vm3, %v9129_v19  ;;  %v2613_v19 = vld [vmem:[#allocation10 + $0x140] sm:$0xff]  ;;  %v9136_v52 = vpack.c.bf16 %v1610_v37, %v1602_v34  ;;  %v1633_v37 = vld [vmem:[#allocation7 + $0x1b0] sm:$0xff] }
 0x2a6   :  { %9211 = vmatprep.subr.bf16.mxu0 %v9210_v21  ;;  %2182 = vmatmul.mubr.f32.gmra.mrb[22].mxu1 %v11557_v43  ;;  %v9134_v21 = vpack.c.bf16 %v1593_v6, %v1585_v4  ;;  %v9220_v51 = vpack.c.bf16 %v2613_v19, %v2605_v27  ;;  %v1642_v4 = vld [vmem:[#allocation7 + $0x1f8] sm:$0xff]  ;;  %v2654_v6 = vld [vmem:[#allocation10 + $0x288] sm:$0xff] }
 0x2a7   :  { %9047 = vmatpush1.bf16.msra.mxu1 %v9046_v61  ;;  %2252 = vmatprep.mubr.f32.mxu1 %v12784_v0  ;;  %v9222_v61 = vpack.c.bf16 %v2630_v8, %v2622_v58  ;;  %v2662_v27 = vld [vmem:[#allocation10 + $0x2c8] sm:$0xff]  ;;  %v2653_v8 = vld [vmem:[#allocation10 + $0x280] sm:$0xff] }
 0x2a8   :  { %8242 = vmatmul.mubr.msk.f32.vlgmr.msra.gmra.mrb[24].mxu0 %vm1925_vm4, %v11576_v13  ;;  %9050 = vmatprep.subr.msk.bf16.mxu1 %vm11514_vm3, %v9048_v63  ;;  %v1618_v63 = vld [vmem:[#allocation7 + $0x138] sm:$0xff]  ;;  %v1641_v58 = vld [vmem:[#allocation7 + $0x1f0] sm:$0xff] }
 0x2a9   :  { %9213 = vmatpush1.bf16.msra.mxu0 %v9212_v42  ;;  %2412 = vmatprep.mubr.f32.mxu0 %v12784_v0  ;;  %v2629_v42 = vld [vmem:[#allocation10 + $0x1c0] sm:$0xff]  ;;  %v9140_v14 = vpack.c.bf16 %v1626_v5, %v1618_v63  ;;  %v1649_v63 = vld [vmem:[#allocation7 + $0x230] sm:$0xff] }
 0x2aa   :  { %9215 = vmatprep.subr.bf16.mxu0 %v9214_v9  ;;  %v9138_v9 = vpack.c.bf16 %v1609_v57, %v1601_v53  ;;  %v9224_v10 = vpack.c.bf16 %v2629_v42, %v2621_v60  ;;  %v1658_v53 = vld [vmem:[#allocation7 + $0x278] sm:$0xff]  ;;  %v2670_v57 = vld [vmem:[#allocation10 + $0x308] sm:$0xff] }
 0x2ab   :  { %9053 = vmatpush1.bf16.msk.msra.mxu1 %vm11514_vm3, %v9051_v20  ;;  %v9226_v20 = vpack.c.bf16 %v2646_v2, %v2638_v1  ;;  %v2678_v60 = vld [vmem:[#allocation10 + $0x348] sm:$0xff]  ;;  %v2669_v1 = vld [vmem:[#allocation10 + $0x300] sm:$0xff] }
 0x2ac   :  { %8243 = vmatmul.mubr.msk.f32.gmra.mrb[26].mxu0 %vm1925_vm4, %v11587_v44  ;;  %9133 = vmatprep.subr.bf16.mxu1 %v9132_v11  ;;  %v1634_v11 = vld [vmem:[#allocation7 + $0x1b8] sm:$0xff]  ;;  %v1657_v5 = vld [vmem:[#allocation7 + $0x270] sm:$0xff]  ;;  %v9234_v2 = vpack.c.bf16 %v2678_v60, %v2670_v57  ;;  %v2701_v57 = vld [vmem:[#allocation10 + $0x400] sm:$0xff] }
 0x2ad   :  { %9217 = vmatpush1.bf16.msra.mxu0 %v9216_v23  ;;  %3013 = vmatprep.mubr.f32.mxu0 %v11647_v24  ;;  %v2645_v23 = vld [vmem:[#allocation10 + $0x240] sm:$0xff]  ;;  %v9144_v34 = vpack.c.bf16 %v1642_v4, %v1634_v11  ;;  %v1665_v11 = vld [vmem:[#allocation7 + $0x2b0] sm:$0xff] }
 0x2ae   :  { %9219 = vmatprep.subr.bf16.mxu0 %v9218_v45  ;;  %8238 = vmatmul.mubr.msk.f32.vlgmr.msra.gmra.mrb[20].mxu1 %vm1925_vm4, %v11576_v13  ;;  %v9142_v45 = vpack.c.bf16 %v1625_v54, %v1617_v15  ;;  %v9228_v19 = vpack.c.bf16 %v2645_v23, %v2637_v18  ;;  %v2686_v15 = vld [vmem:[#allocation10 + $0x388] sm:$0xff]  ;;  %v9150_v18 = vpack.c.bf16 %v1657_v5, %v1649_v63 }
 0x2af   :  { %9135 = vmatpush1.bf16.msra.mxu1 %v9134_v21  ;;  %2258 = vmatprep.mubr.f32.mxu1 %v12784_v0  ;;  %v9230_v21 = vpack.c.bf16 %v2662_v27, %v2654_v6  ;;  %v2694_v54 = vld [vmem:[#allocation10 + $0x3c8] sm:$0xff]  ;;  %v2685_v6 = vld [vmem:[#allocation10 + $0x380] sm:$0xff] }
 0x2b0   :  { %9137 = vmatprep.subr.bf16.mxu1 %v9136_v52  ;;  %v1650_v52 = vld [vmem:[#allocation7 + $0x238] sm:$0xff]  ;;  %v1673_v4 = vld [vmem:[#allocation7 + $0x2f0] sm:$0xff]  ;;  %v9238_v27 = vpack.c.bf16 %v2694_v54, %v2686_v15  ;;  %v2717_v15 = vld [vmem:[#allocation10 + $0x480] sm:$0xff] }
 0x2b1   :  { %9221 = vmatpush1.bf16.msra.mxu0 %v9220_v51  ;;  %v2661_v51 = vld [vmem:[#allocation10 + $0x2c0] sm:$0xff]  ;;  %v9148_v42 = vpack.c.bf16 %v1658_v53, %v1650_v52  ;;  %v1681_v52 = vld [vmem:[#allocation7 + $0x330] sm:$0xff] }
 0x2b2   :  { %9223 = vmatprep.subr.bf16.mxu0 %v9222_v61  ;;  %8239 = vmatmul.mubr.msk.f32.gmra.mrb[22].mxu1 %vm1925_vm4, %v11587_v44  ;;  %v9146_v61 = vpack.c.bf16 %v1641_v58, %v1633_v37  ;;  %v2702_v37 = vld [vmem:[#allocation10 + $0x408] sm:$0xff] }
 0x2b3   :  { %9139 = vmatpush1.bf16.msra.mxu1 %v9138_v9  ;;  %2483 = vmatprep.mubr.f32.mxu1 %v11545_v26  ;;  %v9232_v26 = vpack.c.bf16 %v2661_v51, %v2653_v8  ;;  %v2677_v9 = vld [vmem:[#allocation10 + $0x340] sm:$0xff]  ;;  %v2710_v58 = vld [vmem:[#allocation10 + $0x448] sm:$0xff]  ;;  %v9154_v8 = vpack.c.bf16 %v1673_v4, %v1665_v11 }
 0x2b4   :  { %9141 = vmatprep.subr.bf16.mxu1 %v9140_v14  ;;  %v1674_v14 = vld [vmem:[#allocation7 + $0x2f8] sm:$0xff]  ;;  %v1689_v53 = vld [vmem:[#allocation7 + $0x370] sm:$0xff]  ;;  %v9242_v60 = vpack.c.bf16 %v2710_v58, %v2702_v37  ;;  %v2733_v37 = vld [vmem:[#allocation10 + $0x500] sm:$0xff] }
 0x2b5   :  { %9225 = vmatpush1.bf16.msra.mxu0 %v9224_v10  ;;  %v1666_v10 = vld [vmem:[#allocation7 + $0x2b8] sm:$0xff]  ;;  %v2718_v63 = vld [vmem:[#allocation10 + $0x488] sm:$0xff] }
 0x2b6   :  { %9227 = vmatprep.subr.bf16.mxu0 %v9226_v20  ;;  %v9236_v20 = vpack.c.bf16 %v2677_v9, %v2669_v1  ;;  %v9152_v23 = vpack.c.bf16 %v1674_v14, %v1666_v10  ;;  %v2726_v5 = vld [vmem:[#allocation10 + $0x4c8] sm:$0xff]  ;;  %v9158_v1 = vpack.c.bf16 %v1689_v53, %v1681_v52 }
 0x2b7   :  { %9143 = vmatpush1.bf16.msra.mxu1 %v9142_v45  ;;  %v2693_v45 = vld [vmem:[#allocation10 + $0x3c0] sm:$0xff]  ;;  %v1697_v10 = vld [vmem:[#allocation7 + $0x3b0] sm:$0xff]  ;;  %v9246_v54 = vpack.c.bf16 %v2726_v5, %v2718_v63 }
 0x2b8   :  { %9145 = vmatprep.subr.bf16.mxu1 %v9144_v34  ;;  %v1690_v34 = vld [vmem:[#allocation7 + $0x378] sm:$0xff]  ;;  %v1705_v14 = vld [vmem:[#allocation7 + $0x3f0] sm:$0xff]  ;;  %v2749_v63 = vld [vmem:[#allocation10 + $0x580] sm:$0xff] }
 0x2b9   :  { %9229 = vmatpush1.bf16.msra.mxu0 %v9228_v19  ;;  %v1682_v19 = vld [vmem:[#allocation7 + $0x338] sm:$0xff]  ;;  %v2734_v11 = vld [vmem:[#allocation10 + $0x508] sm:$0xff] }
 0x2ba   :  { %9231 = vmatprep.subr.bf16.mxu0 %v9230_v21  ;;  %v9240_v21 = vpack.c.bf16 %v2693_v45, %v2685_v6  ;;  %v9156_v51 = vpack.c.bf16 %v1690_v34, %v1682_v19  ;;  %v2742_v4 = vld [vmem:[#allocation10 + $0x548] sm:$0xff]  ;;  %v9162_v6 = vpack.c.bf16 %v1705_v14, %v1697_v10 }
 0x2bb   :  { %9147 = vmatpush1.bf16.msra.mxu1 %v9146_v61  ;;  %v2709_v61 = vld [vmem:[#allocation10 + $0x440] sm:$0xff]  ;;  %v1713_v19 = vld [vmem:[#allocation7 + $0x430] sm:$0xff]  ;;  %v9250_v58 = vpack.c.bf16 %v2742_v4, %v2734_v11 }
 0x2bc   :  { %9149 = vmatprep.subr.bf16.mxu1 %v9148_v42  ;;  %v1706_v42 = vld [vmem:[#allocation7 + $0x3f8] sm:$0xff]  ;;  %v1721_v34 = vld [vmem:[#allocation7 + $0x470] sm:$0xff]  ;;  %v2765_v11 = vld [vmem:[#allocation10 + $0x600] sm:$0xff] }
 0x2bd   :  { %9233 = vmatpush1.bf16.msra.mxu0 %v9232_v26  ;;  %v1698_v26 = vld [vmem:[#allocation7 + $0x3b8] sm:$0xff]  ;;  %v2750_v52 = vld [vmem:[#allocation10 + $0x588] sm:$0xff] }
 0x2be   :  { %9235 = vmatprep.subr.bf16.mxu0 %v9234_v2  ;;  %v9244_v2 = vpack.c.bf16 %v2709_v61, %v2701_v57  ;;  %v9160_v9 = vpack.c.bf16 %v1706_v42, %v1698_v26  ;;  %v2758_v53 = vld [vmem:[#allocation10 + $0x5c8] sm:$0xff]  ;;  %v9166_v57 = vpack.c.bf16 %v1721_v34, %v1713_v19 }
 0x2bf   :  { %9151 = vmatpush1.bf16.msra.mxu1 %v9150_v18  ;;  %v2725_v18 = vld [vmem:[#allocation10 + $0x4c0] sm:$0xff]  ;;  %v1729_v26 = vld [vmem:[#allocation7 + $0x4b0] sm:$0xff]  ;;  %v9254_v5 = vpack.c.bf16 %v2758_v53, %v2750_v52 }
 0x2c0   :  { %9153 = vmatprep.subr.bf16.mxu1 %v9152_v23  ;;  %v1722_v23 = vld [vmem:[#allocation7 + $0x478] sm:$0xff]  ;;  %v1737_v42 = vld [vmem:[#allocation7 + $0x4f0] sm:$0xff]  ;;  %v2781_v52 = vld [vmem:[#allocation10 + $0x680] sm:$0xff] }
 0x2c1   :  { %9237 = vmatpush1.bf16.msra.mxu0 %v9236_v20  ;;  %v1714_v20 = vld [vmem:[#allocation7 + $0x438] sm:$0xff]  ;;  %v2766_v10 = vld [vmem:[#allocation10 + $0x608] sm:$0xff] }
 0x2c2   :  { %9239 = vmatprep.subr.bf16.mxu0 %v9238_v27  ;;  %v9248_v27 = vpack.c.bf16 %v2725_v18, %v2717_v15  ;;  %v9164_v45 = vpack.c.bf16 %v1722_v23, %v1714_v20  ;;  %v2774_v14 = vld [vmem:[#allocation10 + $0x648] sm:$0xff]  ;;  %v9170_v15 = vpack.c.bf16 %v1737_v42, %v1729_v26 }
 0x2c3   :  { %9155 = vmatpush1.bf16.msra.mxu1 %v9154_v8  ;;  %v2741_v8 = vld [vmem:[#allocation10 + $0x540] sm:$0xff]  ;;  %v1745_v20 = vld [vmem:[#allocation7 + $0x530] sm:$0xff]  ;;  %v9258_v4 = vpack.c.bf16 %v2774_v14, %v2766_v10 }
 0x2c4   :  { %9157 = vmatprep.subr.bf16.mxu1 %v9156_v51  ;;  %v1738_v51 = vld [vmem:[#allocation7 + $0x4f8] sm:$0xff]  ;;  %v1753_v23 = vld [vmem:[#allocation7 + $0x570] sm:$0xff]  ;;  %v2797_v10 = vld [vmem:[#allocation10 + $0x700] sm:$0xff] }
 0x2c5   :  { %9241 = vmatpush1.bf16.msra.mxu0 %v9240_v21  ;;  %v1730_v21 = vld [vmem:[#allocation7 + $0x4b8] sm:$0xff]  ;;  %v2782_v19 = vld [vmem:[#allocation10 + $0x688] sm:$0xff] }
 0x2c6   :  { %9243 = vmatprep.subr.bf16.mxu0 %v9242_v60  ;;  %v9252_v60 = vpack.c.bf16 %v2741_v8, %v2733_v37  ;;  %v9168_v61 = vpack.c.bf16 %v1738_v51, %v1730_v21  ;;  %v2790_v34 = vld [vmem:[#allocation10 + $0x6c8] sm:$0xff]  ;;  %v9174_v37 = vpack.c.bf16 %v1753_v23, %v1745_v20 }
 0x2c7   :  { %9159 = vmatpush1.bf16.msra.mxu1 %v9158_v1  ;;  %v2757_v1 = vld [vmem:[#allocation10 + $0x5c0] sm:$0xff]  ;;  %v1761_v21 = vld [vmem:[#allocation7 + $0x5b0] sm:$0xff]  ;;  %v9262_v53 = vpack.c.bf16 %v2790_v34, %v2782_v19 }
 0x2c8   :  { %9161 = vmatprep.subr.bf16.mxu1 %v9160_v9  ;;  %v1754_v9 = vld [vmem:[#allocation7 + $0x578] sm:$0xff]  ;;  %v1769_v51 = vld [vmem:[#allocation7 + $0x5f0] sm:$0xff]  ;;  %v2813_v19 = vld [vmem:[#allocation10 + $0x780] sm:$0xff] }
 0x2c9   :  { %9245 = vmatpush1.bf16.msra.mxu0 %v9244_v2  ;;  %v1746_v2 = vld [vmem:[#allocation7 + $0x538] sm:$0xff]  ;;  %v2798_v26 = vld [vmem:[#allocation10 + $0x708] sm:$0xff] }
 0x2ca   :  { %9247 = vmatprep.subr.bf16.mxu0 %v9246_v54  ;;  %v9256_v54 = vpack.c.bf16 %v2757_v1, %v2749_v63  ;;  %v9172_v18 = vpack.c.bf16 %v1754_v9, %v1746_v2  ;;  %v2806_v42 = vld [vmem:[#allocation10 + $0x748] sm:$0xff]  ;;  %v9178_v63 = vpack.c.bf16 %v1769_v51, %v1761_v21 }
 0x2cb   :  { %9163 = vmatpush1.bf16.msra.mxu1 %v9162_v6  ;;  %v2773_v6 = vld [vmem:[#allocation10 + $0x640] sm:$0xff]  ;;  %v1777_v2 = vld [vmem:[#allocation7 + $0x630] sm:$0xff]  ;;  %v9266_v14 = vpack.c.bf16 %v2806_v42, %v2798_v26 }
 0x2cc   :  { %9165 = vmatprep.subr.bf16.mxu1 %v9164_v45  ;;  %v1770_v45 = vld [vmem:[#allocation7 + $0x5f8] sm:$0xff]  ;;  %v1785_v9 = vld [vmem:[#allocation7 + $0x670] sm:$0xff]  ;;  %v2829_v26 = vld [vmem:[#allocation10 + $0x800] sm:$0xff] }
 0x2cd   :  { %9249 = vmatpush1.bf16.msra.mxu0 %v9248_v27  ;;  %v1762_v27 = vld [vmem:[#allocation7 + $0x5b8] sm:$0xff]  ;;  %v2814_v20 = vld [vmem:[#allocation10 + $0x788] sm:$0xff] }
 0x2ce   :  { %9251 = vmatprep.subr.bf16.mxu0 %v9250_v58  ;;  %v9260_v58 = vpack.c.bf16 %v2773_v6, %v2765_v11  ;;  %v9176_v8 = vpack.c.bf16 %v1770_v45, %v1762_v27  ;;  %v2822_v23 = vld [vmem:[#allocation10 + $0x7c8] sm:$0xff]  ;;  %v9182_v11 = vpack.c.bf16 %v1785_v9, %v1777_v2 }
 0x2cf   :  { %9167 = vmatpush1.bf16.msra.mxu1 %v9166_v57  ;;  %v2789_v57 = vld [vmem:[#allocation10 + $0x6c0] sm:$0xff]  ;;  %v1793_v27 = vld [vmem:[#allocation7 + $0x6b0] sm:$0xff]  ;;  %v9270_v34 = vpack.c.bf16 %v2822_v23, %v2814_v20 }
 0x2d0   :  { %9169 = vmatprep.subr.bf16.mxu1 %v9168_v61  ;;  %v1786_v61 = vld [vmem:[#allocation7 + $0x678] sm:$0xff]  ;;  %v1801_v45 = vld [vmem:[#allocation7 + $0x6f0] sm:$0xff]  ;;  %v2845_v20 = vld [vmem:[#allocation10 + $0x880] sm:$0xff] }
 0x2d1   :  { %9253 = vmatpush1.bf16.msra.mxu0 %v9252_v60  ;;  %v1778_v60 = vld [vmem:[#allocation7 + $0x638] sm:$0xff]  ;;  %v2830_v21 = vld [vmem:[#allocation10 + $0x808] sm:$0xff] }
 0x2d2   :  { %9255 = vmatprep.subr.bf16.mxu0 %v9254_v5  ;;  %v9264_v5 = vpack.c.bf16 %v2789_v57, %v2781_v52  ;;  %v9180_v1 = vpack.c.bf16 %v1786_v61, %v1778_v60  ;;  %v2838_v51 = vld [vmem:[#allocation10 + $0x848] sm:$0xff]  ;;  %v9186_v52 = vpack.c.bf16 %v1801_v45, %v1793_v27 }
 0x2d3   :  { %9171 = vmatpush1.bf16.msra.mxu1 %v9170_v15  ;;  %v2805_v15 = vld [vmem:[#allocation10 + $0x740] sm:$0xff]  ;;  %v1809_v60 = vld [vmem:[#allocation7 + $0x730] sm:$0xff]  ;;  %v9274_v42 = vpack.c.bf16 %v2838_v51, %v2830_v21 }
 0x2d4   :  { %9173 = vmatprep.subr.bf16.mxu1 %v9172_v18  ;;  %v1802_v18 = vld [vmem:[#allocation7 + $0x6f8] sm:$0xff]  ;;  %v1817_v61 = vld [vmem:[#allocation7 + $0x770] sm:$0xff]  ;;  %v2861_v21 = vld [vmem:[#allocation10 + $0x900] sm:$0xff] }
 0x2d5   :  { %9257 = vmatpush1.bf16.msra.mxu0 %v9256_v54  ;;  %v1794_v54 = vld [vmem:[#allocation7 + $0x6b8] sm:$0xff]  ;;  %v2846_v2 = vld [vmem:[#allocation10 + $0x888] sm:$0xff] }
 0x2d6   :  { %9259 = vmatprep.subr.bf16.mxu0 %v9258_v4  ;;  %v9268_v4 = vpack.c.bf16 %v2805_v15, %v2797_v10  ;;  %v9184_v6 = vpack.c.bf16 %v1802_v18, %v1794_v54  ;;  %v2854_v9 = vld [vmem:[#allocation10 + $0x8c8] sm:$0xff]  ;;  %v9190_v10 = vpack.c.bf16 %v1817_v61, %v1809_v60 }
 0x2d7   :  { %9175 = vmatpush1.bf16.msra.mxu1 %v9174_v37  ;;  %v2821_v37 = vld [vmem:[#allocation10 + $0x7c0] sm:$0xff]  ;;  %v1825_v54 = vld [vmem:[#allocation7 + $0x7b0] sm:$0xff]  ;;  %v9278_v23 = vpack.c.bf16 %v2854_v9, %v2846_v2  ;;  %v1874_v9 = vld [vmem:[#allocation7 + $0x938] sm:$0xff] }
 0x2d8   :  { %9177 = vmatprep.subr.bf16.mxu1 %v9176_v8  ;;  %v1818_v8 = vld [vmem:[#allocation7 + $0x778] sm:$0xff]  ;;  %v1833_v18 = vld [vmem:[#allocation7 + $0x7f0] sm:$0xff] }
 0x2d9   :  { %9261 = vmatpush1.bf16.msra.mxu0 %v9260_v58  ;;  %v1810_v58 = vld [vmem:[#allocation7 + $0x738] sm:$0xff]  ;;  %v2862_v27 = vld [vmem:[#allocation10 + $0x908] sm:$0xff] }
 0x2da   :  { %9263 = vmatprep.subr.bf16.mxu0 %v9262_v53  ;;  %v9272_v53 = vpack.c.bf16 %v2821_v37, %v2813_v19  ;;  %v9188_v57 = vpack.c.bf16 %v1818_v8, %v1810_v58  ;;  %v2870_v45 = vld [vmem:[#allocation10 + $0x948] sm:$0xf]  ;;  %v9194_v19 = vpack.c.bf16 %v1833_v18, %v1825_v54  ;;  %v11707_v18 = vpop.eup %10471 }
 0x2db   :  { %9179 = vmatpush1.bf16.msra.mxu1 %v9178_v63  ;;  %v2837_v63 = vld [vmem:[#allocation10 + $0x840] sm:$0xff]  ;;  %v1841_v58 = vld [vmem:[#allocation7 + $0x830] sm:$0xff]  ;;  %v9282_v51 = vpack.c.bf16 %v2870_v45, %v2862_v27  ;;  %12823 = vst [vmem:[#allocation53_spill] sm:$0xff] %v11707_v18  ;;  %v2576_v45 = vld [vmem:[#allocation10 + $0x18] sm:$0xff] }
 0x2dc   :  { %9181 = vmatprep.subr.bf16.mxu1 %v9180_v1  ;;  %v1834_v1 = vld [vmem:[#allocation7 + $0x7f8] sm:$0xff]  ;;  %v1849_v8 = vld [vmem:[#allocation7 + $0x870] sm:$0xff] }
 0x2dd   :  { %9265 = vmatpush1.bf16.msra.mxu0 %v9264_v5  ;;  %v1826_v5 = vld [vmem:[#allocation7 + $0x7b8] sm:$0xff]  ;;  %v2586_v60 = vld [vmem:[#allocation10 + $0x68] sm:$0xff]  ;;  %v9198_v61 = vpack.c.bf16 %v1849_v8, %v1841_v58  ;;  %v11714_v58 = vpop.eup %10473 }
 0x2de   :  { %9267 = vmatprep.subr.bf16.mxu0 %v9266_v14  ;;  %v9276_v14 = vpack.c.bf16 %v2837_v63, %v2829_v26  ;;  %v9192_v15 = vpack.c.bf16 %v1834_v1, %v1826_v5  ;;  %v1857_v63 = vld [vmem:[#allocation7 + $0x8b0] sm:$0xff]  ;;  %v2577_v1 = vld [vmem:[#allocation10 + $0x20] sm:$0xff]  ;;  %12824 = vst [vmem:[#allocation54_spill] sm:$0xff] %v11714_v58 }
 0x2df   :  { %9183 = vmatpush1.bf16.msra.mxu1 %v9182_v11  ;;  %v2853_v11 = vld [vmem:[#allocation10 + $0x8c0] sm:$0xff]  ;;  %v1865_v5 = vld [vmem:[#allocation7 + $0x8f0] sm:$0xff] }
 0x2e0   :  { %9185 = vmatprep.subr.bf16.mxu1 %v9184_v6  ;;  %v1850_v6 = vld [vmem:[#allocation7 + $0x878] sm:$0xff]  ;;  %v9202_v54 = vpack.c.bf16 %v1865_v5, %v1857_v63 }
 0x2e1   :  { %9269 = vmatpush1.bf16.msra.mxu0 %v9268_v4  ;;  %v1842_v4 = vld [vmem:[#allocation7 + $0x838] sm:$0xff] }
 0x2e2   :  { %9271 = vmatprep.subr.bf16.mxu0 %v9270_v34  ;;  %v9280_v34 = vpack.c.bf16 %v2853_v11, %v2845_v20  ;;  %v9196_v37 = vpack.c.bf16 %v1850_v6, %v1842_v4  ;;  %v9368_v20 = vpack.c.bf16 %v2585_v35, %v2577_v1  ;;  %v1873_v11 = vld [vmem:[#allocation7 + $0x930] sm:$0xff]  ;;  %v2593_v6 = vld [vmem:[#allocation10 + $0xa0] sm:$0xff]  ;;  %v2591_v1 = vld [vmem:[#allocation10 + $0x90] sm:$0xff] }
 0x2e3   :  { %9187 = vmatpush1.bf16.msra.mxu1 %v9186_v52  ;;  %v2869_v52 = vld [vmem:[#allocation10 + $0x940] sm:$0xf]  ;;  %v1881_v4 = vld [vmem:[#allocation7 + $0x970] sm:$0xf] }
 0x2e4   :  { %9189 = vmatprep.subr.bf16.mxu1 %v9188_v57  ;;  %v2578_v57 = vld [vmem:[#allocation10 + $0x28] sm:$0xff]  ;;  %v9285_v26 = vpack.c.bf16 %v2869_v52, %v2861_v21  ;;  %v2583_v52 = vld [vmem:[#allocation10 + $0x50] sm:$0xff]  ;;  %v2625_v35 = vld [vmem:[#allocation10 + $0x1a0] sm:$0xff] }
 0x2e5   :  { %9273 = vmatpush1.bf16.msra.mxu0 %v9272_v53  ;;  %v1858_v53 = vld [vmem:[#allocation7 + $0x8b8] sm:$0xff]  ;;  %v9366_v2 = vpack.c.bf16 %v2586_v60, %v2578_v57  ;;  %v2592_v57 = vld [vmem:[#allocation10 + $0x98] sm:$0xff] }
 0x2e6   :  { %9275 = vmatprep.subr.bf16.mxu0 %v9274_v42  ;;  %v9200_v42 = vpack.c.bf16 %v1866_v56, %v1858_v53  ;;  %v2609_v53 = vld [vmem:[#allocation10 + $0x120] sm:$0xff]  ;;  %v2600_v60 = vld [vmem:[#allocation10 + $0xd8] sm:$0xff] }
 0x2e7   :  { %9191 = vmatpush1.bf16.msra.mxu1 %v9190_v10  ;;  %v1882_v10 = vld [vmem:[#allocation7 + $0x978] sm:$0xf]  ;;  %v2617_v56 = vld [vmem:[#allocation10 + $0x160] sm:$0xff]  ;;  %v9292_v5 = vpack.c.bf16 %v2600_v60, %v2592_v57 }
 0x2e8   :  { %3014 = vmatmul.mubr.f32.vlgmr.msra.gmra.mrb[28].mxu0 %v11645_v17  ;;  %9193 = vmatprep.subr.bf16.mxu1 %v9192_v15  ;;  %v2602_v15 = vld [vmem:[#allocation10 + $0xe8] sm:$0xff]  ;;  %v9376_v63 = vpack.c.bf16 %v2617_v56, %v2609_v53  ;;  %v2623_v53 = vld [vmem:[#allocation10 + $0x190] sm:$0xff]  ;;  %v2657_v56 = vld [vmem:[#allocation10 + $0x2a0] sm:$0xff] }
 0x2e9   :  { %9277 = vmatpush1.bf16.msra.mxu0 %v9276_v14  ;;  %3019 = vmatprep.mubr.f32.mxu0 %v11656_v3  ;;  %v2594_v14 = vld [vmem:[#allocation10 + $0xa8] sm:$0xff]  ;;  %v2665_v60 = vld [vmem:[#allocation10 + $0x2e0] sm:$0xff] }
 0x2ea   :  { %9279 = vmatprep.subr.bf16.mxu0 %v9278_v23  ;;  %v9204_v23 = vpack.c.bf16 %v1882_v10, %v1874_v9  ;;  %v9370_v27 = vpack.c.bf16 %v2602_v15, %v2594_v14  ;;  %v2633_v10 = vld [vmem:[#allocation10 + $0x1e0] sm:$0xff]  ;;  %v2608_v14 = vld [vmem:[#allocation10 + $0x118] sm:$0xff] }
 0x2eb   :  { %9195 = vmatpush1.bf16.msra.mxu1 %v9194_v19  ;;  %v2584_v19 = vld [vmem:[#allocation10 + $0x58] sm:$0xff] }
 0x2ec   :  { %3020 = vmatmul.mubr.f32.gmra.mrb[30].mxu0 %v11650_v59  ;;  %9197 = vmatprep.subr.bf16.mxu1 %v9196_v37  ;;  %v9207_v37 = vpack.c.bf16 %v1881_v4, %v1873_v11  ;;  %v9288_v21 = vpack.c.bf16 %v2584_v19, %v2576_v45  ;;  %v2616_v15 = vld [vmem:[#allocation10 + $0x158] sm:$0xff]  ;;  %v9380_v11 = vpack.c.bf16 %v2633_v10, %v2625_v35  ;;  %v2649_v19 = vld [vmem:[#allocation10 + $0x260] sm:$0xff]  ;;  %v2639_v35 = vld [vmem:[#allocation10 + $0x210] sm:$0xff] }
 0x2ed   :  { %9281 = vmatpush1.bf16.msra.mxu0 %v9280_v34  ;;  %3090 = vmatprep.mubr.f32.mxu0 %v12784_v0  ;;  %v2618_v34 = vld [vmem:[#allocation10 + $0x168] sm:$0xff]  ;;  %v9296_v4 = vpack.c.bf16 %v2616_v15, %v2608_v14  ;;  %v2673_v10 = vld [vmem:[#allocation10 + $0x320] sm:$0xff] }
 0x2ee   :  { %9284 = vmatprep.subr.msk.bf16.mxu0 %vm11514_vm3, %v9282_v51  ;;  %2484 = vmatmul.mubr.f32.vlgmr.msra.gmra.mrb[24].mxu1 %v11549_v30  ;;  %v2601_v30 = vld [vmem:[#allocation10 + $0xe0] sm:$0xff]  ;;  %v2575_v51 = vld [vmem:[#allocation10 + $0x10] sm:$0xff] }
 0x2ef   :  { %2489 = vmatprep.mubr.f32.mxu1 %v11563_v55  ;;  %9199 = vmatpush1.bf16.msra.mxu1 %v9198_v61  ;;  %v2610_v55 = vld [vmem:[#allocation10 + $0x128] sm:$0xff]  ;;  %v9372_v8 = vpack.c.bf16 %v2601_v30, %v2593_v6  ;;  %v2607_v6 = vld [vmem:[#allocation10 + $0x110] sm:$0xff]  ;;  %v2641_v30 = vld [vmem:[#allocation10 + $0x220] sm:$0xff] }
 0x2f0   :  { %9201 = vmatprep.subr.bf16.mxu1 %v9200_v42  ;;  %v2626_v61 = vld [vmem:[#allocation10 + $0x1a8] sm:$0xff]  ;;  %v9290_v42 = vpack.c.bf16 %v2583_v52, %v2575_v51  ;;  %v9384_v51 = vpack.c.bf16 %v2649_v19, %v2641_v30  ;;  %v2681_v15 = vld [vmem:[#allocation10 + $0x360] sm:$0xff]  ;;  %v2655_v30 = vld [vmem:[#allocation10 + $0x290] sm:$0xff] }
 0x2f1   :  { %9287 = vmatpush1.bf16.msk.msra.mxu0 %vm11514_vm3, %v9285_v26  ;;  %v2634_v26 = vld [vmem:[#allocation10 + $0x1e8] sm:$0xff]  ;;  %v2689_v19 = vld [vmem:[#allocation10 + $0x3a0] sm:$0xff] }
 0x2f2   :  { %9367 = vmatprep.subr.bf16.mxu0 %v9366_v2  ;;  %2490 = vmatmul.mubr.f32.gmra.mrb[26].mxu1 %v11557_v43  ;;  %v9374_v43 = vpack.c.bf16 %v2618_v34, %v2610_v55  ;;  %v2599_v2 = vld [vmem:[#allocation10 + $0xd0] sm:$0xff]  ;;  %v9378_v9 = vpack.c.bf16 %v2634_v26, %v2626_v61  ;;  %v2624_v55 = vld [vmem:[#allocation10 + $0x198] sm:$0xff] }
 0x2f3   :  { %9203 = vmatpush1.bf16.msra.mxu1 %v9202_v54  ;;  %2560 = vmatprep.mubr.f32.mxu1 %v12784_v0  ;;  %v2642_v54 = vld [vmem:[#allocation10 + $0x228] sm:$0xff]  ;;  %v2632_v34 = vld [vmem:[#allocation10 + $0x1d8] sm:$0xff] }
 0x2f4   :  { %8250 = vmatmul.mubr.msk.f32.vlgmr.msra.gmra.mrb[28].mxu0 %vm1925_vm4, %v11707_v18  ;;  %9206 = vmatprep.subr.msk.bf16.mxu1 %vm11514_vm3, %v9204_v23  ;;  %v9294_v23 = vpack.c.bf16 %v2599_v2, %v2591_v1  ;;  %v9300_v52 = vpack.c.bf16 %v2632_v34, %v2624_v55  ;;  %v2640_v61 = vld [vmem:[#allocation10 + $0x218] sm:$0xff]  ;;  %v9388_v1 = vpack.c.bf16 %v2665_v60, %v2657_v56  ;;  %v2697_v34 = vld [vmem:[#allocation10 + $0x3e0] sm:$0xff]  ;;  %v2671_v56 = vld [vmem:[#allocation10 + $0x310] sm:$0xff] }
 0x2f5   :  { %9369 = vmatpush1.bf16.msra.mxu0 %v9368_v20  ;;  %3096 = vmatprep.mubr.f32.mxu0 %v12784_v0  ;;  %v2650_v20 = vld [vmem:[#allocation10 + $0x268] sm:$0xff]  ;;  %v2648_v26 = vld [vmem:[#allocation10 + $0x258] sm:$0xff]  ;;  %v2705_v60 = vld [vmem:[#allocation10 + $0x420] sm:$0xff] }
 0x2f6   :  { %9371 = vmatprep.subr.bf16.mxu0 %v9370_v27  ;;  %v2615_v27 = vld [vmem:[#allocation10 + $0x150] sm:$0xff]  ;;  %v9382_v45 = vpack.c.bf16 %v2650_v20, %v2642_v54  ;;  %v9304_v2 = vpack.c.bf16 %v2648_v26, %v2640_v61  ;;  %v2656_v54 = vld [vmem:[#allocation10 + $0x298] sm:$0xff]  ;;  %v2713_v26 = vld [vmem:[#allocation10 + $0x460] sm:$0xff] }
 0x2f7   :  { %9209 = vmatpush1.bf16.msk.msra.mxu1 %vm11514_vm3, %v9207_v37  ;;  %v2658_v37 = vld [vmem:[#allocation10 + $0x2a8] sm:$0xff]  ;;  %v2664_v20 = vld [vmem:[#allocation10 + $0x2d8] sm:$0xff] }
 0x2f8   :  { %8251 = vmatmul.mubr.msk.f32.gmra.mrb[30].mxu0 %vm1925_vm4, %v11714_v58  ;;  %9289 = vmatprep.subr.bf16.mxu1 %v9288_v21  ;;  %v9298_v21 = vpack.c.bf16 %v2615_v27, %v2607_v6  ;;  %v9392_v6 = vpack.c.bf16 %v2681_v15, %v2673_v10  ;;  %v9308_v27 = vpack.c.bf16 %v2664_v20, %v2656_v54  ;;  %v2687_v10 = vld [vmem:[#allocation10 + $0x390] sm:$0xff]  ;;  %v2721_v15 = vld [vmem:[#allocation10 + $0x4a0] sm:$0xff] }
 0x2f9   :  { %9373 = vmatpush1.bf16.msra.mxu0 %v9372_v8  ;;  %3321 = vmatprep.mubr.f32.mxu0 %v11647_v24  ;;  %v2666_v8 = vld [vmem:[#allocation10 + $0x2e8] sm:$0xff]  ;;  %v2729_v20 = vld [vmem:[#allocation10 + $0x4e0] sm:$0xff] }
 0x2fa   :  { %9375 = vmatprep.subr.bf16.mxu0 %v9374_v43  ;;  %8246 = vmatmul.mubr.msk.f32.vlgmr.msra.gmra.mrb[24].mxu1 %vm1925_vm4, %v11576_v13  ;;  %v2631_v43 = vld [vmem:[#allocation10 + $0x1d0] sm:$0xff]  ;;  %v9386_v57 = vpack.c.bf16 %v2666_v8, %v2658_v37  ;;  %v2672_v37 = vld [vmem:[#allocation10 + $0x318] sm:$0xff] }
 0x2fb   :  { %9291 = vmatpush1.bf16.msra.mxu1 %v9290_v42  ;;  %2566 = vmatprep.mubr.f32.mxu1 %v12784_v0  ;;  %v2674_v42 = vld [vmem:[#allocation10 + $0x328] sm:$0xff]  ;;  %v2680_v8 = vld [vmem:[#allocation10 + $0x358] sm:$0xff] }
 0x2fc   :  { %9293 = vmatprep.subr.bf16.mxu1 %v9292_v5  ;;  %v9302_v5 = vpack.c.bf16 %v2631_v43, %v2623_v53  ;;  %v9396_v53 = vpack.c.bf16 %v2697_v34, %v2689_v19  ;;  %v9312_v43 = vpack.c.bf16 %v2680_v8, %v2672_v37  ;;  %v2703_v19 = vld [vmem:[#allocation10 + $0x410] sm:$0xff]  ;;  %v2737_v34 = vld [vmem:[#allocation10 + $0x520] sm:$0xff] }
 0x2fd   :  { %9377 = vmatpush1.bf16.msra.mxu0 %v9376_v63  ;;  %v2682_v63 = vld [vmem:[#allocation10 + $0x368] sm:$0xff]  ;;  %v2745_v8 = vld [vmem:[#allocation10 + $0x560] sm:$0xff] }
 0x2fe   :  { %9379 = vmatprep.subr.bf16.mxu0 %v9378_v9  ;;  %8247 = vmatmul.mubr.msk.f32.gmra.mrb[26].mxu1 %vm1925_vm4, %v11587_v44  ;;  %v2647_v9 = vld [vmem:[#allocation10 + $0x250] sm:$0xff]  ;;  %v9390_v14 = vpack.c.bf16 %v2682_v63, %v2674_v42  ;;  %v2688_v42 = vld [vmem:[#allocation10 + $0x398] sm:$0xff] }
 0x2ff   :  { %9295 = vmatpush1.bf16.msra.mxu1 %v9294_v23  ;;  %3167 = vmatprep.mubr.f32.mxu1 %v11647_v24  ;;  %v2690_v23 = vld [vmem:[#allocation10 + $0x3a8] sm:$0xff]  ;;  %v2696_v63 = vld [vmem:[#allocation10 + $0x3d8] sm:$0xff] }
 0x300   :  { %9297 = vmatprep.subr.bf16.mxu1 %v9296_v4  ;;  %v9306_v4 = vpack.c.bf16 %v2647_v9, %v2639_v35  ;;  %v9400_v35 = vpack.c.bf16 %v2713_v26, %v2705_v60  ;;  %v9316_v9 = vpack.c.bf16 %v2696_v63, %v2688_v42  ;;  %v2719_v60 = vld [vmem:[#allocation10 + $0x490] sm:$0xff]  ;;  %v2753_v26 = vld [vmem:[#allocation10 + $0x5a0] sm:$0xff] }
 0x301   :  { %9381 = vmatpush1.bf16.msra.mxu0 %v9380_v11  ;;  %v2698_v11 = vld [vmem:[#allocation10 + $0x3e8] sm:$0xff]  ;;  %v2761_v63 = vld [vmem:[#allocation10 + $0x5e0] sm:$0xff] }
 0x302   :  { %9383 = vmatprep.subr.bf16.mxu0 %v9382_v45  ;;  %v2663_v45 = vld [vmem:[#allocation10 + $0x2d0] sm:$0xff]  ;;  %v9394_v55 = vpack.c.bf16 %v2698_v11, %v2690_v23  ;;  %v2704_v23 = vld [vmem:[#allocation10 + $0x418] sm:$0xff] }
 0x303   :  { %9299 = vmatpush1.bf16.msra.mxu1 %v9298_v21  ;;  %v2706_v21 = vld [vmem:[#allocation10 + $0x428] sm:$0xff]  ;;  %v2712_v11 = vld [vmem:[#allocation10 + $0x458] sm:$0xff] }
 0x304   :  { %9301 = vmatprep.subr.bf16.mxu1 %v9300_v52  ;;  %v9310_v52 = vpack.c.bf16 %v2663_v45, %v2655_v30  ;;  %v9404_v30 = vpack.c.bf16 %v2729_v20, %v2721_v15  ;;  %v9320_v45 = vpack.c.bf16 %v2712_v11, %v2704_v23  ;;  %v2735_v15 = vld [vmem:[#allocation10 + $0x510] sm:$0xff]  ;;  %v2769_v20 = vld [vmem:[#allocation10 + $0x620] sm:$0xff] }
 0x305   :  { %9385 = vmatpush1.bf16.msra.mxu0 %v9384_v51  ;;  %v2714_v51 = vld [vmem:[#allocation10 + $0x468] sm:$0xff]  ;;  %v2777_v11 = vld [vmem:[#allocation10 + $0x660] sm:$0xff] }
 0x306   :  { %9387 = vmatprep.subr.bf16.mxu0 %v9386_v57  ;;  %v2679_v57 = vld [vmem:[#allocation10 + $0x350] sm:$0xff]  ;;  %v9398_v61 = vpack.c.bf16 %v2714_v51, %v2706_v21  ;;  %v2720_v21 = vld [vmem:[#allocation10 + $0x498] sm:$0xff] }
 0x307   :  { %9303 = vmatpush1.bf16.msra.mxu1 %v9302_v5  ;;  %v2722_v5 = vld [vmem:[#allocation10 + $0x4a8] sm:$0xff]  ;;  %v2728_v51 = vld [vmem:[#allocation10 + $0x4d8] sm:$0xff] }
 0x308   :  { %9305 = vmatprep.subr.bf16.mxu1 %v9304_v2  ;;  %v9314_v2 = vpack.c.bf16 %v2679_v57, %v2671_v56  ;;  %v9408_v56 = vpack.c.bf16 %v2745_v8, %v2737_v34  ;;  %v9324_v57 = vpack.c.bf16 %v2728_v51, %v2720_v21  ;;  %v2751_v34 = vld [vmem:[#allocation10 + $0x590] sm:$0xff]  ;;  %v2785_v8 = vld [vmem:[#allocation10 + $0x6a0] sm:$0xff] }
 0x309   :  { %9389 = vmatpush1.bf16.msra.mxu0 %v9388_v1  ;;  %v2730_v1 = vld [vmem:[#allocation10 + $0x4e8] sm:$0xff]  ;;  %v2793_v51 = vld [vmem:[#allocation10 + $0x6e0] sm:$0xff] }
 0x30a   :  { %9391 = vmatprep.subr.bf16.mxu0 %v9390_v14  ;;  %v2695_v14 = vld [vmem:[#allocation10 + $0x3d0] sm:$0xff]  ;;  %v9402_v54 = vpack.c.bf16 %v2730_v1, %v2722_v5  ;;  %v2736_v5 = vld [vmem:[#allocation10 + $0x518] sm:$0xff] }
 0x30b   :  { %9307 = vmatpush1.bf16.msra.mxu1 %v9306_v4  ;;  %v2738_v4 = vld [vmem:[#allocation10 + $0x528] sm:$0xff]  ;;  %v2744_v1 = vld [vmem:[#allocation10 + $0x558] sm:$0xff] }
 0x30c   :  { %9309 = vmatprep.subr.bf16.mxu1 %v9308_v27  ;;  %v9318_v27 = vpack.c.bf16 %v2695_v14, %v2687_v10  ;;  %v9412_v10 = vpack.c.bf16 %v2761_v63, %v2753_v26  ;;  %v9328_v14 = vpack.c.bf16 %v2744_v1, %v2736_v5  ;;  %v2767_v26 = vld [vmem:[#allocation10 + $0x610] sm:$0xff]  ;;  %v2801_v63 = vld [vmem:[#allocation10 + $0x720] sm:$0xff] }
 0x30d   :  { %9393 = vmatpush1.bf16.msra.mxu0 %v9392_v6  ;;  %v2746_v6 = vld [vmem:[#allocation10 + $0x568] sm:$0xff]  ;;  %v2809_v1 = vld [vmem:[#allocation10 + $0x760] sm:$0xff] }
 0x30e   :  { %9395 = vmatprep.subr.bf16.mxu0 %v9394_v55  ;;  %v2711_v55 = vld [vmem:[#allocation10 + $0x450] sm:$0xff]  ;;  %v9406_v37 = vpack.c.bf16 %v2746_v6, %v2738_v4  ;;  %v2752_v4 = vld [vmem:[#allocation10 + $0x598] sm:$0xff] }
 0x30f   :  { %9311 = vmatpush1.bf16.msra.mxu1 %v9310_v52  ;;  %v2754_v52 = vld [vmem:[#allocation10 + $0x5a8] sm:$0xff]  ;;  %v2760_v6 = vld [vmem:[#allocation10 + $0x5d8] sm:$0xff] }
 0x310   :  { %9313 = vmatprep.subr.bf16.mxu1 %v9312_v43  ;;  %v9322_v43 = vpack.c.bf16 %v2711_v55, %v2703_v19  ;;  %v9416_v19 = vpack.c.bf16 %v2777_v11, %v2769_v20  ;;  %v9332_v55 = vpack.c.bf16 %v2760_v6, %v2752_v4  ;;  %v2783_v20 = vld [vmem:[#allocation10 + $0x690] sm:$0xff]  ;;  %v2817_v11 = vld [vmem:[#allocation10 + $0x7a0] sm:$0xff] }
 0x311   :  { %9397 = vmatpush1.bf16.msra.mxu0 %v9396_v53  ;;  %v2762_v53 = vld [vmem:[#allocation10 + $0x5e8] sm:$0xff]  ;;  %v2825_v6 = vld [vmem:[#allocation10 + $0x7e0] sm:$0xff] }
 0x312   :  { %9399 = vmatprep.subr.bf16.mxu0 %v9398_v61  ;;  %v2727_v61 = vld [vmem:[#allocation10 + $0x4d0] sm:$0xff]  ;;  %v9410_v42 = vpack.c.bf16 %v2762_v53, %v2754_v52  ;;  %v2768_v52 = vld [vmem:[#allocation10 + $0x618] sm:$0xff] }
 0x313   :  { %9315 = vmatpush1.bf16.msra.mxu1 %v9314_v2  ;;  %v2770_v2 = vld [vmem:[#allocation10 + $0x628] sm:$0xff]  ;;  %v2776_v53 = vld [vmem:[#allocation10 + $0x658] sm:$0xff] }
 0x314   :  { %9317 = vmatprep.subr.bf16.mxu1 %v9316_v9  ;;  %v9326_v9 = vpack.c.bf16 %v2727_v61, %v2719_v60  ;;  %v9420_v60 = vpack.c.bf16 %v2793_v51, %v2785_v8  ;;  %v9336_v61 = vpack.c.bf16 %v2776_v53, %v2768_v52  ;;  %v2807_v51 = vld [vmem:[#allocation10 + $0x750] sm:$0xff] }
 0x315   :  { %9401 = vmatpush1.bf16.msra.mxu0 %v9400_v35  ;;  %v2778_v35 = vld [vmem:[#allocation10 + $0x668] sm:$0xff] }
 0x316   :  { %9403 = vmatprep.subr.bf16.mxu0 %v9402_v54  ;;  %v2743_v54 = vld [vmem:[#allocation10 + $0x550] sm:$0xff]  ;;  %v9414_v23 = vpack.c.bf16 %v2778_v35, %v2770_v2  ;;  %v2784_v2 = vld [vmem:[#allocation10 + $0x698] sm:$0xff] }
 0x317   :  { %9319 = vmatpush1.bf16.msra.mxu1 %v9318_v27  ;;  %v2786_v27 = vld [vmem:[#allocation10 + $0x6a8] sm:$0xff]  ;;  %v2792_v35 = vld [vmem:[#allocation10 + $0x6d8] sm:$0xff] }
 0x318   :  { %9321 = vmatprep.subr.bf16.mxu1 %v9320_v45  ;;  %v9330_v45 = vpack.c.bf16 %v2743_v54, %v2735_v15  ;;  %v9424_v15 = vpack.c.bf16 %v2809_v1, %v2801_v63  ;;  %v9340_v54 = vpack.c.bf16 %v2792_v35, %v2784_v2  ;;  %v2823_v35 = vld [vmem:[#allocation10 + $0x7d0] sm:$0xff] }
 0x319   :  { %9405 = vmatpush1.bf16.msra.mxu0 %v9404_v30  ;;  %v2794_v30 = vld [vmem:[#allocation10 + $0x6e8] sm:$0xff] }
 0x31a   :  { %9407 = vmatprep.subr.bf16.mxu0 %v9406_v37  ;;  %v2759_v37 = vld [vmem:[#allocation10 + $0x5d0] sm:$0xff]  ;;  %v9418_v21 = vpack.c.bf16 %v2794_v30, %v2786_v27  ;;  %v2800_v27 = vld [vmem:[#allocation10 + $0x718] sm:$0xff] }
 0x31b   :  { %9323 = vmatpush1.bf16.msra.mxu1 %v9322_v43  ;;  %v2802_v43 = vld [vmem:[#allocation10 + $0x728] sm:$0xff]  ;;  %v2808_v30 = vld [vmem:[#allocation10 + $0x758] sm:$0xff] }
 0x31c   :  { %9325 = vmatprep.subr.bf16.mxu1 %v9324_v57  ;;  %v9334_v57 = vpack.c.bf16 %v2759_v37, %v2751_v34  ;;  %v11731_v34 = vld [vmem:[#allocation8] sm:$0xff]  ;;  %v9428_v37 = vpack.c.bf16 %v2825_v6, %v2817_v11  ;;  %v9344_v8 = vpack.c.bf16 %v2808_v30, %v2800_v27  ;;  %v2874_v6 = vld [vmem:[#allocation10 + $0x968] sm:$0xf] }
 0x31d   :  { %9409 = vmatpush1.bf16.msra.mxu0 %v9408_v56  ;;  %v2810_v56 = vld [vmem:[#allocation10 + $0x768] sm:$0xff]  ;;  %v1888_v1 = vrot.slane %v11731_v34, %v11525_v47 }
 0x31e   :  { %9411 = vmatprep.subr.bf16.mxu0 %v9410_v42  ;;  %v2775_v42 = vld [vmem:[#allocation10 + $0x650] sm:$0xff]  ;;  %v9422_v5 = vpack.c.bf16 %v2810_v56, %v2802_v43  ;;  %v2833_v43 = vld [vmem:[#allocation10 + $0x820] sm:$0xff] }
 0x31f   :  { %9327 = vmatpush1.bf16.msra.mxu1 %v9326_v9  ;;  %v2818_v9 = vld [vmem:[#allocation10 + $0x7a8] sm:$0xff]  ;;  %v2841_v56 = vld [vmem:[#allocation10 + $0x860] sm:$0xff] }
 0x320   :  { %9329 = vmatprep.subr.bf16.mxu1 %v9328_v14  ;;  %v9338_v14 = vpack.c.bf16 %v2775_v42, %v2767_v26  ;;  %v2850_v26 = vld [vmem:[#allocation10 + $0x8a8] sm:$0xff]  ;;  %v9432_v2 = vpack.c.bf16 %v2841_v56, %v2833_v43 }
 0x321   :  { %9413 = vmatpush1.bf16.msra.mxu0 %v9412_v10  ;;  %v2826_v10 = vld [vmem:[#allocation10 + $0x7e8] sm:$0xff] }
 0x322   :  { %9415 = vmatprep.subr.bf16.mxu0 %v9414_v23  ;;  %v2791_v23 = vld [vmem:[#allocation10 + $0x6d0] sm:$0xff]  ;;  %v9426_v4 = vpack.c.bf16 %v2826_v10, %v2818_v9  ;;  %v2858_v42 = vld [vmem:[#allocation10 + $0x8e8] sm:$0xff]  ;;  %v2849_v9 = vld [vmem:[#allocation10 + $0x8a0] sm:$0xff] }
 0x323   :  { %9331 = vmatpush1.bf16.msra.mxu1 %v9330_v45  ;;  %v2834_v45 = vld [vmem:[#allocation10 + $0x828] sm:$0xff]  ;;  %v2857_v10 = vld [vmem:[#allocation10 + $0x8e0] sm:$0xff] }
 0x324   :  { %9333 = vmatprep.subr.bf16.mxu1 %v9332_v55  ;;  %v9342_v55 = vpack.c.bf16 %v2791_v23, %v2783_v20  ;;  %v2832_v20 = vld [vmem:[#allocation10 + $0x818] sm:$0xff] }
 0x325   :  { %9417 = vmatpush1.bf16.msra.mxu0 %v9416_v19  ;;  %v2842_v19 = vld [vmem:[#allocation10 + $0x868] sm:$0xff]  ;;  %v2840_v23 = vld [vmem:[#allocation10 + $0x858] sm:$0xff] }
 0x326   :  { %9419 = vmatprep.subr.bf16.mxu0 %v9418_v21  ;;  %v2799_v21 = vld [vmem:[#allocation10 + $0x710] sm:$0xff]  ;;  %v9430_v53 = vpack.c.bf16 %v2842_v19, %v2834_v45  ;;  %v9436_v45 = vpack.c.bf16 %v2857_v10, %v2849_v9 }
 0x327   :  { %9335 = vmatpush1.bf16.msra.mxu1 %v9334_v57  ;;  %v2816_v57 = vld [vmem:[#allocation10 + $0x798] sm:$0xff]  ;;  %v9346_v63 = vpack.c.bf16 %v2807_v51, %v2799_v21  ;;  %v2839_v21 = vld [vmem:[#allocation10 + $0x850] sm:$0xff]  ;;  %v2865_v51 = vld [vmem:[#allocation10 + $0x920] sm:$0xff] }
 0x328   :  { %9337 = vmatprep.subr.bf16.mxu1 %v9336_v61  ;;  %v2824_v61 = vld [vmem:[#allocation10 + $0x7d8] sm:$0xff]  ;;  %v2847_v9 = vld [vmem:[#allocation10 + $0x890] sm:$0xff] }
 0x329   :  { %9421 = vmatpush1.bf16.msra.mxu0 %v9420_v60  ;;  %v2855_v10 = vld [vmem:[#allocation10 + $0x8d0] sm:$0xff] }
 0x32a   :  { %9423 = vmatprep.subr.bf16.mxu0 %v9422_v5  ;;  %v2815_v5 = vld [vmem:[#allocation10 + $0x790] sm:$0xff] }
 0x32b   :  { %9339 = vmatpush1.bf16.msra.mxu1 %v9338_v14  ;;  %v1892_v14 = vrot.slane %v11731_v34, %v11528_v49  ;;  %v9350_v30 = vpack.c.bf16 %v2823_v35, %v2815_v5 }
 0x32c   :  { %9341 = vmatprep.subr.bf16.mxu1 %v9340_v54  ;;  %v9434_v54 = vpack.c.bf16 %v2858_v42, %v2850_v26  ;;  %v2856_v26 = vld [vmem:[#allocation10 + $0x8d8] sm:$0xff] }
 0x32d   :  { %9425 = vmatpush1.bf16.msra.mxu0 %v9424_v15  ;;  %v9348_v15 = vpack.c.bf16 %v2824_v61, %v2816_v57  ;;  %v2873_v57 = vld [vmem:[#allocation10 + $0x960] sm:$0xf]  ;;  %v2848_v61 = vld [vmem:[#allocation10 + $0x898] sm:$0xff] }
 0x32e   :  { %v2023_v52 = vpop.f32.mrb[20].mxu0  ;;  %9427 = vmatprep.subr.bf16.mxu0 %v9426_v4  ;;  %v2866_v4 = vld [vmem:[#allocation10 + $0x928] sm:$0xff]  ;;  %v9441_v35 = vpack.c.bf16 %v2873_v57, %v2865_v51  ;;  %v2604_v51 = vld [vmem:[#allocation10 + $0xf8] sm:$0xff]  ;;  %v2595_v57 = vld [vmem:[#allocation10 + $0xb0] sm:$0xff] }
 0x32f   :  { %v2025_v60 = vpop.f32.mrb[21].mxu0  ;;  %9343 = vmatpush1.bf16.msra.mxu1 %v9342_v55  ;;  %v2024_v19 = vadd.f32 %v2023_v52, %v1888_v1  ;;  %v9438_v56 = vpack.c.bf16 %v2874_v6, %v2866_v4  ;;  %v2863_v6 = vld [vmem:[#allocation10 + $0x910] sm:$0xff] }
 0x330   :  { %9345 = vmatprep.subr.bf16.mxu1 %v9344_v8  ;;  %v2831_v8 = vld [vmem:[#allocation10 + $0x810] sm:$0xff] }
 0x331   :  { %9429 = vmatpush1.bf16.msra.mxu0 %v9428_v37  ;;  %v9352_v37 = vpack.c.bf16 %v2840_v23, %v2832_v20  ;;  %v9354_v5 = vpack.c.bf16 %v2839_v21, %v2831_v8  ;;  %v2587_v8 = vld [vmem:[#allocation10 + $0x70] sm:$0xff]  ;;  %v2596_v21 = vld [vmem:[#allocation10 + $0xb8] sm:$0xff] }
 0x332   :  { %9431 = vmatprep.subr.bf16.mxu0 %v9430_v53  ;;  %v2026_v53 = vadd.f32 %v2025_v60, %v1892_v14  ;;  %v9356_v60 = vpack.c.bf16 %v2856_v26, %v2848_v61  ;;  %v2603_v61 = vld [vmem:[#allocation10 + $0xf0] sm:$0xff]  ;;  %v2612_v26 = vld [vmem:[#allocation10 + $0x138] sm:$0xff] }
 0x333   :  { %v2029_v11 = vpop.f32.mrb[22].mxu0  ;;  %9347 = vmatpush1.bf16.msra.mxu1 %v9346_v63 }
 0x334   :  { %3322 = vmatmul.mubr.f32.vlgmr.msra.gmra.mrb[32].mxu0 %v11645_v17  ;;  %v2031_v27 = vpop.f32.mrb[23].mxu0  ;;  %9349 = vmatprep.subr.bf16.mxu1 %v9348_v15  ;;  %v2864_v15 = vld [vmem:[#allocation10 + $0x918] sm:$0xff] }
 0x335   :  { %v2032_v55 = vadd.f32 %v2031_v27, %v1892_v14  ;;  %3327 = vmatprep.mubr.f32.mxu0 %v11656_v3  ;;  %9433 = vmatpush1.bf16.msra.mxu0 %v9432_v2  ;;  %v2100_v43 = vpop.f32.mrb[16].mxu1  ;;  %v2030_v2 = vadd.f32 %v2029_v11, %v1888_v1  ;;  %v9358_v11 = vpack.c.bf16 %v2855_v10, %v2847_v9  ;;  %v2871_v27 = vld [vmem:[#allocation10 + $0x950] sm:$0xf]  ;;  %v2636_v9 = vld [vmem:[#allocation10 + $0x1f8] sm:$0xff] }
 0x336   :  { %9435 = vmatprep.subr.bf16.mxu0 %v9434_v54  ;;  %v11739_v42 = vadd.f32 %v2100_v43, %v2024_v19  ;;  %v2102_v63 = vpop.f32.mrb[17].mxu1  ;;  %v2872_v54 = vld [vmem:[#allocation10 + $0x958] sm:$0xf]  ;;  %v9363_v19 = vpack.c.bf16 %v2871_v27, %v2863_v6  ;;  %v2643_v27 = vld [vmem:[#allocation10 + $0x230] sm:$0xff] }
 0x337   :  { %v2103_v52 = vadd.f32 %v2102_v63, %v2026_v53  ;;  %9351 = vmatpush1.bf16.msra.mxu1 %v9350_v30  ;;  %v9360_v4 = vpack.c.bf16 %v2872_v54, %v2864_v15  ;;  %v2580_v30 = vld [vmem:[#allocation10 + $0x38] sm:$0xff]  ;;  %v2627_v15 = vld [vmem:[#allocation10 + $0x1b0] sm:$0xff] }
 0x338   :  { %3328 = vmatmul.mubr.f32.gmra.mrb[34].mxu0 %v11650_v59  ;;  %9353 = vmatprep.subr.bf16.mxu1 %v9352_v37  ;;  %v2579_v37 = vld [vmem:[#allocation10 + $0x30] sm:$0xff]  ;;  %v2620_v63 = vld [vmem:[#allocation10 + $0x178] sm:$0xff] }
 0x339   :  { %9437 = vmatpush1.bf16.msra.mxu0 %v9436_v45  ;;  %v2106_v14 = vpop.f32.mrb[18].mxu1  ;;  %3398 = vmatprep.mubr.f32.mxu0 %v12784_v0  ;;  %v2588_v45 = vld [vmem:[#allocation10 + $0x78] sm:$0xff]  ;;  %v11760_v53 = vmul.f32 0.08164966, %v2103_v52  ;;  %v9446_v43 = vpack.c.bf16 %v2587_v8, %v2579_v37  ;;  %v9450_v52 = vpack.c.bf16 %v2603_v61, %v2595_v57  ;;  %v2635_v54 = vld [vmem:[#allocation10 + $0x1f0] sm:$0xff] }
 0x33a   :  { %9440 = vmatprep.subr.msk.bf16.mxu0 %vm11514_vm3, %v9438_v56  ;;  %v11745_v20 = vadd.f32 %v2106_v14, %v2030_v2  ;;  %3168 = vmatmul.mubr.f32.vlgmr.msra.gmra.mrb[28].mxu1 %v11645_v17  ;;  %v2108_v23 = vpop.f32.mrb[19].mxu1  ;;  %v9448_v56 = vpack.c.bf16 %v2604_v51, %v2596_v21  ;;  %v2611_v2 = vld [vmem:[#allocation10 + $0x130] sm:$0xff]  ;;  %v2676_v21 = vld [vmem:[#allocation10 + $0x338] sm:$0xff] }
 0x33b   :  { %v11748_v1 = vadd.f32 %v2108_v23, %v2032_v55  ;;  %3173 = vmatprep.mubr.f32.mxu1 %v11656_v3  ;;  %9355 = vmatpush1.bf16.msra.mxu1 %v9354_v5  ;;  %v9444_v55 = vpack.c.bf16 %v2588_v45, %v2580_v30  ;;  %v9452_v5 = vpack.c.bf16 %v2620_v63, %v2612_v26  ;;  %v2644_v23 = vld [vmem:[#allocation10 + $0x238] sm:$0xff]  ;;  %v2651_v30 = vld [vmem:[#allocation10 + $0x270] sm:$0xff] }
 0x33c   :  { %9357 = vmatprep.subr.bf16.mxu1 %v9356_v60  ;;  %v2628_v60 = vld [vmem:[#allocation10 + $0x1b8] sm:$0xff]  ;;  %v2667_v8 = vld [vmem:[#allocation10 + $0x2f0] sm:$0xff] }
 0x33d   :  { %9443 = vmatpush1.bf16.msk.msra.mxu0 %vm11514_vm3, %v9441_v35  ;;  %v2619_v35 = vld [vmem:[#allocation10 + $0x170] sm:$0xff]  ;;  %v9456_v14 = vpack.c.bf16 %v2636_v9, %v2628_v60  ;;  %v2660_v45 = vld [vmem:[#allocation10 + $0x2b8] sm:$0xff] }
 0x33e   :  { %3174 = vmatmul.mubr.f32.gmra.mrb[30].mxu1 %v11650_v59  ;;  %v9454_v10 = vpack.c.bf16 %v2619_v35, %v2611_v2  ;;  %v2684_v51 = vld [vmem:[#allocation10 + $0x378] sm:$0xff]  ;;  %v2675_v57 = vld [vmem:[#allocation10 + $0x330] sm:$0xff] }
 0x33f   :  { %9359 = vmatpush1.bf16.msra.mxu1 %v9358_v11  ;;  %3244 = vmatprep.mubr.f32.mxu1 %v12784_v0  ;;  %v2652_v11 = vld [vmem:[#allocation10 + $0x278] sm:$0xff]  ;;  %v2683_v61 = vld [vmem:[#allocation10 + $0x370] sm:$0xff] }
 0x340   :  { %8258 = vmatmul.mubr.msk.f32.vlgmr.msra.gmra.mrb[32].mxu0 %vm1925_vm4, %v11707_v18  ;;  %9362 = vmatprep.subr.msk.bf16.mxu1 %vm11514_vm3, %v9360_v4  ;;  %v9458_v4 = vpack.c.bf16 %v2635_v54, %v2627_v15  ;;  %v9460_v6 = vpack.c.bf16 %v2652_v11, %v2644_v23  ;;  %v2692_v26 = vld [vmem:[#allocation10 + $0x3b8] sm:$0xff]  ;;  %v2691_v2 = vld [vmem:[#allocation10 + $0x3b0] sm:$0xff] }
 0x341   :  { %3404 = vmatprep.mubr.f32.mxu0 %v12784_v0  ;;  %v2700_v63 = vld [vmem:[#allocation10 + $0x3f8] sm:$0xff]  ;;  %v2699_v35 = vld [vmem:[#allocation10 + $0x3f0] sm:$0xff] }
 0x342   :  { %v2708_v60 = vld [vmem:[#allocation10 + $0x438] sm:$0xff]  ;;  %v2707_v15 = vld [vmem:[#allocation10 + $0x430] sm:$0xff] }
 0x343   :  { %9365 = vmatpush1.bf16.msk.msra.mxu1 %vm11514_vm3, %v9363_v19  ;;  %v2668_v19 = vld [vmem:[#allocation10 + $0x2f8] sm:$0xff]  ;;  %v2715_v54 = vld [vmem:[#allocation10 + $0x470] sm:$0xff] }
 0x344   :  { %8259 = vmatmul.mubr.msk.f32.gmra.mrb[34].mxu0 %vm1925_vm4, %v11714_v58  ;;  %9445 = vmatprep.subr.bf16.mxu1 %v9444_v55  ;;  %v9462_v55 = vpack.c.bf16 %v2651_v30, %v2643_v27  ;;  %v9464_v37 = vpack.c.bf16 %v2668_v19, %v2660_v45  ;;  %v2716_v9 = vld [vmem:[#allocation10 + $0x478] sm:$0xff]  ;;  %v2723_v27 = vld [vmem:[#allocation10 + $0x4b0] sm:$0xff] }
 0x345   :  { %8265 = vmatprep.mubr.msk.f32.mxu0 %vm3576_vm5, %v11760_v53  ;;  %v2724_v23 = vld [vmem:[#allocation10 + $0x4b8] sm:$0xff]  ;;  %v2731_v30 = vld [vmem:[#allocation10 + $0x4f0] sm:$0xff] }
 0x346   :  { %8254 = vmatmul.mubr.msk.f32.vlgmr.msra.gmra.mrb[28].mxu1 %vm1925_vm4, %v11707_v18  ;;  %v2732_v11 = vld [vmem:[#allocation10 + $0x4f8] sm:$0xff] }
 0x347   :  { %9447 = vmatpush1.bf16.msra.mxu1 %v9446_v43  ;;  %3250 = vmatprep.mubr.f32.mxu1 %v12784_v0  ;;  %v2740_v45 = vld [vmem:[#allocation10 + $0x538] sm:$0xff] }
 0x348   :  { %9449 = vmatprep.subr.bf16.mxu1 %v9448_v56  ;;  %v9468_v56 = vpack.c.bf16 %v2684_v51, %v2676_v21  ;;  %v2748_v19 = vld [vmem:[#allocation10 + $0x578] sm:$0xff] }
 0x349   :  { %v2756_v21 = vld [vmem:[#allocation10 + $0x5b8] sm:$0xff] }
 0x34a   :  { %8255 = vmatmul.mubr.msk.f32.gmra.mrb[30].mxu1 %vm1925_vm4, %v11714_v58  ;;  %v2764_v51 = vld [vmem:[#allocation10 + $0x5f8] sm:$0xff] }
 0x34b   :  { %9451 = vmatpush1.bf16.msra.mxu1 %v9450_v52  ;;  %3475 = vmatprep.mubr.f32.mxu1 %v11647_v24  ;;  %v2659_v24 = vld [vmem:[#allocation10 + $0x2b0] sm:$0xff]  ;;  %v9470_v52 = vpack.c.bf16 %v2683_v61, %v2675_v57 }
 0x34c   :  { %9453 = vmatprep.subr.bf16.mxu1 %v9452_v5  ;;  %v9466_v43 = vpack.c.bf16 %v2667_v8, %v2659_v24  ;;  %v9472_v5 = vpack.c.bf16 %v2700_v63, %v2692_v26  ;;  %v2739_v24 = vld [vmem:[#allocation10 + $0x530] sm:$0xff]  ;;  %v2772_v26 = vld [vmem:[#allocation10 + $0x638] sm:$0xff] }
 0x34d   :  { %v2747_v8 = vld [vmem:[#allocation10 + $0x570] sm:$0xff]  ;;  %v2780_v63 = vld [vmem:[#allocation10 + $0x678] sm:$0xff] }
 0x34e   :  { %v2755_v57 = vld [vmem:[#allocation10 + $0x5b0] sm:$0xff] }
 0x34f   :  { %9455 = vmatpush1.bf16.msra.mxu1 %v9454_v10  ;;  %v9474_v10 = vpack.c.bf16 %v2699_v35, %v2691_v2  ;;  %v2763_v61 = vld [vmem:[#allocation10 + $0x5f0] sm:$0xff] }
 0x350   :  { %9457 = vmatprep.subr.bf16.mxu1 %v9456_v14  ;;  %v9476_v14 = vpack.c.bf16 %v2716_v9, %v2708_v60  ;;  %v2771_v2 = vld [vmem:[#allocation10 + $0x630] sm:$0xff]  ;;  %v2788_v60 = vld [vmem:[#allocation10 + $0x6b8] sm:$0xff] }
 0x351   :  { %v2779_v35 = vld [vmem:[#allocation10 + $0x670] sm:$0xff]  ;;  %v2796_v9 = vld [vmem:[#allocation10 + $0x6f8] sm:$0xff] }
 0x353   :  { %9459 = vmatpush1.bf16.msra.mxu1 %v9458_v4  ;;  %v9478_v4 = vpack.c.bf16 %v2715_v54, %v2707_v15  ;;  %v9496_v15 = vpack.c.bf16 %v2796_v9, %v2788_v60  ;;  %v2787_v54 = vld [vmem:[#allocation10 + $0x6b0] sm:$0xff] }
 0x354   :  { %9461 = vmatprep.subr.bf16.mxu1 %v9460_v6  ;;  %v9480_v6 = vpack.c.bf16 %v2732_v11, %v2724_v23  ;;  %v2795_v23 = vld [vmem:[#allocation10 + $0x6f0] sm:$0xff]  ;;  %v2804_v11 = vld [vmem:[#allocation10 + $0x738] sm:$0xff] }
 0x357   :  { %9463 = vmatpush1.bf16.msra.mxu1 %v9462_v55  ;;  %v9482_v55 = vpack.c.bf16 %v2731_v30, %v2723_v27  ;;  %v9498_v27 = vpack.c.bf16 %v2795_v23, %v2787_v54  ;;  %v2835_v23 = vld [vmem:[#allocation10 + $0x830] sm:$0xff] }
 0x358   :  { %9465 = vmatprep.subr.bf16.mxu1 %v9464_v37  ;;  %v9484_v37 = vpack.c.bf16 %v2748_v19, %v2740_v45  ;;  %v2803_v45 = vld [vmem:[#allocation10 + $0x730] sm:$0xff] }
 0x359   :  { %v2811_v19 = vld [vmem:[#allocation10 + $0x770] sm:$0xff] }
 0x35b   :  { %9467 = vmatpush1.bf16.msra.mxu1 %v9466_v43  ;;  %v9486_v43 = vpack.c.bf16 %v2747_v8, %v2739_v24  ;;  %v1907_v8 = vsub.s32 5, %v11522_v46 }
 0x35c   :  { %9469 = vmatprep.subr.bf16.mxu1 %v9468_v56  ;;  %v9488_v56 = vpack.c.bf16 %v2764_v51, %v2756_v21 }
 0x35f   :  { %9471 = vmatpush1.bf16.msra.mxu1 %v9470_v52  ;;  %v9490_v52 = vpack.c.bf16 %v2763_v61, %v2755_v57  ;;  %v2819_v61 = vld [vmem:[#allocation10 + $0x7b0] sm:$0xff] }
 0x360   :  { %9473 = vmatprep.subr.bf16.mxu1 %v9472_v5  ;;  %v9492_v5 = vpack.c.bf16 %v2780_v63, %v2772_v26  ;;  %v2827_v26 = vld [vmem:[#allocation10 + $0x7f0] sm:$0xff]  ;;  %v2836_v63 = vld [vmem:[#allocation10 + $0x838] sm:$0xff] }
 0x363   :  { %9475 = vmatpush1.bf16.msra.mxu1 %v9474_v10  ;;  %v9494_v10 = vpack.c.bf16 %v2779_v35, %v2771_v2  ;;  %v1896_v35 = vrot.slane %v11731_v34, %v11535_v62 }
 0x364   :  { %9477 = vmatprep.subr.bf16.mxu1 %v9476_v14  ;;  %v11775_v14 = vsub.s32 4, %v11522_v46 }
 0x366   :  { %12825 = vst [vmem:[#allocation55_spill] sm:$0xff] %v11775_v14 }
 0x367   :  { %9479 = vmatpush1.bf16.msra.mxu1 %v9478_v4  ;;  %v2812_v4 = vld [vmem:[#allocation10 + $0x778] sm:$0xff] }
 0x368   :  { %9481 = vmatprep.subr.bf16.mxu1 %v9480_v6  ;;  %v11779_v6 = vrot.slane %v11731_v34, %v11775_v14  ;;  %v9500_v30 = vpack.c.bf16 %v2812_v4, %v2804_v11  ;;  %v2843_v11 = vld [vmem:[#allocation10 + $0x870] sm:$0xff] }
 0x36b   :  { %9483 = vmatpush1.bf16.msra.mxu1 %v9482_v55  ;;  %v2820_v55 = vld [vmem:[#allocation10 + $0x7b8] sm:$0xff] }
 0x36c   :  { %9485 = vmatprep.subr.bf16.mxu1 %v9484_v37  ;;  %v2828_v37 = vld [vmem:[#allocation10 + $0x7f8] sm:$0xff] }
 0x36d   :  { %v9504_v57 = vpack.c.bf16 %v2828_v37, %v2820_v55  ;;  %v9510_v37 = vpack.c.bf16 %v2843_v11, %v2835_v23  ;;  %v2867_v23 = vld [vmem:[#allocation10 + $0x930] sm:$0xff] }
 0x36e   :  { %v2875_v11 = vld [vmem:[#allocation10 + $0x970] sm:$0xf] }
 0x36f   :  { %9487 = vmatpush1.bf16.msra.mxu1 %v9486_v43  ;;  %v9502_v43 = vpack.c.bf16 %v2811_v19, %v2803_v45 }
 0x370   :  { %9489 = vmatprep.subr.bf16.mxu1 %v9488_v56  ;;  %v11788_v56 = vsub.s32 3, %v11522_v46 }
 0x372   :  { %12826 = vst [vmem:[#allocation56_spill] sm:$0xff] %v11788_v56  ;;  %v1900_v9 = vrot.slane %v11731_v34, %v11788_v56 }
 0x373   :  { %9491 = vmatpush1.bf16.msra.mxu1 %v9490_v52  ;;  %v2844_v52 = vld [vmem:[#allocation10 + $0x878] sm:$0xff] }
 0x374   :  { %9493 = vmatprep.subr.bf16.mxu1 %v9492_v5  ;;  %v11795_v5 = vrot.slane %v11731_v34, %v1907_v8  ;;  %v9508_v54 = vpack.c.bf16 %v2844_v52, %v2836_v63  ;;  %v2876_v63 = vld [vmem:[#allocation10 + $0x978] sm:$0xf] }
 0x377   :  { %9495 = vmatpush1.bf16.msra.mxu1 %v9494_v10  ;;  %v9506_v10 = vpack.c.bf16 %v2827_v26, %v2819_v61  ;;  %v2859_v61 = vld [vmem:[#allocation10 + $0x8f0] sm:$0xff] }
 0x378   :  { %9497 = vmatprep.subr.bf16.mxu1 %v9496_v15 }
 0x37b   :  { %v2408_v24 = vpop.f32.mrb[24].mxu0  ;;  %9499 = vmatpush1.bf16.msra.mxu1 %v9498_v27  ;;  %v2852_v27 = vld [vmem:[#allocation10 + $0x8b8] sm:$0xff] }
 0x37c   :  { %v11783_v21 = vadd.f32 %v2408_v24, %v11779_v6  ;;  %v11785_v51 = vpop.f32.mrb[25].mxu0  ;;  %9501 = vmatprep.subr.bf16.mxu1 %v9500_v30  ;;  %v2860_v30 = vld [vmem:[#allocation10 + $0x8f8] sm:$0xff] }
 0x37d   :  { %v9512_v24 = vpack.c.bf16 %v2860_v30, %v2852_v27  ;;  %v9519_v27 = vpack.c.bf16 %v2875_v11, %v2867_v23 }
 0x37e   :  { %3760 = vrot.lane.b32.xlu1 %v11783_v21, %s11066_s22 }
 0x37f   :  { %v2414_v2 = vpop.f32.mrb[26].mxu0  ;;  %9503 = vmatpush1.bf16.msra.mxu1 %v9502_v43  ;;  %v2851_v43 = vld [vmem:[#allocation10 + $0x8b0] sm:$0xff] }
 0x380   :  { %v2416_v60 = vpop.f32.mrb[27].mxu0  ;;  %9505 = vmatprep.subr.bf16.mxu1 %v9504_v57  ;;  %v2868_v57 = vld [vmem:[#allocation10 + $0x938] sm:$0xff] }
 0x381   :  { %v11802_v15 = vadd.f32 %v2416_v60, %v11795_v5  ;;  %v2254_v4 = vpop.f32.mrb[20].mxu1 }
 0x382   :  { %v10274_v45 = vadd.f32 %v2254_v4, %v1896_v35  ;;  %v2256_v19 = vpop.f32.mrb[21].mxu1 }
 0x383   :  { %v10275_v55 = vadd.f32 %v2256_v19, %v1900_v9  ;;  %9507 = vmatpush1.bf16.msra.mxu1 %v9506_v10  ;;  %v9514_v10 = vpack.c.bf16 %v2859_v61, %v2851_v43  ;;  %v1915_v43 = vsub.s32 7, %v11522_v46 }
 0x384   :  { %3569 = vrot.lane.b32.xlu0 %v10274_v45, %s11067_s8  ;;  %9509 = vmatprep.subr.bf16.mxu1 %v9508_v54  ;;  %v3748_v60 = vmul.f32 0.08164966, %v10274_v45  ;;  %v9516_v54 = vpack.c.bf16 %v2876_v63, %v2868_v57 }
 0x385   :  { %v2260_v26 = vpop.f32.mrb[22].mxu1  ;;  %3758 = vrot.lane.b32.xlu1 %v10275_v55, %s11066_s22  ;;  %v11869_v57 = vrot.slane %v11731_v34, %v1915_v43 }
 0x386   :  { %v2262_v52 = vpop.f32.mrb[23].mxu1  ;;  %3476 = vmatmul.mubr.f32.vlgmr.msra.gmra.mrb[32].mxu1 %v11645_v17  ;;  %v10276_v17 = vadd.f32 %v2260_v26, %v1896_v35 }
 0x387   :  { %3481 = vmatprep.mubr.f32.mxu1 %v11656_v3  ;;  %9511 = vmatpush1.bf16.msra.mxu1 %v9510_v37  ;;  %v10277_v4 = vadd.f32 %v2262_v52, %v1900_v9  ;;  %v11818_v3 = vadd.f32 %v2414_v2, %v11779_v6  ;;  %v11835_v6 = vld [vmem:[#allocation11] sm:$0xff] }
 0x388   :  { %3571 = vrot.lane.b32.xlu0 %v10275_v55, %s11067_s8  ;;  %9513 = vmatprep.subr.bf16.mxu1 %v9512_v24  ;;  %v11843_v9 = vrot.slane %v11835_v6, %v11525_v47  ;;  %v1911_v55 = vsub.s32 6, %v11522_v46 }
 0x389   :  { %3752 = vrot.lane.b32.xlu1 %v3748_v60, %s11068_s4 }
 0x38a   :  { %3482 = vmatmul.mubr.f32.gmra.mrb[34].mxu1 %v11650_v59  ;;  %v4125_v59 = vmul.f32 0.08164966, %v10276_v17  ;;  %v11864_v26 = vrot.slane %v11731_v34, %v1911_v55  ;;  %v3565_v34 = vmul.f32 0.08164966, %v11739_v42  ;;  %v3946_v42 = vmul.f32 0.08164966, %v11745_v20 }
 0x38b   :  { %9515 = vmatpush1.bf16.msra.mxu1 %v9514_v10  ;;  %3552 = vmatprep.mubr.f32.mxu1 %v12784_v0  ;;  %v2902_v20 = vrot.slane %v11835_v6, %v1907_v8 }
 0x38c   :  { %3750 = vrot.lane.b32.xlu0 %v11760_v53, %s11068_s4  ;;  %9518 = vmatprep.subr.msk.bf16.mxu1 %vm11514_vm3, %v9516_v54  ;;  %v3947_v53 = vmul.f32 0.08164966, %v11748_v1  ;;  %v11847_v1 = vrot.slane %v11835_v6, %v11528_v49 }
 0x38d   :  { %3952 = vrot.lane.b32.xlu1 %v10277_v4, %s11067_s8 }
 0x38f   :  { %9521 = vmatpush1.bf16.msk.msra.mxu1 %vm11514_vm3, %v9519_v27 }
 0x390   :  { %3950 = vrot.lane.b32.xlu0 %v10276_v17, %s11067_s8 }
 0x391   :  { %4136 = vrot.lane.b32.xlu1 %v11818_v3, %s11066_s22 }
 0x392   :  { %8262 = vmatmul.mubr.msk.f32.vlgmr.msra.gmra.mrb[32].mxu1 %vm1925_vm4, %v11707_v18 }
 0x393   :  { %3558 = vmatprep.mubr.f32.mxu1 %v12784_v0 }
 0x394   :  { %4134 = vrot.lane.b32.xlu0 %v10277_v4, %s11066_s22 }
 0x395   :  { %4129 = vrot.lane.b32.xlu1 %v4125_v59, %s11068_s4 }
 0x396   :  { %8263 = vmatmul.mubr.msk.f32.gmra.mrb[34].mxu1 %vm1925_vm4, %v11714_v58  ;;  %v4388_v58 = vld [vmem:[#allocation13 + $0x220] sm:$0xff] }
 0x397   :  { %3741 = vmatprep.mubr.f32.mxu1 %v12784_v0 }
 0x398   :  { %4127 = vrot.lane.b32.xlu0 %v3947_v53, %s11068_s4 }
 0x3c7   :  { %v11837_v2 = vpop.f32.mrb[28].mxu0 }
 0x3c8   :  { %v11839_v35 = vpop.f32.mrb[29].mxu0 }
 0x3cb   :  { %v3098_v30 = vpop.f32.mrb[30].mxu0 }
 0x3cc   :  { %v11850_v45 = vadd.f32 %v3098_v30, %v11843_v9  ;;  %v3100_v19 = vpop.f32.mrb[31].mxu0 }
 0x3cd   :  { %v11854_v37 = vadd.f32 %v3100_v19, %v11847_v1  ;;  %v11856_v24 = vpop.f32.mrb[24].mxu1 }
 0x3ce   :  { %v11859_v61 = vpop.f32.mrb[25].mxu1 }
 0x3d1   :  { %v2568_v63 = vpop.f32.mrb[26].mxu1 }
 0x3d2   :  { %v11872_v52 = vadd.f32 %v2568_v63, %v11864_v26  ;;  %v2570_v60 = vpop.f32.mrb[27].mxu1 }
 0x3d3   :  { %v11875_v10 = vadd.f32 %v2570_v60, %v11869_v57 }
 0x3f0   :  { %v3761_v54 = vpop.permute.xlu1 %3760 }
 0x3f6   :  { %v3570_v23 = vpop.permute.xlu0 %3569 }
 0x3f7   :  { %v3759_v11 = vpop.permute.xlu1 %3758 }
 0x3f8   :  { %v3763_v30 = vsel %vm3762_vm7, %v3759_v11, %v3761_v54 }
 0x3fa   :  { %v3572_v4 = vpop.permute.xlu0 %3571 }
 0x3fb   :  { %8264 = vmatprep.subr.msk.mxu0 %vm3576_vm5, %v3572_v4  ;;  %v3753_v27 = vpop.permute.xlu1 %3752  ;;  %v3574_v17 = vsel %vm3573_vm6, %v3570_v23, %v3572_v4 }
 0x3fc   :  { %3583 = vmatpush1.xpose.msra.mxu0 %v3574_v17 }
 0x3fd   :  { %8267 = vmatprep.subr.msk.mxu0 %vm3576_vm5, %v3761_v54 }
 0x3fe   :  { %v3751_v59 = vpop.permute.xlu0 %3750 }
 0x3ff   :  { %v3953_v19 = vpop.permute.xlu1 %3952  ;;  %3647 = vmatmul.mubr.f32.vlgmr.msra.gmra.mrb[36].mxu0 %v3565_v34  ;;  %v3755_v63 = vsel %vm3754_vm8, %v3751_v59, %v3753_v27  ;;  %v2898_v59 = vrot.slane %v11835_v6, %v11775_v14 }
 0x400   :  { %3770 = vmatpush1.xpose.msra.mxu0 %v3763_v30  ;;  %8268 = vmatprep.mubr.msk.f32.mxu0 %vm3576_vm5, %v3753_v27 }
 0x401   :  { %8270 = vmatprep.subr.msk.mxu0 %vm3576_vm5, %v3953_v19 }
 0x402   :  { %v3951_v60 = vpop.permute.xlu0 %3950 }
 0x403   :  { %v3954_v23 = vsel %vm3573_vm6, %v3951_v60, %v3953_v19  ;;  %v4137_v4 = vpop.permute.xlu1 %4136  ;;  %3834 = vmatmul.mubr.f32.vlgmr.msra.gmra.mrb[38].mxu0 %v3755_v63 }
 0x404   :  { %3962 = vmatpush1.xpose.msra.mxu0 %v3954_v23  ;;  %8271 = vmatprep.mubr.msk.f32.mxu0 %vm3576_vm5, %v3947_v53 }
 0x405   :  { %8273 = vmatprep.subr.msk.mxu0 %vm3576_vm5, %v4137_v4 }
 0x406   :  { %v4135_v54 = vpop.permute.xlu0 %4134 }
 0x407   :  { %v4138_v11 = vsel %vm3762_vm7, %v4135_v54, %v4137_v4  ;;  %v4130_v17 = vpop.permute.xlu1 %4129  ;;  %4026 = vmatmul.mubr.f32.vlgmr.msra.gmra.mrb[40].mxu0 %v3946_v42 }
 0x408   :  { %4145 = vmatpush1.xpose.msra.mxu0 %v4138_v11  ;;  %8274 = vmatprep.mubr.msk.f32.mxu0 %vm3576_vm5, %v4130_v17  ;;  %v11912_v11 = vrot.slane %v11835_v6, %v11535_v62 }
 0x40a   :  { %v4128_v27 = vpop.permute.xlu0 %4127 }
 0x40b   :  { %v4131_v34 = vsel %vm3754_vm8, %v4128_v27, %v4130_v17  ;;  %v11916_v17 = vrot.slane %v11835_v6, %v11788_v56 }
 0x40c   :  { %4209 = vmatmul.mubr.f32.vlgmr.msra.gmra.mrb[42].mxu0 %v4131_v34 }
 0x413   :  { %v3400_v53 = vpop.f32.mrb[32].mxu0 }
 0x414   :  { %v11897_v30 = vadd.f32 %v3400_v53, %v2898_v59  ;;  %v3402_v19 = vpop.f32.mrb[33].mxu0  ;;  %v2906_v53 = vrot.slane %v11835_v6, %v1911_v55 }
 0x415   :  { %v10295_v63 = vadd.f32 %v3402_v19, %v2902_v20 }
 0x416   :  { %3666 = vrot.lane.b32.xlu1 %v11897_v30, %s11069_s1 }
 0x417   :  { %v3406_v60 = vpop.f32.mrb[34].mxu0  ;;  %3668 = vrot.lane.b32.xlu0 %v10295_v63, %s11069_s1 }
 0x418   :  { %v11902_v23 = vadd.f32 %v3406_v60, %v2898_v59  ;;  %v3408_v4 = vpop.f32.mrb[35].mxu0 }
 0x419   :  { %v11904_v42 = vadd.f32 %v3408_v4, %v2902_v20  ;;  %v11906_v54 = vpop.f32.mrb[28].mxu1  ;;  %v2910_v4 = vrot.slane %v11835_v6, %v1915_v43 }
 0x41a   :  { %v11908_v8 = vpop.f32.mrb[29].mxu1 }
 0x41d   :  { %v3252_v27 = vpop.f32.mrb[30].mxu1 }
 0x41e   :  { %v11919_v34 = vadd.f32 %v3252_v27, %v11912_v11  ;;  %v3254_v59 = vpop.f32.mrb[31].mxu1 }
 0x41f   :  { %v11922_v20 = vadd.f32 %v3254_v59, %v11916_v17 }
 0x465   :  { %v3554_v19 = vpop.f32.mrb[32].mxu1 }
 0x466   :  { %v10298_v60 = vadd.f32 %v3554_v19, %v2906_v53  ;;  %v3556_v0 = vpop.f32.mrb[33].mxu1 }
 0x467   :  { %v10299_v14 = vadd.f32 %v3556_v0, %v2910_v4 }
 0x468   :  { %3854 = vrot.lane.b32.xlu1 %v10298_v60, %s11070_s6 }
 0x469   :  { %v3560_v27 = vpop.f32.mrb[34].mxu1 }
 0x46a   :  { %v10300_v56 = vadd.f32 %v3560_v27, %v2906_v53  ;;  %v3562_v44 = vpop.f32.mrb[35].mxu1 }
 0x46b   :  { %v10301_v59 = vadd.f32 %v3562_v44, %v2910_v4 }
 0x46c   :  { %3856 = vrot.lane.b32.xlu1 %v10299_v14, %s11070_s6 }
 0x488   :  { %v3667_v13 = vpop.permute.xlu1 %3666 }
 0x489   :  { %v3669_v55 = vpop.permute.xlu0 %3668 }
 0x48a   :  { %v3671_v19 = vsel %vm3670_vm9, %v3667_v13, %v3669_v55  ;;  %3677 = vmatprep.subr.mxu1 %v3669_v55 }
 0x48b   :  { %3678 = vmatpush1.msra.mxu1 %v3671_v19 }
 0x4d2   :  { %v3648_v46 = vpop.f32.mrb[36].mxu0 }
 0x4d3   :  { %v3650_v6 = vpop.f32.mrb[37].mxu0  ;;  %v3653_v43 = vsel %vm3652_vm10, %v3648_v46, -inf }
 0x4d4   :  { %3654 = vmax.xlane.f32.xlu0 %v3653_v43 }
 0x4d6   :  { %v3835_v60 = vpop.f32.mrb[38].mxu0 }
 0x4d7   :  { %v3837_v0 = vpop.f32.mrb[39].mxu0  ;;  %v3839_v53 = vsel %vm3652_vm10, %v3835_v60, -inf }
 0x4d8   :  { %3840 = vmax.xlane.f32.xlu1 %v3839_v53 }
 0x4da   :  { %v3855_v44 = vpop.permute.xlu1 %3854  ;;  %v4027_v14 = vpop.f32.mrb[40].mxu0 }
 0x4db   :  { %v4029_v4 = vpop.f32.mrb[41].mxu0  ;;  %v4031_v27 = vsel %vm3652_vm10, %v4027_v14, -inf }
 0x4dc   :  { %4032 = vmax.xlane.f32.xlu0 %v4031_v27 }
 0x4de   :  { %v3857_v13 = vpop.permute.xlu1 %3856 }
 0x4df   :  { %v4210_v55 = vpop.f32.mrb[42].mxu0  ;;  %v3860_v19 = vsel %vm3858_vm11, %v3855_v44, %v3857_v13 }
 0x4e0   :  { %3866 = vmatprep.subr.mxu1 %v3860_v19  ;;  %v4212_v6 = vpop.f32.mrb[43].mxu0  ;;  %v4214_v43 = vsel %vm3652_vm10, %v4210_v55, -inf }
 0x4e1   :  { %4215 = vmax.xlane.f32.xlu0 %v4214_v43 }
 0x4e9   :  { %4044 = vrot.lane.b32.xlu1 %v11902_v23, %s11069_s1 }
 0x4f7   :  { %3852 = vrot.lane.b32.xlu0 %v10295_v63, %s11070_s6 }
 0x561   :  { %v3655_v0 = vpop.xlane.xlu0 %3654 }
 0x562   :  { %v3656_v53 = vsub.f32 %v3648_v46, %v3655_v0 }
 0x564   :  { %v3657_v4 = vmul.f32 1.442695, %v3656_v53 }
 0x565   :  { %v3841_v38 = vpop.xlane.xlu1 %3840 }
 0x566   :  { %10475 = vpow2.f32 %v3657_v4  ;;  %v3842_v27 = vsub.f32 %v3835_v60, %v3841_v38 }
 0x568   :  { %v3843_v31 = vmul.f32 1.442695, %v3842_v27 }
 0x569   :  { %v4033_v43 = vpop.xlane.xlu0 %4032 }
 0x56a   :  { %10477 = vpow2.f32 %v3843_v31  ;;  %v4034_v63 = vsub.f32 %v4027_v14, %v4033_v43 }
 0x56c   :  { %v4035_v0 = vmul.f32 1.442695, %v4034_v63 }
 0x56e   :  { %v4216_v46 = vpop.xlane.xlu0 %4215  ;;  %10479 = vpow2.f32 %v4035_v0 }
 0x56f   :  { %v4217_v38 = vsub.f32 %v4210_v55, %v4216_v46 }
 0x570   :  { %v10476_v48 = vpop.eup %10475 }
 0x571   :  { %v3659_v13 = vsel %vm3652_vm10, %v10476_v48, 0.0  ;;  %v4218_v31 = vmul.f32 1.442695, %v4217_v38  ;;  %v12827_v38 = vmov 0.0  }
 0x572   :  { %3660 = vadd.xlane.f32.xlu1 %v3659_v13  ;;  %v3853_v14 = vpop.permute.xlu0 %3852 }
 0x573   :  { %10481 = vpow2.f32 %v4218_v31  ;;  %v3859_v63 = vsel %vm3858_vm11, %v3853_v14, %v3855_v44 }
 0x574   :  { %v10478_v19 = vpop.eup %10477 }
 0x575   :  { %v3845_v6 = vsel %vm3652_vm10, %v10478_v19, 0.0 }
 0x576   :  { %3846 = vadd.xlane.f32.xlu0 %v3845_v6 }
 0x578   :  { %v10480_v60 = vpop.eup %10479 }
 0x579   :  { %v4037_v53 = vsel %vm3652_vm10, %v10480_v60, 0.0 }
 0x57d   :  { %v10482_v4 = vpop.eup %10481 }
 0x57e   :  { %v4220_v27 = vsel %vm3652_vm10, %v10482_v4, 0.0 }
 0x583   :  { %4229 = vrot.lane.b32.xlu1 %v10300_v56, %s11070_s6  ;;  %v4045_v56 = vpop.permute.xlu1 %4044 }
 0x58c   :  { %4046 = vrot.lane.b32.xlu0 %v11904_v42, %s11069_s1 }
 0x5a7   :  { %4038 = vadd.xlane.f32.xlu1 %v4037_v53 }
 0x5ab   :  { %4221 = vadd.xlane.f32.xlu0 %v4220_v27 }
 0x5b8   :  { %4227 = vrot.lane.b32.xlu1 %v11904_v42, %s11070_s6 }
 0x5c1   :  { %4231 = vrot.lane.b32.xlu0 %v10301_v59, %s11070_s6 }
 0x5ff   :  { %v3661_v13 = vpop.xlane.xlu1 %3660 }
 0x600   :  { %10483 = vrcp.f32 %v3661_v13 }
 0x603   :  { %v3847_v55 = vpop.xlane.xlu0 %3846  ;;  %v4230_v31 = vpop.permute.xlu1 %4229 }
 0x604   :  { %10485 = vrcp.f32 %v3847_v55 }
 0x607   :  { %v4047_v0 = vpop.permute.xlu0 %4046 }
 0x608   :  { %v4048_v59 = vsel %vm3670_vm9, %v4045_v56, %v4047_v0 }
 0x60a   :  { %v10484_v6 = vpop.eup %10483 }
 0x60b   :  { %v3663_v43 = vmul.f32 %v10484_v6, %v10476_v48 }
 0x60d   :  { %8266 = vmatmul.mubr.msk.f32.vlgmr.msra.gmra.mrb[36].mxu1 %vm3652_vm10, %v3663_v43  ;;  %v4321_v43 = vld [vmem:[#allocation13 + $0x8] sm:$0xff] }
 0x60e   :  { %v10486_v46 = vpop.eup %10485  ;;  %3867 = vmatpush1.msra.mxu1 %v3859_v63  ;;  %3930 = vmatprep.mubr.f32.mxu1 %v12827_v38  ;;  %v4324_v63 = vld [vmem:[#allocation13 + $0x20] sm:$0xff] }
 0x60f   :  { %v3849_v42 = vmul.f32 %v10486_v46, %v10478_v19  ;;  %4054 = vmatprep.subr.mxu1 %v4047_v0  ;;  %v9522_v46 = vpack.c.bf16 %v4324_v63, %v4321_v43  ;;  %v4320_v0 = vld [vmem:[#allocation13] sm:$0xff]  ;;  %v4342_v43 = vld [vmem:[#allocation13 + $0xb0] sm:$0xff] }
 0x611   :  { %8269 = vmatmul.mubr.msk.f32.vlgmr.msra.gmra.mrb[38].mxu1 %vm3652_vm10, %v3849_v42  ;;  %v4323_v42 = vld [vmem:[#allocation13 + $0x18] sm:$0xff]  ;;  %9523 = vmatprep.subr.bf16.mxu0 %v9522_v46  ;;  %v4338_v46 = vld [vmem:[#allocation13 + $0x90] sm:$0xff] }
 0x612   :  { %4055 = vmatpush1.msra.mxu1 %v4048_v59  ;;  %4118 = vmatprep.mubr.f32.mxu1 %v12827_v38  ;;  %v4327_v59 = vld [vmem:[#allocation13 + $0x38] sm:$0xff] }
 0x634   :  { %v4039_v48 = vpop.xlane.xlu1 %4038 }
 0x635   :  { %10487 = vrcp.f32 %v4039_v48  ;;  %v9524_v48 = vpack.c.bf16 %v4323_v42, %v4320_v0  ;;  %v4341_v0 = vld [vmem:[#allocation13 + $0xa8] sm:$0xff] }
 0x636   :  { %v4345_v42 = vld [vmem:[#allocation13 + $0xc8] sm:$0xff] }
 0x637   :  { %9525 = vmatpush1.bf16.msra.mxu0 %v9524_v48  ;;  %v4348_v48 = vld [vmem:[#allocation13 + $0xe0] sm:$0xff] }
 0x638   :  { %v4222_v44 = vpop.xlane.xlu0 %4221  ;;  %v4228_v13 = vpop.permute.xlu1 %4227 }
 0x639   :  { %10489 = vrcp.f32 %v4222_v44  ;;  %v4233_v55 = vsel %vm3858_vm11, %v4228_v13, %v4230_v31  ;;  %v4330_v44 = vld [vmem:[#allocation13 + $0x50] sm:$0xff]  ;;  %v4336_v13 = vld [vmem:[#allocation13 + $0x80] sm:$0xff] }
 0x63c   :  { %v4232_v53 = vpop.permute.xlu0 %4231 }
 0x63d   :  { %v4234_v27 = vsel %vm3858_vm11, %v4230_v31, %v4232_v53  ;;  %v4326_v31 = vld [vmem:[#allocation13 + $0x30] sm:$0xff]  ;;  %v4329_v53 = vld [vmem:[#allocation13 + $0x48] sm:$0xff] }
 0x63e   :  { %4240 = vmatprep.subr.mxu1 %v4234_v27  ;;  %v4333_v27 = vld [vmem:[#allocation13 + $0x68] sm:$0xff] }
 0x63f   :  { %v10488_v14 = vpop.eup %10487 }
 0x640   :  { %v4041_v19 = vmul.f32 %v10488_v14, %v10480_v60  ;;  %v9526_v60 = vpack.c.bf16 %v4330_v44, %v4327_v59  ;;  %v9528_v14 = vpack.c.bf16 %v4329_v53, %v4326_v31  ;;  %v9536_v59 = vpack.c.bf16 %v4341_v0, %v4338_v46  ;;  %v4347_v31 = vld [vmem:[#allocation13 + $0xd8] sm:$0xff] }
 0x641   :  { %v9538_v44 = vpack.c.bf16 %v4348_v48, %v4345_v42  ;;  %v4351_v53 = vld [vmem:[#allocation13 + $0xf8] sm:$0xff]  ;;  %v4366_v42 = vld [vmem:[#allocation13 + $0x170] sm:$0xff]  ;;  %v4373_v48 = vld [vmem:[#allocation13 + $0x1a8] sm:$0xff] }
 0x642   :  { %8272 = vmatmul.mubr.msk.f32.vlgmr.msra.gmra.mrb[40].mxu1 %vm3652_vm10, %v4041_v19  ;;  %9527 = vmatprep.subr.bf16.mxu0 %v9526_v60  ;;  %v4332_v19 = vld [vmem:[#allocation13 + $0x60] sm:$0xff]  ;;  %v4359_v46 = vld [vmem:[#allocation13 + $0x138] sm:$0xff] }
 0x643   :  { %v10490_v56 = vpop.eup %10489  ;;  %4241 = vmatpush1.msra.mxu1 %v4233_v55  ;;  %4304 = vmatprep.mubr.f32.mxu1 %v12827_v38  ;;  %v4335_v55 = vld [vmem:[#allocation13 + $0x78] sm:$0xff]  ;;  %v4344_v60 = vld [vmem:[#allocation13 + $0xc0] sm:$0xff] }
 0x644   :  { %v4224_v6 = vmul.f32 %v10490_v56, %v10482_v4  ;;  %v9530_v4 = vpack.c.bf16 %v4336_v13, %v4333_v27  ;;  %9529 = vmatpush1.bf16.msra.mxu0 %v9528_v14  ;;  %v4339_v56 = vld [vmem:[#allocation13 + $0x98] sm:$0xff]  ;;  %v9540_v27 = vpack.c.bf16 %v4347_v31, %v4344_v60  ;;  %v4354_v14 = vld [vmem:[#allocation13 + $0x110] sm:$0xff] }
 0x645   :  { %v9534_v63 = vpack.c.bf16 %v4342_v43, %v4339_v56  ;;  %v4350_v13 = vld [vmem:[#allocation13 + $0xf0] sm:$0xff]  ;;  %v4360_v56 = vld [vmem:[#allocation13 + $0x140] sm:$0xff]  ;;  %v4363_v0 = vld [vmem:[#allocation13 + $0x158] sm:$0xff] }
 0x646   :  { %8275 = vmatmul.mubr.msk.f32.vlgmr.msra.gmra.mrb[42].mxu1 %vm3652_vm10, %v4224_v6  ;;  %9531 = vmatprep.subr.bf16.mxu0 %v9530_v4  ;;  %v9532_v6 = vpack.c.bf16 %v4335_v55, %v4332_v19  ;;  %v4353_v4 = vld [vmem:[#allocation13 + $0x108] sm:$0xff]  ;;  %v9542_v19 = vpack.c.bf16 %v4354_v14, %v4351_v53  ;;  %v4362_v31 = vld [vmem:[#allocation13 + $0x150] sm:$0xff]  ;;  %v9550_v53 = vpack.c.bf16 %v4366_v42, %v4363_v0  ;;  %v4375_v0 = vld [vmem:[#allocation13 + $0x1b8] sm:$0xff] }
 0x647   :  { %v4357_v55 = vld [vmem:[#allocation13 + $0x128] sm:$0xff] }
 0x648   :  { %9533 = vmatpush1.bf16.msra.mxu0 %v9532_v6  ;;  %v9544_v6 = vpack.c.bf16 %v4353_v4, %v4350_v13  ;;  %v9546_v43 = vpack.c.bf16 %v4360_v56, %v4357_v55  ;;  %v4369_v14 = vld [vmem:[#allocation13 + $0x188] sm:$0xff]  ;;  %v4376_v13 = vld [vmem:[#allocation13 + $0x1c0] sm:$0xff]  ;;  %v4379_v4 = vld [vmem:[#allocation13 + $0x1d8] sm:$0xff] }
 0x649   :  { %9535 = vmatprep.subr.bf16.mxu0 %v9534_v63  ;;  %v4356_v63 = vld [vmem:[#allocation13 + $0x120] sm:$0xff]  ;;  %v9604_v55 = vpack.c.bf16 %v4379_v4, %v4376_v13  ;;  %v4391_v13 = vld [vmem:[#allocation13 + $0x238] sm:$0xff] }
 0x64a   :  { %v9548_v60 = vpack.c.bf16 %v4359_v46, %v4356_v63  ;;  %v4328_v56 = vld [vmem:[#allocation13 + $0x40] sm:$0xff]  ;;  %v4371_v46 = vld [vmem:[#allocation13 + $0x198] sm:$0xff] }
 0x64b   :  { %v9606_v41 = vpack.c.bf16 %v4331_v33, %v4328_v56  ;;  %v4368_v63 = vld [vmem:[#allocation13 + $0x180] sm:$0xff]  ;;  %v4381_v56 = vld [vmem:[#allocation13 + $0x1e8] sm:$0xff] }
 0x64c   :  { %9537 = vmatpush1.bf16.msra.mxu0 %v9536_v59  ;;  %v4370_v59 = vld [vmem:[#allocation13 + $0x190] sm:$0xff]  ;;  %v9556_v33 = vpack.c.bf16 %v4371_v46, %v4368_v63  ;;  %v4349_v46 = vld [vmem:[#allocation13 + $0xe8] sm:$0xff] }
 0x64d   :  { %9539 = vmatprep.subr.bf16.mxu0 %v9538_v44  ;;  %v9600_v44 = vpack.c.bf16 %v4373_v48, %v4370_v59  ;;  %v4382_v59 = vld [vmem:[#allocation13 + $0x1f0] sm:$0xff]  ;;  %v4385_v48 = vld [vmem:[#allocation13 + $0x208] sm:$0xff] }
 0x64e   :  { %v9608_v42 = vpack.c.bf16 %v4385_v48, %v4382_v59  ;;  %v4384_v59 = vld [vmem:[#allocation13 + $0x200] sm:$0xff]  ;;  %v4346_v63 = vld [vmem:[#allocation13 + $0xd0] sm:$0xff] }
 0x64f   :  { %9601 = vmatprep.subr.bf16.mxu1 %v9600_v44  ;;  %v4378_v44 = vld [vmem:[#allocation13 + $0x1d0] sm:$0xff] }
 0x650   :  { %9541 = vmatpush1.bf16.msra.mxu0 %v9540_v27  ;;  %v9602_v27 = vpack.c.bf16 %v4325_v12, %v4322_v40  ;;  %v4334_v12 = vld [vmem:[#allocation13 + $0x70] sm:$0xff]  ;;  %v4337_v40 = vld [vmem:[#allocation13 + $0x88] sm:$0xff] }
 0x651   :  { %9543 = vmatprep.subr.bf16.mxu0 %v9542_v19  ;;  %v4372_v19 = vld [vmem:[#allocation13 + $0x1a0] sm:$0xff]  ;;  %v9610_v4 = vpack.c.bf16 %v4337_v40, %v4334_v12  ;;  %v4390_v40 = vld [vmem:[#allocation13 + $0x230] sm:$0xff] }
 0x652   :  { %9603 = vmatpush3.bf16.msra.mxu1 %v9602_v27  ;;  %v4374_v27 = vld [vmem:[#allocation13 + $0x1b0] sm:$0xff]  ;;  %v4400_v12 = vld [vmem:[#allocation13 + $0x280] sm:$0xff] }
 0x653   :  { %9605 = vmatprep.subr.bf16.mxu1 %v9604_v55  ;;  %v9558_v55 = vpack.c.bf16 %v4378_v44, %v4375_v0  ;;  %v4387_v0 = vld [vmem:[#allocation13 + $0x218] sm:$0xff]  ;;  %v9618_v44 = vpack.c.bf16 %v4349_v46, %v4346_v63  ;;  %v4361_v63 = vld [vmem:[#allocation13 + $0x148] sm:$0xff] }
 0x654   :  { %9545 = vmatpush1.bf16.msra.mxu0 %v9544_v6  ;;  %v9552_v6 = vpack.c.bf16 %v4365_v7, %v4362_v31  ;;  %v9612_v7 = vpack.c.bf16 %v4391_v13, %v4388_v58  ;;  %v4343_v31 = vld [vmem:[#allocation13 + $0xb8] sm:$0xff]  ;;  %v9562_v58 = vpack.c.bf16 %v4384_v59, %v4381_v56 }
 0x655   :  { %9547 = vmatprep.subr.bf16.mxu0 %v9546_v43  ;;  %v9554_v43 = vpack.c.bf16 %v4372_v19, %v4369_v14  ;;  %v4394_v14 = vld [vmem:[#allocation13 + $0x250] sm:$0xff]  ;;  %v4397_v19 = vld [vmem:[#allocation13 + $0x268] sm:$0xff]  ;;  %v4395_v46 = vld [vmem:[#allocation13 + $0x258] sm:$0xff] }
 0x656   :  { %9607 = vmatpush3.bf16.msra.mxu1 %v9606_v41  ;;  %v4380_v41 = vld [vmem:[#allocation13 + $0x1e0] sm:$0xff] }
 0x657   :  { %9609 = vmatprep.subr.bf16.mxu1 %v9608_v42  ;;  %v4383_v42 = vld [vmem:[#allocation13 + $0x1f8] sm:$0xff] }
 0x658   :  { %9549 = vmatpush1.bf16.msra.mxu0 %v9548_v60  ;;  %v4340_v60 = vld [vmem:[#allocation13 + $0xa0] sm:$0xff]  ;;  %v9564_v13 = vpack.c.bf16 %v4383_v42, %v4380_v41  ;;  %v4358_v41 = vld [vmem:[#allocation13 + $0x130] sm:$0xff] }
 0x659   :  { %9551 = vmatprep.subr.bf16.mxu0 %v9550_v53  ;;  %v4377_v53 = vld [vmem:[#allocation13 + $0x1c8] sm:$0xff]  ;;  %v9614_v48 = vpack.c.bf16 %v4343_v31, %v4340_v60  ;;  %v4355_v60 = vld [vmem:[#allocation13 + $0x118] sm:$0xff]  ;;  %v4412_v42 = vld [vmem:[#allocation13 + $0x2e0] sm:$0xff] }
 0x65a   :  { %9611 = vmatpush3.bf16.msra.mxu1 %v9610_v4  ;;  %v9560_v18 = vpack.c.bf16 %v4377_v53, %v4374_v27  ;;  %v4386_v4 = vld [vmem:[#allocation13 + $0x210] sm:$0xff]  ;;  %v4352_v27 = vld [vmem:[#allocation13 + $0x100] sm:$0xff]  ;;  %v4389_v31 = vld [vmem:[#allocation13 + $0x228] sm:$0xff] }
 0x65b   :  { %9613 = vmatprep.subr.bf16.mxu1 %v9612_v7  ;;  %v9566_v7 = vpack.c.bf16 %v4390_v40, %v4387_v0  ;;  %v4406_v53 = vld [vmem:[#allocation13 + $0x2b0] sm:$0xff]  ;;  %v9622_v56 = vpack.c.bf16 %v4355_v60, %v4352_v27  ;;  %v9568_v59 = vpack.c.bf16 %v4389_v31, %v4386_v4  ;;  %v9626_v0 = vpack.c.bf16 %v4361_v63, %v4358_v41  ;;  %v4367_v4 = vld [vmem:[#allocation13 + $0x178] sm:$0xff]  ;;  %v4401_v60 = vld [vmem:[#allocation13 + $0x288] sm:$0xff] }
 0x65c   :  { %9553 = vmatpush1.bf16.msra.mxu0 %v9552_v6  ;;  %v9616_v6 = vpack.c.bf16 %v4397_v19, %v4394_v14  ;;  %v4393_v14 = vld [vmem:[#allocation13 + $0x248] sm:$0xff]  ;;  %v4396_v19 = vld [vmem:[#allocation13 + $0x260] sm:$0xff]  ;;  %v4398_v27 = vld [vmem:[#allocation13 + $0x270] sm:$0xff] }
 0x65d   :  { %9555 = vmatprep.subr.bf16.mxu0 %v9554_v43  ;;  %v4403_v43 = vld [vmem:[#allocation13 + $0x298] sm:$0xff]  ;;  %v4405_v31 = vld [vmem:[#allocation13 + $0x2a8] sm:$0xff]  ;;  %v4410_v63 = vld [vmem:[#allocation13 + $0x2d0] sm:$0xff] }
 0x65e   :  { %9615 = vmatpush3.bf16.msra.mxu1 %v9614_v48  ;;  %v4392_v48 = vld [vmem:[#allocation13 + $0x240] sm:$0xff] }
 0x65f   :  { %9617 = vmatprep.subr.bf16.mxu1 %v9616_v6  ;;  %v9570_v6 = vpack.c.bf16 %v4396_v19, %v4393_v14  ;;  %v9572_v40 = vpack.c.bf16 %v4395_v46, %v4392_v48  ;;  %v4404_v19 = vld [vmem:[#allocation13 + $0x2a0] sm:$0xff]  ;;  %v4414_v48 = vld [vmem:[#allocation13 + $0x2f0] sm:$0xff] }
 0x660   :  { %9557 = vmatpush1.bf16.msra.mxu0 %v9556_v33  ;;  %v9620_v33 = vpack.c.bf16 %v4403_v43, %v4400_v12  ;;  %v4399_v12 = vld [vmem:[#allocation13 + $0x278] sm:$0xff]  ;;  %v4402_v43 = vld [vmem:[#allocation13 + $0x290] sm:$0xff] }
 0x661   :  { %9559 = vmatprep.subr.bf16.mxu0 %v9558_v55  ;;  %v4409_v55 = vld [vmem:[#allocation13 + $0x2c8] sm:$0xff] }
 0x662   :  { %9619 = vmatpush3.bf16.msra.mxu1 %v9618_v44 }
 0x663   :  { %9621 = vmatprep.subr.bf16.mxu1 %v9620_v33  ;;  %v9574_v33 = vpack.c.bf16 %v4402_v43, %v4399_v12  ;;  %v4417_v12 = vld [vmem:[#allocation13 + $0x308] sm:$0xff] }
 0x664   :  { %9561 = vmatpush1.bf16.msra.mxu0 %v9560_v18  ;;  %v9624_v18 = vpack.c.bf16 %v4409_v55, %v4406_v53  ;;  %v9576_v55 = vpack.c.bf16 %v4401_v60, %v4398_v27  ;;  %v11966_v27 = vadd.f32 %v11906_v54, %v11912_v11  ;;  %v11980_v54 = vadd.f32 %v11785_v51, %v11795_v5  ;;  %v4416_v11 = vld [vmem:[#allocation13 + $0x300] sm:$0xff]  ;;  %v4422_v51 = vld [vmem:[#allocation13 + $0x330] sm:$0xff]  ;;  %v4425_v5 = vld [vmem:[#allocation13 + $0x348] sm:$0xff] }
 0x665   :  { %9563 = vmatprep.subr.bf16.mxu0 %v9562_v58  ;;  %v4415_v58 = vld [vmem:[#allocation13 + $0x2f8] sm:$0xff] }
 0x666   :  { %9623 = vmatpush3.bf16.msra.mxu1 %v9622_v56  ;;  %v9628_v44 = vpack.c.bf16 %v4415_v58, %v4412_v42  ;;  %v4407_v56 = vld [vmem:[#allocation13 + $0x2b8] sm:$0xff]  ;;  %v4418_v42 = vld [vmem:[#allocation13 + $0x310] sm:$0xff]  ;;  %v4421_v58 = vld [vmem:[#allocation13 + $0x328] sm:$0xff] }
 0x667   :  { %9625 = vmatprep.subr.bf16.mxu1 %v9624_v18  ;;  %v9580_v18 = vpack.c.bf16 %v4407_v56, %v4404_v19  ;;  %v4424_v19 = vld [vmem:[#allocation13 + $0x340] sm:$0xff]  ;;  %v4427_v56 = vld [vmem:[#allocation13 + $0x358] sm:$0xff] }
 0x668   :  { %9565 = vmatpush1.bf16.msra.mxu0 %v9564_v13  ;;  %v4364_v13 = vld [vmem:[#allocation13 + $0x160] sm:$0xff] }
 0x669   :  { %9567 = vmatprep.subr.bf16.mxu0 %v9566_v7  ;;  %v4408_v7 = vld [vmem:[#allocation13 + $0x2c0] sm:$0xff]  ;;  %v9630_v53 = vpack.c.bf16 %v4367_v4, %v4364_v13 }
 0x66a   :  { %9627 = vmatpush3.bf16.msra.mxu1 %v9626_v0  ;;  %v9578_v14 = vpack.c.bf16 %v4408_v7, %v4405_v31  ;;  %v9632_v0 = vpack.c.bf16 %v4421_v58, %v4418_v42  ;;  %v4429_v42 = vld [vmem:[#allocation13 + $0x368] sm:$0xff]  ;;  %v9592_v58 = vpack.c.bf16 %v4425_v5, %v4422_v51 }
 0x66b   :  { %9629 = vmatprep.subr.bf16.mxu1 %v9628_v44 }
 0x66c   :  { %9569 = vmatpush1.bf16.msra.mxu0 %v9568_v59  ;;  %v4411_v59 = vld [vmem:[#allocation13 + $0x2d8] sm:$0xff] }
 0x66d   :  { %9571 = vmatprep.subr.bf16.mxu0 %v9570_v6  ;;  %v9582_v41 = vpack.c.bf16 %v4414_v48, %v4411_v59  ;;  %v4413_v6 = vld [vmem:[#allocation13 + $0x2e8] sm:$0xff]  ;;  %v4423_v59 = vld [vmem:[#allocation13 + $0x338] sm:$0xff] }
 0x66e   :  { %9631 = vmatpush3.bf16.msra.mxu1 %v9630_v53  ;;  %v9584_v46 = vpack.c.bf16 %v4413_v6, %v4410_v63  ;;  %v4430_v6 = vld [vmem:[#allocation13 + $0x370] sm:$0xff] }
 0x66f   :  { %9633 = vmatprep.subr.bf16.mxu1 %v9632_v0 }
 0x670   :  { %9573 = vmatpush1.bf16.msra.mxu0 %v9572_v40  ;;  %v4420_v40 = vld [vmem:[#allocation13 + $0x320] sm:$0xff] }
 0x671   :  { %9575 = vmatprep.subr.bf16.mxu0 %v9574_v33  ;;  %v9586_v13 = vpack.c.bf16 %v4420_v40, %v4417_v12 }
 0x674   :  { %9577 = vmatpush1.bf16.msra.mxu0 %v9576_v55  ;;  %v11974_v55 = vadd.f32 %v11908_v8, %v11916_v17  ;;  %v4426_v8 = vld [vmem:[#allocation13 + $0x350] sm:$0xff] }
 0x675   :  { %9579 = vmatprep.subr.bf16.mxu0 %v9578_v14  ;;  %v4419_v14 = vld [vmem:[#allocation13 + $0x318] sm:$0xff]  ;;  %v9590_v63 = vpack.c.bf16 %v4426_v8, %v4423_v59 }
 0x676   :  { %v9588_v48 = vpack.c.bf16 %v4419_v14, %v4416_v11 }
 0x678   :  { %9581 = vmatpush1.bf16.msra.mxu0 %v9580_v18 }
 0x679   :  { %9583 = vmatprep.subr.bf16.mxu0 %v9582_v41  ;;  %v9636_v41 = vpack.c.bf16 %v4427_v56, %v4424_v19 }
 0x67c   :  { %9585 = vmatpush1.bf16.msra.mxu0 %v9584_v46  ;;  %v4433_v46 = vld [vmem:[#allocation13 + $0x388] sm:$0xf] }
 0x67d   :  { %9587 = vmatprep.subr.bf16.mxu0 %v9586_v13  ;;  %v9640_v12 = vpack.c.bf16 %v4433_v46, %v4430_v6  ;;  %v4431_v13 = vld [vmem:[#allocation13 + $0x378] sm:$0xf] }
 0x6e0   :  { %v3743_v43 = vpop.f32.mrb[36].mxu1 }
 0x6e1   :  { %v3745_v44 = vpop.f32.mrb[37].mxu1 }
 0x6e4   :  { %v3932_v4 = vpop.f32.mrb[38].mxu1 }
 0x6e5   :  { %3939 = vrot.lane.b32.xlu0 %v3932_v4, %s11071_s12  ;;  %v3934_v33 = vpop.f32.mrb[39].mxu1 }
 0x6e9   :  { %3941 = vrot.lane.b32.xlu0 %v3934_v33, %s11071_s12 }
 0x6ed   :  { %4772 = vrot.lane.b32.xlu0 %v11966_v27, %s11067_s8 }
 0x715   :  { %v4120_v60 = vpop.f32.mrb[40].mxu1 }
 0x716   :  { %v4122_v31 = vpop.f32.mrb[41].mxu1 }
 0x719   :  { %v4306_v7 = vpop.f32.mrb[42].mxu1 }
 0x71a   :  { %4313 = vrot.lane.b32.xlu1 %v4306_v7, %s11071_s12  ;;  %v4308_v53 = vpop.f32.mrb[43].mxu1  ;;  %v10287_v7 = vadd.f32 %v11839_v35, %v11847_v1 }
 0x71c   :  { %v4769_v19 = vmul.f32 0.08164966, %v10287_v7 }
 0x71e   :  { %4315 = vrot.lane.b32.xlu1 %v4308_v53, %s11071_s12 }
 0x722   :  { %4774 = vrot.lane.b32.xlu1 %v11974_v55, %s11067_s8 }
 0x726   :  { %4867 = vrot.lane.b32.xlu1 %v11980_v54, %s11069_s1 }
 0x72a   :  { %4956 = vrot.lane.b32.xlu1 %v11897_v30, %s11066_s22  ;;  %v4432_v30 = vld [vmem:[#allocation13 + $0x380] sm:$0xf] }
 0x72b   :  { %v9594_v40 = vpack.c.bf16 %v4432_v30, %v4429_v42 }
 0x757   :  { %v3940_v17 = vpop.permute.xlu0 %3939 }
 0x758   :  { %v3945_v18 = vsel %vm3576_vm5, %v3745_v44, %v3940_v17  ;;  %v4428_v44 = vld [vmem:[#allocation13 + $0x360] sm:$0xff] }
 0x759   :  { %4528 = vmatprep.mubr.f32.mxu0 %v3945_v18  ;;  %4682 = vmatprep.mubr.f32.mxu1 %v3945_v18  ;;  %v9597_v4 = vpack.c.bf16 %v4431_v13, %v4428_v44 }
 0x75a   :  { %4529 = vmatmul.mubr.f32.vlgmr.msra.gmra.mrb[44].mxu0 %v3743_v43  ;;  %4683 = vmatmul.mubr.f32.vlgmr.msra.gmra.mrb[44].mxu1 %v3743_v43 }
 0x75b   :  { %9635 = vmatpush3.bf16.msra.mxu1 %v9632_v0  ;;  %9589 = vmatpush1.bf16.msra.mxu0 %v9588_v48  ;;  %v3942_v43 = vpop.permute.xlu0 %3941 }
 0x75c   :  { %9637 = vmatprep.subr.bf16.mxu1 %v9636_v41  ;;  %9591 = vmatprep.subr.bf16.mxu0 %v9590_v63  ;;  %v3943_v53 = vsel %vm3576_vm5, %v3940_v17, %v3942_v43  ;;  %v12012_v17 = vld [vmem:[#allocation14] sm:$0x7] }
 0x75d   :  { %v4447_v18 = vrot.slane %v12012_v17, %v11535_v62 }
 0x75f   :  { %9639 = vmatpush3.bf16.msra.mxu1 %v9636_v41  ;;  %9593 = vmatpush1.bf16.msra.mxu0 %v9592_v58  ;;  %v4773_v35 = vpop.permute.xlu0 %4772 }
 0x760   :  { %9642 = vmatprep.subr.msk.bf16.mxu1 %vm11514_vm3, %v9640_v12  ;;  %9596 = vmatprep.subr.msk.bf16.mxu0 %vm11514_vm3, %v9594_v40 }
 0x763   :  { %9645 = vmatpush3.bf16.msk.msra.mxu1 %vm11514_vm3, %v9640_v12  ;;  %9599 = vmatpush1.bf16.msk.msra.mxu0 %vm11514_vm3, %v9597_v4 }
 0x78c   :  { %v4314_v0 = vpop.permute.xlu1 %4313 }
 0x78d   :  { %v4319_v33 = vsel %vm3576_vm5, %v4122_v31, %v4314_v0  ;;  %v10286_v31 = vadd.f32 %v11837_v2, %v11843_v9 }
 0x78e   :  { %4534 = vmatprep.mubr.f32.mxu0 %v4319_v33  ;;  %4687 = vmatprep.mubr.f32.mxu1 %v4319_v33 }
 0x78f   :  { %4535 = vmatmul.mubr.f32.gmra.mrb[46].mxu0 %v4120_v60  ;;  %4688 = vmatmul.mubr.f32.gmra.mrb[46].mxu1 %v4120_v60  ;;  %v4768_v56 = vmul.f32 0.08164966, %v10286_v31 }
 0x790   :  { %v4316_v11 = vpop.permute.xlu1 %4315  ;;  %8724 = vmatprep.mubr.msk.f32.mxu1 %vm1925_vm4, %v3943_v53  ;;  %4605 = vmatprep.mubr.f32.mxu0 %v12827_v38 }
 0x791   :  { %v4317_v14 = vsel %vm3576_vm5, %v4314_v0, %v4316_v11 }
 0x793   :  { %8278 = vmatmul.mubr.msk.f32.vlgmr.msra.gmra.mrb[44].mxu0 %vm1925_vm4, %v3943_v53  ;;  %8725 = vmatmul.mubr.msk.f32.vlgmr.msra.gmra.mrb[48].mxu1 %vm1925_vm4, %v4317_v14 }
 0x794   :  { %v4775_v1 = vpop.permute.xlu1 %4774  ;;  %8284 = vmatprep.mubr.msk.f32.mxu1 %vm3576_vm5, %v4769_v19  ;;  %4611 = vmatprep.mubr.f32.mxu0 %v12827_v38 }
 0x795   :  { %v4776_v60 = vsel %vm3573_vm6, %v4773_v35, %v4775_v1  ;;  %8283 = vmatprep.subr.msk.mxu1 %vm3576_vm5, %v4775_v1 }
 0x796   :  { %4784 = vmatpush1.xpose.msra.mxu1 %v4776_v60 }
 0x797   :  { %8279 = vmatmul.mubr.msk.f32.gmra.mrb[46].mxu0 %vm1925_vm4, %v4317_v14 }
 0x798   :  { %v4868_v59 = vpop.permute.xlu1 %4867 }
 0x799   :  { %4848 = vmatmul.mubr.f32.vlgmr.msra.gmra.mrb[50].mxu1 %v4768_v56  ;;  %4875 = vmatprep.subr.mxu1 %v4868_v59 }
 0x79a   :  { %4939 = vmatprep.mubr.f32.mxu1 %v12827_v38 }
 0x79c   :  { %v4957_v14 = vpop.permute.xlu1 %4956 }
 0x82d   :  { %v8402_v2 = vpop.f32.mrb[44].mxu1 }
 0x82e   :  { %v8403_v9 = vpop.f32.mrb[45].mxu1 }
 0x82f   :  { %v8404_v8 = vadd.f32 %v8403_v9, %v8402_v2 }
 0x831   :  { %v4685_v46 = vadd.f32 %v8404_v8, %v4447_v18 }
 0x862   :  { %v8405_v48 = vpop.f32.mrb[46].mxu1 }
 0x863   :  { %v8406_v41 = vpop.f32.mrb[47].mxu1 }
 0x864   :  { %v8407_v63 = vadd.f32 %v8406_v41, %v8405_v48  ;;  %v10282_v41 = vadd.f32 %v11856_v24, %v11864_v26 }
 0x866   :  { %v12016_v51 = vpop.f32.mrb[44].mxu0  ;;  %v4690_v5 = vadd.f32 %v8407_v63, %v4447_v18  ;;  %v8726_v6 = vpop.f32.mrb[48].mxu1 }
 0x867   :  { %v12018_v42 = vpop.f32.mrb[45].mxu0  ;;  %v4759_v30 = vpop.f32.mrb[49].mxu1 }
 0x868   :  { %v12020_v58 = vadd.f32 %v8726_v6, %v4690_v5  ;;  %v12022_v12 = vadd.f32 %v4759_v30, %v4685_v46 }
 0x86a   :  { %v12024_v40 = vpop.f32.mrb[46].mxu0 }
 0x86b   :  { %v12026_v44 = vpop.f32.mrb[47].mxu0 }
 0x86c   :  { %v4849_v13 = vpop.f32.mrb[50].mxu1 }
 0x86d   :  { %v4851_v4 = vpop.f32.mrb[51].mxu1  ;;  %v4853_v43 = vsel %vm3652_vm10, %v4849_v13, -inf }
 0x86e   :  { %4854 = vmax.xlane.f32.xlu0 %v4853_v43 }
 0x884   :  { %4865 = vrot.lane.b32.xlu0 %v11783_v21, %s11069_s1  ;;  %v4946_v21 = vmul.f32 0.08164966, %v11966_v27 }
 0x888   :  { %4954 = vrot.lane.b32.xlu0 %v11974_v55, %s11066_s22  ;;  %v10283_v55 = vadd.f32 %v11859_v61, %v11869_v57 }
 0x88c   :  { %4948 = vrot.lane.b32.xlu0 %v4769_v19, %s11068_s4 }
 0x8fb   :  { %v4855_v0 = vpop.xlane.xlu0 %4854 }
 0x8fc   :  { %v4856_v33 = vsub.f32 %v4849_v13, %v4855_v0 }
 0x8fe   :  { %v4857_v7 = vmul.f32 1.442695, %v4856_v33 }
 0x8ff   :  { %v4866_v53 = vpop.permute.xlu0 %4865 }
 0x900   :  { %10491 = vpow2.f32 %v4857_v7  ;;  %v4869_v11 = vsel %vm3670_vm9, %v4866_v53, %v4868_v59  ;;  %v5141_v7 = vmul.f32 0.08164966, %v11854_v37 }
 0x901   :  { %4876 = vmatpush1.msra.mxu1 %v4869_v11  ;;  %v5140_v11 = vmul.f32 0.08164966, %v11850_v45 }
 0x902   :  { %8286 = vmatprep.subr.msk.mxu1 %vm3576_vm5, %v4957_v14 }
 0x903   :  { %v4955_v1 = vpop.permute.xlu0 %4954 }
 0x904   :  { %v4958_v59 = vsel %vm3762_vm7, %v4955_v1, %v4957_v14 }
 0x907   :  { %v4949_v27 = vpop.permute.xlu0 %4948 }
 0x90a   :  { %v10492_v31 = vpop.eup %10491 }
 0x90b   :  { %v4859_v35 = vsel %vm3652_vm10, %v10492_v31, 0.0 }
 0x90c   :  { %4860 = vadd.xlane.f32.xlu1 %v4859_v35 }
 0x91d   :  { %4950 = vrot.lane.b32.xlu1 %v4946_v21, %s11068_s4 }
 0x921   :  { %5051 = vrot.lane.b32.xlu1 %v10283_v55, %s11070_s6 }
 0x999   :  { %v4861_v19 = vpop.xlane.xlu1 %4860 }
 0x99a   :  { %10493 = vrcp.f32 %v4861_v19 }
 0x99d   :  { %v4951_v2 = vpop.permute.xlu1 %4950 }
 0x99e   :  { %v4952_v9 = vsel %vm3754_vm8, %v4949_v27, %v4951_v2 }
 0x9a1   :  { %v5052_v46 = vpop.permute.xlu1 %5051 }
 0x9a4   :  { %v10494_v60 = vpop.eup %10493 }
 0x9a5   :  { %v4863_v56 = vmul.f32 %v10494_v60, %v10492_v31 }
 0x9a7   :  { %8285 = vmatmul.mubr.msk.f32.vlgmr.msra.gmra.mrb[52].mxu1 %vm3652_vm10, %v4863_v56 }
 0x9a8   :  { %4965 = vmatpush1.xpose.msra.mxu1 %v4958_v59  ;;  %8287 = vmatprep.mubr.msk.f32.mxu1 %vm3576_vm5, %v4951_v2 }
 0x9ab   :  { %5029 = vmatmul.mubr.f32.vlgmr.msra.gmra.mrb[54].mxu1 %v4952_v9 }
 0x9ac   :  { %5124 = vmatprep.mubr.f32.mxu1 %v12827_v38 }
 0xa7a   :  { %v12047_v61 = vpop.f32.mrb[52].mxu1 }
 0xa7b   :  { %v12049_v57 = vpop.f32.mrb[53].mxu1 }
 0xa7e   :  { %v5030_v8 = vpop.f32.mrb[54].mxu1 }
 0xa7f   :  { %v5032_v48 = vpop.f32.mrb[55].mxu1  ;;  %v5034_v18 = vsel %vm3652_vm10, %v5030_v8, -inf }
 0xa80   :  { %5035 = vmax.xlane.f32.xlu0 %v5034_v18 }
 0xa96   :  { %5049 = vrot.lane.b32.xlu0 %v10282_v41, %s11070_s6 }
 0xa9a   :  { %5047 = vrot.lane.b32.xlu0 %v11980_v54, %s11070_s6 }
 0xa9e   :  { %5146 = vrot.lane.b32.xlu0 %v11922_v20, %s11067_s8 }
 0xaa2   :  { %5237 = vrot.lane.b32.xlu0 %v11818_v3, %s11069_s1 }
 0xaa6   :  { %5328 = vrot.lane.b32.xlu0 %v11902_v23, %s11066_s22 }
 0xb0d   :  { %v5036_v63 = vpop.xlane.xlu0 %5035 }
 0xb0e   :  { %v5037_v5 = vsub.f32 %v5030_v8, %v5036_v63 }
 0xb10   :  { %v5038_v6 = vmul.f32 1.442695, %v5037_v5 }
 0xb11   :  { %v5050_v30 = vpop.permute.xlu0 %5049 }
 0xb12   :  { %10495 = vpow2.f32 %v5038_v6  ;;  %v5054_v24 = vsel %vm3858_vm11, %v5050_v30, %v5052_v46 }
 0xb13   :  { %5060 = vmatprep.subr.mxu1 %v5054_v24 }
 0xb15   :  { %v5048_v26 = vpop.permute.xlu0 %5047 }
 0xb16   :  { %v5053_v54 = vsel %vm3858_vm11, %v5048_v26, %v5050_v30 }
 0xb17   :  { %5061 = vmatpush1.msra.mxu1 %v5053_v54  ;;  %v5513_v54 = vld [vmem:[#allocation16 + $0x8] sm:$0xff] }
 0xb19   :  { %v5147_v13 = vpop.permute.xlu0 %5146 }
 0xb1a   :  { %8289 = vmatprep.subr.msk.mxu1 %vm3576_vm5, %v5147_v13 }
 0xb1c   :  { %v10496_v3 = vpop.eup %10495 }
 0xb1d   :  { %v5040_v4 = vsel %vm3652_vm10, %v10496_v3, 0.0  ;;  %v5238_v45 = vpop.permute.xlu0 %5237 }
 0xb1e   :  { %5041 = vadd.xlane.f32.xlu1 %v5040_v4 }
 0xb21   :  { %v5329_v59 = vpop.permute.xlu0 %5328 }
 0xb2f   :  { %5144 = vrot.lane.b32.xlu1 %v11919_v34, %s11067_s8 }
 0xbab   :  { %v5042_v23 = vpop.xlane.xlu1 %5041 }
 0xbac   :  { %10497 = vrcp.f32 %v5042_v23  ;;  %v5515_v23 = vld [vmem:[#allocation16 + $0x18] sm:$0xff] }
 0xbaf   :  { %v5145_v0 = vpop.permute.xlu1 %5144 }
 0xbb0   :  { %v5148_v53 = vsel %vm3573_vm6, %v5145_v0, %v5147_v13  ;;  %v5516_v13 = vld [vmem:[#allocation16 + $0x20] sm:$0xff]  ;;  %v5522_v0 = vld [vmem:[#allocation16 + $0x50] sm:$0xff] }
 0xbb1   :  { %v9646_v4 = vpack.c.bf16 %v5516_v13, %v5513_v54  ;;  %v5552_v54 = vld [vmem:[#allocation16 + $0x140] sm:$0xff] }
 0xbb3   :  { %9647 = vmatprep.subr.bf16.mxu0 %v9646_v4  ;;  %v5548_v4 = vld [vmem:[#allocation16 + $0x120] sm:$0xff] }
 0xbb6   :  { %v10498_v43 = vpop.eup %10497 }
 0xbb7   :  { %v5044_v33 = vmul.f32 %v10498_v43, %v10496_v3  ;;  %v5512_v3 = vld [vmem:[#allocation16] sm:$0xff]  ;;  %v5519_v43 = vld [vmem:[#allocation16 + $0x38] sm:$0xff] }
 0xbb9   :  { %8288 = vmatmul.mubr.msk.f32.vlgmr.msra.gmra.mrb[56].mxu1 %vm3652_vm10, %v5044_v33  ;;  %v9648_v33 = vpack.c.bf16 %v5515_v23, %v5512_v3  ;;  %v5551_v23 = vld [vmem:[#allocation16 + $0x138] sm:$0xff] }
 0xbba   :  { %5156 = vmatpush1.xpose.msra.mxu1 %v5148_v53  ;;  %8290 = vmatprep.mubr.msk.f32.mxu1 %vm3576_vm5, %v5141_v7  ;;  %v5518_v53 = vld [vmem:[#allocation16 + $0x30] sm:$0xff] }
 0xbbb   :  { %9649 = vmatpush1.bf16.msra.mxu0 %v9648_v33  ;;  %v9672_v33 = vpack.c.bf16 %v5551_v23, %v5548_v4  ;;  %v5584_v4 = vld [vmem:[#allocation16 + $0x240] sm:$0xff]  ;;  %v5587_v23 = vld [vmem:[#allocation16 + $0x258] sm:$0xff] }
 0xbbd   :  { %5220 = vmatmul.mubr.f32.vlgmr.msra.gmra.mrb[58].mxu1 %v5140_v11  ;;  %v5521_v11 = vld [vmem:[#allocation16 + $0x48] sm:$0xff] }
 0xbbe   :  { %5311 = vmatprep.mubr.f32.mxu1 %v12827_v38 }
 0xc8c   :  { %v12075_v14 = vpop.f32.mrb[56].mxu1 }
 0xc8d   :  { %v12077_v31 = vpop.f32.mrb[57].mxu1 }
 0xc90   :  { %v5221_v35 = vpop.f32.mrb[58].mxu1 }
 0xc91   :  { %v5223_v21 = vpop.f32.mrb[59].mxu1  ;;  %v5225_v37 = vsel %vm3652_vm10, %v5221_v35, -inf }
 0xc92   :  { %5226 = vmax.xlane.f32.xlu1 %v5225_v37  ;;  %v5528_v21 = vld [vmem:[#allocation16 + $0x80] sm:$0xff]  ;;  %v9652_v37 = vpack.c.bf16 %v5521_v11, %v5518_v53  ;;  %v5554_v53 = vld [vmem:[#allocation16 + $0x150] sm:$0xff]  ;;  %v5557_v11 = vld [vmem:[#allocation16 + $0x168] sm:$0xff] }
 0xca3   :  { %5239 = vrot.lane.b32.xlu1 %v11802_v15, %s11069_s1 }
 0xca7   :  { %5326 = vrot.lane.b32.xlu1 %v11922_v20, %s11066_s22  ;;  %v5318_v20 = vmul.f32 0.08164966, %v11919_v34 }
 0xcab   :  { %5320 = vrot.lane.b32.xlu1 %v5141_v7, %s11068_s4  ;;  %v9650_v7 = vpack.c.bf16 %v5522_v0, %v5519_v43  ;;  %v5555_v43 = vld [vmem:[#allocation16 + $0x158] sm:$0xff]  ;;  %v5558_v0 = vld [vmem:[#allocation16 + $0x170] sm:$0xff] }
 0xcad   :  { %9651 = vmatprep.subr.bf16.mxu0 %v9650_v7  ;;  %v9674_v7 = vpack.c.bf16 %v5558_v0, %v5555_v43  ;;  %v5591_v43 = vld [vmem:[#allocation16 + $0x278] sm:$0xff]  ;;  %v5594_v0 = vld [vmem:[#allocation16 + $0x290] sm:$0xff] }
 0xcae   :  { %9653 = vmatpush1.bf16.msra.mxu0 %v9652_v37  ;;  %v9676_v37 = vpack.c.bf16 %v5557_v11, %v5554_v53  ;;  %v5590_v53 = vld [vmem:[#allocation16 + $0x270] sm:$0xff]  ;;  %v5593_v11 = vld [vmem:[#allocation16 + $0x288] sm:$0xff] }
 0xd1f   :  { %v5227_v55 = vpop.xlane.xlu1 %5226 }
 0xd20   :  { %v5228_v19 = vsub.f32 %v5221_v35, %v5227_v55  ;;  %v5525_v35 = vld [vmem:[#allocation16 + $0x68] sm:$0xff]  ;;  %v5531_v55 = vld [vmem:[#allocation16 + $0x98] sm:$0xff] }
 0xd22   :  { %v5229_v1 = vmul.f32 1.442695, %v5228_v19  ;;  %v5534_v19 = vld [vmem:[#allocation16 + $0xb0] sm:$0xff] }
 0xd23   :  { %v5240_v60 = vpop.permute.xlu1 %5239 }
 0xd24   :  { %10499 = vpow2.f32 %v5229_v1  ;;  %v5241_v56 = vsel %vm3670_vm9, %v5238_v45, %v5240_v60  ;;  %5247 = vmatprep.subr.mxu1 %v5240_v60  ;;  %v5524_v45 = vld [vmem:[#allocation16 + $0x60] sm:$0xff]  ;;  %v9658_v60 = vpack.c.bf16 %v5534_v19, %v5531_v55  ;;  %v5567_v55 = vld [vmem:[#allocation16 + $0x1b8] sm:$0xff]  ;;  %v5570_v19 = vld [vmem:[#allocation16 + $0x1d0] sm:$0xff] }
 0xd25   :  { %5248 = vmatpush1.msra.mxu1 %v5241_v56  ;;  %v5530_v56 = vld [vmem:[#allocation16 + $0x90] sm:$0xff] }
 0xd26   :  { %8292 = vmatprep.subr.msk.mxu1 %vm3576_vm5, %v5329_v59 }
 0xd27   :  { %v5327_v8 = vpop.permute.xlu1 %5326 }
 0xd28   :  { %v5330_v41 = vsel %vm3762_vm7, %v5327_v8, %v5329_v59  ;;  %v5533_v59 = vld [vmem:[#allocation16 + $0xa8] sm:$0xff]  ;;  %v5536_v8 = vld [vmem:[#allocation16 + $0xc0] sm:$0xff] }
 0xd2b   :  { %v5321_v5 = vpop.permute.xlu1 %5320 }
 0xd2e   :  { %v10500_v2 = vpop.eup %10499 }
 0xd2f   :  { %v5231_v27 = vsel %vm3652_vm10, %v10500_v2, 0.0 }
 0xd30   :  { %5232 = vadd.xlane.f32.xlu0 %v5231_v27  ;;  %v5540_v27 = vld [vmem:[#allocation16 + $0xe0] sm:$0xff] }
 0xd46   :  { %5322 = vrot.lane.b32.xlu0 %v5318_v20, %s11068_s4  ;;  %v9660_v20 = vpack.c.bf16 %v5533_v59, %v5530_v56  ;;  %v5566_v56 = vld [vmem:[#allocation16 + $0x1b0] sm:$0xff]  ;;  %v5569_v59 = vld [vmem:[#allocation16 + $0x1c8] sm:$0xff] }
 0xdbd   :  { %v5233_v9 = vpop.xlane.xlu0 %5232 }
 0xdbe   :  { %10501 = vrcp.f32 %v5233_v9 }
 0xdc1   :  { %v5323_v63 = vpop.permute.xlu0 %5322 }
 0xdc2   :  { %v5324_v6 = vsel %vm3754_vm8, %v5321_v5, %v5323_v63 }
 0xdc8   :  { %v10502_v48 = vpop.eup %10501 }
 0xdc9   :  { %v5235_v18 = vmul.f32 %v10502_v48, %v10500_v2  ;;  %v5537_v2 = vld [vmem:[#allocation16 + $0xc8] sm:$0xff]  ;;  %v5539_v48 = vld [vmem:[#allocation16 + $0xd8] sm:$0xff] }
 0xdca   :  { %v9662_v9 = vpack.c.bf16 %v5540_v27, %v5537_v2  ;;  %v5573_v2 = vld [vmem:[#allocation16 + $0x1e8] sm:$0xff]  ;;  %v5576_v27 = vld [vmem:[#allocation16 + $0x200] sm:$0xff] }
 0xdcb   :  { %8291 = vmatmul.mubr.msk.f32.vlgmr.msra.gmra.mrb[60].mxu1 %vm3652_vm10, %v5235_v18  ;;  %v5543_v18 = vld [vmem:[#allocation16 + $0xf8] sm:$0xff] }
 0xdcc   :  { %5337 = vmatpush1.xpose.msra.mxu1 %v5330_v41  ;;  %8293 = vmatprep.mubr.msk.f32.mxu1 %vm3576_vm5, %v5323_v63  ;;  %v5546_v41 = vld [vmem:[#allocation16 + $0x110] sm:$0xff]  ;;  %v9664_v63 = vpack.c.bf16 %v5539_v48, %v5536_v8  ;;  %v5572_v8 = vld [vmem:[#allocation16 + $0x1e0] sm:$0xff]  ;;  %v5575_v48 = vld [vmem:[#allocation16 + $0x1f8] sm:$0xff] }
 0xdcd   :  { %v9666_v5 = vpack.c.bf16 %v5546_v41, %v5543_v18  ;;  %v5579_v18 = vld [vmem:[#allocation16 + $0x218] sm:$0xff]  ;;  %v5582_v41 = vld [vmem:[#allocation16 + $0x230] sm:$0xff] }
 0xdcf   :  { %5401 = vmatmul.mubr.f32.vlgmr.msra.gmra.mrb[62].mxu1 %v5324_v6  ;;  %v5542_v6 = vld [vmem:[#allocation16 + $0xf0] sm:$0xff] }
 0xdd0   :  { %5496 = vmatprep.mubr.f32.mxu1 %v12827_v38 }
 0xe9e   :  { %v12095_v34 = vpop.f32.mrb[60].mxu1 }
 0xe9f   :  { %v12097_v46 = vpop.f32.mrb[61].mxu1 }
 0xea2   :  { %v12099_v30 = vpop.f32.mrb[62].mxu1 }
 0xea3   :  { %v5404_v24 = vpop.f32.mrb[63].mxu1  ;;  %v5406_v26 = vsel %vm3652_vm10, %v12099_v30, -inf }
 0xea4   :  { %5407 = vmax.xlane.f32.xlu1 %v5406_v26  ;;  %v5545_v24 = vld [vmem:[#allocation16 + $0x108] sm:$0xff] }
 0xea5   :  { %v5549_v26 = vld [vmem:[#allocation16 + $0x128] sm:$0xff]  ;;  %v9668_v13 = vpack.c.bf16 %v5545_v24, %v5542_v6  ;;  %v5578_v6 = vld [vmem:[#allocation16 + $0x210] sm:$0xff] }
 0xea6   :  { %v9670_v3 = vpack.c.bf16 %v5552_v54, %v5549_v26  ;;  %v5581_v24 = vld [vmem:[#allocation16 + $0x228] sm:$0xff]  ;;  %v5588_v54 = vld [vmem:[#allocation16 + $0x260] sm:$0xff] }
 0xea7   :  { %v5585_v26 = vld [vmem:[#allocation16 + $0x248] sm:$0xff] }
 0xeb5   :  { %5423 = vrot.lane.b32.xlu1 %v11875_v10, %s11070_s6  ;;  %v9654_v10 = vpack.c.bf16 %v5528_v21, %v5525_v35  ;;  %v5561_v35 = vld [vmem:[#allocation16 + $0x188] sm:$0xff]  ;;  %v5564_v21 = vld [vmem:[#allocation16 + $0x1a0] sm:$0xff] }
 0xeb7   :  { %9655 = vmatprep.subr.bf16.mxu0 %v9654_v10  ;;  %v9678_v10 = vpack.c.bf16 %v5564_v21, %v5561_v35  ;;  %v9700_v35 = vpack.c.bf16 %v5593_v11, %v5590_v53  ;;  %v5523_v53 = vld [vmem:[#allocation16 + $0x58] sm:$0xff]  ;;  %v5574_v11 = vld [vmem:[#allocation16 + $0x1f0] sm:$0xff] }
 0xeb9   :  { %5419 = vrot.lane.b32.xlu1 %v11802_v15, %s11070_s6  ;;  %v5527_v15 = vld [vmem:[#allocation16 + $0x78] sm:$0xff] }
 0xeba   :  { %v9656_v1 = vpack.c.bf16 %v5527_v15, %v5524_v45  ;;  %v5560_v45 = vld [vmem:[#allocation16 + $0x180] sm:$0xff]  ;;  %v5563_v15 = vld [vmem:[#allocation16 + $0x198] sm:$0xff] }
 0xebc   :  { %9657 = vmatpush1.bf16.msra.mxu0 %v9656_v1  ;;  %v9680_v1 = vpack.c.bf16 %v5563_v15, %v5560_v45 }
 0xebd   :  { %9659 = vmatprep.subr.bf16.mxu0 %v9658_v60  ;;  %v9682_v60 = vpack.c.bf16 %v5570_v19, %v5567_v55  ;;  %v5597_v55 = vld [vmem:[#allocation16 + $0x2a8] sm:$0xff]  ;;  %v5600_v19 = vld [vmem:[#allocation16 + $0x2c0] sm:$0xff] }
 0xec0   :  { %9661 = vmatpush1.bf16.msra.mxu0 %v9660_v20  ;;  %v9684_v20 = vpack.c.bf16 %v5569_v59, %v5566_v56  ;;  %v5599_v56 = vld [vmem:[#allocation16 + $0x2b8] sm:$0xff] }
 0xec1   :  { %9663 = vmatprep.subr.bf16.mxu0 %v9662_v9  ;;  %v9686_v9 = vpack.c.bf16 %v5576_v27, %v5573_v2  ;;  %v5603_v2 = vld [vmem:[#allocation16 + $0x2d8] sm:$0xff]  ;;  %v5606_v27 = vld [vmem:[#allocation16 + $0x2f0] sm:$0xff] }
 0xec4   :  { %9665 = vmatpush1.bf16.msra.mxu0 %v9664_v63  ;;  %v9688_v63 = vpack.c.bf16 %v5575_v48, %v5572_v8 }
 0xec5   :  { %9667 = vmatprep.subr.bf16.mxu0 %v9666_v5  ;;  %v9690_v5 = vpack.c.bf16 %v5582_v41, %v5579_v18  ;;  %v5562_v41 = vld [vmem:[#allocation16 + $0x190] sm:$0xff] }
 0xec8   :  { %9669 = vmatpush1.bf16.msra.mxu0 %v9668_v13  ;;  %v9692_v13 = vpack.c.bf16 %v5581_v24, %v5578_v6 }
 0xec9   :  { %9671 = vmatprep.subr.bf16.mxu0 %v9670_v3  ;;  %v9694_v3 = vpack.c.bf16 %v5588_v54, %v5585_v26 }
 0xecc   :  { %9673 = vmatpush1.bf16.msra.mxu0 %v9672_v33  ;;  %v9696_v33 = vpack.c.bf16 %v5587_v23, %v5584_v4  ;;  %v5571_v4 = vld [vmem:[#allocation16 + $0x1d8] sm:$0xff] }
 0xecd   :  { %9675 = vmatprep.subr.bf16.mxu0 %v9674_v7  ;;  %v9698_v7 = vpack.c.bf16 %v5594_v0, %v5591_v43 }
 0xed0   :  { %9677 = vmatpush1.bf16.msra.mxu0 %v9676_v37 }
 0xed1   :  { %9679 = vmatprep.subr.bf16.mxu0 %v9678_v10 }
 0xed4   :  { %9681 = vmatpush1.bf16.msra.mxu0 %v9680_v1  ;;  %v9702_v1 = vpack.c.bf16 %v5600_v19, %v5597_v55  ;;  %v5583_v55 = vld [vmem:[#allocation16 + $0x238] sm:$0xff] }
 0xed5   :  { %9683 = vmatprep.subr.bf16.mxu0 %v9682_v60  ;;  %v5596_v60 = vld [vmem:[#allocation16 + $0x2a0] sm:$0xff] }
 0xed6   :  { %v9704_v59 = vpack.c.bf16 %v5599_v56, %v5596_v60  ;;  %v5535_v60 = vld [vmem:[#allocation16 + $0xb8] sm:$0xff]  ;;  %v5586_v56 = vld [vmem:[#allocation16 + $0x250] sm:$0xff] }
 0xed8   :  { %9685 = vmatpush1.bf16.msra.mxu0 %v9684_v20  ;;  %v5602_v20 = vld [vmem:[#allocation16 + $0x2d0] sm:$0xff] }
 0xed9   :  { %9687 = vmatprep.subr.bf16.mxu0 %v9686_v9  ;;  %v5605_v9 = vld [vmem:[#allocation16 + $0x2e8] sm:$0xff] }
 0xeda   :  { %v9708_v8 = vpack.c.bf16 %v5605_v9, %v5602_v20  ;;  %v5541_v20 = vld [vmem:[#allocation16 + $0xe8] sm:$0xff]  ;;  %v5592_v9 = vld [vmem:[#allocation16 + $0x280] sm:$0xff] }
 0xedc   :  { %9689 = vmatpush1.bf16.msra.mxu0 %v9688_v63 }
 0xedd   :  { %9691 = vmatprep.subr.bf16.mxu0 %v9690_v5 }
 0xee0   :  { %9693 = vmatpush1.bf16.msra.mxu0 %v9692_v13  ;;  %v5517_v13 = vld [vmem:[#allocation16 + $0x28] sm:$0xff] }
 0xee1   :  { %9695 = vmatprep.subr.bf16.mxu0 %v9694_v3  ;;  %v5568_v3 = vld [vmem:[#allocation16 + $0x1c0] sm:$0xff] }
 0xee4   :  { %9697 = vmatpush1.bf16.msra.mxu0 %v9696_v33  ;;  %v9728_v33 = vpack.c.bf16 %v5571_v4, %v5568_v3 }
 0xee5   :  { %9699 = vmatprep.subr.bf16.mxu0 %v9698_v7  ;;  %v5520_v7 = vld [vmem:[#allocation16 + $0x40] sm:$0xff] }
 0xee8   :  { %9701 = vmatpush1.bf16.msra.mxu0 %v9700_v35  ;;  %v5577_v35 = vld [vmem:[#allocation16 + $0x208] sm:$0xff] }
 0xee9   :  { %9703 = vmatprep.subr.bf16.mxu0 %v9702_v1  ;;  %v5532_v1 = vld [vmem:[#allocation16 + $0xa0] sm:$0xff] }
 0xeec   :  { %9705 = vmatpush1.bf16.msra.mxu0 %v9704_v59  ;;  %v5589_v59 = vld [vmem:[#allocation16 + $0x268] sm:$0xff] }
 0xf31   :  { %v5408_v21 = vpop.xlane.xlu1 %5407 }
 0xf32   :  { %v5409_v37 = vsub.f32 %v12099_v30, %v5408_v21  ;;  %v9706_v30 = vpack.c.bf16 %v5606_v27, %v5603_v2  ;;  %v9730_v21 = vpack.c.bf16 %v5523_v53, %v5520_v7  ;;  %v9738_v2 = vpack.c.bf16 %v5535_v60, %v5532_v1  ;;  %v5612_v7 = vld [vmem:[#allocation16 + $0x320] sm:$0xff]  ;;  %v5610_v53 = vld [vmem:[#allocation16 + $0x310] sm:$0xff]  ;;  %v5619_v1 = vld [vmem:[#allocation16 + $0x358] sm:$0xff] }
 0xf33   :  { %v9740_v27 = vpack.c.bf16 %v5589_v59, %v5586_v56  ;;  %v5614_v60 = vld [vmem:[#allocation16 + $0x330] sm:$0xff]  ;;  %v5617_v56 = vld [vmem:[#allocation16 + $0x348] sm:$0xff] }
 0xf34   :  { %v5410_v10 = vmul.f32 1.442695, %v5409_v37  ;;  %9707 = vmatprep.subr.bf16.mxu0 %v9706_v30  ;;  %v5526_v37 = vld [vmem:[#allocation16 + $0x70] sm:$0xff]  ;;  %v9716_v59 = vpack.c.bf16 %v5617_v56, %v5614_v60  ;;  %v6082_v60 = vld [vmem:[#allocation20 + $0x40] sm:$0xff] }
 0xf35   :  { %9709 = vmatpush1.bf16.msra.mxu0 %v9708_v8  ;;  %v5424_v48 = vpop.permute.xlu1 %5423  ;;  %v5538_v30 = vld [vmem:[#allocation16 + $0xd0] sm:$0xff]  ;;  %v5595_v8 = vld [vmem:[#allocation16 + $0x298] sm:$0xff] }
 0xf36   :  { %10503 = vpow2.f32 %v5410_v10  ;;  %v5529_v10 = vld [vmem:[#allocation16 + $0x88] sm:$0xff]  ;;  %v12150_v56 = vld [vmem:[#allocation5 + $0x6] sm:$0x7] }
 0xf37   :  { %v9734_v19 = vpack.c.bf16 %v5529_v10, %v5526_v37 }
 0xf39   :  { %v5420_v63 = vpop.permute.xlu1 %5419 }
 0xf40   :  { %v10504_v45 = vpop.eup %10503 }
 0xf41   :  { %v5412_v15 = vsel %vm3652_vm10, %v10504_v45, 0.0 }
 0xf42   :  { %5413 = vadd.xlane.f32.xlu0 %v5412_v15  ;;  %v5580_v15 = vld [vmem:[#allocation16 + $0x220] sm:$0xff] }
 0xf58   :  { %5421 = vrot.lane.b32.xlu0 %v11872_v52, %s11070_s6  ;;  %v5565_v52 = vld [vmem:[#allocation16 + $0x1a8] sm:$0xff] }
 0xf59   :  { %v9724_v6 = vpack.c.bf16 %v5565_v52, %v5562_v41  ;;  %v5544_v41 = vld [vmem:[#allocation16 + $0x100] sm:$0xff]  ;;  %v5547_v52 = vld [vmem:[#allocation16 + $0x118] sm:$0xff] }
 0xf5c   :  { %5133 = vrot.lane.b32.xlu0 %v12075_v14, %s11071_s12  ;;  %v5514_v14 = vld [vmem:[#allocation16 + $0x10] sm:$0xff] }
 0xf5d   :  { %v9726_v43 = vpack.c.bf16 %v5517_v13, %v5514_v14  ;;  %v5553_v14 = vld [vmem:[#allocation16 + $0x148] sm:$0xff]  ;;  %v5604_v13 = vld [vmem:[#allocation16 + $0x2e0] sm:$0xff] }
 0xf60   :  { %5135 = vrot.lane.b32.xlu0 %v12077_v31, %s11071_s12 }
 0xfcf   :  { %v5414_v18 = vpop.xlane.xlu0 %5413 }
 0xfd0   :  { %10505 = vrcp.f32 %v5414_v18  ;;  %v9744_v18 = vpack.c.bf16 %v5595_v8, %v5592_v9  ;;  %v5625_v9 = vld [vmem:[#allocation16 + $0x388] sm:$0xf]  ;;  %v5620_v8 = vld [vmem:[#allocation16 + $0x360] sm:$0xff] }
 0xfd3   :  { %v5422_v5 = vpop.permute.xlu0 %5421 }
 0xfd4   :  { %v5425_v24 = vsel %vm3858_vm11, %v5420_v63, %v5422_v5  ;;  %v5426_v26 = vsel %vm3858_vm11, %v5422_v5, %v5424_v48  ;;  %v9742_v48 = vpack.c.bf16 %v5541_v20, %v5538_v30  ;;  %v5598_v63 = vld [vmem:[#allocation16 + $0x2b0] sm:$0xff]  ;;  %v5601_v5 = vld [vmem:[#allocation16 + $0x2c8] sm:$0xff] }
 0xfd5   :  { %5432 = vmatprep.subr.mxu1 %v5426_v26  ;;  %v5550_v26 = vld [vmem:[#allocation16 + $0x130] sm:$0xff] }
 0xfd6   :  { %5433 = vmatpush1.msra.mxu1 %v5425_v24  ;;  %v9748_v24 = vpack.c.bf16 %v5601_v5, %v5598_v63  ;;  %v9750_v3 = vpack.c.bf16 %v5553_v14, %v5550_v26  ;;  %v5622_v30 = vld [vmem:[#allocation16 + $0x370] sm:$0xff]  ;;  %v6078_v63 = vld [vmem:[#allocation20 + $0x20] sm:$0xff] }
 0xfd7   :  { %v12117_v54 = vpop.permute.xlu0 %5133  ;;  %9725 = vmatprep.subr.bf16.mxu1 %v9724_v6  ;;  %v9746_v6 = vpack.c.bf16 %v5547_v52, %v5544_v41  ;;  %v6075_v52 = vld [vmem:[#allocation20 + $0x8] sm:$0xff]  ;;  %v6124_v5 = vld [vmem:[#allocation20 + $0x190] sm:$0xff] }
 0xfd8   :  { %v5139_v31 = vsel %vm3576_vm5, %v12049_v57, %v12117_v54  ;;  %v9732_v57 = vpack.c.bf16 %v5577_v35, %v5574_v11  ;;  %v5613_v35 = vld [vmem:[#allocation16 + $0x328] sm:$0xff] }
 0xfd9   :  { %5720 = vmatprep.mubr.f32.mxu0 %v5139_v31  ;;  %v9756_v37 = vpack.c.bf16 %v5613_v35, %v5610_v53  ;;  %v6076_v53 = vld [vmem:[#allocation20 + $0x10] sm:$0xff]  ;;  %v6081_v35 = vld [vmem:[#allocation20 + $0x38] sm:$0xff] }
 0xfda   :  { %v10506_v23 = vpop.eup %10505  ;;  %5721 = vmatmul.mubr.f32.vlgmr.msra.gmra.mrb[48].mxu0 %v12047_v61 }
 0xfdb   :  { %v5416_v0 = vmul.f32 %v10506_v23, %v10504_v45  ;;  %v9736_v45 = vpack.c.bf16 %v5583_v55, %v5580_v15  ;;  %v5556_v23 = vld [vmem:[#allocation16 + $0x160] sm:$0xff]  ;;  %v5615_v15 = vld [vmem:[#allocation16 + $0x338] sm:$0xff]  ;;  %v5618_v55 = vld [vmem:[#allocation16 + $0x350] sm:$0xff] }
 0xfdd   :  { %8294 = vmatmul.mubr.msk.f32.vlgmr.msra.gmra.mrb[64].mxu1 %vm3652_vm10, %v5416_v0 }
 0xfde   :  { %9727 = vmatpush3.bf16.msra.mxu1 %v9726_v43  ;;  %5874 = vmatprep.mubr.f32.mxu1 %v5139_v31  ;;  %v5607_v31 = vld [vmem:[#allocation16 + $0x2f8] sm:$0xff] }
 0xfdf   :  { %9729 = vmatprep.subr.bf16.mxu1 %v9728_v33  ;;  %v9752_v4 = vpack.c.bf16 %v5607_v31, %v5604_v13  ;;  %v5559_v43 = vld [vmem:[#allocation16 + $0x178] sm:$0xff]  ;;  %v5609_v33 = vld [vmem:[#allocation16 + $0x308] sm:$0xff] }
 0xfe0   :  { %v9754_v0 = vpack.c.bf16 %v5559_v43, %v5556_v23  ;;  %v9710_v11 = vpack.c.bf16 %v5612_v7, %v5609_v33  ;;  %v5136_v23 = vpop.permute.xlu0 %5135  ;;  %v6077_v7 = vld [vmem:[#allocation20 + $0x18] sm:$0xff] }
 0xfe2   :  { %9731 = vmatpush3.bf16.msra.mxu1 %v9730_v21  ;;  %v5608_v21 = vld [vmem:[#allocation16 + $0x300] sm:$0xff]  ;;  %9711 = vmatprep.subr.bf16.mxu0 %v9710_v11  ;;  %v6079_v11 = vld [vmem:[#allocation20 + $0x28] sm:$0xff] }
 0xfe3   :  { %9733 = vmatprep.subr.bf16.mxu1 %v9732_v57  ;;  %v5611_v57 = vld [vmem:[#allocation16 + $0x318] sm:$0xff] }
 0xfe4   :  { %v9712_v10 = vpack.c.bf16 %v5611_v57, %v5608_v21  ;;  %v12141_v21 = vrot.slane %v12012_v17, %v11528_v49  ;;  %v5137_v57 = vsel %vm3576_vm5, %v12117_v54, %v5136_v23  ;;  %v6085_v54 = vld [vmem:[#allocation20 + $0x58] sm:$0xff]  ;;  %v6095_v23 = vld [vmem:[#allocation20 + $0xa8] sm:$0xff] }
 0xfe6   :  { %9735 = vmatpush3.bf16.msra.mxu1 %v9734_v19  ;;  %v5616_v19 = vld [vmem:[#allocation16 + $0x340] sm:$0xff]  ;;  %9713 = vmatpush1.bf16.msra.mxu0 %v9712_v10 }
 0xfe7   :  { %9737 = vmatprep.subr.bf16.mxu1 %v9736_v45  ;;  %v9714_v45 = vpack.c.bf16 %v5618_v55, %v5615_v15  ;;  %v6130_v10 = vld [vmem:[#allocation20 + $0x1c0] sm:$0xff] }
 0xfe9   :  { %9715 = vmatprep.subr.bf16.mxu0 %v9714_v45  ;;  %v6080_v45 = vld [vmem:[#allocation20 + $0x30] sm:$0xff] }
 0xfea   :  { %9739 = vmatpush3.bf16.msra.mxu1 %v9738_v2  ;;  %9717 = vmatpush1.bf16.msra.mxu0 %v9716_v59  ;;  %v5621_v2 = vld [vmem:[#allocation16 + $0x368] sm:$0xff] }
 0xfeb   :  { %9741 = vmatprep.subr.bf16.mxu1 %v9740_v27  ;;  %v5624_v27 = vld [vmem:[#allocation16 + $0x380] sm:$0xf]  ;;  %v6087_v59 = vld [vmem:[#allocation20 + $0x68] sm:$0xff] }
 0xfec   :  { %v9718_v20 = vpack.c.bf16 %v5624_v27, %v5621_v2  ;;  %v6090_v2 = vld [vmem:[#allocation20 + $0x80] sm:$0xff]  ;;  %v10303_v27 = vadd.f32 %v12018_v42, %v12141_v21 }
 0xfed   :  { %v9778_v42 = vpack.c.bf16 %v6090_v2, %v6087_v59 }
 0xfee   :  { %9743 = vmatpush3.bf16.msra.mxu1 %v9742_v48  ;;  %v5623_v48 = vld [vmem:[#allocation16 + $0x378] sm:$0xf]  ;;  %9720 = vmatprep.subr.msk.bf16.mxu0 %vm11514_vm3, %v9718_v20  ;;  %v6139_v20 = vld [vmem:[#allocation20 + $0x208] sm:$0xff] }
 0xfef   :  { %9745 = vmatprep.subr.bf16.mxu1 %v9744_v18  ;;  %v9764_v18 = vpack.c.bf16 %v5625_v9, %v5622_v30  ;;  %v9721_v41 = vpack.c.bf16 %v5623_v48, %v5620_v8  ;;  %v6136_v30 = vld [vmem:[#allocation20 + $0x1f0] sm:$0xff]  ;;  %v9854_v8 = vpack.c.bf16 %v6085_v54, %v6082_v60  ;;  %v6086_v48 = vld [vmem:[#allocation20 + $0x60] sm:$0xff]  ;;  %v6105_v60 = vld [vmem:[#allocation20 + $0xf8] sm:$0xff] }
 0xff0   :  { %v6108_v54 = vld [vmem:[#allocation20 + $0x110] sm:$0xff] }
 0xff1   :  { %9723 = vmatpush1.bf16.msk.msra.mxu0 %vm11514_vm3, %v9721_v41  ;;  %v12158_v41 = vrot.slane %v12150_v56, %v11528_v49 }
 0xff2   :  { %9747 = vmatpush3.bf16.msra.mxu1 %v9746_v6  ;;  %v9770_v6 = vpack.c.bf16 %v6078_v63, %v6075_v52  ;;  %v6088_v52 = vld [vmem:[#allocation20 + $0x70] sm:$0xff]  ;;  %v6091_v63 = vld [vmem:[#allocation20 + $0x88] sm:$0xff] }
 0xff3   :  { %9749 = vmatprep.subr.bf16.mxu1 %v9748_v24  ;;  %v6127_v24 = vld [vmem:[#allocation20 + $0x1a8] sm:$0xff] }
 0xff4   :  { %v9848_v26 = vpack.c.bf16 %v6127_v24, %v6124_v5  ;;  %v6093_v5 = vld [vmem:[#allocation20 + $0x98] sm:$0xff]  ;;  %v6096_v24 = vld [vmem:[#allocation20 + $0xb0] sm:$0xff] }
 0xff6   :  { %9751 = vmatpush3.bf16.msra.mxu1 %v9750_v3  ;;  %9849 = vmatprep.subr.bf16.mxu0 %v9848_v26  ;;  %v6142_v26 = vld [vmem:[#allocation20 + $0x220] sm:$0xff] }
 0xff7   :  { %9753 = vmatprep.subr.bf16.mxu1 %v9752_v4 }
 0xffa   :  { %9755 = vmatpush3.bf16.msra.mxu1 %v9754_v0  ;;  %v6074_v0 = vld [vmem:[#allocation20] sm:$0xff] }
 0xffb   :  { %9757 = vmatprep.subr.bf16.mxu1 %v9756_v37  ;;  %v9772_v55 = vpack.c.bf16 %v6077_v7, %v6074_v0  ;;  %v9782_v0 = vpack.c.bf16 %v6096_v24, %v6093_v5  ;;  %v6094_v7 = vld [vmem:[#allocation20 + $0xa0] sm:$0xff] }
 0xffc   :  { %v6110_v24 = vld [vmem:[#allocation20 + $0x120] sm:$0xff] }
 0xffd   :  { %5875 = vmatmul.mubr.f32.vlgmr.msra.gmra.mrb[66].mxu1 %v12047_v61  ;;  %v9760_v61 = vpack.c.bf16 %v5619_v1, %v5616_v19  ;;  %v9850_v19 = vpack.c.bf16 %v6079_v11, %v6076_v53  ;;  %v6083_v1 = vld [vmem:[#allocation20 + $0x48] sm:$0xff]  ;;  %v6097_v53 = vld [vmem:[#allocation20 + $0xb8] sm:$0xff] }
 0xffe   :  { %9759 = vmatpush3.bf16.msra.mxu1 %v9756_v37  ;;  %v6084_v37 = vld [vmem:[#allocation20 + $0x50] sm:$0xff]  ;;  %v9776_v9 = vpack.c.bf16 %v6083_v1, %v6080_v45  ;;  %v6099_v11 = vld [vmem:[#allocation20 + $0xc8] sm:$0xff] }
 0xfff   :  { %9761 = vmatprep.subr.bf16.mxu1 %v9760_v61  ;;  %v6103_v1 = vld [vmem:[#allocation20 + $0xe8] sm:$0xff] }
0x1002   :  { %9763 = vmatpush3.bf16.msra.mxu1 %v9760_v61  ;;  %v9774_v61 = vpack.c.bf16 %v6084_v37, %v6081_v35  ;;  %v6102_v35 = vld [vmem:[#allocation20 + $0xe0] sm:$0xff]  ;;  %v6151_v37 = vld [vmem:[#allocation20 + $0x268] sm:$0xff] }
0x1003   :  { %9766 = vmatprep.subr.msk.bf16.mxu1 %vm11514_vm3, %v9764_v18 }
0x1006   :  { %9769 = vmatpush3.bf16.msk.msra.mxu1 %vm11514_vm3, %v9764_v18  ;;  %v6089_v18 = vld [vmem:[#allocation20 + $0x78] sm:$0xff] }
0x1007   :  { %9771 = vmatprep.subr.bf16.mxu1 %v9770_v6  ;;  %v9856_v6 = vpack.c.bf16 %v6139_v20, %v6136_v30  ;;  %v6107_v30 = vld [vmem:[#allocation20 + $0x108] sm:$0xff]  ;;  %v9790_v20 = vpack.c.bf16 %v6108_v54, %v6105_v60  ;;  %v10587_v60 = vld [vmem:[#allocation14] sm:$0x7] }
0x1008   :  { %v4439_v54 = vrot.slane %v10587_v60, %v11525_v47 }
0x10b0   :  { %v5498_v14 = vpop.f32.mrb[64].mxu1 }
0x10b1   :  { %5505 = vrot.lane.b32.xlu1 %v5498_v14, %s11071_s12  ;;  %v5500_v13 = vpop.f32.mrb[65].mxu1  ;;  %v6145_v14 = vld [vmem:[#allocation20 + $0x238] sm:$0xff] }
0x10b5   :  { %5507 = vrot.lane.b32.xlu1 %v5500_v13, %s11071_s12  ;;  %v9780_v13 = vpack.c.bf16 %v6089_v18, %v6086_v48  ;;  %v6109_v48 = vld [vmem:[#allocation20 + $0x118] sm:$0xff]  ;;  %v6111_v18 = vld [vmem:[#allocation20 + $0x128] sm:$0xff] }
0x10d0   :  { %v8448_v31 = vpop.f32.mrb[66].mxu1 }
0x10d1   :  { %v8449_v3 = vpop.f32.mrb[67].mxu1 }
0x10d2   :  { %v12135_v4 = vadd.f32 %v8449_v3, %v8448_v31  ;;  %v9858_v31 = vpack.c.bf16 %v6091_v63, %v6088_v52  ;;  %v6092_v3 = vld [vmem:[#allocation20 + $0x90] sm:$0xff]  ;;  %v6163_v63 = vld [vmem:[#allocation20 + $0x2c8] sm:$0xff] }
0x10d3   :  { %v6160_v52 = vld [vmem:[#allocation20 + $0x2b0] sm:$0xff] }
0x1123   :  { %v5506_v43 = vpop.permute.xlu1 %5505 }
0x1124   :  { %v5511_v33 = vsel %vm3576_vm5, %v12097_v46, %v5506_v43  ;;  %v6133_v46 = vld [vmem:[#allocation20 + $0x1d8] sm:$0xff] }
0x1125   :  { %5726 = vmatprep.mubr.f32.mxu0 %v5511_v33  ;;  %5879 = vmatprep.mubr.f32.mxu1 %v5511_v33  ;;  %v9860_v33 = vpack.c.bf16 %v6145_v14, %v6142_v26  ;;  %v6113_v26 = vld [vmem:[#allocation20 + $0x138] sm:$0xff] }
0x1126   :  { %5727 = vmatmul.mubr.f32.gmra.mrb[50].mxu0 %v12095_v34  ;;  %5880 = vmatmul.mubr.f32.gmra.mrb[68].mxu1 %v12095_v34  ;;  %v9852_v34 = vpack.c.bf16 %v6133_v46, %v6130_v10  ;;  %v9784_v10 = vpack.c.bf16 %v6095_v23, %v6092_v3  ;;  %v9862_v46 = vpack.c.bf16 %v6097_v53, %v6094_v7  ;;  %v6115_v3 = vld [vmem:[#allocation20 + $0x148] sm:$0xff]  ;;  %v6117_v23 = vld [vmem:[#allocation20 + $0x158] sm:$0xff] }
0x1127   :  { %8739 = vmatprep.mubr.msk.f32.mxu1 %vm1925_vm4, %v5137_v57  ;;  %v5508_v15 = vpop.permute.xlu1 %5507  ;;  %5797 = vmatprep.mubr.f32.mxu0 %v12827_v38  ;;  %v9796_v7 = vpack.c.bf16 %v6113_v26, %v6110_v24  ;;  %v6135_v24 = vld [vmem:[#allocation20 + $0x1e8] sm:$0xff]  ;;  %v6138_v26 = vld [vmem:[#allocation20 + $0x200] sm:$0xff] }
0x1128   :  { %v5509_v17 = vsel %vm3576_vm5, %v5506_v43, %v5508_v15  ;;  %v809_v43 = vadd.f32 %v11540_v29, %v12158_v41  ;;  %v6098_v15 = vld [vmem:[#allocation20 + $0xc0] sm:$0xff]  ;;  %v9786_v29 = vpack.c.bf16 %v6102_v35, %v6099_v11  ;;  %v6116_v11 = vld [vmem:[#allocation20 + $0x150] sm:$0xff]  ;;  %v6119_v35 = vld [vmem:[#allocation20 + $0x168] sm:$0xff] }
0x112a   :  { %8297 = vmatmul.mubr.msk.f32.vlgmr.msra.gmra.mrb[48].mxu0 %vm1925_vm4, %v5137_v57  ;;  %8740 = vmatmul.mubr.msk.f32.vlgmr.msra.gmra.mrb[70].mxu1 %vm1925_vm4, %v5509_v17  ;;  %v6148_v57 = vld [vmem:[#allocation20 + $0x250] sm:$0xff] }
0x112b   :  { %9773 = vmatpush1.bf16.msra.mxu1 %v9772_v55  ;;  %9851 = vmatpush3.bf16.msra.mxu0 %v9850_v19  ;;  %v6101_v55 = vld [vmem:[#allocation20 + $0xd8] sm:$0xff]  ;;  %v8203_v19 = vmul.f32 -1.442695, %v809_v43  ;;  %v9864_v45 = vpack.c.bf16 %v6151_v37, %v6148_v57  ;;  %v6120_v43 = vld [vmem:[#allocation20 + $0x170] sm:$0xff] }
0x112c   :  { %6267 = vmatprep.mubr.f32.mxu1 %v10303_v27  ;;  %5803 = vmatprep.mubr.f32.mxu0 %v12827_v38  ;;  %v9788_v59 = vpack.c.bf16 %v6101_v55, %v6098_v15  ;;  %v9798_v57 = vpack.c.bf16 %v6120_v43, %v6117_v23  ;;  %v6123_v15 = vld [vmem:[#allocation20 + $0x188] sm:$0xff]  ;;  %v6126_v55 = vld [vmem:[#allocation20 + $0x1a0] sm:$0xff]  ;;  %v6137_v23 = vld [vmem:[#allocation20 + $0x1f8] sm:$0xff] }
0x112d   :  { %9775 = vmatprep.subr.bf16.mxu1 %v9774_v61  ;;  %9853 = vmatprep.subr.bf16.mxu0 %v9852_v34  ;;  %v6154_v61 = vld [vmem:[#allocation20 + $0x280] sm:$0xff]  ;;  %v6157_v34 = vld [vmem:[#allocation20 + $0x298] sm:$0xff]  ;;  %10507 = vpow2.f32 %v8203_v19  ;;  %v6172_v19 = vld [vmem:[#allocation20 + $0x310] sm:$0xff] }
0x112e   :  { %8298 = vmatmul.mubr.msk.f32.gmra.mrb[50].mxu0 %vm1925_vm4, %v5509_v17  ;;  %v6100_v17 = vld [vmem:[#allocation20 + $0xd0] sm:$0xff] }
0x112f   :  { %9777 = vmatpush1.bf16.msra.mxu1 %v9776_v9  ;;  %9855 = vmatpush3.bf16.msra.mxu0 %v9854_v8  ;;  %v9866_v2 = vpack.c.bf16 %v6103_v1, %v6100_v17  ;;  %v9868_v9 = vpack.c.bf16 %v6157_v34, %v6154_v61  ;;  %v6106_v8 = vld [vmem:[#allocation20 + $0x100] sm:$0xff]  ;;  %v9800_v17 = vpack.c.bf16 %v6119_v35, %v6116_v11 }
0x1130   :  { %6421 = vmatprep.mubr.f32.mxu0 %v10303_v27  ;;  %9779 = vmatprep.subr.bf16.mxu1 %v9778_v42  ;;  %v6104_v27 = vld [vmem:[#allocation20 + $0xf0] sm:$0xff]  ;;  %v6114_v42 = vld [vmem:[#allocation20 + $0x140] sm:$0xff]  ;;  %v9802_v61 = vpack.c.bf16 %v6126_v55, %v6123_v15  ;;  %v815_v35 = vadd.f32 %v11547_v28, %v12158_v41  ;;  %v5965_v55 = vld [vmem:[#allocation19 + $0x28] sm:$0xff] }
0x1131   :  { %9857 = vmatprep.subr.bf16.mxu0 %v9856_v6  ;;  %v9792_v5 = vpack.c.bf16 %v6107_v30, %v6104_v27  ;;  %v9870_v6 = vpack.c.bf16 %v6109_v48, %v6106_v8  ;;  %v9794_v14 = vpack.c.bf16 %v6114_v42, %v6111_v18  ;;  %v6129_v30 = vld [vmem:[#allocation20 + $0x1b8] sm:$0xff]  ;;  %v12166_v18 = vadd.f32 %v12016_v51, %v4439_v54  ;;  %v5962_v15 = vld [vmem:[#allocation19 + $0x10] sm:$0xff] }
0x1132   :  { %v6181_v8 = vld [vmem:[#allocation20 + $0x358] sm:$0xff]  ;;  %v728_v51 = vrot.slane %v12150_v56, %v11525_v47 }
0x1133   :  { %9781 = vmatpush1.bf16.msra.mxu1 %v9780_v13  ;;  %9859 = vmatpush3.bf16.msra.mxu0 %v9858_v31  ;;  %v9872_v13 = vpack.c.bf16 %v6163_v63, %v6160_v52  ;;  %v6112_v31 = vld [vmem:[#allocation20 + $0x130] sm:$0xff]  ;;  %v6131_v63 = vld [vmem:[#allocation20 + $0x1c8] sm:$0xff] }
0x1134   :  { %9783 = vmatprep.subr.bf16.mxu1 %v9782_v0  ;;  %9861 = vmatprep.subr.bf16.mxu0 %v9860_v33  ;;  %v6166_v0 = vld [vmem:[#allocation20 + $0x2e0] sm:$0xff]  ;;  %v6169_v33 = vld [vmem:[#allocation20 + $0x2f8] sm:$0xff]  ;;  %v9874_v53 = vpack.c.bf16 %v6115_v3, %v6112_v31  ;;  %v6128_v52 = vld [vmem:[#allocation20 + $0x1b0] sm:$0xff]  ;;  %v12177_v3 = vadd.f32 %v12024_v40, %v4439_v54  ;;  %v807_v11 = vadd.f32 %v11538_v16, %v728_v51  ;;  %v8206_v54 = vmul.f32 -1.442695, %v815_v35 }
0x1135   :  { %v9876_v37 = vpack.c.bf16 %v6169_v33, %v6166_v0  ;;  %v9808_v31 = vpack.c.bf16 %v6131_v63, %v6128_v52  ;;  %v6141_v0 = vld [vmem:[#allocation20 + $0x218] sm:$0xff]  ;;  %v6144_v33 = vld [vmem:[#allocation20 + $0x230] sm:$0xff]  ;;  %v813_v41 = vadd.f32 %v11543_v25, %v728_v51  ;;  %v6022_v52 = vld [vmem:[#allocation19 + $0x1f0] sm:$0xff] }
0x1136   :  { %v8202_v28 = vmul.f32 -1.442695, %v807_v11  ;;  %v6153_v25 = vld [vmem:[#allocation20 + $0x278] sm:$0xff]  ;;  %v6158_v35 = vld [vmem:[#allocation20 + $0x2a0] sm:$0xff] }
0x1137   :  { %9785 = vmatpush1.bf16.msra.mxu1 %v9784_v10  ;;  %9863 = vmatpush3.bf16.msra.mxu0 %v9862_v46  ;;  %v6118_v10 = vld [vmem:[#allocation20 + $0x160] sm:$0xff]  ;;  %v6121_v46 = vld [vmem:[#allocation20 + $0x178] sm:$0xff] }
0x1138   :  { %9787 = vmatprep.subr.bf16.mxu1 %v9786_v29  ;;  %9865 = vmatprep.subr.bf16.mxu0 %v9864_v45  ;;  %v6175_v29 = vld [vmem:[#allocation20 + $0x328] sm:$0xff]  ;;  %v10508_v45 = vpop.eup %10507  ;;  %v9878_v1 = vpack.c.bf16 %v6121_v46, %v6118_v10  ;;  %v736_v46 = vrot.slane %v12150_v56, %v11535_v62  ;;  %v9974_v56 = vpack.c.bf16 %v5965_v55, %v5962_v15  ;;  %v6025_v63 = vld [vmem:[#allocation19 + $0x208] sm:$0xff]  ;;  %v6168_v55 = vld [vmem:[#allocation20 + $0x2f0] sm:$0xff] }
0x1139   :  { %v9880_v34 = vpack.c.bf16 %v6175_v29, %v6172_v19  ;;  %v911_v27 = vadd.f32 1.0, %v10508_v45  ;;  %v6143_v10 = vld [vmem:[#allocation20 + $0x228] sm:$0xff]  ;;  %v6150_v29 = vld [vmem:[#allocation20 + $0x260] sm:$0xff]  ;;  %v6016_v45 = vld [vmem:[#allocation19 + $0x1c0] sm:$0xff] }
0x113a   :  { %v6147_v19 = vld [vmem:[#allocation20 + $0x248] sm:$0xff]  ;;  %v6165_v15 = vld [vmem:[#allocation20 + $0x2d8] sm:$0xff] }
0x113b   :  { %9789 = vmatpush1.bf16.msra.mxu1 %v9788_v59  ;;  %9867 = vmatpush3.bf16.msra.mxu0 %v9866_v2  ;;  %v6122_v59 = vld [vmem:[#allocation20 + $0x180] sm:$0xff]  ;;  %v6125_v2 = vld [vmem:[#allocation20 + $0x198] sm:$0xff]  ;;  %10509 = vrcp.f32 %v911_v27  ;;  %v8218_v27 = vmul.f32 -1.442695, %v11636_v50 }
0x113c   :  { %9791 = vmatprep.subr.bf16.mxu1 %v9790_v20  ;;  %9869 = vmatprep.subr.bf16.mxu0 %v9868_v9  ;;  %v6132_v20 = vld [vmem:[#allocation20 + $0x1d0] sm:$0xff]  ;;  %v6178_v9 = vld [vmem:[#allocation20 + $0x340] sm:$0xff]  ;;  %v9804_v48 = vpack.c.bf16 %v6125_v2, %v6122_v59  ;;  %v884_v2 = vadd.f32 %v11585_v32, %v736_v46  ;;  %10511 = vpow2.f32 %v8202_v28 }
0x113d   :  { %v9806_v42 = vpack.c.bf16 %v6132_v20, %v6129_v30  ;;  %v5968_v59 = vld [vmem:[#allocation19 + $0x40] sm:$0xff]  ;;  %v9818_v30 = vpack.c.bf16 %v6150_v29, %v6147_v19  ;;  %10513 = vpow2.f32 %v8206_v54  ;;  %v6034_v19 = vld [vmem:[#allocation19 + $0x250] sm:$0xff]  ;;  %v6037_v29 = vld [vmem:[#allocation19 + $0x268] sm:$0xff] }
0x113e   :  { %v8204_v51 = vmul.f32 -1.442695, %v884_v2  ;;  %10515 = vpow2.f32 %v8218_v27  ;;  %v5986_v28 = vld [vmem:[#allocation19 + $0xd0] sm:$0xff]  ;;  %v5989_v54 = vld [vmem:[#allocation19 + $0xe8] sm:$0xff]  ;;  %v6043_v2 = vld [vmem:[#allocation19 + $0x298] sm:$0xff] }
0x113f   :  { %9793 = vmatpush1.bf16.msra.mxu1 %v9792_v5  ;;  %9871 = vmatpush3.bf16.msra.mxu0 %v9870_v6  ;;  %v12170_v5 = vadd.f32 %v12026_v44, %v12141_v21  ;;  %v9884_v6 = vpack.c.bf16 %v6181_v8, %v6178_v9  ;;  %v9810_v44 = vpack.c.bf16 %v6138_v26, %v6135_v24  ;;  %v6134_v21 = vld [vmem:[#allocation20 + $0x1e0] sm:$0xff]  ;;  %v5971_v9 = vld [vmem:[#allocation19 + $0x58] sm:$0xff]  ;;  %v6156_v8 = vld [vmem:[#allocation20 + $0x290] sm:$0xff] }
0x1140   :  { %9795 = vmatprep.subr.bf16.mxu1 %v9794_v14  ;;  %9873 = vmatprep.subr.bf16.mxu0 %v9872_v13  ;;  %v6184_v14 = vld [vmem:[#allocation20 + $0x370] sm:$0xff]  ;;  %v6187_v13 = vld [vmem:[#allocation20 + $0x388] sm:$0xf]  ;;  %v9812_v40 = vpack.c.bf16 %v6137_v23, %v6134_v21  ;;  %v9978_v50 = vpack.c.bf16 %v5971_v9, %v5968_v59  ;;  %v9822_v24 = vpack.c.bf16 %v6156_v8, %v6153_v25  ;;  %v6162_v23 = vld [vmem:[#allocation20 + $0x2c0] sm:$0xff] }
0x1141   :  { %v9888_v43 = vpack.c.bf16 %v6187_v13, %v6184_v14  ;;  %v6152_v26 = vld [vmem:[#allocation20 + $0x270] sm:$0xff]  ;;  %v6155_v14 = vld [vmem:[#allocation20 + $0x288] sm:$0xff]  ;;  %v5974_v13 = vld [vmem:[#allocation19 + $0x70] sm:$0xff]  ;;  %v9990_v9 = vpack.c.bf16 %v5989_v54, %v5986_v28 }
0x1142   :  { %v6159_v21 = vld [vmem:[#allocation20 + $0x2a8] sm:$0xff]  ;;  %v6040_v59 = vld [vmem:[#allocation19 + $0x280] sm:$0xff]  ;;  %v6170_v8 = vld [vmem:[#allocation20 + $0x300] sm:$0xff] }
0x1143   :  { %9797 = vmatpush1.bf16.msra.mxu1 %v9796_v7  ;;  %9875 = vmatpush3.bf16.msra.mxu0 %v9874_v53  ;;  %v6010_v7 = vld [vmem:[#allocation19 + $0x190] sm:$0xff]  ;;  %v6013_v53 = vld [vmem:[#allocation19 + $0x1a8] sm:$0xff]  ;;  %v5964_v28 = vld [vmem:[#allocation19 + $0x20] sm:$0xff] }
0x1144   :  { %9799 = vmatprep.subr.bf16.mxu1 %v9798_v57  ;;  %9877 = vmatprep.subr.bf16.mxu0 %v9876_v37  ;;  %v9814_v57 = vpack.c.bf16 %v6144_v33, %v6141_v0  ;;  %v6140_v37 = vld [vmem:[#allocation20 + $0x210] sm:$0xff]  ;;  %v9972_v16 = vpack.c.bf16 %v6013_v53, %v6010_v7  ;;  %v6031_v0 = vld [vmem:[#allocation19 + $0x238] sm:$0xff]  ;;  %v889_v33 = vadd.f32 %v11582_v22, %v736_v46  ;;  %v8221_v7 = vmul.f32 -1.442695, %v11634_v36 }
0x1145   :  { %v9816_v60 = vpack.c.bf16 %v6143_v10, %v6140_v37  ;;  %v9824_v53 = vpack.c.bf16 %v6155_v14, %v6152_v26  ;;  %v5980_v37 = vld [vmem:[#allocation19 + $0xa0] sm:$0xff] }
0x1146   :  { %v8207_v22 = vmul.f32 -1.442695, %v889_v33  ;;  %v6180_v26 = vld [vmem:[#allocation20 + $0x350] sm:$0xff]  ;;  %v6179_v33 = vld [vmem:[#allocation20 + $0x348] sm:$0xff] }
0x1147   :  { %9801 = vmatpush1.bf16.msra.mxu1 %v9800_v17  ;;  %9879 = vmatpush3.bf16.msra.mxu0 %v9878_v1  ;;  %v6019_v17 = vld [vmem:[#allocation19 + $0x1d8] sm:$0xff]  ;;  %v10510_v1 = vpop.eup %10509 }
0x1148   :  { %9803 = vmatprep.subr.bf16.mxu1 %v9802_v61  ;;  %9881 = vmatprep.subr.bf16.mxu0 %v9880_v34  ;;  %v6146_v61 = vld [vmem:[#allocation20 + $0x240] sm:$0xff]  ;;  %v9976_v20 = vpack.c.bf16 %v6019_v17, %v6016_v45  ;;  %v9830_v45 = vpack.c.bf16 %v6168_v55, %v6165_v15  ;;  %v6164_v17 = vld [vmem:[#allocation20 + $0x2d0] sm:$0xff] }
0x114a   :  { %6422 = vmatmul.mubr.f32.vlgmr.msra.gmra.mrb[52].mxu0 %v12166_v18 }
0x114b   :  { %9805 = vmatpush1.bf16.msra.mxu1 %v9804_v48  ;;  %6426 = vmatprep.mubr.f32.mxu0 %v12170_v5  ;;  %v10588_v48 = vld [vmem:[%s12822_s15 + $0x8] sm:$0xff] }
0x114c   :  { %9883 = vmatpush3.bf16.msra.mxu0 %v9880_v34  ;;  %9807 = vmatprep.subr.bf16.mxu1 %v9806_v42  ;;  %v6149_v34 = vld [vmem:[#allocation20 + $0x258] sm:$0xff]  ;;  %v12197_v42 = vmul.f32 %v10588_v48, %v10510_v1  ;;  %v6167_v1 = vld [vmem:[#allocation20 + $0x2e8] sm:$0xff] }
0x114d   :  { %9885 = vmatprep.subr.bf16.mxu0 %v9884_v6  ;;  %v9820_v32 = vpack.c.bf16 %v6149_v34, %v6146_v61  ;;  %v6174_v61 = vld [vmem:[#allocation20 + $0x320] sm:$0xff]  ;;  %v6173_v48 = vld [vmem:[#allocation20 + $0x318] sm:$0xff] }
0x114e   :  { %6427 = vmatmul.mubr.f32.gmra.mrb[54].mxu0 %v12177_v3 }
0x114f   :  { %9809 = vmatpush1.bf16.msra.mxu1 %v9808_v31  ;;  %8754 = vmatprep.mubr.msk.f32.mxu0 %vm1925_vm4, %v12022_v12  ;;  %v9980_v31 = vpack.c.bf16 %v6025_v63, %v6022_v52  ;;  %v5992_v52 = vld [vmem:[#allocation19 + $0x100] sm:$0xff] }
0x1150   :  { %9887 = vmatpush3.bf16.msra.mxu0 %v9884_v6  ;;  %9811 = vmatprep.subr.bf16.mxu1 %v9810_v44  ;;  %v8205_v6 = vmul.f32 -1.442695, %v813_v41  ;;  %v5977_v44 = vld [vmem:[#allocation19 + $0x88] sm:$0xff]  ;;  %v10512_v41 = vpop.eup %10511 }
0x1151   :  { %9890 = vmatprep.subr.msk.bf16.mxu0 %vm11514_vm3, %v9888_v43  ;;  %v9982_v11 = vpack.c.bf16 %v5977_v44, %v5974_v13  ;;  %v10514_v34 = vpop.eup %10513  ;;  %v6046_v13 = vld [vmem:[#allocation19 + $0x2b0] sm:$0xff]  ;;  %v9836_v44 = vpack.c.bf16 %v6173_v48, %v6170_v8  ;;  %v6067_v8 = vld [vmem:[#allocation19 + $0x358] sm:$0xff] }
0x1152   :  { %10517 = vpow2.f32 %v8205_v6  ;;  %v10516_v27 = vpop.eup %10515  ;;  %v914_v6 = vadd.f32 1.0, %v10514_v34  ;;  %v5960_v34 = vld [vmem:[#allocation19] sm:$0xff] }
0x1153   :  { %9813 = vmatpush1.bf16.msra.mxu1 %v9812_v40  ;;  %v9826_v40 = vpack.c.bf16 %v6162_v23, %v6159_v21  ;;  %10519 = vpow2.f32 %v8204_v51  ;;  %v1320_v14 = vadd.f32 1.0, %v10516_v27  ;;  %v6049_v51 = vld [vmem:[#allocation19 + $0x2c8] sm:$0xff] }
0x1154   :  { %9893 = vmatpush3.bf16.msk.msra.mxu0 %vm11514_vm3, %v9888_v43  ;;  %9815 = vmatprep.subr.bf16.mxu1 %v9814_v57  ;;  %v6028_v43 = vld [vmem:[#allocation19 + $0x220] sm:$0xff]  ;;  %v6161_v57 = vld [vmem:[#allocation20 + $0x2b8] sm:$0xff]  ;;  %10521 = vpow2.f32 %v8221_v7  ;;  %v5998_v7 = vld [vmem:[#allocation19 + $0x130] sm:$0xff] }
0x1155   :  { %9973 = vmatprep.subr.bf16.mxu0 %v9972_v16  ;;  %v9984_v10 = vpack.c.bf16 %v6031_v0, %v6028_v43  ;;  %v5983_v16 = vld [vmem:[#allocation19 + $0xb8] sm:$0xff]  ;;  %v9828_v36 = vpack.c.bf16 %v6161_v57, %v6158_v35  ;;  %10523 = vpow2.f32 %v8207_v22  ;;  %v6176_v0 = vld [vmem:[#allocation20 + $0x330] sm:$0xff]  ;;  %v6186_v57 = vld [vmem:[#allocation20 + $0x380] sm:$0xf] }
0x1156   :  { %v9986_v46 = vpack.c.bf16 %v5983_v16, %v5980_v37  ;;  %v6183_v35 = vld [vmem:[#allocation20 + $0x368] sm:$0xff]  ;;  %v9840_v15 = vpack.c.bf16 %v6179_v33, %v6176_v0  ;;  %v6182_v22 = vld [vmem:[#allocation20 + $0x360] sm:$0xff]  ;;  %v6073_v0 = vld [vmem:[#allocation19 + $0x388] sm:$0xf] }
0x1157   :  { %8755 = vmatmul.mubr.msk.f32.vlgmr.msra.gmra.mrb[56].mxu0 %vm1925_vm4, %v12020_v58  ;;  %9817 = vmatpush1.bf16.msra.mxu1 %v9816_v60  ;;  %v9988_v60 = vpack.c.bf16 %v6037_v29, %v6034_v19  ;;  %v6055_v16 = vld [vmem:[#allocation19 + $0x2f8] sm:$0xff]  ;;  %v9842_v29 = vpack.c.bf16 %v6186_v57, %v6183_v35  ;;  %v5982_v57 = vld [vmem:[#allocation19 + $0xb0] sm:$0xff] }
0x1158   :  { %9975 = vmatpush3.bf16.msra.mxu0 %v9974_v56  ;;  %6740 = vmatprep.mubr.f32.mxu0 %v12197_v42  ;;  %v6171_v56 = vld [vmem:[#allocation20 + $0x308] sm:$0xff] }
0x1159   :  { %9819 = vmatprep.subr.bf16.mxu1 %v9818_v30  ;;  %9977 = vmatprep.subr.bf16.mxu0 %v9976_v20  ;;  %v9832_v30 = vpack.c.bf16 %v6167_v1, %v6164_v17  ;;  %v910_v20 = vadd.f32 1.0, %v10512_v41  ;;  %v9834_v25 = vpack.c.bf16 %v6174_v61, %v6171_v56  ;;  %v6007_v1 = vld [vmem:[#allocation19 + $0x178] sm:$0xff]  ;;  %v6061_v41 = vld [vmem:[#allocation19 + $0x328] sm:$0xff] }
0x115a   :  { %v5979_v35 = vld [vmem:[#allocation19 + $0x98] sm:$0xff] }
0x115b   :  { %9821 = vmatpush1.bf16.msra.mxu1 %v9820_v32  ;;  %v9992_v32 = vpack.c.bf16 %v6043_v2, %v6040_v59  ;;  %10525 = vrcp.f32 %v910_v20  ;;  %v5963_v59 = vld [vmem:[#allocation19 + $0x18] sm:$0xff] }
0x115c   :  { %9979 = vmatpush3.bf16.msra.mxu0 %v9978_v50  ;;  %9823 = vmatprep.subr.bf16.mxu1 %v9822_v24  ;;  %v10518_v63 = vpop.eup %10517  ;;  %v5995_v50 = vld [vmem:[#allocation19 + $0x118] sm:$0xff]  ;;  %v6177_v24 = vld [vmem:[#allocation20 + $0x338] sm:$0xff]  ;;  %10527 = vrcp.f32 %v914_v6 }
0x115d   :  { %9981 = vmatprep.subr.bf16.mxu0 %v9980_v31  ;;  %v10520_v31 = vpop.eup %10519  ;;  %v913_v21 = vadd.f32 1.0, %v10518_v63  ;;  %v9994_v23 = vpack.c.bf16 %v5995_v50, %v5992_v52  ;;  %v9838_v43 = vpack.c.bf16 %v6180_v26, %v6177_v24  ;;  %10529 = vrcp.f32 %v1320_v14  ;;  %v5966_v52 = vld [vmem:[#allocation19 + $0x30] sm:$0xff]  ;;  %v5969_v63 = vld [vmem:[#allocation19 + $0x48] sm:$0xff] }
0x115e   :  { %v912_v37 = vadd.f32 1.0, %v10520_v31  ;;  %v10589_v6 = vld [vmem:[%s12822_s15] sm:$0xff]  ;;  %v10590_v26 = vld [vmem:[%s12822_s15 + $0x58] sm:$0xff]  ;;  %v5976_v31 = vld [vmem:[#allocation19 + $0x80] sm:$0xff] }
0x115f   :  { %9825 = vmatpush1.bf16.msra.mxu1 %v9824_v53  ;;  %v10522_v53 = vpop.eup %10521  ;;  %10531 = vrcp.f32 %v913_v21  ;;  %v12828_v21 = vld [vmem:[#allocation53_spill] sm:$0xff] }
0x1160   :  { %9983 = vmatpush3.bf16.msra.mxu0 %v9982_v11  ;;  %9827 = vmatprep.subr.bf16.mxu1 %v9826_v40  ;;  %v9996_v11 = vpack.c.bf16 %v6049_v51, %v6046_v13  ;;  %v6001_v40 = vld [vmem:[#allocation19 + $0x148] sm:$0xff]  ;;  %v1323_v55 = vadd.f32 1.0, %v10522_v53  ;;  %10533 = vrcp.f32 %v912_v37 }
0x1161   :  { %9985 = vmatprep.subr.bf16.mxu0 %v9984_v10  ;;  %v6052_v10 = vld [vmem:[#allocation19 + $0x2e0] sm:$0xff]  ;;  %v9998_v19 = vpack.c.bf16 %v6001_v40, %v5998_v7  ;;  %v5973_v51 = vld [vmem:[#allocation19 + $0x68] sm:$0xff]  ;;  %v5975_v7 = vld [vmem:[#allocation19 + $0x78] sm:$0xff] }
0x1162   :  { %v10000_v17 = vpack.c.bf16 %v6055_v16, %v6052_v10  ;;  %10535 = vrcp.f32 %v1323_v55  ;;  %v10591_v53 = vld [vmem:[%s12822_s15 + $0x50] sm:$0xff]  ;;  %v9902_v40 = vpack.c.bf16 %v5976_v31, %v5973_v51  ;;  %v6964_v16 = vld [vmem:[#allocation25 + $0x8] sm:$0xff] }
0x1163   :  { %9829 = vmatpush1.bf16.msra.mxu1 %v9828_v36  ;;  %v6185_v36 = vld [vmem:[#allocation20 + $0x378] sm:$0xf]  ;;  %v6978_v51 = vld [vmem:[#allocation25 + $0x78] sm:$0xff] }
0x1164   :  { %9987 = vmatpush3.bf16.msra.mxu0 %v9986_v46  ;;  %9831 = vmatprep.subr.bf16.mxu1 %v9830_v45  ;;  %v6004_v46 = vld [vmem:[#allocation19 + $0x160] sm:$0xff]  ;;  %v10524_v45 = vpop.eup %10523  ;;  %v6982_v31 = vld [vmem:[#allocation25 + $0x98] sm:$0xff] }
0x1165   :  { %9989 = vmatprep.subr.bf16.mxu0 %v9988_v60  ;;  %v9845_v60 = vpack.c.bf16 %v6185_v36, %v6182_v22  ;;  %v915_v54 = vadd.f32 1.0, %v10524_v45  ;;  %v10002_v56 = vpack.c.bf16 %v6007_v1, %v6004_v46  ;;  %v10526_v27 = vpop.eup %10525  ;;  %v5978_v22 = vld [vmem:[#allocation19 + $0x90] sm:$0xff]  ;;  %v5981_v36 = vld [vmem:[#allocation19 + $0xa8] sm:$0xff] }
0x1166   :  { %v10528_v20 = vpop.eup %10527  ;;  %v5985_v46 = vld [vmem:[#allocation19 + $0xc8] sm:$0xff] }
0x1167   :  { %9833 = vmatpush1.bf16.msra.mxu1 %v9832_v30  ;;  %v5970_v30 = vld [vmem:[#allocation19 + $0x50] sm:$0xff]  ;;  %v10530_v48 = vpop.eup %10529  ;;  %10537 = vrcp.f32 %v915_v54  ;;  %v12222_v14 = vmul.f32 %v10590_v26, %v10528_v20  ;;  %v6972_v20 = vld [vmem:[#allocation25 + $0x48] sm:$0xff] }
0x1168   :  { %9991 = vmatpush3.bf16.msra.mxu0 %v9990_v9  ;;  %9835 = vmatprep.subr.bf16.mxu1 %v9834_v25  ;;  %v9896_v9 = vpack.c.bf16 %v5963_v59, %v5960_v34  ;;  %v6064_v25 = vld [vmem:[#allocation19 + $0x340] sm:$0xff]  ;;  %v12829_v45 = vld [vmem:[#allocation54_spill] sm:$0xff]  ;;  %v5991_v34 = vld [vmem:[#allocation19 + $0xf8] sm:$0xff] }
0x1169   :  { %9993 = vmatprep.subr.bf16.mxu0 %v9992_v32  ;;  %v12215_v32 = vmul.f32 %v10589_v6, %v10526_v27  ;;  %v10532_v24 = vpop.eup %10531  ;;  %v10008_v13 = vpack.c.bf16 %v6067_v8, %v6064_v25  ;;  %v5994_v27 = vld [vmem:[#allocation19 + $0x110] sm:$0xff]  ;;  %v5997_v6 = vld [vmem:[#allocation19 + $0x128] sm:$0xff] }
0x116a   :  { %6268 = vmatmul.mubr.f32.vlgmr.msra.gmra.mrb[72].mxu1 %v12166_v18  ;;  %v5961_v18 = vld [vmem:[#allocation19 + $0x8] sm:$0xff]  ;;  %v10534_v33 = vpop.eup %10533  ;;  %v6979_v25 = vld [vmem:[#allocation25 + $0x80] sm:$0xff] }
0x116b   :  { %6273 = vmatprep.mubr.f32.mxu1 %v12170_v5  ;;  %9837 = vmatpush1.bf16.msra.mxu1 %v9836_v44  ;;  %v6058_v5 = vld [vmem:[#allocation19 + $0x310] sm:$0xff]  ;;  %v9894_v61 = vpack.c.bf16 %v5964_v28, %v5961_v18  ;;  %v9900_v44 = vpack.c.bf16 %v5969_v63, %v5966_v52  ;;  %v5993_v63 = vld [vmem:[#allocation19 + $0x108] sm:$0xff] }
0x116c   :  { %9995 = vmatpush3.bf16.msra.mxu0 %v9994_v23  ;;  %9839 = vmatprep.subr.bf16.mxu1 %v9838_v43  ;;  %v10004_v2 = vpack.c.bf16 %v6061_v41, %v6058_v5  ;;  %v12226_v23 = vmul.f32 %v10530_v48, %v12828_v21  ;;  %v6070_v43 = vld [vmem:[#allocation19 + $0x370] sm:$0xff]  ;;  %v10536_v37 = vpop.eup %10535  ;;  %v6973_v41 = vld [vmem:[#allocation25 + $0x50] sm:$0xff]  ;;  %v9914_v48 = vpack.c.bf16 %v5994_v27, %v5991_v34  ;;  %v6996_v27 = vld [vmem:[#allocation25 + $0x108] sm:$0xff] }
0x116d   :  { %9997 = vmatprep.subr.bf16.mxu0 %v9996_v11  ;;  %v12233_v11 = vmul.f32 %v10591_v53, %v10532_v24  ;;  %v10012_v10 = vpack.c.bf16 %v6073_v0, %v6070_v43  ;;  %v6963_v18 = vld [vmem:[#allocation25] sm:$0xff]  ;;  %v6966_v28 = vld [vmem:[#allocation25 + $0x18] sm:$0xff]  ;;  %v6000_v24 = vld [vmem:[#allocation19 + $0x140] sm:$0xff] }
0x116e   :  { %6274 = vmatmul.mubr.f32.gmra.mrb[74].mxu1 %v12177_v3  ;;  %v5967_v3 = vld [vmem:[#allocation19 + $0x38] sm:$0xff]  ;;  %v12239_v55 = vmul.f32 %v10534_v33, %v12226_v23  ;;  %v10020_v59 = vpack.c.bf16 %v6966_v28, %v6963_v18  ;;  %v5990_v52 = vld [vmem:[#allocation19 + $0xf0] sm:$0xff]  ;;  %v9918_v43 = vpack.c.bf16 %v6000_v24, %v5997_v6  ;;  %v5996_v0 = vld [vmem:[#allocation19 + $0x120] sm:$0xff] }
0x116f   :  { %9841 = vmatpush1.bf16.msra.mxu1 %v9840_v15  ;;  %6344 = vmatprep.mubr.f32.mxu1 %v12827_v38  ;;  %v9898_v50 = vpack.c.bf16 %v5970_v30, %v5967_v3  ;;  %v6967_v15 = vld [vmem:[#allocation25 + $0x20] sm:$0xff]  ;;  %v6969_v30 = vld [vmem:[#allocation25 + $0x30] sm:$0xff]  ;;  %v9916_v21 = vpack.c.bf16 %v5993_v63, %v5990_v52  ;;  %v6994_v18 = vld [vmem:[#allocation25 + $0xf8] sm:$0xff] }
0x1170   :  { %9999 = vmatpush3.bf16.msra.mxu0 %v9998_v19  ;;  %9844 = vmatprep.subr.msk.bf16.mxu1 %vm11514_vm3, %v9842_v29  ;;  %v9906_v29 = vpack.c.bf16 %v5982_v57, %v5979_v35  ;;  %v10018_v1 = vpack.c.bf16 %v6967_v15, %v6964_v16  ;;  %v5999_v33 = vld [vmem:[#allocation19 + $0x138] sm:$0xff]  ;;  %v6006_v53 = vld [vmem:[#allocation19 + $0x170] sm:$0xff]  ;;  %v6981_v35 = vld [vmem:[#allocation25 + $0x90] sm:$0xff] }
0x1171   :  { %10001 = vmatprep.subr.bf16.mxu0 %v10000_v17  ;;  %v5988_v17 = vld [vmem:[#allocation19 + $0xe0] sm:$0xff]  ;;  %v10538_v5 = vpop.eup %10537  ;;  %v9920_v16 = vpack.c.bf16 %v5999_v33, %v5996_v0  ;;  %v7002_v24 = vld [vmem:[#allocation25 + $0x138] sm:$0xff] }
0x1172   :  { %v9910_v54 = vpack.c.bf16 %v5988_v17, %v5985_v46  ;;  %v6984_v57 = vld [vmem:[#allocation25 + $0xa8] sm:$0xff]  ;;  %v6987_v17 = vld [vmem:[#allocation25 + $0xc0] sm:$0xff]  ;;  %v6997_v28 = vld [vmem:[#allocation25 + $0x110] sm:$0xff] }
0x1173   :  { %9847 = vmatpush1.bf16.msk.msra.mxu1 %vm11514_vm3, %v9845_v60  ;;  %v9908_v60 = vpack.c.bf16 %v5981_v36, %v5978_v22  ;;  %v6009_v22 = vld [vmem:[#allocation19 + $0x188] sm:$0xff]  ;;  %v10032_v36 = vpack.c.bf16 %v6984_v57, %v6981_v35  ;;  %v6012_v46 = vld [vmem:[#allocation19 + $0x1a0] sm:$0xff]  ;;  %v10038_v34 = vpack.c.bf16 %v6997_v28, %v6994_v18  ;;  %v6030_v33 = vld [vmem:[#allocation19 + $0x230] sm:$0xff] }
0x1174   :  { %10003 = vmatpush3.bf16.msra.mxu0 %v10002_v56  ;;  %9895 = vmatprep.subr.bf16.mxu1 %v9894_v61  ;;  %v5984_v56 = vld [vmem:[#allocation19 + $0xc0] sm:$0xff]  ;;  %v5987_v61 = vld [vmem:[#allocation19 + $0xd8] sm:$0xff] }
0x1175   :  { %10005 = vmatprep.subr.bf16.mxu0 %v10004_v2  ;;  %v9912_v8 = vpack.c.bf16 %v5987_v61, %v5984_v56  ;;  %v6018_v61 = vld [vmem:[#allocation19 + $0x1d0] sm:$0xff]  ;;  %v6024_v63 = vld [vmem:[#allocation19 + $0x200] sm:$0xff] }
0x1176   :  { %8304 = vmatmul.mubr.msk.f32.vlgmr.msra.gmra.mrb[72].mxu1 %vm1925_vm4, %v12022_v12  ;;  %v5972_v12 = vld [vmem:[#allocation19 + $0x60] sm:$0xff]  ;;  %v7015_v35 = vld [vmem:[#allocation25 + $0x1a0] sm:$0xff] }
0x1177   :  { %6741 = vmatmul.mubr.f32.vlgmr.msra.gmra.mrb[58].mxu0 %v12215_v32  ;;  %9897 = vmatpush1.bf16.msra.mxu1 %v9896_v9  ;;  %v9904_v19 = vpack.c.bf16 %v5975_v7, %v5972_v12  ;;  %v6976_v9 = vld [vmem:[#allocation25 + $0x68] sm:$0xff] }
0x1178   :  { %6745 = vmatprep.mubr.f32.mxu0 %v12222_v14  ;;  %10007 = vmatpush3.bf16.msra.mxu0 %v10004_v2  ;;  %v10026_v26 = vpack.c.bf16 %v6979_v25, %v6976_v9  ;;  %v6003_v12 = vld [vmem:[#allocation19 + $0x158] sm:$0xff]  ;;  %v6014_v25 = vld [vmem:[#allocation19 + $0x1b0] sm:$0xff]  ;;  %v6032_v28 = vld [vmem:[#allocation19 + $0x240] sm:$0xff] }
0x1179   :  { %6350 = vmatprep.mubr.f32.mxu1 %v12827_v38  ;;  %9899 = vmatprep.subr.bf16.mxu1 %v9898_v50  ;;  %v10024_v50 = vpack.c.bf16 %v6972_v20, %v6969_v30  ;;  %v9922_v15 = vpack.c.bf16 %v6006_v53, %v6003_v12  ;;  %v7003_v30 = vld [vmem:[#allocation25 + $0x140] sm:$0xff]  ;;  %v7008_v53 = vld [vmem:[#allocation25 + $0x168] sm:$0xff] }
0x117a   :  { %8305 = vmatmul.mubr.msk.f32.gmra.mrb[74].mxu1 %vm1925_vm4, %v12020_v58  ;;  %10009 = vmatprep.subr.bf16.mxu0 %v10008_v13  ;;  %v12243_v58 = vmul.f32 %v10536_v37, %v12829_v45  ;;  %v6988_v37 = vld [vmem:[#allocation25 + $0xc8] sm:$0xff] }
0x117b   :  { %6746 = vmatmul.mubr.f32.gmra.mrb[60].mxu0 %v12233_v11  ;;  %9901 = vmatpush1.bf16.msra.mxu1 %v9900_v44  ;;  %v6985_v44 = vld [vmem:[#allocation25 + $0xb0] sm:$0xff] }
0x117c   :  { %6586 = vmatprep.mubr.f32.mxu1 %v12197_v42  ;;  %10011 = vmatpush3.bf16.msra.mxu0 %v10008_v13  ;;  %v6970_v42 = vld [vmem:[#allocation25 + $0x38] sm:$0xff]  ;;  %v12252_v2 = vmul.f32 %v10538_v5, %v12243_v58  ;;  %v6975_v13 = vld [vmem:[#allocation25 + $0x60] sm:$0xff] }
0x117d   :  { %8769 = vmatprep.mubr.msk.f32.mxu0 %vm1925_vm4, %v12239_v55  ;;  %9903 = vmatprep.subr.bf16.mxu1 %v9902_v40  ;;  %v10022_v3 = vpack.c.bf16 %v6973_v41, %v6970_v42  ;;  %v10028_v7 = vpack.c.bf16 %v6978_v51, %v6975_v13  ;;  %v10030_v40 = vpack.c.bf16 %v6985_v44, %v6982_v31  ;;  %v6008_v41 = vld [vmem:[#allocation19 + $0x180] sm:$0xff] }
0x117e   :  { %10014 = vmatprep.subr.msk.bf16.mxu0 %vm11514_vm3, %v10012_v10  ;;  %v9926_v42 = vpack.c.bf16 %v6012_v46, %v6009_v22  ;;  %v7009_v13 = vld [vmem:[#allocation25 + $0x170] sm:$0xff]  ;;  %v7014_v46 = vld [vmem:[#allocation25 + $0x198] sm:$0xff] }
0x117f   :  { %9905 = vmatpush1.bf16.msra.mxu1 %v9904_v19  ;;  %v6002_v19 = vld [vmem:[#allocation19 + $0x150] sm:$0xff]  ;;  %v6020_v44 = vld [vmem:[#allocation19 + $0x1e0] sm:$0xff] }
0x1180   :  { %10017 = vmatpush3.bf16.msk.msra.mxu0 %vm11514_vm3, %v10012_v10  ;;  %9907 = vmatprep.subr.bf16.mxu1 %v9906_v29  ;;  %v6991_v10 = vld [vmem:[#allocation25 + $0xe0] sm:$0xff]  ;;  %v6005_v29 = vld [vmem:[#allocation19 + $0x168] sm:$0xff] }
0x1181   :  { %10019 = vmatprep.subr.bf16.mxu0 %v10018_v1  ;;  %v10034_v45 = vpack.c.bf16 %v6991_v10, %v6988_v37  ;;  %v6990_v1 = vld [vmem:[#allocation25 + $0xd8] sm:$0xff]  ;;  %v9924_v5 = vpack.c.bf16 %v6005_v29, %v6002_v19  ;;  %v6036_v29 = vld [vmem:[#allocation19 + $0x260] sm:$0xff] }
0x1182   :  { %v10036_v56 = vpack.c.bf16 %v6990_v1, %v6987_v17  ;;  %v6026_v10 = vld [vmem:[#allocation19 + $0x210] sm:$0xff]  ;;  %v7021_v17 = vld [vmem:[#allocation25 + $0x1d0] sm:$0xff] }
0x1183   :  { %8770 = vmatmul.mubr.msk.f32.vlgmr.msra.gmra.mrb[56].mxu0 %vm1925_vm4, %v12252_v2  ;;  %9909 = vmatpush1.bf16.msra.mxu1 %v9908_v60  ;;  %v6011_v60 = vld [vmem:[#allocation19 + $0x198] sm:$0xff] }
0x1184   :  { %9911 = vmatprep.subr.bf16.mxu1 %v9910_v54  ;;  %10021 = vmatpush1.bf16.msra.mxu0 %v10020_v59  ;;  %v6015_v54 = vld [vmem:[#allocation19 + $0x1b8] sm:$0xff]  ;;  %v6993_v59 = vld [vmem:[#allocation25 + $0xf0] sm:$0xff]  ;;  %v9928_v20 = vpack.c.bf16 %v6011_v60, %v6008_v41  ;;  %v6042_v60 = vld [vmem:[#allocation19 + $0x290] sm:$0xff] }
0x1185   :  { %10023 = vmatprep.subr.bf16.mxu0 %v10022_v3  ;;  %v7000_v3 = vld [vmem:[#allocation25 + $0x128] sm:$0xff]  ;;  %v9930_v9 = vpack.c.bf16 %v6018_v61, %v6015_v54  ;;  %v10040_v52 = vpack.c.bf16 %v6996_v27, %v6993_v59  ;;  %v7027_v59 = vld [vmem:[#allocation25 + $0x200] sm:$0xff] }
0x1186   :  { %v10042_v6 = vpack.c.bf16 %v7003_v30, %v7000_v3  ;;  %v7020_v61 = vld [vmem:[#allocation25 + $0x1c8] sm:$0xff]  ;;  %v6038_v30 = vld [vmem:[#allocation19 + $0x270] sm:$0xff] }
0x1187   :  { %9913 = vmatpush1.bf16.msra.mxu1 %v9912_v8  ;;  %v6017_v8 = vld [vmem:[#allocation19 + $0x1c8] sm:$0xff] }
0x1188   :  { %9915 = vmatprep.subr.bf16.mxu1 %v9914_v48  ;;  %10025 = vmatpush1.bf16.msra.mxu0 %v10024_v50  ;;  %v6021_v48 = vld [vmem:[#allocation19 + $0x1e8] sm:$0xff]  ;;  %v6999_v50 = vld [vmem:[#allocation25 + $0x120] sm:$0xff]  ;;  %v9932_v51 = vpack.c.bf16 %v6017_v8, %v6014_v25  ;;  %v6048_v8 = vld [vmem:[#allocation19 + $0x2c0] sm:$0xff] }
0x1189   :  { %10027 = vmatprep.subr.bf16.mxu0 %v10026_v26  ;;  %v7006_v26 = vld [vmem:[#allocation25 + $0x158] sm:$0xff]  ;;  %v9934_v31 = vpack.c.bf16 %v6024_v63, %v6021_v48  ;;  %v10044_v0 = vpack.c.bf16 %v7002_v24, %v6999_v50  ;;  %v7033_v50 = vld [vmem:[#allocation25 + $0x230] sm:$0xff] }
0x118a   :  { %v10046_v12 = vpack.c.bf16 %v7009_v13, %v7006_v26  ;;  %v7026_v63 = vld [vmem:[#allocation25 + $0x1f8] sm:$0xff]  ;;  %v6044_v13 = vld [vmem:[#allocation19 + $0x2a0] sm:$0xff] }
0x118b   :  { %9917 = vmatpush1.bf16.msra.mxu1 %v9916_v21  ;;  %v6023_v21 = vld [vmem:[#allocation19 + $0x1f8] sm:$0xff] }
0x118c   :  { %9919 = vmatprep.subr.bf16.mxu1 %v9918_v43  ;;  %10029 = vmatpush1.bf16.msra.mxu0 %v10028_v7  ;;  %v6027_v43 = vld [vmem:[#allocation19 + $0x218] sm:$0xff]  ;;  %v7005_v7 = vld [vmem:[#allocation25 + $0x150] sm:$0xff]  ;;  %v9936_v57 = vpack.c.bf16 %v6023_v21, %v6020_v44  ;;  %v6054_v21 = vld [vmem:[#allocation19 + $0x2f0] sm:$0xff] }
0x118d   :  { %10031 = vmatprep.subr.bf16.mxu0 %v10030_v40  ;;  %v7012_v40 = vld [vmem:[#allocation25 + $0x188] sm:$0xff]  ;;  %v9938_v37 = vpack.c.bf16 %v6030_v33, %v6027_v43  ;;  %v10048_v19 = vpack.c.bf16 %v7008_v53, %v7005_v7  ;;  %v7039_v7 = vld [vmem:[#allocation25 + $0x260] sm:$0xff] }
0x118e   :  { %v10050_v22 = vpack.c.bf16 %v7015_v35, %v7012_v40  ;;  %v7032_v33 = vld [vmem:[#allocation25 + $0x228] sm:$0xff]  ;;  %v6050_v35 = vld [vmem:[#allocation19 + $0x2d0] sm:$0xff] }
0x118f   :  { %9921 = vmatpush1.bf16.msra.mxu1 %v9920_v16  ;;  %v6029_v16 = vld [vmem:[#allocation19 + $0x228] sm:$0xff] }
0x1190   :  { %9923 = vmatprep.subr.bf16.mxu1 %v9922_v15  ;;  %10033 = vmatpush1.bf16.msra.mxu0 %v10032_v36  ;;  %v6033_v15 = vld [vmem:[#allocation19 + $0x248] sm:$0xff]  ;;  %v7011_v36 = vld [vmem:[#allocation25 + $0x180] sm:$0xff]  ;;  %v9940_v1 = vpack.c.bf16 %v6029_v16, %v6026_v10  ;;  %v6060_v16 = vld [vmem:[#allocation19 + $0x320] sm:$0xff] }
0x1191   :  { %10035 = vmatprep.subr.bf16.mxu0 %v10034_v45  ;;  %v7018_v45 = vld [vmem:[#allocation25 + $0x1b8] sm:$0xff]  ;;  %v9942_v18 = vpack.c.bf16 %v6036_v29, %v6033_v15  ;;  %v10052_v41 = vpack.c.bf16 %v7014_v46, %v7011_v36  ;;  %v7045_v36 = vld [vmem:[#allocation25 + $0x290] sm:$0xff] }
0x1192   :  { %v10054_v54 = vpack.c.bf16 %v7021_v17, %v7018_v45  ;;  %v7038_v29 = vld [vmem:[#allocation25 + $0x258] sm:$0xff]  ;;  %v6056_v17 = vld [vmem:[#allocation19 + $0x300] sm:$0xff] }
0x1193   :  { %9925 = vmatpush1.bf16.msra.mxu1 %v9924_v5  ;;  %v6035_v5 = vld [vmem:[#allocation19 + $0x258] sm:$0xff] }
0x1194   :  { %9927 = vmatprep.subr.bf16.mxu1 %v9926_v42  ;;  %10037 = vmatpush1.bf16.msra.mxu0 %v10036_v56  ;;  %v6039_v42 = vld [vmem:[#allocation19 + $0x278] sm:$0xff]  ;;  %v7017_v56 = vld [vmem:[#allocation25 + $0x1b0] sm:$0xff]  ;;  %v9944_v27 = vpack.c.bf16 %v6035_v5, %v6032_v28  ;;  %v6066_v5 = vld [vmem:[#allocation19 + $0x350] sm:$0xff] }
0x1195   :  { %10039 = vmatprep.subr.bf16.mxu0 %v10038_v34  ;;  %v7024_v34 = vld [vmem:[#allocation25 + $0x1e8] sm:$0xff]  ;;  %v9946_v3 = vpack.c.bf16 %v6042_v60, %v6039_v42  ;;  %v10056_v25 = vpack.c.bf16 %v7020_v61, %v7017_v56  ;;  %v7051_v56 = vld [vmem:[#allocation25 + $0x2c0] sm:$0xff] }
0x1196   :  { %v10058_v48 = vpack.c.bf16 %v7027_v59, %v7024_v34  ;;  %v7044_v60 = vld [vmem:[#allocation25 + $0x288] sm:$0xff]  ;;  %v6062_v59 = vld [vmem:[#allocation19 + $0x330] sm:$0xff] }
0x1197   :  { %9929 = vmatpush1.bf16.msra.mxu1 %v9928_v20  ;;  %v6041_v20 = vld [vmem:[#allocation19 + $0x288] sm:$0xff] }
0x1198   :  { %9931 = vmatprep.subr.bf16.mxu1 %v9930_v9  ;;  %10041 = vmatpush1.bf16.msra.mxu0 %v10040_v52  ;;  %v6045_v9 = vld [vmem:[#allocation19 + $0x2a8] sm:$0xff]  ;;  %v7023_v52 = vld [vmem:[#allocation25 + $0x1e0] sm:$0xff]  ;;  %v9948_v24 = vpack.c.bf16 %v6041_v20, %v6038_v30  ;;  %v6072_v20 = vld [vmem:[#allocation19 + $0x380] sm:$0xf] }
0x1199   :  { %10043 = vmatprep.subr.bf16.mxu0 %v10042_v6  ;;  %v7030_v6 = vld [vmem:[#allocation25 + $0x218] sm:$0xff]  ;;  %v9950_v26 = vpack.c.bf16 %v6048_v8, %v6045_v9  ;;  %v10060_v44 = vpack.c.bf16 %v7026_v63, %v7023_v52  ;;  %v7057_v52 = vld [vmem:[#allocation25 + $0x2f0] sm:$0xff] }
0x119a   :  { %v10062_v43 = vpack.c.bf16 %v7033_v50, %v7030_v6  ;;  %v7050_v8 = vld [vmem:[#allocation25 + $0x2b8] sm:$0xff]  ;;  %v6068_v50 = vld [vmem:[#allocation19 + $0x360] sm:$0xff] }
0x119b   :  { %9933 = vmatpush1.bf16.msra.mxu1 %v9932_v51  ;;  %v6047_v51 = vld [vmem:[#allocation19 + $0x2b8] sm:$0xff] }
0x119c   :  { %9935 = vmatprep.subr.bf16.mxu1 %v9934_v31  ;;  %10045 = vmatpush1.bf16.msra.mxu0 %v10044_v0  ;;  %v6051_v31 = vld [vmem:[#allocation19 + $0x2d8] sm:$0xff]  ;;  %v7029_v0 = vld [vmem:[#allocation25 + $0x210] sm:$0xff]  ;;  %v9952_v53 = vpack.c.bf16 %v6047_v51, %v6044_v13 }
0x119d   :  { %10047 = vmatprep.subr.bf16.mxu0 %v10046_v12  ;;  %v7036_v12 = vld [vmem:[#allocation25 + $0x248] sm:$0xff]  ;;  %v9954_v40 = vpack.c.bf16 %v6054_v21, %v6051_v31  ;;  %v10064_v10 = vpack.c.bf16 %v7032_v33, %v7029_v0  ;;  %v6965_v33 = vld [vmem:[#allocation25 + $0x10] sm:$0xff] }
0x119e   :  { %v10066_v15 = vpack.c.bf16 %v7039_v7, %v7036_v12  ;;  %v7016_v51 = vld [vmem:[#allocation25 + $0x1a8] sm:$0xff] }
0x119f   :  { %9937 = vmatpush1.bf16.msra.mxu1 %v9936_v57  ;;  %v6053_v57 = vld [vmem:[#allocation19 + $0x2e8] sm:$0xff]  ;;  %v7056_v21 = vld [vmem:[#allocation25 + $0x2e8] sm:$0xff] }
0x11a0   :  { %9939 = vmatprep.subr.bf16.mxu1 %v9938_v37  ;;  %10049 = vmatpush1.bf16.msra.mxu0 %v10048_v19  ;;  %v6057_v37 = vld [vmem:[#allocation19 + $0x308] sm:$0xff]  ;;  %v7035_v19 = vld [vmem:[#allocation25 + $0x240] sm:$0xff]  ;;  %v9956_v46 = vpack.c.bf16 %v6053_v57, %v6050_v35  ;;  %v6968_v12 = vld [vmem:[#allocation25 + $0x28] sm:$0xff] }
0x11a1   :  { %10051 = vmatprep.subr.bf16.mxu0 %v10050_v22  ;;  %v7042_v22 = vld [vmem:[#allocation25 + $0x278] sm:$0xff]  ;;  %v9958_v45 = vpack.c.bf16 %v6060_v16, %v6057_v37  ;;  %v10068_v28 = vpack.c.bf16 %v7038_v29, %v7035_v19  ;;  %v6971_v37 = vld [vmem:[#allocation25 + $0x40] sm:$0xff]  ;;  %v7025_v16 = vld [vmem:[#allocation25 + $0x1f0] sm:$0xff] }
0x11a2   :  { %v10070_v42 = vpack.c.bf16 %v7045_v36, %v7042_v22  ;;  %v6977_v22 = vld [vmem:[#allocation25 + $0x70] sm:$0xff]  ;;  %v6980_v36 = vld [vmem:[#allocation25 + $0x88] sm:$0xff] }
0x11a3   :  { %9941 = vmatpush1.bf16.msra.mxu1 %v9940_v1  ;;  %v6059_v1 = vld [vmem:[#allocation19 + $0x318] sm:$0xff] }
0x11a4   :  { %9943 = vmatprep.subr.bf16.mxu1 %v9942_v18  ;;  %10053 = vmatpush1.bf16.msra.mxu0 %v10052_v41  ;;  %v6063_v18 = vld [vmem:[#allocation19 + $0x338] sm:$0xff]  ;;  %v7041_v41 = vld [vmem:[#allocation25 + $0x270] sm:$0xff]  ;;  %v9960_v61 = vpack.c.bf16 %v6059_v1, %v6056_v17  ;;  %v10106_v17 = vpack.c.bf16 %v6980_v36, %v6977_v22 }
0x11a5   :  { %10055 = vmatprep.subr.bf16.mxu0 %v10054_v54  ;;  %v7048_v54 = vld [vmem:[#allocation25 + $0x2a8] sm:$0xff]  ;;  %v9962_v34 = vpack.c.bf16 %v6066_v5, %v6063_v18  ;;  %v10072_v30 = vpack.c.bf16 %v7044_v60, %v7041_v41  ;;  %v6983_v18 = vld [vmem:[#allocation25 + $0xa0] sm:$0xff]  ;;  %v6989_v60 = vld [vmem:[#allocation25 + $0xd0] sm:$0xff] }
0x11a6   :  { %v10074_v9 = vpack.c.bf16 %v7051_v56, %v7048_v54  ;;  %v7040_v5 = vld [vmem:[#allocation25 + $0x268] sm:$0xff]  ;;  %v7043_v56 = vld [vmem:[#allocation25 + $0x280] sm:$0xff]  ;;  %v7069_v36 = vld [vmem:[#allocation25 + $0x350] sm:$0xff] }
0x11a7   :  { %9945 = vmatpush1.bf16.msra.mxu1 %v9944_v27  ;;  %v6065_v27 = vld [vmem:[#allocation19 + $0x348] sm:$0xff]  ;;  %v6992_v54 = vld [vmem:[#allocation25 + $0xe8] sm:$0xff] }
0x11a8   :  { %9947 = vmatprep.subr.bf16.mxu1 %v9946_v3  ;;  %10057 = vmatpush1.bf16.msra.mxu0 %v10056_v25  ;;  %v6069_v3 = vld [vmem:[#allocation19 + $0x368] sm:$0xff]  ;;  %v7047_v25 = vld [vmem:[#allocation25 + $0x2a0] sm:$0xff]  ;;  %v9964_v63 = vpack.c.bf16 %v6065_v27, %v6062_v59 }
0x11a9   :  { %10059 = vmatprep.subr.bf16.mxu0 %v10058_v48  ;;  %v7054_v48 = vld [vmem:[#allocation25 + $0x2d8] sm:$0xff]  ;;  %v9966_v6 = vpack.c.bf16 %v6072_v20, %v6069_v3  ;;  %v10076_v13 = vpack.c.bf16 %v7050_v8, %v7047_v25  ;;  %v6995_v59 = vld [vmem:[#allocation25 + $0x100] sm:$0xff]  ;;  %v7049_v3 = vld [vmem:[#allocation25 + $0x2b0] sm:$0xff] }
0x11aa   :  { %v10078_v31 = vpack.c.bf16 %v7057_v52, %v7054_v48  ;;  %v6998_v27 = vld [vmem:[#allocation25 + $0x118] sm:$0xff]  ;;  %v7001_v25 = vld [vmem:[#allocation25 + $0x130] sm:$0xff]  ;;  %v7004_v8 = vld [vmem:[#allocation25 + $0x148] sm:$0xff] }
0x11ab   :  { %9949 = vmatpush1.bf16.msra.mxu1 %v9948_v24  ;;  %v6071_v24 = vld [vmem:[#allocation19 + $0x378] sm:$0xf]  ;;  %v10118_v20 = vpack.c.bf16 %v6998_v27, %v6995_v59  ;;  %v7058_v52 = vld [vmem:[#allocation25 + $0x2f8] sm:$0xff]  ;;  %v7073_v59 = vld [vmem:[#allocation25 + $0x370] sm:$0xff] }
0x11ac   :  { %9951 = vmatprep.subr.bf16.mxu1 %v9950_v26  ;;  %10061 = vmatpush1.bf16.msra.mxu0 %v10060_v44  ;;  %v7013_v26 = vld [vmem:[#allocation25 + $0x190] sm:$0xff]  ;;  %v7055_v48 = vld [vmem:[#allocation25 + $0x2e0] sm:$0xff]  ;;  %v7076_v27 = vld [vmem:[#allocation25 + $0x388] sm:$0xf] }
0x11ad   :  { %10063 = vmatprep.subr.bf16.mxu0 %v10062_v43  ;;  %v7053_v44 = vld [vmem:[#allocation25 + $0x2d0] sm:$0xff]  ;;  %v7063_v43 = vld [vmem:[#allocation25 + $0x320] sm:$0xff]  ;;  %v10096_v0 = vpack.c.bf16 %v7016_v51, %v7013_v26 }
0x11ae   :  { %v10080_v7 = vpack.c.bf16 %v7056_v21, %v7053_v44  ;;  %v7061_v26 = vld [vmem:[#allocation25 + $0x310] sm:$0xff] }
0x11af   :  { %9953 = vmatpush1.bf16.msra.mxu1 %v9952_v53  ;;  %v7019_v53 = vld [vmem:[#allocation25 + $0x1c0] sm:$0xff]  ;;  %v12269_v44 = vld [vmem:[#allocation5 + $0xf] sm:$0x7] }
0x11b0   :  { %9955 = vmatprep.subr.bf16.mxu1 %v9954_v40  ;;  %10065 = vmatpush1.bf16.msra.mxu0 %v10064_v10  ;;  %v7022_v40 = vld [vmem:[#allocation25 + $0x1d8] sm:$0xff]  ;;  %v12273_v21 = vrot.slane %v12269_v44, %v11528_v49 }
0x11b1   :  { %10067 = vmatprep.subr.bf16.mxu0 %v10066_v15  ;;  %v10100_v57 = vpack.c.bf16 %v7022_v40, %v7019_v53  ;;  %v6974_v10 = vld [vmem:[#allocation25 + $0x58] sm:$0xff]  ;;  %v7028_v15 = vld [vmem:[#allocation25 + $0x208] sm:$0xff] }
0x11b2   :  { %v10102_v19 = vpack.c.bf16 %v6974_v10, %v6971_v37  ;;  %v10104_v29 = vpack.c.bf16 %v7028_v15, %v7025_v16  ;;  %v7062_v37 = vld [vmem:[#allocation25 + $0x318] sm:$0xff] }
0x11b3   :  { %9957 = vmatpush1.bf16.msra.mxu1 %v9956_v46  ;;  %v7031_v46 = vld [vmem:[#allocation25 + $0x220] sm:$0xff]  ;;  %v7066_v10 = vld [vmem:[#allocation25 + $0x338] sm:$0xff] }
0x11b4   :  { %9959 = vmatprep.subr.bf16.mxu1 %v9958_v45  ;;  %10069 = vmatpush1.bf16.msra.mxu0 %v10068_v28  ;;  %v7034_v45 = vld [vmem:[#allocation25 + $0x238] sm:$0xff] }
0x11b5   :  { %10071 = vmatprep.subr.bf16.mxu0 %v10070_v42  ;;  %v10108_v1 = vpack.c.bf16 %v7034_v45, %v7031_v46  ;;  %v6986_v28 = vld [vmem:[#allocation25 + $0xb8] sm:$0xff]  ;;  %v7067_v46 = vld [vmem:[#allocation25 + $0x340] sm:$0xff] }
0x11b6   :  { %6587 = vmatmul.mubr.f32.vlgmr.msra.gmra.mrb[72].mxu1 %v12215_v32  ;;  %v7060_v32 = vld [vmem:[#allocation25 + $0x308] sm:$0xff]  ;;  %v10110_v42 = vpack.c.bf16 %v6986_v28, %v6983_v18  ;;  %v7070_v45 = vld [vmem:[#allocation25 + $0x358] sm:$0xff] }
0x11b7   :  { %6592 = vmatprep.mubr.f32.mxu1 %v12222_v14  ;;  %9961 = vmatpush1.bf16.msra.mxu1 %v9960_v61  ;;  %v9969_v14 = vpack.c.bf16 %v6071_v24, %v6068_v50  ;;  %v10082_v35 = vpack.c.bf16 %v7063_v43, %v7060_v32  ;;  %v7046_v61 = vld [vmem:[#allocation25 + $0x298] sm:$0xff]  ;;  %v7007_v50 = vld [vmem:[#allocation25 + $0x160] sm:$0xff]  ;;  %v12830_v32 = vld [vmem:[#allocation48_spill] sm:$0xff] }
0x11b8   :  { %9963 = vmatprep.subr.bf16.mxu1 %v9962_v34  ;;  %10073 = vmatpush1.bf16.msra.mxu0 %v10072_v30  ;;  %v10114_v34 = vpack.c.bf16 %v6992_v54, %v6989_v60  ;;  %v7052_v30 = vld [vmem:[#allocation25 + $0x2c8] sm:$0xff]  ;;  %v7010_v24 = vld [vmem:[#allocation25 + $0x178] sm:$0xff]  ;;  %v1436_v43 = vadd.f32 %v12830_v32, %v12273_v21  ;;  %v10132_v60 = vpack.c.bf16 %v7070_v45, %v7067_v46  ;;  %v7065_v54 = vld [vmem:[#allocation25 + $0x330] sm:$0xff] }
0x11b9   :  { %10075 = vmatprep.subr.bf16.mxu0 %v10074_v9  ;;  %v10120_v9 = vpack.c.bf16 %v7052_v30, %v7049_v3  ;;  %v10126_v51 = vpack.c.bf16 %v7010_v24, %v7007_v50  ;;  %v1355_v3 = vrot.slane %v12269_v44, %v11525_v47  ;;  %v6899_v50 = vld [vmem:[#allocation23 + $0x190] sm:$0xff]  ;;  %v6902_v24 = vld [vmem:[#allocation23 + $0x1a8] sm:$0xff]  ;;  %v6849_v32 = vld [vmem:[#allocation23] sm:$0xff] }
0x11ba   :  { %6593 = vmatmul.mubr.f32.gmra.mrb[74].mxu1 %v12233_v11  ;;  %v10098_v11 = vpack.c.bf16 %v6968_v12, %v6965_v33  ;;  %v6858_v46 = vld [vmem:[#allocation23 + $0x48] sm:$0xff]  ;;  %v6857_v45 = vld [vmem:[#allocation23 + $0x40] sm:$0xff] }
0x11bb   :  { %9965 = vmatpush1.bf16.msra.mxu1 %v9964_v63  ;;  %6663 = vmatprep.mubr.f32.mxu1 %v12827_v38  ;;  %v10122_v63 = vpack.c.bf16 %v7004_v8, %v7001_v25  ;;  %v7071_v8 = vld [vmem:[#allocation25 + $0x360] sm:$0xff] }
0x11bc   :  { %9968 = vmatprep.subr.msk.bf16.mxu1 %vm11514_vm3, %v9966_v6  ;;  %10077 = vmatpush1.bf16.msra.mxu0 %v10076_v13  ;;  %v10124_v6 = vpack.c.bf16 %v7058_v52, %v7055_v48  ;;  %v7064_v13 = vld [vmem:[#allocation25 + $0x328] sm:$0xff]  ;;  %v7074_v48 = vld [vmem:[#allocation25 + $0x378] sm:$0xf] }
0x11bd   :  { %10079 = vmatprep.subr.bf16.mxu0 %v10078_v31  ;;  %v10128_v31 = vpack.c.bf16 %v7064_v13, %v7061_v26  ;;  %v6850_v52 = vld [vmem:[#allocation23 + $0x8] sm:$0xff]  ;;  %v12831_v26 = vld [vmem:[#allocation47_spill] sm:$0xff] }
0x11be   :  { %v1434_v13 = vadd.f32 %v12831_v26, %v1355_v3 }
0x11bf   :  { %9971 = vmatpush1.bf16.msk.msra.mxu1 %vm11514_vm3, %v9969_v14  ;;  %v8227_v14 = vmul.f32 -1.442695, %v1436_v43  ;;  %v12832_v43 = vld [vmem:[#allocation50_spill] sm:$0xff] }
0x11c0   :  { %10097 = vmatprep.subr.bf16.mxu1 %v10096_v0  ;;  %10081 = vmatpush1.bf16.msra.mxu0 %v10080_v7  ;;  %v5626_v0 = vld [vmem:[#allocation17] sm:$0x7] }
0x11c1   :  { %10083 = vmatprep.subr.bf16.mxu0 %v10082_v35  ;;  %10539 = vpow2.f32 %v8227_v14  ;;  %v5639_v12 = vrot.slane %v5626_v0, %v11535_v62  ;;  %v5635_v35 = vrot.slane %v5626_v0, %v11528_v49  ;;  %v1442_v14 = vadd.f32 %v12832_v43, %v12273_v21  ;;  %v6908_v21 = vld [vmem:[#allocation23 + $0x1d8] sm:$0xff]  ;;  %v6869_v43 = vld [vmem:[#allocation23 + $0xa0] sm:$0xff] }
0x11c2   :  { %8311 = vmatmul.mubr.msk.f32.vlgmr.msra.gmra.mrb[72].mxu1 %vm1925_vm4, %v12239_v55  ;;  %v7037_v55 = vld [vmem:[#allocation25 + $0x250] sm:$0xff] }
0x11c3   :  { %6669 = vmatprep.mubr.f32.mxu1 %v12827_v38  ;;  %10099 = vmatpush3.bf16.msra.mxu1 %v10098_v11  ;;  %v10112_v41 = vpack.c.bf16 %v7040_v5, %v7037_v55  ;;  %v5631_v11 = vrot.slane %v5626_v0, %v11525_v47  ;;  %v5877_v22 = vadd.f32 %v12135_v4, %v5639_v12  ;;  %v7072_v4 = vld [vmem:[#allocation25 + $0x368] sm:$0xff] }
0x11c4   :  { %10101 = vmatprep.subr.bf16.mxu1 %v10100_v57  ;;  %v7059_v57 = vld [vmem:[#allocation25 + $0x300] sm:$0xff] }
0x11c5   :  { %v10084_v5 = vpack.c.bf16 %v7062_v37, %v7059_v57  ;;  %v8226_v57 = vmul.f32 -1.442695, %v1434_v13  ;;  %v12833_v37 = vld [vmem:[#allocation49_spill] sm:$0xff] }
0x11c6   :  { %8312 = vmatmul.mubr.msk.f32.gmra.mrb[74].mxu1 %vm1925_vm4, %v12252_v2  ;;  %v10116_v2 = vpack.c.bf16 %v7046_v61, %v7043_v56  ;;  %v7068_v56 = vld [vmem:[#allocation25 + $0x348] sm:$0xff] }
0x11c7   :  { %10103 = vmatpush3.bf16.msra.mxu1 %v10102_v19 }
0x11c8   :  { %10105 = vmatprep.subr.bf16.mxu1 %v10104_v29 }
0x11cb   :  { %10107 = vmatpush3.bf16.msra.mxu1 %v10106_v17  ;;  %v10540_v7 = vpop.eup %10539 }
0x11cc   :  { %10109 = vmatprep.subr.bf16.mxu1 %v10108_v1  ;;  %v1538_v16 = vadd.f32 1.0, %v10540_v7  ;;  %v6851_v7 = vld [vmem:[#allocation23 + $0x10] sm:$0xff] }
0x11ce   :  { %10541 = vrcp.f32 %v1538_v16 }
0x11cf   :  { %10111 = vmatpush3.bf16.msra.mxu1 %v10110_v42  ;;  %10543 = vpow2.f32 %v8226_v57  ;;  %v6876_v57 = vld [vmem:[#allocation23 + $0xd8] sm:$0xff] }
0x11d0   :  { %10113 = vmatprep.subr.bf16.mxu1 %v10112_v41  ;;  %v10086_v41 = vpack.c.bf16 %v7069_v36, %v7066_v10  ;;  %v1440_v10 = vadd.f32 %v12833_v37, %v1355_v3  ;;  %v6855_v36 = vld [vmem:[#allocation23 + $0x30] sm:$0xff]  ;;  %v6861_v3 = vld [vmem:[#allocation23 + $0x60] sm:$0xff] }
0x11d1   :  { %v6875_v37 = vld [vmem:[#allocation23 + $0xd0] sm:$0xff] }
0x11d3   :  { %10115 = vmatpush3.bf16.msra.mxu1 %v10114_v34  ;;  %v7075_v34 = vld [vmem:[#allocation25 + $0x380] sm:$0xf] }
0x11d4   :  { %10117 = vmatprep.subr.bf16.mxu1 %v10116_v2  ;;  %v10090_v25 = vpack.c.bf16 %v7075_v34, %v7072_v4  ;;  %v6914_v4 = vld [vmem:[#allocation23 + $0x208] sm:$0xff]  ;;  %v8229_v34 = vmul.f32 -1.442695, %v1440_v10 }
0x11d7   :  { %10119 = vmatpush3.bf16.msra.mxu1 %v10118_v20  ;;  %v10088_v20 = vpack.c.bf16 %v7068_v56, %v7065_v54  ;;  %v12316_v54 = vld [vmem:[%s12815_s16 + $0x8] sm:$0xff] }
0x11d8   :  { %10121 = vmatprep.subr.bf16.mxu1 %v10120_v9 }
0x11db   :  { %10123 = vmatpush3.bf16.msra.mxu1 %v10122_v63  ;;  %v10136_v63 = vpack.c.bf16 %v7076_v27, %v7073_v59 }
0x11dc   :  { %10125 = vmatprep.subr.bf16.mxu1 %v10124_v6  ;;  %v6853_v6 = vld [vmem:[#allocation23 + $0x20] sm:$0xff] }
0x11dd   :  { %v10142_v0 = vpack.c.bf16 %v6853_v6, %v6850_v52  ;;  %v6917_v52 = vld [vmem:[#allocation23 + $0x220] sm:$0xff]  ;;  %v12836_v6 = vld [vmem:[#allocation51_spill] sm:$0xff] }
0x11df   :  { %10127 = vmatpush3.bf16.msra.mxu1 %v10126_v51  ;;  %v12290_v51 = vrot.slane %v12269_v44, %v11535_v62  ;;  %v6856_v44 = vld [vmem:[#allocation23 + $0x38] sm:$0xff] }
0x11e0   :  { %10129 = vmatprep.subr.bf16.mxu1 %v10128_v31 }
0x11f9   :  { %v8451_v33 = vpop.f32.mrb[68].mxu1 }
0x11fa   :  { %v8452_v53 = vpop.f32.mrb[69].mxu1 }
0x11fb   :  { %v8453_v40 = vadd.f32 %v8452_v53, %v8451_v33  ;;  %v10220_v33 = vpack.c.bf16 %v6902_v24, %v6899_v50  ;;  %v6854_v53 = vld [vmem:[#allocation23 + $0x28] sm:$0xff]  ;;  %v1516_v50 = vadd.f32 %v12836_v6, %v12290_v51  ;;  %v6885_v6 = vld [vmem:[#allocation23 + $0x120] sm:$0xff] }
0x11fd   :  { %v5799_v15 = vpop.f32.mrb[48].mxu0  ;;  %v5882_v19 = vadd.f32 %v8453_v40, %v5639_v12  ;;  %v8741_v29 = vpop.f32.mrb[70].mxu1  ;;  %v6852_v12 = vld [vmem:[#allocation23 + $0x18] sm:$0xff]  ;;  %v6859_v40 = vld [vmem:[#allocation23 + $0x50] sm:$0xff] }
0x11fe   :  { %v5801_v17 = vpop.f32.mrb[49].mxu0  ;;  %v5951_v1 = vpop.f32.mrb[71].mxu1  ;;  %v10306_v42 = vadd.f32 %v5799_v15, %v5631_v11  ;;  %v10144_v16 = vpack.c.bf16 %v6852_v12, %v6849_v32  ;;  %v10222_v15 = vpack.c.bf16 %v6854_v53, %v6851_v7  ;;  %v6870_v32 = vld [vmem:[#allocation23 + $0xa8] sm:$0xff]  ;;  %v6877_v7 = vld [vmem:[#allocation23 + $0xe0] sm:$0xff]  ;;  %v6923_v53 = vld [vmem:[#allocation23 + $0x250] sm:$0xff] }
0x11ff   :  { %v12281_v18 = vadd.f32 %v8741_v29, %v5882_v19  ;;  %v10307_v28 = vadd.f32 %v5801_v17, %v5635_v35  ;;  %v12283_v55 = vadd.f32 %v5951_v1, %v5877_v22  ;;  %v8230_v19 = vmul.f32 -1.442695, %v1442_v14  ;;  %v12834_v29 = vld [vmem:[#allocation52_spill] sm:$0xff]  ;;  %v12837_v14 = vld [vmem:[#allocation43_spill] sm:$0xff]  ;;  %v6874_v12 = vld [vmem:[#allocation23 + $0xc8] sm:$0xff] }
0x1200   :  { %v1511_v22 = vadd.f32 %v12834_v29, %v12290_v51  ;;  %v10146_v17 = vpack.c.bf16 %v6859_v40, %v6856_v44  ;;  %v6926_v51 = vld [vmem:[#allocation23 + $0x268] sm:$0xff]  ;;  %v8231_v44 = vmul.f32 -1.442695, %v1516_v50  ;;  %v6883_v29 = vld [vmem:[#allocation23 + $0x110] sm:$0xff]  ;;  %v6888_v50 = vld [vmem:[#allocation23 + $0x138] sm:$0xff] }
0x1201   :  { %v5805_v61 = vpop.f32.mrb[50].mxu0  ;;  %7156 = vmatprep.mubr.f32.mxu0 %v10307_v28  ;;  %7310 = vmatprep.mubr.f32.mxu1 %v10307_v28  ;;  %v6860_v28 = vld [vmem:[#allocation23 + $0x58] sm:$0xff]  ;;  %10545 = vpow2.f32 %v8230_v19 }
0x1202   :  { %v5807_v2 = vpop.f32.mrb[51].mxu0  ;;  %7157 = vmatmul.mubr.f32.vlgmr.msra.gmra.mrb[62].mxu0 %v10306_v42  ;;  %7311 = vmatmul.mubr.f32.vlgmr.msra.gmra.mrb[76].mxu1 %v10306_v42  ;;  %v10308_v9 = vadd.f32 %v5805_v61, %v5631_v11  ;;  %v10542_v11 = vpop.eup %10541  ;;  %v6865_v42 = vld [vmem:[#allocation23 + $0x80] sm:$0xff]  ;;  %v6911_v61 = vld [vmem:[#allocation23 + $0x1f0] sm:$0xff]  ;;  %v8228_v59 = vmul.f32 -1.442695, %v1511_v22  ;;  %v6880_v19 = vld [vmem:[#allocation23 + $0xf8] sm:$0xff] }
0x1203   :  { %v10309_v30 = vadd.f32 %v5807_v2, %v5635_v35  ;;  %10085 = vmatpush1.bf16.msra.mxu0 %v10084_v5  ;;  %10131 = vmatpush3.bf16.msra.mxu1 %v10128_v31  ;;  %v10093_v31 = vpack.c.bf16 %v7074_v48, %v7071_v8  ;;  %v6905_v35 = vld [vmem:[#allocation23 + $0x1c0] sm:$0xff]  ;;  %v6862_v5 = vld [vmem:[#allocation23 + $0x68] sm:$0xff]  ;;  %v1574_v56 = vmul.f32 %v12316_v54, %v10542_v11  ;;  %v6868_v8 = vld [vmem:[#allocation23 + $0x98] sm:$0xff]  ;;  %v10544_v10 = vpop.eup %10543 }
0x1204   :  { %10087 = vmatprep.subr.bf16.mxu0 %v10086_v41  ;;  %10133 = vmatprep.subr.bf16.mxu1 %v10132_v60  ;;  %v10224_v1 = vpack.c.bf16 %v6908_v21, %v6905_v35  ;;  %v12835_v41 = vld [vmem:[#allocation44_spill] sm:$0xff]  ;;  %v10148_v2 = vpack.c.bf16 %v6858_v46, %v6855_v36  ;;  %v10150_v27 = vpack.c.bf16 %v6865_v42, %v6862_v5  ;;  %v6871_v48 = vld [vmem:[#allocation23 + $0xb0] sm:$0xff] }
0x1205   :  { %7162 = vmatprep.mubr.f32.mxu0 %v10309_v30  ;;  %7315 = vmatprep.mubr.f32.mxu1 %v10309_v30  ;;  %v6864_v30 = vld [vmem:[#allocation23 + $0x78] sm:$0xff]  ;;  %v10154_v13 = vpack.c.bf16 %v6871_v48, %v6868_v8  ;;  %v10158_v21 = vpack.c.bf16 %v6877_v7, %v6874_v12  ;;  %v6873_v11 = vld [vmem:[#allocation23 + $0xc0] sm:$0xff]  ;;  %v10162_v5 = vpack.c.bf16 %v6883_v29, %v6880_v19  ;;  %v6879_v42 = vld [vmem:[#allocation23 + $0xf0] sm:$0xff] }
0x1206   :  { %7163 = vmatmul.mubr.f32.gmra.mrb[64].mxu0 %v10308_v9  ;;  %7316 = vmatmul.mubr.f32.gmra.mrb[78].mxu1 %v10308_v9  ;;  %v10228_v9 = vpack.c.bf16 %v6914_v4, %v6911_v61  ;;  %v10152_v24 = vpack.c.bf16 %v6864_v30, %v6861_v3  ;;  %v6929_v36 = vld [vmem:[#allocation23 + $0x280] sm:$0xff]  ;;  %v6932_v46 = vld [vmem:[#allocation23 + $0x298] sm:$0xff]  ;;  %v6935_v30 = vld [vmem:[#allocation23 + $0x2b0] sm:$0xff] }
0x1207   :  { %10089 = vmatpush1.bf16.msra.mxu0 %v10088_v20  ;;  %10135 = vmatpush3.bf16.msra.mxu1 %v10132_v60  ;;  %v8194_v60 = vmul.f32 -1.442695, %v12835_v41  ;;  %v6863_v20 = vld [vmem:[#allocation23 + $0x70] sm:$0xff]  ;;  %v6882_v41 = vld [vmem:[#allocation23 + $0x108] sm:$0xff] }
0x1208   :  { %8784 = vmatprep.mubr.msk.f32.mxu1 %vm1925_vm4, %v12283_v55  ;;  %10092 = vmatprep.subr.msk.bf16.mxu0 %vm11514_vm3, %v10090_v25  ;;  %v6866_v25 = vld [vmem:[#allocation23 + $0x88] sm:$0xff]  ;;  %v10164_v8 = vpack.c.bf16 %v6882_v41, %v6879_v42  ;;  %v6947_v19 = vld [vmem:[#allocation23 + $0x310] sm:$0xff] }
0x1209   :  { %10138 = vmatprep.subr.msk.bf16.mxu1 %vm11514_vm3, %v10136_v63  ;;  %7233 = vmatprep.mubr.f32.mxu0 %v12827_v38  ;;  %10547 = vpow2.f32 %v8194_v60  ;;  %v10230_v26 = vpack.c.bf16 %v6866_v25, %v6863_v20  ;;  %v6881_v60 = vld [vmem:[#allocation23 + $0x100] sm:$0xff]  ;;  %v6938_v20 = vld [vmem:[#allocation23 + $0x2c8] sm:$0xff]  ;;  %v6907_v41 = vld [vmem:[#allocation23 + $0x1d0] sm:$0xff] }
0x120a   :  { %10549 = vpow2.f32 %v8229_v34  ;;  %v10240_v34 = vpack.c.bf16 %v6932_v46, %v6929_v36  ;;  %v6950_v29 = vld [vmem:[#allocation23 + $0x328] sm:$0xff] }
0x120b   :  { %10095 = vmatpush1.bf16.msk.msra.mxu0 %vm11514_vm3, %v10093_v31  ;;  %10141 = vmatpush3.bf16.msk.msra.mxu1 %vm11514_vm3, %v10136_v63  ;;  %v6920_v63 = vld [vmem:[#allocation23 + $0x238] sm:$0xff]  ;;  %10551 = vpow2.f32 %v8228_v59  ;;  %v6867_v31 = vld [vmem:[#allocation23 + $0x90] sm:$0xff]  ;;  %v10546_v22 = vpop.eup %10545  ;;  %v6886_v59 = vld [vmem:[#allocation23 + $0x128] sm:$0xff] }
0x120c   :  { %10143 = vmatprep.subr.bf16.mxu0 %v10142_v0  ;;  %10221 = vmatprep.subr.bf16.mxu1 %v10220_v33  ;;  %v8197_v0 = vmul.f32 -1.442695, %v12837_v14  ;;  %v6872_v33 = vld [vmem:[#allocation23 + $0xb8] sm:$0xff]  ;;  %v10156_v40 = vpack.c.bf16 %v6870_v32, %v6867_v31  ;;  %v1541_v61 = vadd.f32 1.0, %v10546_v22  ;;  %v10244_v31 = vpack.c.bf16 %v6938_v20, %v6935_v30  ;;  %v6890_v32 = vld [vmem:[#allocation23 + $0x148] sm:$0xff]  ;;  %v6895_v14 = vld [vmem:[#allocation23 + $0x170] sm:$0xff] }
0x120d   :  { %v10234_v35 = vpack.c.bf16 %v6872_v33, %v6869_v43  ;;  %v6892_v43 = vld [vmem:[#allocation23 + $0x158] sm:$0xff]  ;;  %v6910_v20 = vld [vmem:[#allocation23 + $0x1e8] sm:$0xff] }
0x120e   :  { %8318 = vmatmul.mubr.msk.f32.vlgmr.msra.gmra.mrb[62].mxu0 %vm1925_vm4, %v12283_v55  ;;  %8785 = vmatmul.mubr.msk.f32.vlgmr.msra.gmra.mrb[80].mxu1 %vm1925_vm4, %v12281_v18  ;;  %v10226_v55 = vpack.c.bf16 %v6860_v28, %v6857_v45  ;;  %10553 = vpow2.f32 %v8197_v0  ;;  %v10160_v45 = vpack.c.bf16 %v6876_v57, %v6873_v11  ;;  %v6944_v33 = vld [vmem:[#allocation23 + $0x2f8] sm:$0xff] }
0x120f   :  { %10145 = vmatpush1.bf16.msra.mxu0 %v10144_v16  ;;  %10223 = vmatpush3.bf16.msra.mxu1 %v10222_v15  ;;  %v10236_v16 = vpack.c.bf16 %v6926_v51, %v6923_v53  ;;  %v6878_v15 = vld [vmem:[#allocation23 + $0xe8] sm:$0xff]  ;;  %10555 = vpow2.f32 %v8231_v44  ;;  %v10168_v53 = vpack.c.bf16 %v6888_v50, %v6885_v6  ;;  %v10170_v44 = vpack.c.bf16 %v6895_v14, %v6892_v43 }
0x1210   :  { %7629 = vmatprep.mubr.f32.mxu1 %v1574_v56  ;;  %7239 = vmatprep.mubr.f32.mxu0 %v12827_v38  ;;  %v10238_v28 = vpack.c.bf16 %v6878_v15, %v6875_v37  ;;  %v6896_v37 = vld [vmem:[#allocation23 + $0x178] sm:$0xff]  ;;  %v6962_v6 = vld [vmem:[#allocation23 + $0x388] sm:$0xf] }
0x1211   :  { %10147 = vmatprep.subr.bf16.mxu0 %v10146_v17  ;;  %10225 = vmatprep.subr.bf16.mxu1 %v10224_v1  ;;  %v1537_v1 = vadd.f32 1.0, %v10544_v10  ;;  %v6898_v10 = vld [vmem:[#allocation23 + $0x188] sm:$0xff] }
0x1212   :  { %8319 = vmatmul.mubr.msk.f32.gmra.mrb[64].mxu0 %vm1925_vm4, %v12281_v18  ;;  %v10232_v18 = vpack.c.bf16 %v6920_v63, %v6917_v52  ;;  %v12353_v43 = vld [vmem:[%s12815_s16 + $0x50] sm:$0xff] }
0x1213   :  { %10149 = vmatpush1.bf16.msra.mxu0 %v10148_v2  ;;  %7475 = vmatprep.mubr.f32.mxu0 %v1574_v56  ;;  %v10548_v17 = vpop.eup %10547  ;;  %v6884_v2 = vld [vmem:[#allocation23 + $0x118] sm:$0xff]  ;;  %10557 = vrcp.f32 %v1537_v1 }
0x1214   :  { %10227 = vmatpush3.bf16.msra.mxu1 %v10226_v55  ;;  %10151 = vmatprep.subr.bf16.mxu0 %v10150_v27  ;;  %v10550_v56 = vpop.eup %10549  ;;  %v6889_v55 = vld [vmem:[#allocation23 + $0x140] sm:$0xff]  ;;  %v10242_v52 = vpack.c.bf16 %v6884_v2, %v6881_v60  ;;  %10559 = vrcp.f32 %v1541_v61  ;;  %v6900_v1 = vld [vmem:[#allocation23 + $0x198] sm:$0xff]  ;;  %v6906_v2 = vld [vmem:[#allocation23 + $0x1c8] sm:$0xff] }
0x1215   :  { %10229 = vmatprep.subr.bf16.mxu1 %v10228_v9  ;;  %v10552_v27 = vpop.eup %10551  ;;  %v693_v9 = vadd.f32 1.0, %v10548_v17  ;;  %v1540_v48 = vadd.f32 1.0, %v10550_v56  ;;  %v10166_v63 = vpack.c.bf16 %v6889_v55, %v6886_v59  ;;  %v6897_v17 = vld [vmem:[#allocation23 + $0x180] sm:$0xff]  ;;  %v6956_v56 = vld [vmem:[#allocation23 + $0x358] sm:$0xff] }
0x1216   :  { %v6953_v60 = vld [vmem:[#allocation23 + $0x340] sm:$0xff]  ;;  %v12332_v55 = vld [vmem:[%s12815_s16] sm:$0xff] }
0x1217   :  { %10153 = vmatpush1.bf16.msra.mxu0 %v10152_v24  ;;  %v6887_v24 = vld [vmem:[#allocation23 + $0x130] sm:$0xff]  ;;  %10561 = vrcp.f32 %v693_v9  ;;  %v10256_v30 = vpack.c.bf16 %v6956_v56, %v6953_v60 }
0x1218   :  { %10231 = vmatpush3.bf16.msra.mxu1 %v10230_v26  ;;  %10155 = vmatprep.subr.bf16.mxu0 %v10154_v13  ;;  %v1539_v26 = vadd.f32 1.0, %v10552_v27  ;;  %v10554_v12 = vpop.eup %10553  ;;  %10563 = vrcp.f32 %v1540_v48  ;;  %v10246_v51 = vpack.c.bf16 %v6890_v32, %v6887_v24  ;;  %v6912_v32 = vld [vmem:[#allocation23 + $0x1f8] sm:$0xff] }
0x1219   :  { %10233 = vmatprep.subr.bf16.mxu1 %v10232_v18  ;;  %v6941_v18 = vld [vmem:[#allocation23 + $0x2e0] sm:$0xff]  ;;  %v10556_v11 = vpop.eup %10555  ;;  %v696_v15 = vadd.f32 1.0, %v10554_v12  ;;  %v6919_v12 = vld [vmem:[#allocation23 + $0x230] sm:$0xff] }
0x121a   :  { %10565 = vrcp.f32 %v1539_v26  ;;  %v10248_v57 = vpack.c.bf16 %v6944_v33, %v6941_v18  ;;  %v1542_v36 = vadd.f32 1.0, %v10556_v11  ;;  %v12838_v26 = vld [vmem:[#allocation45_spill] sm:$0xff]  ;;  %v6916_v33 = vld [vmem:[#allocation23 + $0x218] sm:$0xff] }
0x121b   :  { %10157 = vmatpush1.bf16.msra.mxu0 %v10156_v40  ;;  %v6891_v40 = vld [vmem:[#allocation23 + $0x150] sm:$0xff]  ;;  %10567 = vrcp.f32 %v696_v15  ;;  %v6922_v11 = vld [vmem:[#allocation23 + $0x248] sm:$0xff] }
0x121c   :  { %10235 = vmatpush3.bf16.msra.mxu1 %v10234_v35  ;;  %10159 = vmatprep.subr.bf16.mxu0 %v10158_v21  ;;  %v6894_v35 = vld [vmem:[#allocation23 + $0x168] sm:$0xff]  ;;  %v6893_v21 = vld [vmem:[#allocation23 + $0x160] sm:$0xff]  ;;  %10569 = vrcp.f32 %v1542_v36 }
0x121d   :  { %v8494_v4 = vpop.f32.mrb[52].mxu0  ;;  %10237 = vmatprep.subr.bf16.mxu1 %v10236_v16  ;;  %v6901_v16 = vld [vmem:[#allocation23 + $0x1a0] sm:$0xff]  ;;  %v10172_v22 = vpack.c.bf16 %v6894_v35, %v6891_v40  ;;  %v10250_v46 = vpack.c.bf16 %v6896_v37, %v6893_v21  ;;  %v10558_v42 = vpop.eup %10557  ;;  %v10186_v40 = vpack.c.bf16 %v6919_v12, %v6916_v33  ;;  %v6915_v35 = vld [vmem:[#allocation23 + $0x210] sm:$0xff]  ;;  %v6918_v21 = vld [vmem:[#allocation23 + $0x228] sm:$0xff] }
0x121e   :  { %v8495_v3 = vpop.f32.mrb[53].mxu0  ;;  %v10560_v61 = vpop.eup %10559  ;;  %v12335_v27 = vmul.f32 %v12332_v55, %v10558_v42  ;;  %v10188_v15 = vpack.c.bf16 %v6918_v21, %v6915_v35  ;;  %v6934_v42 = vld [vmem:[#allocation23 + $0x2a8] sm:$0xff]  ;;  %v6961_v35 = vld [vmem:[#allocation23 + $0x380] sm:$0xf] }
0x121f   :  { %v12325_v25 = vadd.f32 %v8495_v3, %v8494_v4  ;;  %10161 = vmatpush1.bf16.msra.mxu0 %v10160_v45  ;;  %v10174_v45 = vpack.c.bf16 %v6901_v16, %v6898_v10  ;;  %v10176_v4 = vpack.c.bf16 %v6900_v1, %v6897_v17  ;;  %v12839_v10 = vld [vmem:[#allocation46_spill] sm:$0xff] }
0x1220   :  { %10239 = vmatpush3.bf16.msra.mxu1 %v10238_v28  ;;  %10163 = vmatprep.subr.bf16.mxu0 %v10162_v5  ;;  %v10252_v28 = vpack.c.bf16 %v6950_v29, %v6947_v19  ;;  %v6904_v5 = vld [vmem:[#allocation23 + $0x1b8] sm:$0xff]  ;;  %v6921_v29 = vld [vmem:[#allocation23 + $0x240] sm:$0xff] }
0x1221   :  { %v8497_v13 = vpop.f32.mrb[54].mxu0  ;;  %10241 = vmatprep.subr.bf16.mxu1 %v10240_v34  ;;  %v6903_v34 = vld [vmem:[#allocation23 + $0x1b0] sm:$0xff]  ;;  %v10562_v59 = vpop.eup %10561  ;;  %v10178_v3 = vpack.c.bf16 %v6907_v41, %v6904_v5  ;;  %v6930_v5 = vld [vmem:[#allocation23 + $0x288] sm:$0xff]  ;;  %v6937_v41 = vld [vmem:[#allocation23 + $0x2c0] sm:$0xff] }
0x1222   :  { %v8498_v0 = vpop.f32.mrb[55].mxu0  ;;  %v10564_v9 = vpop.eup %10563  ;;  %v10180_v24 = vpack.c.bf16 %v6906_v2, %v6903_v34  ;;  %v10198_v56 = vpack.c.bf16 %v6937_v41, %v6934_v42  ;;  %v6940_v34 = vld [vmem:[#allocation23 + $0x2d8] sm:$0xff]  ;;  %v6943_v2 = vld [vmem:[#allocation23 + $0x2f0] sm:$0xff] }
0x1223   :  { %v12327_v7 = vadd.f32 %v8498_v0, %v8497_v13  ;;  %10165 = vmatpush1.bf16.msra.mxu0 %v10164_v8  ;;  %v12340_v8 = vld [vmem:[%s12815_s16 + $0x58] sm:$0xff]  ;;  %v12348_v13 = vmul.f32 %v10562_v59, %v12838_v26  ;;  %v12356_v14 = vmul.f32 %v12353_v43, %v10564_v9  ;;  %v6952_v26 = vld [vmem:[#allocation23 + $0x338] sm:$0xff] }
0x1224   :  { %10243 = vmatpush3.bf16.msra.mxu1 %v10242_v52  ;;  %10167 = vmatprep.subr.bf16.mxu0 %v10166_v63  ;;  %v12343_v48 = vmul.f32 %v12340_v8, %v10560_v61  ;;  %v6913_v52 = vld [vmem:[#allocation23 + $0x200] sm:$0xff]  ;;  %v6959_v63 = vld [vmem:[#allocation23 + $0x370] sm:$0xff]  ;;  %v10566_v50 = vpop.eup %10565  ;;  %v6946_v9 = vld [vmem:[#allocation23 + $0x308] sm:$0xff] }
0x1225   :  { %10245 = vmatprep.subr.bf16.mxu1 %v10244_v31  ;;  %v6909_v31 = vld [vmem:[#allocation23 + $0x1e0] sm:$0xff]  ;;  %v10182_v0 = vpack.c.bf16 %v6913_v52, %v6910_v20  ;;  %v10260_v18 = vpack.c.bf16 %v6962_v6, %v6959_v63  ;;  %v6942_v20 = vld [vmem:[#allocation23 + $0x2e8] sm:$0xff] }
0x1226   :  { %v6933_v61 = vld [vmem:[#allocation23 + $0x2a0] sm:$0xff] }
0x1227   :  { %10169 = vmatpush1.bf16.msra.mxu0 %v10168_v53  ;;  %v12359_v53 = vmul.f32 %v10566_v50, %v12348_v13  ;;  %v6949_v52 = vld [vmem:[#allocation23 + $0x320] sm:$0xff] }
0x1228   :  { %10247 = vmatpush3.bf16.msra.mxu1 %v10246_v51  ;;  %10171 = vmatprep.subr.bf16.mxu0 %v10170_v44  ;;  %v10184_v51 = vpack.c.bf16 %v6912_v32, %v6909_v31  ;;  %v10568_v44 = vpop.eup %10567  ;;  %v10206_v6 = vpack.c.bf16 %v6949_v52, %v6946_v9  ;;  %v6945_v50 = vld [vmem:[#allocation23 + $0x300] sm:$0xff]  ;;  %v6955_v31 = vld [vmem:[#allocation23 + $0x350] sm:$0xff] }
0x1229   :  { %10249 = vmatprep.subr.bf16.mxu1 %v10248_v57  ;;  %v6925_v57 = vld [vmem:[#allocation23 + $0x260] sm:$0xff]  ;;  %v10570_v37 = vpop.eup %10569  ;;  %v12367_v16 = vmul.f32 %v10568_v44, %v12839_v10  ;;  %v10210_v12 = vpack.c.bf16 %v6955_v31, %v6952_v26  ;;  %v6954_v44 = vld [vmem:[#allocation23 + $0x348] sm:$0xff] }
0x122a   :  { %v10190_v19 = vpack.c.bf16 %v6925_v57, %v6922_v11  ;;  %v7715_v31 = vld [vmem:[#allocation26] sm:$0x7] }
0x122b   :  { %10173 = vmatpush1.bf16.msra.mxu0 %v10172_v22  ;;  %v6924_v22 = vld [vmem:[#allocation23 + $0x258] sm:$0xff]  ;;  %v12372_v36 = vmul.f32 %v10570_v37, %v12367_v16 }
0x122c   :  { %10251 = vmatpush3.bf16.msra.mxu1 %v10250_v46  ;;  %10175 = vmatprep.subr.bf16.mxu0 %v10174_v45  ;;  %v6928_v46 = vld [vmem:[#allocation23 + $0x278] sm:$0xff]  ;;  %v6931_v45 = vld [vmem:[#allocation23 + $0x290] sm:$0xff]  ;;  %v10192_v17 = vpack.c.bf16 %v6924_v22, %v6921_v29 }
0x122d   :  { %10253 = vmatprep.subr.bf16.mxu1 %v10252_v28  ;;  %v10194_v1 = vpack.c.bf16 %v6931_v45, %v6928_v46  ;;  %v6960_v29 = vld [vmem:[#allocation23 + $0x378] sm:$0xf]  ;;  %v6826_v46 = vld [vmem:[#allocation22] sm:$0x7] }
0x122e   :  { %v6835_v39 = vrot.slane %v6826_v46, %v11528_v49 }
0x122f   :  { %7630 = vmatmul.mubr.f32.vlgmr.msra.gmra.mrb[82].mxu1 %v12335_v27  ;;  %10177 = vmatpush1.bf16.msra.mxu0 %v10176_v4  ;;  %v6936_v4 = vld [vmem:[#allocation23 + $0x2b8] sm:$0xff] }
0x1230   :  { %7634 = vmatprep.mubr.f32.mxu1 %v12343_v48  ;;  %10255 = vmatpush3.bf16.msra.mxu1 %v10252_v28  ;;  %v6927_v28 = vld [vmem:[#allocation23 + $0x270] sm:$0xff]  ;;  %v10200_v59 = vpack.c.bf16 %v6936_v4, %v6933_v61 }
0x1231   :  { %10179 = vmatprep.subr.bf16.mxu0 %v10178_v3  ;;  %10257 = vmatprep.subr.bf16.mxu1 %v10256_v30  ;;  %v10196_v60 = vpack.c.bf16 %v6930_v5, %v6927_v28  ;;  %v10202_v3 = vpack.c.bf16 %v6943_v2, %v6940_v34  ;;  %v6831_v28 = vrot.slane %v6826_v46, %v11525_v47 }
0x1233   :  { %7635 = vmatmul.mubr.f32.gmra.mrb[84].mxu1 %v12356_v14  ;;  %10181 = vmatpush1.bf16.msra.mxu0 %v10180_v24  ;;  %v6948_v24 = vld [vmem:[#allocation23 + $0x318] sm:$0xff] }
0x1234   :  { %10259 = vmatpush3.bf16.msra.mxu1 %v10256_v30  ;;  %8799 = vmatprep.mubr.msk.f32.mxu1 %vm1925_vm4, %v12359_v53  ;;  %v6939_v30 = vld [vmem:[#allocation23 + $0x2d0] sm:$0xff] }
0x1235   :  { %10183 = vmatprep.subr.bf16.mxu0 %v10182_v0  ;;  %10262 = vmatprep.subr.msk.bf16.mxu1 %vm11514_vm3, %v10260_v18  ;;  %v10204_v63 = vpack.c.bf16 %v6942_v20, %v6939_v30 }
0x1237   :  { %10185 = vmatpush1.bf16.msra.mxu0 %v10184_v51  ;;  %v6951_v51 = vld [vmem:[#allocation23 + $0x330] sm:$0xff] }
0x1238   :  { %10265 = vmatpush3.bf16.msk.msra.mxu1 %vm11514_vm3, %v10260_v18  ;;  %10187 = vmatprep.subr.bf16.mxu0 %v10186_v40  ;;  %v10208_v18 = vpack.c.bf16 %v6948_v24, %v6945_v50  ;;  %v6958_v40 = vld [vmem:[#allocation23 + $0x368] sm:$0xff]  ;;  %v10212_v37 = vpack.c.bf16 %v6954_v44, %v6951_v51 }
0x123b   :  { %8800 = vmatmul.mubr.msk.f32.vlgmr.msra.gmra.mrb[80].mxu1 %vm1925_vm4, %v12372_v36  ;;  %10189 = vmatpush1.bf16.msra.mxu0 %v10188_v15  ;;  %v10214_v15 = vpack.c.bf16 %v6961_v35, %v6958_v40 }
0x123c   :  { %10191 = vmatprep.subr.bf16.mxu0 %v10190_v19  ;;  %v6957_v19 = vld [vmem:[#allocation23 + $0x360] sm:$0xff] }
0x123d   :  { %v10217_v45 = vpack.c.bf16 %v6960_v29, %v6957_v19  ;;  %v7724_v29 = vrot.slane %v7715_v31, %v11528_v49 }
0x123f   :  { %10193 = vmatpush1.bf16.msra.mxu0 %v10192_v17 }
0x1240   :  { %10195 = vmatprep.subr.bf16.mxu0 %v10194_v1 }
0x1243   :  { %10197 = vmatpush1.bf16.msra.mxu0 %v10196_v60 }
0x1244   :  { %10199 = vmatprep.subr.bf16.mxu0 %v10198_v56 }
0x1247   :  { %10201 = vmatpush1.bf16.msra.mxu0 %v10200_v59 }
0x1248   :  { %10203 = vmatprep.subr.bf16.mxu0 %v10202_v3 }
0x124a   :  { %v8540_v32 = vpop.f32.mrb[58].mxu0 }
0x124b   :  { %v8541_v0 = vpop.f32.mrb[59].mxu0  ;;  %10205 = vmatpush1.bf16.msra.mxu0 %v10204_v63 }
0x124c   :  { %v8542_v33 = vadd.f32 %v8541_v0, %v8540_v32  ;;  %10207 = vmatprep.subr.bf16.mxu0 %v10206_v6  ;;  %v7728_v0 = vrot.slane %v7715_v31, %v11535_v62 }
0x124e   :  { %v8543_v21 = vpop.f32.mrb[60].mxu0  ;;  %7476 = vmatmul.mubr.f32.vlgmr.msra.gmra.mrb[62].mxu0 %v12335_v27  ;;  %v10312_v11 = vadd.f32 %v8542_v33, %v12325_v25  ;;  %v6839_v25 = vrot.slane %v6826_v46, %v11535_v62 }
0x124f   :  { %v8544_v57 = vpop.f32.mrb[61].mxu0  ;;  %7481 = vmatprep.mubr.f32.mxu0 %v12343_v48  ;;  %10209 = vmatpush1.bf16.msra.mxu0 %v10208_v18 }
0x1250   :  { %v8545_v10 = vadd.f32 %v8544_v57, %v8543_v21  ;;  %10211 = vmatprep.subr.bf16.mxu0 %v10210_v12 }
0x1252   :  { %7482 = vmatmul.mubr.f32.gmra.mrb[64].mxu0 %v12356_v14  ;;  %v10310_v22 = vadd.f32 %v8545_v10, %v12327_v7 }
0x1253   :  { %10213 = vmatpush1.bf16.msra.mxu0 %v10212_v37  ;;  %7552 = vmatprep.mubr.f32.mxu0 %v12827_v38 }
0x1254   :  { %10216 = vmatprep.subr.msk.bf16.mxu0 %vm11514_vm3, %v10214_v15 }
0x1256   :  { %v8771_v27 = vpop.f32.mrb[56].mxu0 }
0x1257   :  { %v10311_v48 = vadd.f32 %v10310_v22, %v8771_v27  ;;  %v6817_v17 = vpop.f32.mrb[57].mxu0  ;;  %10219 = vmatpush1.bf16.msk.msra.mxu0 %vm11514_vm3, %v10217_v45 }
0x1258   :  { %v10313_v1 = vadd.f32 %v10312_v11, %v6817_v17  ;;  %v7862_v17 = vld [vmem:[#allocation29] sm:$0x1f] }
0x1259   :  { %v12387_v14 = vadd.f32 %v10311_v48, %v6839_v25  ;;  %v7798_v48 = vld [vmem:[#allocation28] sm:$0x1f] }
0x125a   :  { %v12389_v7 = vadd.f32 %v10313_v1, %v6839_v25  ;;  %8325 = vmatmul.mubr.msk.f32.vlgmr.msra.gmra.mrb[62].mxu0 %vm1925_vm4, %v12359_v53  ;;  %v7803_v1 = vrot.slane %v7798_v48, %v11525_v47 }
0x125b   :  { %7558 = vmatprep.mubr.f32.mxu0 %v12827_v38 }
0x125e   :  { %8326 = vmatmul.mubr.msk.f32.gmra.mrb[64].mxu0 %vm1925_vm4, %v12372_v36 }
0x1295   :  { %v6665_v5 = vpop.f32.mrb[72].mxu1 }
0x1296   :  { %v6843_v42 = vadd.f32 %v6831_v28, %v6665_v5  ;;  %v6667_v41 = vpop.f32.mrb[73].mxu1  ;;  %v7867_v5 = vrot.slane %v7862_v17, %v11525_v47 }
0x1297   :  { %v6844_v56 = vadd.f32 %v6835_v39, %v6667_v41  ;;  %v7807_v41 = vrot.slane %v7798_v48, %v11528_v49 }
0x1298   :  { %7744 = vrot.lane.b32.xlu0 %v6843_v42, %s11072_s7  ;;  %v7871_v42 = vrot.slane %v7862_v17, %v11528_v49 }
0x1299   :  { %v6671_v60 = vpop.f32.mrb[74].mxu1 }
0x129a   :  { %v6846_v61 = vadd.f32 %v6831_v28, %v6671_v60  ;;  %v6673_v4 = vpop.f32.mrb[75].mxu1  ;;  %v7811_v60 = vrot.slane %v7798_v48, %v11535_v62 }
0x129b   :  { %v6847_v38 = vadd.f32 %v6835_v39, %v6673_v4  ;;  %v7875_v39 = vrot.slane %v7862_v17, %v11535_v62 }
0x129c   :  { %7746 = vrot.lane.b32.xlu0 %v6844_v56, %s11072_s7  ;;  %7750 = vrot.lane.b32.xlu1 %v6846_v61, %s11072_s7 }
0x12a0   :  { %7752 = vrot.lane.b32.xlu1 %v6847_v38, %s11072_s7  ;;  %v7826_v38 = vmul.f32 %v12316_v54, %v7807_v41 }
0x12d5   :  { %v8586_v53 = vpop.f32.mrb[76].mxu1 }
0x12d6   :  { %v8587_v36 = vpop.f32.mrb[77].mxu1 }
0x12d7   :  { %v8588_v34 = vadd.f32 %v8587_v36, %v8586_v53  ;;  %v12840_v36 = vld [vmem:[#allocation56_spill] sm:$0xff] }
0x12d9   :  { %v8589_v2 = vpop.f32.mrb[78].mxu1 }
0x12da   :  { %v8590_v59 = vpop.f32.mrb[79].mxu1 }
0x12db   :  { %v8591_v3 = vadd.f32 %v8590_v59, %v8589_v2  ;;  %v12841_v2 = vld [vmem:[#allocation55_spill] sm:$0xff] }
0x12dc   :  { %v7883_v59 = vrot.slane %v7862_v17, %v12841_v2 }
0x1302   :  { %v8632_v30 = vpop.f32.mrb[82].mxu1 }
0x1303   :  { %v8633_v20 = vpop.f32.mrb[83].mxu1 }
0x1304   :  { %v8634_v9 = vadd.f32 %v8633_v20, %v8632_v30  ;;  %v12486_v30 = vld [vmem:[%s12822_s15 + $0x50] sm:$0xff]  ;;  %v12492_v20 = vld [vmem:[%s12822_s15 + $0x58] sm:$0xff] }
0x1306   :  { %v8635_v52 = vpop.f32.mrb[84].mxu1  ;;  %v10316_v63 = vadd.f32 %v8634_v9, %v8588_v34  ;;  %v7879_v34 = vrot.slane %v7862_v17, %v12840_v36  ;;  %v7895_v9 = vmul.f32 %v12492_v20, %v7871_v42 }
0x1307   :  { %v8636_v6 = vpop.f32.mrb[85].mxu1 }
0x1308   :  { %v8637_v50 = vadd.f32 %v8636_v6, %v8635_v52 }
0x130a   :  { %v7745_v24 = vpop.permute.xlu0 %7744  ;;  %v10314_v26 = vadd.f32 %v8637_v50, %v8591_v3  ;;  %v7815_v3 = vrot.slane %v7798_v48, %v12840_v36 }
0x130b   :  { %v12404_v32 = vsel %vm1925_vm4, %v12348_v13, %v7745_v24 }
0x130c   :  { %8043 = vst [vmem:[%s12815_s16 + $0x10] sm:$0xff] %v12404_v32  ;;  %v7827_v52 = vmul.f32 %v7811_v60, %v12404_v32 }
0x130e   :  { %v8801_v18 = vpop.f32.mrb[80].mxu1  ;;  %v12411_v33 = vpop.permute.xlu0 %7746 }
0x130f   :  { %v10315_v12 = vadd.f32 %v10314_v26, %v8801_v18  ;;  %v12415_v51 = vsel %vm1925_vm4, %v7745_v24, %v12411_v33  ;;  %v7751_v44 = vpop.permute.xlu1 %7750  ;;  %v7706_v40 = vpop.f32.mrb[81].mxu1  ;;  %v7819_v18 = vrot.slane %v7798_v48, %v12841_v2 }
0x1310   :  { %8044 = vst [vmem:[%s12815_s16 + $0x18] sm:$0xff] %v12415_v51  ;;  %v12423_v13 = vsel %vm1925_vm4, %v12367_v16, %v7751_v44  ;;  %v10317_v35 = vadd.f32 %v10316_v63, %v7706_v40  ;;  %v7720_v16 = vrot.slane %v7715_v31, %v11525_v47  ;;  %v12467_v47 = vld [vmem:[%s12822_s15 + $0x8] sm:$0xff] }
0x1311   :  { %v7737_v21 = vadd.f32 %v10315_v12, %v7728_v0  ;;  %8054 = vst [vmem:[%s12815_s16 + $0x60] sm:$0xff] %v12423_v13  ;;  %v7890_v49 = vmul.f32 %v12467_v47, %v7871_v42 }
0x1312   :  { %v7734_v11 = vadd.f32 %v10317_v35, %v7728_v0  ;;  %v7828_v35 = vmul.f32 %v7815_v3, %v12415_v51 }
0x1313   :  { %v12429_v57 = vpop.permute.xlu1 %7752  ;;  %7784 = vrot.lane.b32.xlu1 %v7737_v21, %s11072_s7 }
0x1314   :  { %v12434_v37 = vsel %vm1925_vm4, %v7751_v44, %v12429_v57  ;;  %7778 = vrot.lane.b32.xlu0 %v7734_v11, %s11072_s7  ;;  %v7830_v11 = vmul.f32 %v12353_v43, %v7803_v1 }
0x1315   :  { %8055 = vst [vmem:[%s12815_s16 + $0x68] sm:$0xff] %v12434_v37  ;;  %v7833_v42 = vmul.f32 %v7815_v3, %v12434_v37 }
0x132d   :  { %v7554_v10 = vpop.f32.mrb[62].mxu0 }
0x132e   :  { %v7732_v15 = vadd.f32 %v7720_v16, %v7554_v10  ;;  %v7556_v19 = vpop.f32.mrb[63].mxu0  ;;  %v7832_v10 = vmul.f32 %v7811_v60, %v12423_v13 }
0x132f   :  { %v7733_v46 = vadd.f32 %v7724_v29, %v7556_v19 }
0x1330   :  { %7774 = vrot.lane.b32.xlu0 %v7732_v15, %s11072_s7 }
0x1331   :  { %v7560_v22 = vpop.f32.mrb[64].mxu0 }
0x1332   :  { %v7735_v45 = vadd.f32 %v7720_v16, %v7560_v22  ;;  %v7562_v25 = vpop.f32.mrb[65].mxu0  ;;  %v7831_v16 = vmul.f32 %v12340_v8, %v7807_v41 }
0x1333   :  { %v7736_v27 = vadd.f32 %v7724_v29, %v7562_v25 }
0x1334   :  { %7776 = vrot.lane.b32.xlu0 %v7733_v46, %s11072_s7  ;;  %7780 = vrot.lane.b32.xlu1 %v7735_v45, %s11072_s7  ;;  %v7843_v41 = vadd.f32 %v7831_v16, %v7830_v11 }
0x1338   :  { %7748 = vrot.lane.b32.xlu0 %v12389_v7, %s11072_s7  ;;  %7782 = vrot.lane.b32.xlu1 %v7736_v27, %s11072_s7  ;;  %v7825_v7 = vmul.f32 %v12332_v55, %v7803_v1 }
0x133a   :  { %v7835_v24 = vadd.f32 %v7826_v38, %v7825_v7 }
0x133c   :  { %7754 = vrot.lane.b32.xlu1 %v12387_v14, %s11072_s7  ;;  %v12461_v14 = vld [vmem:[%s12822_s15] sm:$0xff]  ;;  %v7836_v46 = vadd.f32 %v7835_v24, %v7827_v52 }
0x133d   :  { %v7889_v4 = vmul.f32 %v12461_v14, %v7867_v5 }
0x133f   :  { %v7899_v50 = vadd.f32 %v7890_v49, %v7889_v4  ;;  %v7844_v49 = vadd.f32 %v7843_v41, %v7832_v10 }
0x1341   :  { %v7845_v36 = vadd.f32 %v7844_v49, %v7833_v42 }
0x1385   :  { %v7785_v56 = vpop.permute.xlu1 %7784 }
0x1386   :  { %v7779_v28 = vpop.permute.xlu0 %7778 }
0x13a2   :  { %v7775_v61 = vpop.permute.xlu0 %7774 }
0x13a3   :  { %v12473_v62 = vsel %vm1925_vm4, %v12226_v23, %v7775_v61  ;;  %v7894_v23 = vmul.f32 %v12486_v30, %v7867_v5  ;;  %v7837_v5 = vadd.f32 %v7836_v46, %v7828_v35 }
0x13a4   :  { %v7891_v53 = vmul.f32 %v7875_v39, %v12473_v62  ;;  %8116 = vst [vmem:[%s12822_s15 + $0x10] sm:$0xff] %v12473_v62 }
0x13a5   :  { %v7906_v21 = vadd.f32 %v7895_v9, %v7894_v23 }
0x13a6   :  { %v7777_v63 = vpop.permute.xlu0 %7776  ;;  %v7781_v6 = vpop.permute.xlu1 %7780 }
0x13a7   :  { %v12497_v26 = vsel %vm1925_vm4, %v7775_v61, %v7777_v63  ;;  %v12500_v31 = vsel %vm1925_vm4, %v7777_v63, %v7779_v28  ;;  %v12504_v0 = vsel %vm1925_vm4, %v12243_v58, %v7781_v6  ;;  %v7900_v58 = vadd.f32 %v7899_v50, %v7891_v53 }
0x13a8   :  { %8117 = vst [vmem:[%s12822_s15 + $0x18] sm:$0xff] %v12497_v26  ;;  %v7896_v12 = vmul.f32 %v7875_v39, %v12504_v0  ;;  %8126 = vst [vmem:[%s12822_s15 + $0x60] sm:$0xff] %v12504_v0  ;;  %v7892_v44 = vmul.f32 %v7879_v34, %v12497_v26  ;;  %v7893_v40 = vmul.f32 %v7883_v59, %v12500_v31 }
0x13aa   :  { %v7749_v15 = vpop.permute.xlu0 %7748  ;;  %v7783_v19 = vpop.permute.xlu1 %7782  ;;  %v7901_v29 = vadd.f32 %v7900_v58, %v7892_v44  ;;  %v7902_v22 = vsel %vm7838_vm12, %v7893_v40, 0.0  ;;  %v7907_v48 = vadd.f32 %v7906_v21, %v7896_v12 }
0x13ab   :  { %v12525_v45 = vsel %vm1925_vm4, %v12411_v33, %v7749_v15  ;;  %v12528_v25 = vsel %vm1925_vm4, %v7781_v6, %v7783_v19  ;;  %v12531_v27 = vsel %vm1925_vm4, %v7783_v19, %v7785_v56 }
0x13ac   :  { %8127 = vst [vmem:[%s12822_s15 + $0x68] sm:$0xff] %v12528_v25  ;;  %v7903_v17 = vadd.f32 %v7902_v22, %v7901_v29  ;;  %v7829_v1 = vmul.f32 %v7819_v18, %v12525_v45  ;;  %v7897_v28 = vmul.f32 %v7879_v34, %v12528_v25  ;;  %v7898_v33 = vmul.f32 %v7883_v59, %v12531_v27 }
0x13ae   :  { %7904 = vadd.xlane.f32.xlu0 %v7903_v17  ;;  %v7755_v39 = vpop.permute.xlu1 %7754  ;;  %v7839_v7 = vsel %vm7838_vm12, %v7829_v1, 0.0  ;;  %v7908_v60 = vadd.f32 %v7907_v48, %v7897_v28  ;;  %v7909_v56 = vsel %vm7838_vm12, %v7898_v33, 0.0 }
0x13af   :  { %v12545_v61 = vsel %vm1925_vm4, %v12429_v57, %v7755_v39  ;;  %v7840_v4 = vadd.f32 %v7839_v7, %v7837_v5 }
0x13b0   :  { %v7910_v38 = vadd.f32 %v7909_v56, %v7908_v60  ;;  %v7834_v53 = vmul.f32 %v7819_v18, %v12545_v61 }
0x13b2   :  { %7841 = vadd.xlane.f32.xlu0 %v7840_v4  ;;  %7911 = vadd.xlane.f32.xlu1 %v7910_v38  ;;  %v7846_v34 = vsel %vm7838_vm12, %v7834_v53, 0.0 }
0x13b3   :  { %v7847_v2 = vadd.f32 %v7846_v34, %v7845_v36 }
0x13b6   :  { %7848 = vadd.xlane.f32.xlu0 %v7847_v2 }
0x143b   :  { %v7905_v59 = vpop.xlane.xlu0 %7904 }
0x143c   :  { %v8332_v3 = vmul.f32 -1.442695, %v7905_v59 }
0x143e   :  { %10571 = vpow2.f32 %v8332_v3 }
0x143f   :  { %v7842_v23 = vpop.xlane.xlu0 %7841  ;;  %v7912_v9 = vpop.xlane.xlu1 %7911 }
0x1440   :  { %v8330_v52 = vmul.f32 -1.442695, %v7842_v23  ;;  %v8333_v57 = vmul.f32 -1.442695, %v7912_v9 }
0x1442   :  { %10573 = vpow2.f32 %v8330_v52 }
0x1443   :  { %10575 = vpow2.f32 %v8333_v57  ;;  %v7849_v63 = vpop.xlane.xlu0 %7848 }
0x1444   :  { %v8331_v6 = vmul.f32 -1.442695, %v7849_v63 }
0x1446   :  { %10577 = vpow2.f32 %v8331_v6 }
0x1448   :  { %v10572_v50 = vpop.eup %10571 }
0x1449   :  { %v7919_v24 = vadd.f32 1.0, %v10572_v50 }
0x144b   :  { %10579 = vrcp.f32 %v7919_v24 }
0x144c   :  { %v10574_v18 = vpop.eup %10573 }
0x144d   :  { %v10576_v12 = vpop.eup %10575  ;;  %v7856_v44 = vadd.f32 1.0, %v10574_v18 }
0x144e   :  { %v7920_v40 = vadd.f32 1.0, %v10576_v12 }
0x144f   :  { %10581 = vrcp.f32 %v7856_v44 }
0x1450   :  { %v10578_v58 = vpop.eup %10577  ;;  %10583 = vrcp.f32 %v7920_v40 }
0x1451   :  { %v7857_v35 = vadd.f32 1.0, %v10578_v58 }
0x1453   :  { %10585 = vrcp.f32 %v7857_v35 }
0x1455   :  { %v12549_v21 = vpop.eup %10579 }
0x1456   :  { %v12554_v15 = vsub.f32 1.0, %v12549_v21  ;;  %v7960_v23 = vmul.f32 %v12316_v54, %v12549_v21 }
0x1458   :  { %v7970_v59 = vmul.f32 %v12467_v47, %v12554_v15  ;;  %v7972_v63 = vmul.f32 %v12554_v15, %v12497_v26 }
0x1459   :  { %v10582_v11 = vpop.eup %10581 }
0x145a   :  { %v12551_v16 = vpop.eup %10583  ;;  %v7925_v10 = vsub.f32 1.0, %v10582_v11  ;;  %v7929_v19 = vmul.f32 %v12332_v55, %v10582_v11  ;;  %v8134_v46 = vmul.f32 %v10582_v11, %v12554_v15  ;;  %v7932_v41 = vmul.f32 %v10582_v11, %v12415_v51 }
0x145b   :  { %v12559_v22 = vsub.f32 1.0, %v12551_v16  ;;  %v7930_v9 = vmul.f32 %v12316_v54, %v10582_v11  ;;  %v7980_v52 = vadd.f32 %v7970_v59, %v7960_v23  ;;  %v7931_v50 = vmul.f32 %v10582_v11, %v12404_v32 }
0x145c   :  { %v7939_v29 = vmul.f32 %v12461_v14, %v7925_v10  ;;  %v7942_v28 = vmul.f32 %v7925_v10, %v12497_v26  ;;  %v8137_v5 = vsel %vm8136_vm13, %v8134_v46, 0.0  ;;  %v7940_v3 = vmul.f32 %v12467_v47, %v7925_v10 }
0x145d   :  { %v10586_v48 = vpop.eup %10585  ;;  %v7941_v6 = vmul.f32 %v7925_v10, %v12473_v62  ;;  %v7962_v47 = vmul.f32 %v12549_v21, %v12415_v51  ;;  %v7943_v54 = vmul.f32 %v7925_v10, %v12500_v31  ;;  %v7974_v12 = vmul.f32 %v12486_v30, %v12559_v22 }
0x145e   :  { %v7949_v17 = vadd.f32 %v7939_v29, %v7929_v19  ;;  %v8135_v1 = vmul.f32 %v10586_v48, %v12559_v22  ;;  %v7926_v33 = vsub.f32 1.0, %v10586_v48  ;;  %v7952_v7 = vadd.f32 %v7942_v28, %v7932_v41 }
0x145f   :  { %v7934_v56 = vmul.f32 %v12353_v43, %v10586_v48  ;;  %v7936_v38 = vmul.f32 %v10586_v48, %v12423_v13  ;;  %v7938_v34 = vmul.f32 %v10586_v48, %v12545_v61  ;;  %v7950_v57 = vadd.f32 %v7940_v3, %v7930_v9 }
0x1460   :  { %7999 = vrot.lane.b32.xlu0 %v7949_v17, %s11073_s14  ;;  %v8138_v42 = vsel %vm8136_vm13, %v8135_v1, 0.0  ;;  %v7944_v60 = vmul.f32 %v12486_v30, %v7926_v33  ;;  %v7946_v49 = vmul.f32 %v7926_v33, %v12504_v0  ;;  %v7948_v36 = vmul.f32 %v7926_v33, %v12531_v27 }
0x1461   :  { %v8139_v39 = vadd.f32 %v8138_v42, %v8137_v5  ;;  %v7982_v24 = vadd.f32 %v7972_v63, %v7962_v47  ;;  %v7951_v18 = vadd.f32 %v7941_v6, %v7931_v50  ;;  %v7933_v26 = vmul.f32 %v10582_v11, %v12525_v45 }
0x1462   :  { %v7954_v4 = vadd.f32 %v7944_v60, %v7934_v56  ;;  %v7956_v53 = vadd.f32 %v7946_v49, %v7936_v38  ;;  %v7958_v2 = vadd.f32 %v7948_v36, %v7938_v34  ;;  %v7964_v44 = vmul.f32 %v12353_v43, %v12551_v16 }
0x1463   :  { %8140 = vadd.xlane.f32.xlu1 %v8139_v39  ;;  %v7953_v40 = vadd.f32 %v7943_v54, %v7933_v26  ;;  %v7945_v58 = vmul.f32 %v12492_v20, %v7926_v33  ;;  %v7976_v35 = vmul.f32 %v12559_v22, %v12504_v0  ;;  %v7935_v30 = vmul.f32 %v12340_v8, %v10586_v48 }
0x1464   :  { %8005 = vrot.lane.b32.xlu0 %v7952_v7, %s11073_s14  ;;  %v7984_v51 = vadd.f32 %v7974_v12, %v7964_v44  ;;  %v7966_v10 = vmul.f32 %v12551_v16, %v12423_v13  ;;  %v7947_v43 = vmul.f32 %v7926_v33, %v12528_v25  ;;  %v7978_v29 = vmul.f32 %v12559_v22, %v12531_v27 }
0x1465   :  { %v7955_v11 = vadd.f32 %v7945_v58, %v7935_v30  ;;  %v7937_v0 = vmul.f32 %v10586_v48, %v12434_v37  ;;  %v7968_v46 = vmul.f32 %v12551_v16, %v12545_v61  ;;  %v7969_v13 = vmul.f32 %v12461_v14, %v12554_v15 }
0x1466   :  { %v7986_v19 = vadd.f32 %v7976_v35, %v7966_v10  ;;  %v7959_v28 = vmul.f32 %v12332_v55, %v12549_v21  ;;  %v7971_v5 = vmul.f32 %v12554_v15, %v12473_v62  ;;  %v7961_v48 = vmul.f32 %v12549_v21, %v12404_v32 }
0x1467   :  { %v7957_v17 = vadd.f32 %v7947_v43, %v7937_v0  ;;  %v7988_v1 = vadd.f32 %v7978_v29, %v7968_v46  ;;  %v7973_v14 = vmul.f32 %v12554_v15, %v12500_v31  ;;  %v7963_v41 = vmul.f32 %v12549_v21, %v12525_v45 }
0x1468   :  { %8009 = vrot.lane.b32.xlu0 %v7954_v4, %s11073_s14  ;;  %v7979_v33 = vadd.f32 %v7969_v13, %v7959_v28  ;;  %v7981_v42 = vadd.f32 %v7971_v5, %v7961_v48  ;;  %v7975_v55 = vmul.f32 %v12492_v20, %v12559_v22  ;;  %v7965_v62 = vmul.f32 %v12340_v8, %v12551_v16 }
0x1469   :  { %v7983_v39 = vadd.f32 %v7973_v14, %v7963_v41  ;;  %v7977_v32 = vmul.f32 %v12559_v22, %v12528_v25  ;;  %v7967_v15 = vmul.f32 %v12551_v16, %v12434_v37 }
0x146a   :  { %v7985_v7 = vadd.f32 %v7975_v55, %v7965_v62 }
0x146b   :  { %v7987_v60 = vadd.f32 %v7977_v32, %v7967_v15 }
0x146c   :  { %8013 = vrot.lane.b32.xlu0 %v7956_v53, %s11073_s14 }
0x1470   :  { %8017 = vrot.lane.b32.xlu0 %v7958_v2, %s11073_s14 }
0x1474   :  { %8074 = vrot.lane.b32.xlu0 %v7980_v52, %s11073_s14  ;;  %8001 = vrot.lane.b32.xlu1 %v7950_v57, %s11073_s14 }
0x1478   :  { %8078 = vrot.lane.b32.xlu0 %v7982_v24, %s11073_s14  ;;  %8003 = vrot.lane.b32.xlu1 %v7951_v18, %s11073_s14 }
0x147c   :  { %8007 = vrot.lane.b32.xlu1 %v7953_v40, %s11073_s14  ;;  %8082 = vrot.lane.b32.xlu0 %v7984_v51, %s11073_s14 }
0x1480   :  { %8011 = vrot.lane.b32.xlu1 %v7955_v11, %s11073_s14  ;;  %8086 = vrot.lane.b32.xlu0 %v7986_v19, %s11073_s14 }
0x1484   :  { %8015 = vrot.lane.b32.xlu1 %v7957_v17, %s11073_s14  ;;  %8090 = vrot.lane.b32.xlu0 %v7988_v1, %s11073_s14 }
0x1488   :  { %8072 = vrot.lane.b32.xlu1 %v7979_v33, %s11073_s14 }
0x148c   :  { %8076 = vrot.lane.b32.xlu1 %v7981_v42, %s11073_s14 }
0x1490   :  { %8080 = vrot.lane.b32.xlu1 %v7983_v39, %s11073_s14 }
0x1494   :  { %8084 = vrot.lane.b32.xlu1 %v7985_v7, %s11073_s14 }
0x1498   :  { %8088 = vrot.lane.b32.xlu1 %v7987_v60, %s11073_s14 }
0x14d2   :  { %v8000_v21 = vpop.permute.xlu0 %7999 }
0x14d3   :  { %v8039_v20 = vsel %vm7838_vm12, %v12525_v45, %v8000_v21 }
0x14d4   :  { %8045 = vst [vmem:[%s12815_s16 + $0x20] sm:$0xff] %v8039_v20 }
0x14d6   :  { %v8006_v8 = vpop.permute.xlu0 %8005 }
0x14da   :  { %v8010_v56 = vpop.permute.xlu0 %8009 }
0x14db   :  { %v8040_v25 = vsel %vm7838_vm12, %v12545_v61, %v8010_v56 }
0x14dc   :  { %8056 = vst [vmem:[%s12815_s16 + $0x70] sm:$0xff] %v8040_v25 }
0x14de   :  { %v8014_v37 = vpop.permute.xlu0 %8013 }
0x14e2   :  { %v8018_v16 = vpop.permute.xlu0 %8017 }
0x14e3   :  { %8061 = vst.msk [vmem:[%s12815_s16 + $0x98] sm:$0xff] %vm8050_vm14, %v8018_v16 }
0x14e6   :  { %v8075_v45 = vpop.permute.xlu0 %8074 }
0x14ea   :  { %v8079_v22 = vpop.permute.xlu0 %8078 }
0x14ee   :  { %v8083_v4 = vpop.permute.xlu0 %8082 }
0x14ef   :  { %v8113_v49 = vsel %vm7838_vm12, %v12531_v27, %v8083_v4 }
0x14f0   :  { %8128 = vst [vmem:[%s12822_s15 + $0x70] sm:$0xff] %v8113_v49  ;;  %v8141_v61 = vpop.xlane.xlu1 %8140 }
0x14f1   :  { %v8142_v38 = vrot.slane %v8141_v61, 4 }
0x14f2   :  { %v8087_v53 = vpop.permute.xlu0 %8086 }
0x14f3   :  { %v8143_v36 = vadd.f32 %v8142_v38, %v8141_v61 }
0x14f4   :  { %v8002_v34 = vpop.permute.xlu1 %8001 }
0x14f5   :  { %v8144_v2 = vrot.slane %v8143_v36, 2  ;;  %v8019_v59 = vsel %vm7838_vm12, %v8000_v21, %v8002_v34 }
0x14f6   :  { %8046 = vst [vmem:[%s12815_s16 + $0x28] sm:$0xff] %v8019_v59  ;;  %v8091_v3 = vpop.permute.xlu0 %8090 }
0x14f7   :  { %8133 = vst.msk [vmem:[%s12822_s15 + $0x98] sm:$0xff] %vm8050_vm14, %v8091_v3  ;;  %v8145_v27 = vadd.f32 %v8144_v2, %v8143_v36 }
0x14f8   :  { %v8004_v23 = vpop.permute.xlu1 %8003 }
0x14f9   :  { %v8020_v9 = vsel %vm7838_vm12, %v8002_v34, %v8004_v23  ;;  %v8021_v52 = vsel %vm7838_vm12, %v8004_v23, %v8006_v8  ;;  %v8146_v57 = vrot.slane %v8145_v27, 1 }
0x14fa   :  { %8047 = vst [vmem:[%s12815_s16 + $0x30] sm:$0xff] %v8020_v9  ;;  %8048 = vst [vmem:[%s12815_s16 + $0x38] sm:$0xff] %v8021_v52 }
0x14fb   :  { %v8147_v63 = vadd.f32 %v8146_v57, %v8145_v27 }
0x14fc   :  { %v8008_v6 = vpop.permute.xlu1 %8007 }
0x14fd   :  { %v8022_v47 = vsel %vm7838_vm12, %v8006_v8, %v8008_v6  ;;  %8051 = vst.msk [vmem:[%s12815_s16 + $0x48] sm:$0xff] %vm8050_vm14, %v8008_v6 }
0x14fe   :  { %10382 = vpush %v8147_v63  ;;  %8049 = vst [vmem:[%s12815_s16 + $0x40] sm:$0xff] %v8022_v47 }
0x1500   :  { %v8012_v50 = vpop.permute.xlu1 %8011 }
0x1501   :  { %v8023_v24 = vsel %vm7838_vm12, %v8010_v56, %v8012_v50  ;;  %v8024_v18 = vsel %vm7838_vm12, %v8012_v50, %v8014_v37 }
0x1502   :  { %8057 = vst [vmem:[%s12815_s16 + $0x78] sm:$0xff] %v8023_v24  ;;  %8058 = vst [vmem:[%s12815_s16 + $0x80] sm:$0xff] %v8024_v18 }
0x1504   :  { %v8016_v54 = vpop.permute.xlu1 %8015 }
0x1505   :  { %v8025_v12 = vsel %vm7838_vm12, %v8014_v37, %v8016_v54  ;;  %v8026_v26 = vsel %vm7838_vm12, %v8016_v54, %v8018_v16 }
0x1506   :  { %8059 = vst [vmem:[%s12815_s16 + $0x88] sm:$0xff] %v8025_v12  ;;  %8060 = vst [vmem:[%s12815_s16 + $0x90] sm:$0xff] %v8026_v26 }
0x1508   :  { %v8073_v44 = vpop.permute.xlu1 %8072 }
0x1509   :  { %v8092_v40 = vsel %vm7838_vm12, %v8073_v44, %v8075_v45  ;;  %v8112_v51 = vsel %vm7838_vm12, %v12500_v31, %v8073_v44 }
0x150a   :  { %8118 = vst [vmem:[%s12822_s15 + $0x20] sm:$0xff] %v8112_v51  ;;  %8119 = vst [vmem:[%s12822_s15 + $0x28] sm:$0xff] %v8092_v40 }
0x150c   :  { %v8077_v58 = vpop.permute.xlu1 %8076 }
0x150d   :  { %v8093_v35 = vsel %vm7838_vm12, %v8075_v45, %v8077_v58  ;;  %v8094_v30 = vsel %vm7838_vm12, %v8077_v58, %v8079_v22 }
0x150e   :  { %8120 = vst [vmem:[%s12822_s15 + $0x30] sm:$0xff] %v8093_v35  ;;  %8121 = vst [vmem:[%s12822_s15 + $0x38] sm:$0xff] %v8094_v30 }
0x1510   :  { %v8081_v31 = vpop.permute.xlu1 %8080 }
0x1511   :  { %v8095_v10 = vsel %vm7838_vm12, %v8079_v22, %v8081_v31  ;;  %8123 = vst.msk [vmem:[%s12822_s15 + $0x48] sm:$0xff] %vm8050_vm14, %v8081_v31 }
0x1512   :  { %8122 = vst [vmem:[%s12822_s15 + $0x40] sm:$0xff] %v8095_v10 }
0x1514   :  { %v8085_v11 = vpop.permute.xlu1 %8084 }
0x1515   :  { %v8096_v19 = vsel %vm7838_vm12, %v8083_v4, %v8085_v11  ;;  %v8097_v43 = vsel %vm7838_vm12, %v8085_v11, %v8087_v53 }
0x1516   :  { %8129 = vst [vmem:[%s12822_s15 + $0x78] sm:$0xff] %v8096_v19  ;;  %8130 = vst [vmem:[%s12822_s15 + $0x80] sm:$0xff] %v8097_v43 }
0x1518   :  { %v8089_v29 = vpop.permute.xlu1 %8088 }
0x1519   :  { %v8098_v0 = vsel %vm7838_vm12, %v8087_v53, %v8089_v29  ;;  %v8099_v46 = vsel %vm7838_vm12, %v8089_v29, %v8091_v3 }
0x151a   :  { %8131 = vst [vmem:[%s12822_s15 + $0x88] sm:$0xff] %v8098_v0  ;;  %8132 = vst [vmem:[%s12822_s15 + $0x90] sm:$0xff] %v8099_v46 }
0x152f   :  { %s10383_s2 = spop %10382 }
0x1530   :  { %v8149_v17 = vstv %s10383_s2 }
0x1531   :  { %8151 = vst.msk [vmem:[#allocation31] sm:$0x1] %vm8150_vm15, %v8149_v17 }
0x1532   :  { %11007 = shalt.err (!%p11004_p8)
}
0x1533   :  { %s12842_s20 = sld [smem:[#allocation65_spill]] }
0x1539   :  { %s11008_s30 = scalar_lea.hbm %s12842_s20, 16 }
0x153a   :  { %p11009_p9 = scmp.ne.s32.totalorder %s12842_s20, %s11008_s30  ;;  %p11012_p10 = scmp.lt.u32.totalorder %s11008_s30, %s12842_s20 }
0x153c   :  { %p11014_p11 = pnand %p11012_p10, %p11009_p9 }
0x153e   :  { %11017 = shalt.err (!%p11014_p11)
}
0x153f   :  { %8165 = dma.vmem_to_hbm [thread:$0]  %s8163_s27, 16, %s12842_s20, [#allocation4]  }
0x1540   :  { %11038 = dma.done.wait [#allocation4], 16  }
0x1541   :  { %11039 = vsyncadd [#allocation4], 4294967280 }
0x1542   :  { %8173 = vsyncpa [#allocation3], 1 }
0x1543   :  { %8174 = vsyncpa [#allocation6], 1 }
0x1544   :  { %8175 = vsyncpa [#allocation9], 1 }
0x1545   :  { %8176 = vsyncpa [#allocation12], 1 }
0x1546   :  { %8177 = vsyncpa [#allocation15], 1 }
0x1547   :  { %8178 = vsyncpa [#allocation18], 1 }
0x1548   :  { %8179 = vsyncpa [#allocation21], 1 }
0x1549   :  { %8180 = vsyncpa [#allocation24], 1 }
0x154a   :  { %8181 = vsyncpa [#allocation27], 1 }
0x154b   :  { %8182 = vsyncpa [#allocation30], 1 }
0x154c   :  { %8183 = vsyncpa [#allocation4], 1 }

</bundles_post_ra>
